<compile_context>
chip_gen: v5e
topology: v5e:2x2
jax: 0.10.0
libtpu: 0.0.40
codegen_flags: <defaults>
</compile_context>

<pallas_src>
import functools

import jax
import jax.numpy as jnp
import numpy as np
from jax.experimental import pallas as pl
from jax.experimental.pallas import tpu as pltpu


# ----------------------------------------------------------------------------
# Pallas kernel (one graph per grid step, weights resident).
# ----------------------------------------------------------------------------
def _make_gps_kernel(num_layers, num_heads, hid):
    dh = hid // num_heads
    att_scale = 1.0 / np.sqrt(dh)
    bf, f32 = jnp.bfloat16, jnp.float32

    def kernel(a_ref, x_ref,
               wpre_ref, bpre_ref,
               wgcn_ref, scl_ref, shl_ref,
               wqkv_ref, bqkv_ref, wo_ref, sca_ref, sha_ref,
               wff1_ref, bff1_ref, wff2_ref, sc2_ref, sh2_ref,
               wpost_ref, bpost_ref,
               out_ref):
        a = a_ref[...]                                   # [N, N] bf16 (normalized adj)
        x = x_ref[...]                                   # [N, Fin] bf16
        n = a.shape[0]

        # --- pre_mp: Linear + ReLU (dropout = identity in eval) ---
        h = jnp.dot(x, wpre_ref[...], preferred_element_type=f32) + bpre_ref[...]
        h = jnp.maximum(h, 0.0)                          # f32 [N, hid]

        for l in range(num_layers):
            h_in = h
            hb = h.astype(bf)

            # ---- local branch: GCNConv + residual + BN1_local ----
            # GCNConv: A_hat @ (h @ W); bias folded into the BN shift.
            hl = jnp.dot(hb, wgcn_ref[l], preferred_element_type=f32)
            hl = jnp.dot(a, hl.astype(bf), preferred_element_type=f32)
            hl = (h_in + hl) * scl_ref[l] + shl_ref[l]

            # ---- global branch: multi-head self-attention + residual + BN1_attn ----
            qkv = jnp.dot(hb, wqkv_ref[l], preferred_element_type=f32) + bqkv_ref[l]
            q = qkv[:, :hid]
            k = qkv[:, hid:2 * hid]
            v = qkv[:, 2 * hid:]
            wo_l = wo_ref[l]                             # [hid, hid] bf16
            attn = jnp.zeros((n, hid), f32)
            for hh in range(num_heads):
                lo, hi = hh * dh, (hh + 1) * dh
                qh = (q[:, lo:hi] * att_scale).astype(bf)
                kh = k[:, lo:hi].astype(bf)
                vh = v[:, lo:hi].astype(bf)
                s = jax.lax.dot_general(qh, kh, (((1,), (1,)), ((), ())),
                                        preferred_element_type=f32)    # [N, N]
                s = s - jnp.max(s, axis=-1, keepdims=True)
                e = jnp.exp(s)
                p = e / jnp.sum(e, axis=-1, keepdims=True)
                oh = jnp.dot(p.astype(bf), vh, preferred_element_type=f32)
                # output projection folded per-head: concat(heads)@Wo == sum_h oh@Wo[rows_h]
                attn = attn + jnp.dot(oh.astype(bf), wo_l[lo:hi, :],
                                      preferred_element_type=f32)
            # attn-dropout: identity (eval); output-proj bias folded into BN shift.
            ha = (h_in + attn) * sca_ref[l] + sha_ref[l]

            # ---- combine branches + FF block + BN2 ----
            hc = hl + ha
            ff = jnp.dot(hc.astype(bf), wff1_ref[l],
                         preferred_element_type=f32) + bff1_ref[l]
            ff = jnp.maximum(ff, 0.0)
            ff = jnp.dot(ff.astype(bf), wff2_ref[l], preferred_element_type=f32)
            h = (hc + ff) * sc2_ref[l] + sh2_ref[l]      # b_ff2 folded into BN2 shift

        # --- post_mp: Linear (zero-padded to lane-dense 128 output channels) ---
        out_ref[...] = (jnp.dot(h.astype(bf), wpost_ref[...],
                                preferred_element_type=f32) + bpost_ref[...])

    return kernel


def gps_forward(a_hat, x, params, *, num_heads, out_channels):
    """Batched fused GPSModel forward. a_hat: [B,N,N] bf16, x: [B,N,Fin] bf16."""
    B, N, _ = a_hat.shape
    in_c = x.shape[-1]
    hid = params["w_pre"].shape[1]
    out_pad = params["w_post"].shape[1]
    num_layers = params["w_gcn"].shape[0]

    kernel = _make_gps_kernel(num_layers, num_heads, hid)

    weight_ops = (
        params["w_pre"], params["b_pre"],
        params["w_gcn"], params["bn_scale_local"], params["bn_shift_local"],
        params["w_qkv"], params["b_qkv"], params["w_o"],
        params["bn_scale_attn"], params["bn_shift_attn"],
        params["w_ff1"], params["b_ff1"], params["w_ff2"],
        params["bn_scale2"], params["bn_shift2"],
        params["w_post"], params["b_post"],
    )

    in_specs = [
        pl.BlockSpec((None, N, N), lambda b: (b, 0, 0)),       # per-graph A_hat
        pl.BlockSpec((None, N, in_c), lambda b: (b, 0, 0)),    # per-graph node features
    ]
    # Weights: full-array blocks with constant index_map -> resident across the grid.
    for op in weight_ops:
        in_specs.append(pl.BlockSpec(op.shape, lambda b, nd=op.ndim: (0,) * nd))

    out = pl.pallas_call(
        kernel,
        out_shape=jax.ShapeDtypeStruct((B, N, out_pad), jnp.float32),
        grid=(B,),
        in_specs=in_specs,
        out_specs=pl.BlockSpec((None, N, out_pad), lambda b: (b, 0, 0)),
        compiler_params=pltpu.CompilerParams(
            dimension_semantics=("parallel",)),
    )(a_hat, x, *weight_ops)
    return out[..., :out_channels]


# ----------------------------------------------------------------------------
# Glue: dense GCN-normalized adjacency from edge_index (plain JAX).
# Matches PyG gcn_norm: duplicate edges accumulate, existing self-loops are
# replaced by exactly one weight-1 self-loop per node (add_remaining_self_loops).
# ----------------------------------------------------------------------------
def gcn_norm_dense(edge_index, num_nodes):
    src, dst = edge_index[0], edge_index[1]
    w = jnp.where(src == dst, 0.0, 1.0)                  # drop existing self-loops
    a = jnp.zeros((num_nodes, num_nodes), jnp.float32).at[dst, src].add(w)
    a = a + jnp.eye(num_nodes, dtype=jnp.float32)        # exactly one self-loop / node
    deg = jnp.sum(a, axis=1)
    d = jnp.where(deg > 0, jax.lax.rsqrt(deg), 0.0)
    return d[:, None] * a * d[None, :]                   # A_hat[dst, src]


# ----------------------------------------------------------------------------
# Deterministic parameter init (eval-mode BN folded into scale/shift; biases of
# GCN / attn-out-proj / FF2 folded into the following BN shift; post_mp padded
# to 128 lanes).
# ----------------------------------------------------------------------------
def init_params(key, in_c, hid, out_c, num_layers, num_heads, out_pad=128):
    eps = 1e-5
    keys = iter(jax.random.split(key, 64))

    def glorot(shape):
        lim = np.sqrt(6.0 / (shape[-2] + shape[-1]))
        return jax.random.uniform(next(keys), shape, jnp.float32, -lim, lim)

    def nrm(shape, s=0.1):
        return s * jax.random.normal(next(keys), shape, jnp.float32)

    def bn_fold():
        gamma = 1.0 + nrm((hid,))
        beta = nrm((hid,))
        mean = nrm((hid,))
        var = jax.random.uniform(next(keys), (hid,), jnp.float32, 0.5, 1.5)
        scale = gamma / jnp.sqrt(var + eps)
        shift = beta - mean * scale
        return scale, shift

    bf = jnp.bfloat16

    w_pre = glorot((in_c, hid))
    b_pre = nrm((1, hid))

    w_gcn, scl, shl = [], [], []
    w_qkv, b_qkv, w_o, sca, sha = [], [], [], [], []
    w_ff1, b_ff1, w_ff2, sc2, sh2 = [], [], [], [], []
    for _ in range(num_layers):
        # local GCNConv + BN1_local (GCN bias folded into shift)
        wg, bg = glorot((hid, hid)), nrm((hid,))
        s, t = bn_fold()
        w_gcn.append(wg)
        scl.append(s[None, :])
        shl.append((t + s * bg)[None, :])

        # self-attention (fused QKV) + output proj + BN1_attn (out-proj bias folded)
        wq, wk, wv = glorot((hid, hid)), glorot((hid, hid)), glorot((hid, hid))
        bq, bk, bv = nrm((hid,), 0.05), nrm((hid,), 0.05), nrm((hid,), 0.05)
        wo, bo = glorot((hid, hid)), nrm((hid,))
        s, t = bn_fold()
        w_qkv.append(jnp.concatenate([wq, wk, wv], axis=1))
        b_qkv.append(jnp.concatenate([bq, bk, bv])[None, :])
        w_o.append(wo)
        sca.append(s[None, :])
        sha.append((t + s * bo)[None, :])

        # feed-forward + BN2 (FF2 bias folded)
        wf1, bf1 = glorot((hid, 2 * hid)), nrm((2 * hid,))
        wf2, bf2 = glorot((2 * hid, hid)), nrm((hid,))
        s, t = bn_fold()
        w_ff1.append(wf1)
        b_ff1.append(bf1[None, :])
        w_ff2.append(wf2)
        sc2.append(s[None, :])
        sh2.append((t + s * bf2)[None, :])

    w_post = glorot((hid, out_c))
    b_post = nrm((out_c,))
    w_post_p = jnp.zeros((hid, out_pad), jnp.float32).at[:, :out_c].set(w_post)
    b_post_p = jnp.zeros((1, out_pad), jnp.float32).at[0, :out_c].set(b_post)

    return dict(
        w_pre=w_pre.astype(bf), b_pre=b_pre,
        w_gcn=jnp.stack(w_gcn).astype(bf),
        bn_scale_local=jnp.stack(scl), bn_shift_local=jnp.stack(shl),
        w_qkv=jnp.stack(w_qkv).astype(bf), b_qkv=jnp.stack(b_qkv),
        w_o=jnp.stack(w_o).astype(bf),
        bn_scale_attn=jnp.stack(sca), bn_shift_attn=jnp.stack(sha),
        w_ff1=jnp.stack(w_ff1).astype(bf), b_ff1=jnp.stack(b_ff1),
        w_ff2=jnp.stack(w_ff2).astype(bf),
        bn_scale2=jnp.stack(sc2), bn_shift2=jnp.stack(sh2),
        w_post=w_post_p.astype(bf), b_post=b_post_p,
    )


# ----------------------------------------------------------------------------
# Pure-JAX reference (same bf16 cast points as the kernel) for correctness check.
# ----------------------------------------------------------------------------
def gps_ref_single(a, x, p, *, num_heads):
    bf, f32 = jnp.bfloat16, jnp.float32
    hid = p["w_pre"].shape[1]
    dh = hid // num_heads
    scale = 1.0 / np.sqrt(dh)

    h = jnp.dot(x, p["w_pre"], preferred_element_type=f32) + p["b_pre"]
    h = jnp.maximum(h, 0.0)
    for l in range(p["w_gcn"].shape[0]):
        h_in = h
        hb = h.astype(bf)
        hl = jnp.dot(hb, p["w_gcn"][l], preferred_element_type=f32)
        hl = jnp.dot(a, hl.astype(bf), preferred_element_type=f32)
        hl = (h_in + hl) * p["bn_scale_local"][l] + p["bn_shift_local"][l]

        qkv = jnp.dot(hb, p["w_qkv"][l], preferred_element_type=f32) + p["b_qkv"][l]
        q, k, v = qkv[:, :hid], qkv[:, hid:2 * hid], qkv[:, 2 * hid:]
        attn = jnp.zeros((x.shape[0], hid), f32)
        for hh in range(num_heads):
            lo, hi = hh * dh, (hh + 1) * dh
            qh = (q[:, lo:hi] * scale).astype(bf)
            kh = k[:, lo:hi].astype(bf)
            vh = v[:, lo:hi].astype(bf)
            s = jax.lax.dot_general(qh, kh, (((1,), (1,)), ((), ())),
                                    preferred_element_type=f32)
            s = s - jnp.max(s, axis=-1, keepdims=True)
            e = jnp.exp(s)
            pm = e / jnp.sum(e, axis=-1, keepdims=True)
            oh = jnp.dot(pm.astype(bf), vh, preferred_element_type=f32)
            attn = attn + jnp.dot(oh.astype(bf), p["w_o"][l][lo:hi, :],
                                  preferred_element_type=f32)
        ha = (h_in + attn) * p["bn_scale_attn"][l] + p["bn_shift_attn"][l]

        hc = hl + ha
        ff = jnp.maximum(jnp.dot(hc.astype(bf), p["w_ff1"][l],
                                 preferred_element_type=f32) + p["b_ff1"][l], 0.0)
        ff = jnp.dot(ff.astype(bf), p["w_ff2"][l], preferred_element_type=f32)
        h = (hc + ff) * p["bn_scale2"][l] + p["bn_shift2"][l]
    return jnp.dot(h.astype(bf), p["w_post"], preferred_element_type=f32) + p["b_post"]


if __name__ == "__main__":
    key = jax.random.PRNGKey(0)
    k_x, k_e, k_p = jax.random.split(key, 3)

    B, N, E = 4, 64, 256                     # graphs, nodes per graph, edges per graph
    IN_C, HID, OUT_C = 16, 128, 8            # in/hidden/out channels (hidden lane-dense)
    NUM_LAYERS, NUM_HEADS = 2, 4

    x = jax.random.normal(k_x, (B, N, IN_C), jnp.float32)
    edge_index = jax.random.randint(k_e, (B, 2, E), 0, N, dtype=jnp.int32)

    params = init_params(k_p, IN_C, HID, OUT_C, NUM_LAYERS, NUM_HEADS)
    a_hat = jax.vmap(lambda ei: gcn_norm_dense(ei, N))(edge_index)

    # bf16 matmul operands (halves the dominant A_hat DMA, hits bf16 MXU peak);
    # accumulation / elementwise stays f32 inside the kernel.
    a_bf = a_hat.astype(jnp.bfloat16)
    x_bf = x.astype(jnp.bfloat16)

    out = gps_forward(a_bf, x_bf, params, num_heads=NUM_HEADS, out_channels=OUT_C)
    out = jax.block_until_ready(out)

    ref_fn = functools.partial(gps_ref_single, p=params, num_heads=NUM_HEADS)
    ref = jax.vmap(lambda a, xx: ref_fn(a, xx))(a_bf, x_bf)[..., :OUT_C]

    np.testing.assert_allclose(np.asarray(out), np.asarray(ref), rtol=1e-2, atol=1e-2)
    print("KERNEL_OK")
</pallas_src>

<mosaic_0001>
module attributes {stable_mosaic.version = 11 : i64} {
  func.func @kernel(%arg0: i32, %arg1: memref<1x64x64xbf16, #tpu.memory_space<vmem>>, %arg2: memref<1x64x16xbf16, #tpu.memory_space<vmem>>, %arg3: memref<16x128xbf16, #tpu.memory_space<vmem>>, %arg4: memref<1x128xf32, #tpu.memory_space<vmem>>, %arg5: memref<2x128x128xbf16, #tpu.memory_space<vmem>>, %arg6: memref<2x1x128xf32, #tpu.memory_space<vmem>>, %arg7: memref<2x1x128xf32, #tpu.memory_space<vmem>>, %arg8: memref<2x128x384xbf16, #tpu.memory_space<vmem>>, %arg9: memref<2x1x384xf32, #tpu.memory_space<vmem>>, %arg10: memref<2x128x128xbf16, #tpu.memory_space<vmem>>, %arg11: memref<2x1x128xf32, #tpu.memory_space<vmem>>, %arg12: memref<2x1x128xf32, #tpu.memory_space<vmem>>, %arg13: memref<2x128x256xbf16, #tpu.memory_space<vmem>>, %arg14: memref<2x1x256xf32, #tpu.memory_space<vmem>>, %arg15: memref<2x256x128xbf16, #tpu.memory_space<vmem>>, %arg16: memref<2x1x128xf32, #tpu.memory_space<vmem>>, %arg17: memref<2x1x128xf32, #tpu.memory_space<vmem>>, %arg18: memref<128x128xbf16, #tpu.memory_space<vmem>>, %arg19: memref<1x128xf32, #tpu.memory_space<vmem>>, %arg20: memref<1x64x128xf32, #tpu.memory_space<vmem>>) attributes {dimension_semantics = [#tpu.dimension_semantics<parallel>], iteration_bounds = array<i64: 4>, scalar_prefetch = 0 : i64, scratch_operands = 0 : i64, tpu.core_type = #tpu.core_type<tc>, window_params = [{transform_indices = @transform_0, window_bounds = array<i64: 1, 64, 64>}, {transform_indices = @transform_1, window_bounds = array<i64: 1, 64, 16>}, {pipeline_mode = #tpu.pipeline_mode<synchronous>, transform_indices = @transform_2, window_bounds = array<i64: 16, 128>}, {pipeline_mode = #tpu.pipeline_mode<synchronous>, transform_indices = @transform_3, window_bounds = array<i64: 1, 128>}, {pipeline_mode = #tpu.pipeline_mode<synchronous>, transform_indices = @transform_4, window_bounds = array<i64: 2, 128, 128>}, {pipeline_mode = #tpu.pipeline_mode<synchronous>, transform_indices = @transform_5, window_bounds = array<i64: 2, 1, 128>}, {pipeline_mode = #tpu.pipeline_mode<synchronous>, transform_indices = @transform_6, window_bounds = array<i64: 2, 1, 128>}, {pipeline_mode = #tpu.pipeline_mode<synchronous>, transform_indices = @transform_7, window_bounds = array<i64: 2, 128, 384>}, {pipeline_mode = #tpu.pipeline_mode<synchronous>, transform_indices = @transform_8, window_bounds = array<i64: 2, 1, 384>}, {pipeline_mode = #tpu.pipeline_mode<synchronous>, transform_indices = @transform_9, window_bounds = array<i64: 2, 128, 128>}, {pipeline_mode = #tpu.pipeline_mode<synchronous>, transform_indices = @transform_10, window_bounds = array<i64: 2, 1, 128>}, {pipeline_mode = #tpu.pipeline_mode<synchronous>, transform_indices = @transform_11, window_bounds = array<i64: 2, 1, 128>}, {pipeline_mode = #tpu.pipeline_mode<synchronous>, transform_indices = @transform_12, window_bounds = array<i64: 2, 128, 256>}, {pipeline_mode = #tpu.pipeline_mode<synchronous>, transform_indices = @transform_13, window_bounds = array<i64: 2, 1, 256>}, {pipeline_mode = #tpu.pipeline_mode<synchronous>, transform_indices = @transform_14, window_bounds = array<i64: 2, 256, 128>}, {pipeline_mode = #tpu.pipeline_mode<synchronous>, transform_indices = @transform_15, window_bounds = array<i64: 2, 1, 128>}, {pipeline_mode = #tpu.pipeline_mode<synchronous>, transform_indices = @transform_16, window_bounds = array<i64: 2, 1, 128>}, {pipeline_mode = #tpu.pipeline_mode<synchronous>, transform_indices = @transform_17, window_bounds = array<i64: 128, 128>}, {pipeline_mode = #tpu.pipeline_mode<synchronous>, transform_indices = @transform_18, window_bounds = array<i64: 1, 128>}, {transform_indices = @transform_19, window_bounds = array<i64: 1, 64, 128>}]} {
    %c0 = arith.constant 0 : index
    %c0_0 = arith.constant 0 : index
    %c0_1 = arith.constant 0 : index
    %0 = vector.load %arg1[%c0, %c0_0, %c0_1] : memref<1x64x64xbf16, #tpu.memory_space<vmem>>, vector<1x64x64xbf16>
    %1 = vector.shape_cast %0 : vector<1x64x64xbf16> to vector<64x64xbf16>
    %c0_2 = arith.constant 0 : index
    %c0_3 = arith.constant 0 : index
    %c0_4 = arith.constant 0 : index
    %2 = vector.load %arg2[%c0_2, %c0_3, %c0_4] : memref<1x64x16xbf16, #tpu.memory_space<vmem>>, vector<1x64x16xbf16>
    %3 = vector.shape_cast %2 : vector<1x64x16xbf16> to vector<64x16xbf16>
    %c0_5 = arith.constant 0 : index
    %c0_6 = arith.constant 0 : index
    %4 = vector.load %arg3[%c0_5, %c0_6] : memref<16x128xbf16, #tpu.memory_space<vmem>>, vector<16x128xbf16>
    %cst = arith.constant dense<0.000000e+00> : vector<64x128xf32>
    %5 = tpu.matmul %3, %4, %cst {dimension_numbers = #tpu.dot_dimension_numbers<[1], [0], [0], [1], [0, 0, 1, 1], [], []>} : vector<64x16xbf16>, vector<16x128xbf16>, vector<64x128xf32> -> vector<64x128xf32>
    %c0_7 = arith.constant 0 : index
    %c0_8 = arith.constant 0 : index
    %6 = vector.load %arg4[%c0_7, %c0_8] : memref<1x128xf32, #tpu.memory_space<vmem>>, vector<1x128xf32>
    %7 = vector.broadcast %6 : vector<1x128xf32> to vector<64x128xf32>
    %8 = arith.addf %5, %7 : vector<64x128xf32>
    %cst_9 = arith.constant 0.000000e+00 : f32
    %9 = vector.broadcast %cst_9 : f32 to vector<64x128xf32>
    %10 = arith.maximumf %8, %9 : vector<64x128xf32>
    %11 = arith.truncf %10 : vector<64x128xf32> to vector<64x128xbf16>
    %c0_10 = arith.constant 0 : index
    %c0_11 = arith.constant 0 : index
    %c0_12 = arith.constant 0 : index
    %12 = vector.load %arg5[%c0_10, %c0_11, %c0_12] : memref<2x128x128xbf16, #tpu.memory_space<vmem>>, vector<1x128x128xbf16>
    %13 = vector.shape_cast %12 : vector<1x128x128xbf16> to vector<128x128xbf16>
    %cst_13 = arith.constant dense<0.000000e+00> : vector<64x128xf32>
    %14 = tpu.matmul %11, %13, %cst_13 {dimension_numbers = #tpu.dot_dimension_numbers<[1], [0], [0], [1], [0, 0, 1, 1], [], []>} : vector<64x128xbf16>, vector<128x128xbf16>, vector<64x128xf32> -> vector<64x128xf32>
    %15 = arith.truncf %14 : vector<64x128xf32> to vector<64x128xbf16>
    %cst_14 = arith.constant dense<0.000000e+00> : vector<64x128xf32>
    %16 = tpu.matmul %1, %15, %cst_14 {dimension_numbers = #tpu.dot_dimension_numbers<[1], [0], [0], [1], [0, 0, 1, 1], [], []>} : vector<64x64xbf16>, vector<64x128xbf16>, vector<64x128xf32> -> vector<64x128xf32>
    %17 = arith.addf %10, %16 : vector<64x128xf32>
    %c0_15 = arith.constant 0 : index
    %c0_16 = arith.constant 0 : index
    %c0_17 = arith.constant 0 : index
    %18 = vector.load %arg6[%c0_15, %c0_16, %c0_17] : memref<2x1x128xf32, #tpu.memory_space<vmem>>, vector<1x1x128xf32>
    %19 = vector.shape_cast %18 : vector<1x1x128xf32> to vector<1x128xf32>
    %20 = vector.broadcast %19 : vector<1x128xf32> to vector<64x128xf32>
    %21 = arith.mulf %17, %20 : vector<64x128xf32>
    %c0_18 = arith.constant 0 : index
    %c0_19 = arith.constant 0 : index
    %c0_20 = arith.constant 0 : index
    %22 = vector.load %arg7[%c0_18, %c0_19, %c0_20] : memref<2x1x128xf32, #tpu.memory_space<vmem>>, vector<1x1x128xf32>
    %23 = vector.shape_cast %22 : vector<1x1x128xf32> to vector<1x128xf32>
    %24 = vector.broadcast %23 : vector<1x128xf32> to vector<64x128xf32>
    %25 = arith.addf %21, %24 : vector<64x128xf32>
    %c0_21 = arith.constant 0 : index
    %c0_22 = arith.constant 0 : index
    %c0_23 = arith.constant 0 : index
    %26 = vector.load %arg8[%c0_21, %c0_22, %c0_23] : memref<2x128x384xbf16, #tpu.memory_space<vmem>>, vector<1x128x384xbf16>
    %27 = vector.shape_cast %26 : vector<1x128x384xbf16> to vector<128x384xbf16>
    %cst_24 = arith.constant dense<0.000000e+00> : vector<64x384xf32>
    %28 = tpu.matmul %11, %27, %cst_24 {dimension_numbers = #tpu.dot_dimension_numbers<[1], [0], [0], [1], [0, 0, 1, 1], [], []>} : vector<64x128xbf16>, vector<128x384xbf16>, vector<64x384xf32> -> vector<64x384xf32>
    %c0_25 = arith.constant 0 : index
    %c0_26 = arith.constant 0 : index
    %c0_27 = arith.constant 0 : index
    %29 = vector.load %arg9[%c0_25, %c0_26, %c0_27] : memref<2x1x384xf32, #tpu.memory_space<vmem>>, vector<1x1x384xf32>
    %30 = vector.shape_cast %29 : vector<1x1x384xf32> to vector<1x384xf32>
    %31 = vector.broadcast %30 : vector<1x384xf32> to vector<64x384xf32>
    %32 = arith.addf %28, %31 : vector<64x384xf32>
    %33 = vector.extract_strided_slice %32 {offsets = [0, 0], sizes = [64, 128], strides = [1, 1]} : vector<64x384xf32> to vector<64x128xf32>
    %34 = vector.extract_strided_slice %32 {offsets = [0, 128], sizes = [64, 128], strides = [1, 1]} : vector<64x384xf32> to vector<64x128xf32>
    %35 = vector.extract_strided_slice %32 {offsets = [0, 256], sizes = [64, 128], strides = [1, 1]} : vector<64x384xf32> to vector<64x128xf32>
    %c0_28 = arith.constant 0 : index
    %c0_29 = arith.constant 0 : index
    %c0_30 = arith.constant 0 : index
    %36 = vector.load %arg10[%c0_28, %c0_29, %c0_30] : memref<2x128x128xbf16, #tpu.memory_space<vmem>>, vector<1x128x128xbf16>
    %37 = vector.shape_cast %36 : vector<1x128x128xbf16> to vector<128x128xbf16>
    %cst_31 = arith.constant 0.000000e+00 : f32
    %38 = vector.broadcast %cst_31 : f32 to vector<64x128xf32>
    %39 = vector.extract_strided_slice %33 {offsets = [0, 0], sizes = [64, 32], strides = [1, 1]} : vector<64x128xf32> to vector<64x32xf32>
    %cst_32 = arith.constant 0.176776692 : f32
    %40 = vector.broadcast %cst_32 : f32 to vector<64x32xf32>
    %41 = arith.mulf %39, %40 : vector<64x32xf32>
    %42 = arith.truncf %41 : vector<64x32xf32> to vector<64x32xbf16>
    %43 = vector.extract_strided_slice %34 {offsets = [0, 0], sizes = [64, 32], strides = [1, 1]} : vector<64x128xf32> to vector<64x32xf32>
    %44 = arith.truncf %43 : vector<64x32xf32> to vector<64x32xbf16>
    %45 = vector.extract_strided_slice %35 {offsets = [0, 0], sizes = [64, 32], strides = [1, 1]} : vector<64x128xf32> to vector<64x32xf32>
    %46 = arith.truncf %45 : vector<64x32xf32> to vector<64x32xbf16>
    %cst_33 = arith.constant dense<0.000000e+00> : vector<64x64xf32>
    %47 = tpu.matmul %42, %44, %cst_33 {dimension_numbers = #tpu.dot_dimension_numbers<[1], [1], [0], [0], [0, 0, 1, 0], [], []>} : vector<64x32xbf16>, vector<64x32xbf16>, vector<64x64xf32> -> vector<64x64xf32>
    %cst_34 = arith.constant dense<0xFF800000> : vector<64xf32>
    %48 = vector.multi_reduction <maximumf>, %47, %cst_34 [1] : vector<64x64xf32> to vector<64xf32>
    %49 = vector.shape_cast %48 : vector<64xf32> to vector<64x1xf32>
    %50 = vector.broadcast %49 : vector<64x1xf32> to vector<64x64xf32>
    %51 = arith.subf %47, %50 : vector<64x64xf32>
    %52 = math.exp %51 : vector<64x64xf32>
    %cst_35 = arith.constant dense<0.000000e+00> : vector<64xf32>
    %53 = vector.multi_reduction <add>, %52, %cst_35 [1] : vector<64x64xf32> to vector<64xf32>
    %54 = vector.shape_cast %53 : vector<64xf32> to vector<64x1xf32>
    %55 = vector.broadcast %54 : vector<64x1xf32> to vector<64x64xf32>
    %56 = arith.divf %52, %55 : vector<64x64xf32>
    %57 = arith.truncf %56 : vector<64x64xf32> to vector<64x64xbf16>
    %cst_36 = arith.constant dense<0.000000e+00> : vector<64x32xf32>
    %58 = tpu.matmul %57, %46, %cst_36 {dimension_numbers = #tpu.dot_dimension_numbers<[1], [0], [0], [1], [0, 0, 1, 1], [], []>} : vector<64x64xbf16>, vector<64x32xbf16>, vector<64x32xf32> -> vector<64x32xf32>
    %59 = arith.truncf %58 : vector<64x32xf32> to vector<64x32xbf16>
    %60 = vector.extract_strided_slice %37 {offsets = [0, 0], sizes = [32, 128], strides = [1, 1]} : vector<128x128xbf16> to vector<32x128xbf16>
    %cst_37 = arith.constant dense<0.000000e+00> : vector<64x128xf32>
    %61 = tpu.matmul %59, %60, %cst_37 {dimension_numbers = #tpu.dot_dimension_numbers<[1], [0], [0], [1], [0, 0, 1, 1], [], []>} : vector<64x32xbf16>, vector<32x128xbf16>, vector<64x128xf32> -> vector<64x128xf32>
    %62 = arith.addf %38, %61 : vector<64x128xf32>
    %63 = vector.extract_strided_slice %33 {offsets = [0, 32], sizes = [64, 32], strides = [1, 1]} : vector<64x128xf32> to vector<64x32xf32>
    %cst_38 = arith.constant 0.176776692 : f32
    %64 = vector.broadcast %cst_38 : f32 to vector<64x32xf32>
    %65 = arith.mulf %63, %64 : vector<64x32xf32>
    %66 = arith.truncf %65 : vector<64x32xf32> to vector<64x32xbf16>
    %67 = vector.extract_strided_slice %34 {offsets = [0, 32], sizes = [64, 32], strides = [1, 1]} : vector<64x128xf32> to vector<64x32xf32>
    %68 = arith.truncf %67 : vector<64x32xf32> to vector<64x32xbf16>
    %69 = vector.extract_strided_slice %35 {offsets = [0, 32], sizes = [64, 32], strides = [1, 1]} : vector<64x128xf32> to vector<64x32xf32>
    %70 = arith.truncf %69 : vector<64x32xf32> to vector<64x32xbf16>
    %cst_39 = arith.constant dense<0.000000e+00> : vector<64x64xf32>
    %71 = tpu.matmul %66, %68, %cst_39 {dimension_numbers = #tpu.dot_dimension_numbers<[1], [1], [0], [0], [0, 0, 1, 0], [], []>} : vector<64x32xbf16>, vector<64x32xbf16>, vector<64x64xf32> -> vector<64x64xf32>
    %cst_40 = arith.constant dense<0xFF800000> : vector<64xf32>
    %72 = vector.multi_reduction <maximumf>, %71, %cst_40 [1] : vector<64x64xf32> to vector<64xf32>
    %73 = vector.shape_cast %72 : vector<64xf32> to vector<64x1xf32>
    %74 = vector.broadcast %73 : vector<64x1xf32> to vector<64x64xf32>
    %75 = arith.subf %71, %74 : vector<64x64xf32>
    %76 = math.exp %75 : vector<64x64xf32>
    %cst_41 = arith.constant dense<0.000000e+00> : vector<64xf32>
    %77 = vector.multi_reduction <add>, %76, %cst_41 [1] : vector<64x64xf32> to vector<64xf32>
    %78 = vector.shape_cast %77 : vector<64xf32> to vector<64x1xf32>
    %79 = vector.broadcast %78 : vector<64x1xf32> to vector<64x64xf32>
    %80 = arith.divf %76, %79 : vector<64x64xf32>
    %81 = arith.truncf %80 : vector<64x64xf32> to vector<64x64xbf16>
    %cst_42 = arith.constant dense<0.000000e+00> : vector<64x32xf32>
    %82 = tpu.matmul %81, %70, %cst_42 {dimension_numbers = #tpu.dot_dimension_numbers<[1], [0], [0], [1], [0, 0, 1, 1], [], []>} : vector<64x64xbf16>, vector<64x32xbf16>, vector<64x32xf32> -> vector<64x32xf32>
    %83 = arith.truncf %82 : vector<64x32xf32> to vector<64x32xbf16>
    %84 = vector.extract_strided_slice %37 {offsets = [32, 0], sizes = [32, 128], strides = [1, 1]} : vector<128x128xbf16> to vector<32x128xbf16>
    %cst_43 = arith.constant dense<0.000000e+00> : vector<64x128xf32>
    %85 = tpu.matmul %83, %84, %cst_43 {dimension_numbers = #tpu.dot_dimension_numbers<[1], [0], [0], [1], [0, 0, 1, 1], [], []>} : vector<64x32xbf16>, vector<32x128xbf16>, vector<64x128xf32> -> vector<64x128xf32>
    %86 = arith.addf %62, %85 : vector<64x128xf32>
    %87 = vector.extract_strided_slice %33 {offsets = [0, 64], sizes = [64, 32], strides = [1, 1]} : vector<64x128xf32> to vector<64x32xf32>
    %cst_44 = arith.constant 0.176776692 : f32
    %88 = vector.broadcast %cst_44 : f32 to vector<64x32xf32>
    %89 = arith.mulf %87, %88 : vector<64x32xf32>
    %90 = arith.truncf %89 : vector<64x32xf32> to vector<64x32xbf16>
    %91 = vector.extract_strided_slice %34 {offsets = [0, 64], sizes = [64, 32], strides = [1, 1]} : vector<64x128xf32> to vector<64x32xf32>
    %92 = arith.truncf %91 : vector<64x32xf32> to vector<64x32xbf16>
    %93 = vector.extract_strided_slice %35 {offsets = [0, 64], sizes = [64, 32], strides = [1, 1]} : vector<64x128xf32> to vector<64x32xf32>
    %94 = arith.truncf %93 : vector<64x32xf32> to vector<64x32xbf16>
    %cst_45 = arith.constant dense<0.000000e+00> : vector<64x64xf32>
    %95 = tpu.matmul %90, %92, %cst_45 {dimension_numbers = #tpu.dot_dimension_numbers<[1], [1], [0], [0], [0, 0, 1, 0], [], []>} : vector<64x32xbf16>, vector<64x32xbf16>, vector<64x64xf32> -> vector<64x64xf32>
    %cst_46 = arith.constant dense<0xFF800000> : vector<64xf32>
    %96 = vector.multi_reduction <maximumf>, %95, %cst_46 [1] : vector<64x64xf32> to vector<64xf32>
    %97 = vector.shape_cast %96 : vector<64xf32> to vector<64x1xf32>
    %98 = vector.broadcast %97 : vector<64x1xf32> to vector<64x64xf32>
    %99 = arith.subf %95, %98 : vector<64x64xf32>
    %100 = math.exp %99 : vector<64x64xf32>
    %cst_47 = arith.constant dense<0.000000e+00> : vector<64xf32>
    %101 = vector.multi_reduction <add>, %100, %cst_47 [1] : vector<64x64xf32> to vector<64xf32>
    %102 = vector.shape_cast %101 : vector<64xf32> to vector<64x1xf32>
    %103 = vector.broadcast %102 : vector<64x1xf32> to vector<64x64xf32>
    %104 = arith.divf %100, %103 : vector<64x64xf32>
    %105 = arith.truncf %104 : vector<64x64xf32> to vector<64x64xbf16>
    %cst_48 = arith.constant dense<0.000000e+00> : vector<64x32xf32>
    %106 = tpu.matmul %105, %94, %cst_48 {dimension_numbers = #tpu.dot_dimension_numbers<[1], [0], [0], [1], [0, 0, 1, 1], [], []>} : vector<64x64xbf16>, vector<64x32xbf16>, vector<64x32xf32> -> vector<64x32xf32>
    %107 = arith.truncf %106 : vector<64x32xf32> to vector<64x32xbf16>
    %108 = vector.extract_strided_slice %37 {offsets = [64, 0], sizes = [32, 128], strides = [1, 1]} : vector<128x128xbf16> to vector<32x128xbf16>
    %cst_49 = arith.constant dense<0.000000e+00> : vector<64x128xf32>
    %109 = tpu.matmul %107, %108, %cst_49 {dimension_numbers = #tpu.dot_dimension_numbers<[1], [0], [0], [1], [0, 0, 1, 1], [], []>} : vector<64x32xbf16>, vector<32x128xbf16>, vector<64x128xf32> -> vector<64x128xf32>
    %110 = arith.addf %86, %109 : vector<64x128xf32>
    %111 = vector.extract_strided_slice %33 {offsets = [0, 96], sizes = [64, 32], strides = [1, 1]} : vector<64x128xf32> to vector<64x32xf32>
    %cst_50 = arith.constant 0.176776692 : f32
    %112 = vector.broadcast %cst_50 : f32 to vector<64x32xf32>
    %113 = arith.mulf %111, %112 : vector<64x32xf32>
    %114 = arith.truncf %113 : vector<64x32xf32> to vector<64x32xbf16>
    %115 = vector.extract_strided_slice %34 {offsets = [0, 96], sizes = [64, 32], strides = [1, 1]} : vector<64x128xf32> to vector<64x32xf32>
    %116 = arith.truncf %115 : vector<64x32xf32> to vector<64x32xbf16>
    %117 = vector.extract_strided_slice %35 {offsets = [0, 96], sizes = [64, 32], strides = [1, 1]} : vector<64x128xf32> to vector<64x32xf32>
    %118 = arith.truncf %117 : vector<64x32xf32> to vector<64x32xbf16>
    %cst_51 = arith.constant dense<0.000000e+00> : vector<64x64xf32>
    %119 = tpu.matmul %114, %116, %cst_51 {dimension_numbers = #tpu.dot_dimension_numbers<[1], [1], [0], [0], [0, 0, 1, 0], [], []>} : vector<64x32xbf16>, vector<64x32xbf16>, vector<64x64xf32> -> vector<64x64xf32>
    %cst_52 = arith.constant dense<0xFF800000> : vector<64xf32>
    %120 = vector.multi_reduction <maximumf>, %119, %cst_52 [1] : vector<64x64xf32> to vector<64xf32>
    %121 = vector.shape_cast %120 : vector<64xf32> to vector<64x1xf32>
    %122 = vector.broadcast %121 : vector<64x1xf32> to vector<64x64xf32>
    %123 = arith.subf %119, %122 : vector<64x64xf32>
    %124 = math.exp %123 : vector<64x64xf32>
    %cst_53 = arith.constant dense<0.000000e+00> : vector<64xf32>
    %125 = vector.multi_reduction <add>, %124, %cst_53 [1] : vector<64x64xf32> to vector<64xf32>
    %126 = vector.shape_cast %125 : vector<64xf32> to vector<64x1xf32>
    %127 = vector.broadcast %126 : vector<64x1xf32> to vector<64x64xf32>
    %128 = arith.divf %124, %127 : vector<64x64xf32>
    %129 = arith.truncf %128 : vector<64x64xf32> to vector<64x64xbf16>
    %cst_54 = arith.constant dense<0.000000e+00> : vector<64x32xf32>
    %130 = tpu.matmul %129, %118, %cst_54 {dimension_numbers = #tpu.dot_dimension_numbers<[1], [0], [0], [1], [0, 0, 1, 1], [], []>} : vector<64x64xbf16>, vector<64x32xbf16>, vector<64x32xf32> -> vector<64x32xf32>
    %131 = arith.truncf %130 : vector<64x32xf32> to vector<64x32xbf16>
    %132 = vector.extract_strided_slice %37 {offsets = [96, 0], sizes = [32, 128], strides = [1, 1]} : vector<128x128xbf16> to vector<32x128xbf16>
    %cst_55 = arith.constant dense<0.000000e+00> : vector<64x128xf32>
    %133 = tpu.matmul %131, %132, %cst_55 {dimension_numbers = #tpu.dot_dimension_numbers<[1], [0], [0], [1], [0, 0, 1, 1], [], []>} : vector<64x32xbf16>, vector<32x128xbf16>, vector<64x128xf32> -> vector<64x128xf32>
    %134 = arith.addf %110, %133 : vector<64x128xf32>
    %135 = arith.addf %10, %134 : vector<64x128xf32>
    %c0_56 = arith.constant 0 : index
    %c0_57 = arith.constant 0 : index
    %c0_58 = arith.constant 0 : index
    %136 = vector.load %arg11[%c0_56, %c0_57, %c0_58] : memref<2x1x128xf32, #tpu.memory_space<vmem>>, vector<1x1x128xf32>
    %137 = vector.shape_cast %136 : vector<1x1x128xf32> to vector<1x128xf32>
    %138 = vector.broadcast %137 : vector<1x128xf32> to vector<64x128xf32>
    %139 = arith.mulf %135, %138 : vector<64x128xf32>
    %c0_59 = arith.constant 0 : index
    %c0_60 = arith.constant 0 : index
    %c0_61 = arith.constant 0 : index
    %140 = vector.load %arg12[%c0_59, %c0_60, %c0_61] : memref<2x1x128xf32, #tpu.memory_space<vmem>>, vector<1x1x128xf32>
    %141 = vector.shape_cast %140 : vector<1x1x128xf32> to vector<1x128xf32>
    %142 = vector.broadcast %141 : vector<1x128xf32> to vector<64x128xf32>
    %143 = arith.addf %139, %142 : vector<64x128xf32>
    %144 = arith.addf %25, %143 : vector<64x128xf32>
    %145 = arith.truncf %144 : vector<64x128xf32> to vector<64x128xbf16>
    %c0_62 = arith.constant 0 : index
    %c0_63 = arith.constant 0 : index
    %c0_64 = arith.constant 0 : index
    %146 = vector.load %arg13[%c0_62, %c0_63, %c0_64] : memref<2x128x256xbf16, #tpu.memory_space<vmem>>, vector<1x128x256xbf16>
    %147 = vector.shape_cast %146 : vector<1x128x256xbf16> to vector<128x256xbf16>
    %cst_65 = arith.constant dense<0.000000e+00> : vector<64x256xf32>
    %148 = tpu.matmul %145, %147, %cst_65 {dimension_numbers = #tpu.dot_dimension_numbers<[1], [0], [0], [1], [0, 0, 1, 1], [], []>} : vector<64x128xbf16>, vector<128x256xbf16>, vector<64x256xf32> -> vector<64x256xf32>
    %c0_66 = arith.constant 0 : index
    %c0_67 = arith.constant 0 : index
    %c0_68 = arith.constant 0 : index
    %149 = vector.load %arg14[%c0_66, %c0_67, %c0_68] : memref<2x1x256xf32, #tpu.memory_space<vmem>>, vector<1x1x256xf32>
    %150 = vector.shape_cast %149 : vector<1x1x256xf32> to vector<1x256xf32>
    %151 = vector.broadcast %150 : vector<1x256xf32> to vector<64x256xf32>
    %152 = arith.addf %148, %151 : vector<64x256xf32>
    %cst_69 = arith.constant 0.000000e+00 : f32
    %153 = vector.broadcast %cst_69 : f32 to vector<64x256xf32>
    %154 = arith.maximumf %152, %153 : vector<64x256xf32>
    %155 = arith.truncf %154 : vector<64x256xf32> to vector<64x256xbf16>
    %c0_70 = arith.constant 0 : index
    %c0_71 = arith.constant 0 : index
    %c0_72 = arith.constant 0 : index
    %156 = vector.load %arg15[%c0_70, %c0_71, %c0_72] : memref<2x256x128xbf16, #tpu.memory_space<vmem>>, vector<1x256x128xbf16>
    %157 = vector.shape_cast %156 : vector<1x256x128xbf16> to vector<256x128xbf16>
    %cst_73 = arith.constant dense<0.000000e+00> : vector<64x128xf32>
    %158 = tpu.matmul %155, %157, %cst_73 {dimension_numbers = #tpu.dot_dimension_numbers<[1], [0], [0], [1], [0, 0, 1, 1], [], []>} : vector<64x256xbf16>, vector<256x128xbf16>, vector<64x128xf32> -> vector<64x128xf32>
    %159 = arith.addf %144, %158 : vector<64x128xf32>
    %c0_74 = arith.constant 0 : index
    %c0_75 = arith.constant 0 : index
    %c0_76 = arith.constant 0 : index
    %160 = vector.load %arg16[%c0_74, %c0_75, %c0_76] : memref<2x1x128xf32, #tpu.memory_space<vmem>>, vector<1x1x128xf32>
    %161 = vector.shape_cast %160 : vector<1x1x128xf32> to vector<1x128xf32>
    %162 = vector.broadcast %161 : vector<1x128xf32> to vector<64x128xf32>
    %163 = arith.mulf %159, %162 : vector<64x128xf32>
    %c0_77 = arith.constant 0 : index
    %c0_78 = arith.constant 0 : index
    %c0_79 = arith.constant 0 : index
    %164 = vector.load %arg17[%c0_77, %c0_78, %c0_79] : memref<2x1x128xf32, #tpu.memory_space<vmem>>, vector<1x1x128xf32>
    %165 = vector.shape_cast %164 : vector<1x1x128xf32> to vector<1x128xf32>
    %166 = vector.broadcast %165 : vector<1x128xf32> to vector<64x128xf32>
    %167 = arith.addf %163, %166 : vector<64x128xf32>
    %168 = arith.truncf %167 : vector<64x128xf32> to vector<64x128xbf16>
    %c1 = arith.constant 1 : index
    %c0_80 = arith.constant 0 : index
    %c0_81 = arith.constant 0 : index
    %169 = vector.load %arg5[%c1, %c0_80, %c0_81] : memref<2x128x128xbf16, #tpu.memory_space<vmem>>, vector<1x128x128xbf16>
    %170 = vector.shape_cast %169 : vector<1x128x128xbf16> to vector<128x128xbf16>
    %cst_82 = arith.constant dense<0.000000e+00> : vector<64x128xf32>
    %171 = tpu.matmul %168, %170, %cst_82 {dimension_numbers = #tpu.dot_dimension_numbers<[1], [0], [0], [1], [0, 0, 1, 1], [], []>} : vector<64x128xbf16>, vector<128x128xbf16>, vector<64x128xf32> -> vector<64x128xf32>
    %172 = arith.truncf %171 : vector<64x128xf32> to vector<64x128xbf16>
    %cst_83 = arith.constant dense<0.000000e+00> : vector<64x128xf32>
    %173 = tpu.matmul %1, %172, %cst_83 {dimension_numbers = #tpu.dot_dimension_numbers<[1], [0], [0], [1], [0, 0, 1, 1], [], []>} : vector<64x64xbf16>, vector<64x128xbf16>, vector<64x128xf32> -> vector<64x128xf32>
    %174 = arith.addf %167, %173 : vector<64x128xf32>
    %c1_84 = arith.constant 1 : index
    %c0_85 = arith.constant 0 : index
    %c0_86 = arith.constant 0 : index
    %175 = vector.load %arg6[%c1_84, %c0_85, %c0_86] : memref<2x1x128xf32, #tpu.memory_space<vmem>>, vector<1x1x128xf32>
    %176 = vector.shape_cast %175 : vector<1x1x128xf32> to vector<1x128xf32>
    %177 = vector.broadcast %176 : vector<1x128xf32> to vector<64x128xf32>
    %178 = arith.mulf %174, %177 : vector<64x128xf32>
    %c1_87 = arith.constant 1 : index
    %c0_88 = arith.constant 0 : index
    %c0_89 = arith.constant 0 : index
    %179 = vector.load %arg7[%c1_87, %c0_88, %c0_89] : memref<2x1x128xf32, #tpu.memory_space<vmem>>, vector<1x1x128xf32>
    %180 = vector.shape_cast %179 : vector<1x1x128xf32> to vector<1x128xf32>
    %181 = vector.broadcast %180 : vector<1x128xf32> to vector<64x128xf32>
    %182 = arith.addf %178, %181 : vector<64x128xf32>
    %c1_90 = arith.constant 1 : index
    %c0_91 = arith.constant 0 : index
    %c0_92 = arith.constant 0 : index
    %183 = vector.load %arg8[%c1_90, %c0_91, %c0_92] : memref<2x128x384xbf16, #tpu.memory_space<vmem>>, vector<1x128x384xbf16>
    %184 = vector.shape_cast %183 : vector<1x128x384xbf16> to vector<128x384xbf16>
    %cst_93 = arith.constant dense<0.000000e+00> : vector<64x384xf32>
    %185 = tpu.matmul %168, %184, %cst_93 {dimension_numbers = #tpu.dot_dimension_numbers<[1], [0], [0], [1], [0, 0, 1, 1], [], []>} : vector<64x128xbf16>, vector<128x384xbf16>, vector<64x384xf32> -> vector<64x384xf32>
    %c1_94 = arith.constant 1 : index
    %c0_95 = arith.constant 0 : index
    %c0_96 = arith.constant 0 : index
    %186 = vector.load %arg9[%c1_94, %c0_95, %c0_96] : memref<2x1x384xf32, #tpu.memory_space<vmem>>, vector<1x1x384xf32>
    %187 = vector.shape_cast %186 : vector<1x1x384xf32> to vector<1x384xf32>
    %188 = vector.broadcast %187 : vector<1x384xf32> to vector<64x384xf32>
    %189 = arith.addf %185, %188 : vector<64x384xf32>
    %190 = vector.extract_strided_slice %189 {offsets = [0, 0], sizes = [64, 128], strides = [1, 1]} : vector<64x384xf32> to vector<64x128xf32>
    %191 = vector.extract_strided_slice %189 {offsets = [0, 128], sizes = [64, 128], strides = [1, 1]} : vector<64x384xf32> to vector<64x128xf32>
    %192 = vector.extract_strided_slice %189 {offsets = [0, 256], sizes = [64, 128], strides = [1, 1]} : vector<64x384xf32> to vector<64x128xf32>
    %c1_97 = arith.constant 1 : index
    %c0_98 = arith.constant 0 : index
    %c0_99 = arith.constant 0 : index
    %193 = vector.load %arg10[%c1_97, %c0_98, %c0_99] : memref<2x128x128xbf16, #tpu.memory_space<vmem>>, vector<1x128x128xbf16>
    %194 = vector.shape_cast %193 : vector<1x128x128xbf16> to vector<128x128xbf16>
    %cst_100 = arith.constant 0.000000e+00 : f32
    %195 = vector.broadcast %cst_100 : f32 to vector<64x128xf32>
    %196 = vector.extract_strided_slice %190 {offsets = [0, 0], sizes = [64, 32], strides = [1, 1]} : vector<64x128xf32> to vector<64x32xf32>
    %cst_101 = arith.constant 0.176776692 : f32
    %197 = vector.broadcast %cst_101 : f32 to vector<64x32xf32>
    %198 = arith.mulf %196, %197 : vector<64x32xf32>
    %199 = arith.truncf %198 : vector<64x32xf32> to vector<64x32xbf16>
    %200 = vector.extract_strided_slice %191 {offsets = [0, 0], sizes = [64, 32], strides = [1, 1]} : vector<64x128xf32> to vector<64x32xf32>
    %201 = arith.truncf %200 : vector<64x32xf32> to vector<64x32xbf16>
    %202 = vector.extract_strided_slice %192 {offsets = [0, 0], sizes = [64, 32], strides = [1, 1]} : vector<64x128xf32> to vector<64x32xf32>
    %203 = arith.truncf %202 : vector<64x32xf32> to vector<64x32xbf16>
    %cst_102 = arith.constant dense<0.000000e+00> : vector<64x64xf32>
    %204 = tpu.matmul %199, %201, %cst_102 {dimension_numbers = #tpu.dot_dimension_numbers<[1], [1], [0], [0], [0, 0, 1, 0], [], []>} : vector<64x32xbf16>, vector<64x32xbf16>, vector<64x64xf32> -> vector<64x64xf32>
    %cst_103 = arith.constant dense<0xFF800000> : vector<64xf32>
    %205 = vector.multi_reduction <maximumf>, %204, %cst_103 [1] : vector<64x64xf32> to vector<64xf32>
    %206 = vector.shape_cast %205 : vector<64xf32> to vector<64x1xf32>
    %207 = vector.broadcast %206 : vector<64x1xf32> to vector<64x64xf32>
    %208 = arith.subf %204, %207 : vector<64x64xf32>
    %209 = math.exp %208 : vector<64x64xf32>
    %cst_104 = arith.constant dense<0.000000e+00> : vector<64xf32>
    %210 = vector.multi_reduction <add>, %209, %cst_104 [1] : vector<64x64xf32> to vector<64xf32>
    %211 = vector.shape_cast %210 : vector<64xf32> to vector<64x1xf32>
    %212 = vector.broadcast %211 : vector<64x1xf32> to vector<64x64xf32>
    %213 = arith.divf %209, %212 : vector<64x64xf32>
    %214 = arith.truncf %213 : vector<64x64xf32> to vector<64x64xbf16>
    %cst_105 = arith.constant dense<0.000000e+00> : vector<64x32xf32>
    %215 = tpu.matmul %214, %203, %cst_105 {dimension_numbers = #tpu.dot_dimension_numbers<[1], [0], [0], [1], [0, 0, 1, 1], [], []>} : vector<64x64xbf16>, vector<64x32xbf16>, vector<64x32xf32> -> vector<64x32xf32>
    %216 = arith.truncf %215 : vector<64x32xf32> to vector<64x32xbf16>
    %217 = vector.extract_strided_slice %194 {offsets = [0, 0], sizes = [32, 128], strides = [1, 1]} : vector<128x128xbf16> to vector<32x128xbf16>
    %cst_106 = arith.constant dense<0.000000e+00> : vector<64x128xf32>
    %218 = tpu.matmul %216, %217, %cst_106 {dimension_numbers = #tpu.dot_dimension_numbers<[1], [0], [0], [1], [0, 0, 1, 1], [], []>} : vector<64x32xbf16>, vector<32x128xbf16>, vector<64x128xf32> -> vector<64x128xf32>
    %219 = arith.addf %195, %218 : vector<64x128xf32>
    %220 = vector.extract_strided_slice %190 {offsets = [0, 32], sizes = [64, 32], strides = [1, 1]} : vector<64x128xf32> to vector<64x32xf32>
    %cst_107 = arith.constant 0.176776692 : f32
    %221 = vector.broadcast %cst_107 : f32 to vector<64x32xf32>
    %222 = arith.mulf %220, %221 : vector<64x32xf32>
    %223 = arith.truncf %222 : vector<64x32xf32> to vector<64x32xbf16>
    %224 = vector.extract_strided_slice %191 {offsets = [0, 32], sizes = [64, 32], strides = [1, 1]} : vector<64x128xf32> to vector<64x32xf32>
    %225 = arith.truncf %224 : vector<64x32xf32> to vector<64x32xbf16>
    %226 = vector.extract_strided_slice %192 {offsets = [0, 32], sizes = [64, 32], strides = [1, 1]} : vector<64x128xf32> to vector<64x32xf32>
    %227 = arith.truncf %226 : vector<64x32xf32> to vector<64x32xbf16>
    %cst_108 = arith.constant dense<0.000000e+00> : vector<64x64xf32>
    %228 = tpu.matmul %223, %225, %cst_108 {dimension_numbers = #tpu.dot_dimension_numbers<[1], [1], [0], [0], [0, 0, 1, 0], [], []>} : vector<64x32xbf16>, vector<64x32xbf16>, vector<64x64xf32> -> vector<64x64xf32>
    %cst_109 = arith.constant dense<0xFF800000> : vector<64xf32>
    %229 = vector.multi_reduction <maximumf>, %228, %cst_109 [1] : vector<64x64xf32> to vector<64xf32>
    %230 = vector.shape_cast %229 : vector<64xf32> to vector<64x1xf32>
    %231 = vector.broadcast %230 : vector<64x1xf32> to vector<64x64xf32>
    %232 = arith.subf %228, %231 : vector<64x64xf32>
    %233 = math.exp %232 : vector<64x64xf32>
    %cst_110 = arith.constant dense<0.000000e+00> : vector<64xf32>
    %234 = vector.multi_reduction <add>, %233, %cst_110 [1] : vector<64x64xf32> to vector<64xf32>
    %235 = vector.shape_cast %234 : vector<64xf32> to vector<64x1xf32>
    %236 = vector.broadcast %235 : vector<64x1xf32> to vector<64x64xf32>
    %237 = arith.divf %233, %236 : vector<64x64xf32>
    %238 = arith.truncf %237 : vector<64x64xf32> to vector<64x64xbf16>
    %cst_111 = arith.constant dense<0.000000e+00> : vector<64x32xf32>
    %239 = tpu.matmul %238, %227, %cst_111 {dimension_numbers = #tpu.dot_dimension_numbers<[1], [0], [0], [1], [0, 0, 1, 1], [], []>} : vector<64x64xbf16>, vector<64x32xbf16>, vector<64x32xf32> -> vector<64x32xf32>
    %240 = arith.truncf %239 : vector<64x32xf32> to vector<64x32xbf16>
    %241 = vector.extract_strided_slice %194 {offsets = [32, 0], sizes = [32, 128], strides = [1, 1]} : vector<128x128xbf16> to vector<32x128xbf16>
    %cst_112 = arith.constant dense<0.000000e+00> : vector<64x128xf32>
    %242 = tpu.matmul %240, %241, %cst_112 {dimension_numbers = #tpu.dot_dimension_numbers<[1], [0], [0], [1], [0, 0, 1, 1], [], []>} : vector<64x32xbf16>, vector<32x128xbf16>, vector<64x128xf32> -> vector<64x128xf32>
    %243 = arith.addf %219, %242 : vector<64x128xf32>
    %244 = vector.extract_strided_slice %190 {offsets = [0, 64], sizes = [64, 32], strides = [1, 1]} : vector<64x128xf32> to vector<64x32xf32>
    %cst_113 = arith.constant 0.176776692 : f32
    %245 = vector.broadcast %cst_113 : f32 to vector<64x32xf32>
    %246 = arith.mulf %244, %245 : vector<64x32xf32>
    %247 = arith.truncf %246 : vector<64x32xf32> to vector<64x32xbf16>
    %248 = vector.extract_strided_slice %191 {offsets = [0, 64], sizes = [64, 32], strides = [1, 1]} : vector<64x128xf32> to vector<64x32xf32>
    %249 = arith.truncf %248 : vector<64x32xf32> to vector<64x32xbf16>
    %250 = vector.extract_strided_slice %192 {offsets = [0, 64], sizes = [64, 32], strides = [1, 1]} : vector<64x128xf32> to vector<64x32xf32>
    %251 = arith.truncf %250 : vector<64x32xf32> to vector<64x32xbf16>
    %cst_114 = arith.constant dense<0.000000e+00> : vector<64x64xf32>
    %252 = tpu.matmul %247, %249, %cst_114 {dimension_numbers = #tpu.dot_dimension_numbers<[1], [1], [0], [0], [0, 0, 1, 0], [], []>} : vector<64x32xbf16>, vector<64x32xbf16>, vector<64x64xf32> -> vector<64x64xf32>
    %cst_115 = arith.constant dense<0xFF800000> : vector<64xf32>
    %253 = vector.multi_reduction <maximumf>, %252, %cst_115 [1] : vector<64x64xf32> to vector<64xf32>
    %254 = vector.shape_cast %253 : vector<64xf32> to vector<64x1xf32>
    %255 = vector.broadcast %254 : vector<64x1xf32> to vector<64x64xf32>
    %256 = arith.subf %252, %255 : vector<64x64xf32>
    %257 = math.exp %256 : vector<64x64xf32>
    %cst_116 = arith.constant dense<0.000000e+00> : vector<64xf32>
    %258 = vector.multi_reduction <add>, %257, %cst_116 [1] : vector<64x64xf32> to vector<64xf32>
    %259 = vector.shape_cast %258 : vector<64xf32> to vector<64x1xf32>
    %260 = vector.broadcast %259 : vector<64x1xf32> to vector<64x64xf32>
    %261 = arith.divf %257, %260 : vector<64x64xf32>
    %262 = arith.truncf %261 : vector<64x64xf32> to vector<64x64xbf16>
    %cst_117 = arith.constant dense<0.000000e+00> : vector<64x32xf32>
    %263 = tpu.matmul %262, %251, %cst_117 {dimension_numbers = #tpu.dot_dimension_numbers<[1], [0], [0], [1], [0, 0, 1, 1], [], []>} : vector<64x64xbf16>, vector<64x32xbf16>, vector<64x32xf32> -> vector<64x32xf32>
    %264 = arith.truncf %263 : vector<64x32xf32> to vector<64x32xbf16>
    %265 = vector.extract_strided_slice %194 {offsets = [64, 0], sizes = [32, 128], strides = [1, 1]} : vector<128x128xbf16> to vector<32x128xbf16>
    %cst_118 = arith.constant dense<0.000000e+00> : vector<64x128xf32>
    %266 = tpu.matmul %264, %265, %cst_118 {dimension_numbers = #tpu.dot_dimension_numbers<[1], [0], [0], [1], [0, 0, 1, 1], [], []>} : vector<64x32xbf16>, vector<32x128xbf16>, vector<64x128xf32> -> vector<64x128xf32>
    %267 = arith.addf %243, %266 : vector<64x128xf32>
    %268 = vector.extract_strided_slice %190 {offsets = [0, 96], sizes = [64, 32], strides = [1, 1]} : vector<64x128xf32> to vector<64x32xf32>
    %cst_119 = arith.constant 0.176776692 : f32
    %269 = vector.broadcast %cst_119 : f32 to vector<64x32xf32>
    %270 = arith.mulf %268, %269 : vector<64x32xf32>
    %271 = arith.truncf %270 : vector<64x32xf32> to vector<64x32xbf16>
    %272 = vector.extract_strided_slice %191 {offsets = [0, 96], sizes = [64, 32], strides = [1, 1]} : vector<64x128xf32> to vector<64x32xf32>
    %273 = arith.truncf %272 : vector<64x32xf32> to vector<64x32xbf16>
    %274 = vector.extract_strided_slice %192 {offsets = [0, 96], sizes = [64, 32], strides = [1, 1]} : vector<64x128xf32> to vector<64x32xf32>
    %275 = arith.truncf %274 : vector<64x32xf32> to vector<64x32xbf16>
    %cst_120 = arith.constant dense<0.000000e+00> : vector<64x64xf32>
    %276 = tpu.matmul %271, %273, %cst_120 {dimension_numbers = #tpu.dot_dimension_numbers<[1], [1], [0], [0], [0, 0, 1, 0], [], []>} : vector<64x32xbf16>, vector<64x32xbf16>, vector<64x64xf32> -> vector<64x64xf32>
    %cst_121 = arith.constant dense<0xFF800000> : vector<64xf32>
    %277 = vector.multi_reduction <maximumf>, %276, %cst_121 [1] : vector<64x64xf32> to vector<64xf32>
    %278 = vector.shape_cast %277 : vector<64xf32> to vector<64x1xf32>
    %279 = vector.broadcast %278 : vector<64x1xf32> to vector<64x64xf32>
    %280 = arith.subf %276, %279 : vector<64x64xf32>
    %281 = math.exp %280 : vector<64x64xf32>
    %cst_122 = arith.constant dense<0.000000e+00> : vector<64xf32>
    %282 = vector.multi_reduction <add>, %281, %cst_122 [1] : vector<64x64xf32> to vector<64xf32>
    %283 = vector.shape_cast %282 : vector<64xf32> to vector<64x1xf32>
    %284 = vector.broadcast %283 : vector<64x1xf32> to vector<64x64xf32>
    %285 = arith.divf %281, %284 : vector<64x64xf32>
    %286 = arith.truncf %285 : vector<64x64xf32> to vector<64x64xbf16>
    %cst_123 = arith.constant dense<0.000000e+00> : vector<64x32xf32>
    %287 = tpu.matmul %286, %275, %cst_123 {dimension_numbers = #tpu.dot_dimension_numbers<[1], [0], [0], [1], [0, 0, 1, 1], [], []>} : vector<64x64xbf16>, vector<64x32xbf16>, vector<64x32xf32> -> vector<64x32xf32>
    %288 = arith.truncf %287 : vector<64x32xf32> to vector<64x32xbf16>
    %289 = vector.extract_strided_slice %194 {offsets = [96, 0], sizes = [32, 128], strides = [1, 1]} : vector<128x128xbf16> to vector<32x128xbf16>
    %cst_124 = arith.constant dense<0.000000e+00> : vector<64x128xf32>
    %290 = tpu.matmul %288, %289, %cst_124 {dimension_numbers = #tpu.dot_dimension_numbers<[1], [0], [0], [1], [0, 0, 1, 1], [], []>} : vector<64x32xbf16>, vector<32x128xbf16>, vector<64x128xf32> -> vector<64x128xf32>
    %291 = arith.addf %267, %290 : vector<64x128xf32>
    %292 = arith.addf %167, %291 : vector<64x128xf32>
    %c1_125 = arith.constant 1 : index
    %c0_126 = arith.constant 0 : index
    %c0_127 = arith.constant 0 : index
    %293 = vector.load %arg11[%c1_125, %c0_126, %c0_127] : memref<2x1x128xf32, #tpu.memory_space<vmem>>, vector<1x1x128xf32>
    %294 = vector.shape_cast %293 : vector<1x1x128xf32> to vector<1x128xf32>
    %295 = vector.broadcast %294 : vector<1x128xf32> to vector<64x128xf32>
    %296 = arith.mulf %292, %295 : vector<64x128xf32>
    %c1_128 = arith.constant 1 : index
    %c0_129 = arith.constant 0 : index
    %c0_130 = arith.constant 0 : index
    %297 = vector.load %arg12[%c1_128, %c0_129, %c0_130] : memref<2x1x128xf32, #tpu.memory_space<vmem>>, vector<1x1x128xf32>
    %298 = vector.shape_cast %297 : vector<1x1x128xf32> to vector<1x128xf32>
    %299 = vector.broadcast %298 : vector<1x128xf32> to vector<64x128xf32>
    %300 = arith.addf %296, %299 : vector<64x128xf32>
    %301 = arith.addf %182, %300 : vector<64x128xf32>
    %302 = arith.truncf %301 : vector<64x128xf32> to vector<64x128xbf16>
    %c1_131 = arith.constant 1 : index
    %c0_132 = arith.constant 0 : index
    %c0_133 = arith.constant 0 : index
    %303 = vector.load %arg13[%c1_131, %c0_132, %c0_133] : memref<2x128x256xbf16, #tpu.memory_space<vmem>>, vector<1x128x256xbf16>
    %304 = vector.shape_cast %303 : vector<1x128x256xbf16> to vector<128x256xbf16>
    %cst_134 = arith.constant dense<0.000000e+00> : vector<64x256xf32>
    %305 = tpu.matmul %302, %304, %cst_134 {dimension_numbers = #tpu.dot_dimension_numbers<[1], [0], [0], [1], [0, 0, 1, 1], [], []>} : vector<64x128xbf16>, vector<128x256xbf16>, vector<64x256xf32> -> vector<64x256xf32>
    %c1_135 = arith.constant 1 : index
    %c0_136 = arith.constant 0 : index
    %c0_137 = arith.constant 0 : index
    %306 = vector.load %arg14[%c1_135, %c0_136, %c0_137] : memref<2x1x256xf32, #tpu.memory_space<vmem>>, vector<1x1x256xf32>
    %307 = vector.shape_cast %306 : vector<1x1x256xf32> to vector<1x256xf32>
    %308 = vector.broadcast %307 : vector<1x256xf32> to vector<64x256xf32>
    %309 = arith.addf %305, %308 : vector<64x256xf32>
    %cst_138 = arith.constant 0.000000e+00 : f32
    %310 = vector.broadcast %cst_138 : f32 to vector<64x256xf32>
    %311 = arith.maximumf %309, %310 : vector<64x256xf32>
    %312 = arith.truncf %311 : vector<64x256xf32> to vector<64x256xbf16>
    %c1_139 = arith.constant 1 : index
    %c0_140 = arith.constant 0 : index
    %c0_141 = arith.constant 0 : index
    %313 = vector.load %arg15[%c1_139, %c0_140, %c0_141] : memref<2x256x128xbf16, #tpu.memory_space<vmem>>, vector<1x256x128xbf16>
    %314 = vector.shape_cast %313 : vector<1x256x128xbf16> to vector<256x128xbf16>
    %cst_142 = arith.constant dense<0.000000e+00> : vector<64x128xf32>
    %315 = tpu.matmul %312, %314, %cst_142 {dimension_numbers = #tpu.dot_dimension_numbers<[1], [0], [0], [1], [0, 0, 1, 1], [], []>} : vector<64x256xbf16>, vector<256x128xbf16>, vector<64x128xf32> -> vector<64x128xf32>
    %316 = arith.addf %301, %315 : vector<64x128xf32>
    %c1_143 = arith.constant 1 : index
    %c0_144 = arith.constant 0 : index
    %c0_145 = arith.constant 0 : index
    %317 = vector.load %arg16[%c1_143, %c0_144, %c0_145] : memref<2x1x128xf32, #tpu.memory_space<vmem>>, vector<1x1x128xf32>
    %318 = vector.shape_cast %317 : vector<1x1x128xf32> to vector<1x128xf32>
    %319 = vector.broadcast %318 : vector<1x128xf32> to vector<64x128xf32>
    %320 = arith.mulf %316, %319 : vector<64x128xf32>
    %c1_146 = arith.constant 1 : index
    %c0_147 = arith.constant 0 : index
    %c0_148 = arith.constant 0 : index
    %321 = vector.load %arg17[%c1_146, %c0_147, %c0_148] : memref<2x1x128xf32, #tpu.memory_space<vmem>>, vector<1x1x128xf32>
    %322 = vector.shape_cast %321 : vector<1x1x128xf32> to vector<1x128xf32>
    %323 = vector.broadcast %322 : vector<1x128xf32> to vector<64x128xf32>
    %324 = arith.addf %320, %323 : vector<64x128xf32>
    %325 = arith.truncf %324 : vector<64x128xf32> to vector<64x128xbf16>
    %c0_149 = arith.constant 0 : index
    %c0_150 = arith.constant 0 : index
    %326 = vector.load %arg18[%c0_149, %c0_150] : memref<128x128xbf16, #tpu.memory_space<vmem>>, vector<128x128xbf16>
    %cst_151 = arith.constant dense<0.000000e+00> : vector<64x128xf32>
    %327 = tpu.matmul %325, %326, %cst_151 {dimension_numbers = #tpu.dot_dimension_numbers<[1], [0], [0], [1], [0, 0, 1, 1], [], []>} : vector<64x128xbf16>, vector<128x128xbf16>, vector<64x128xf32> -> vector<64x128xf32>
    %c0_152 = arith.constant 0 : index
    %c0_153 = arith.constant 0 : index
    %328 = vector.load %arg19[%c0_152, %c0_153] : memref<1x128xf32, #tpu.memory_space<vmem>>, vector<1x128xf32>
    %329 = vector.broadcast %328 : vector<1x128xf32> to vector<64x128xf32>
    %330 = arith.addf %327, %329 : vector<64x128xf32>
    %c0_154 = arith.constant 0 : index
    %c0_155 = arith.constant 0 : index
    %c0_156 = arith.constant 0 : index
    %331 = vector.load %arg20[%c0_154, %c0_155, %c0_156] : memref<1x64x128xf32, #tpu.memory_space<vmem>>, vector<1x64x128xf32>
    %332 = vector.shape_cast %331 : vector<1x64x128xf32> to vector<64x128xf32>
    %333 = vector.shape_cast %330 : vector<64x128xf32> to vector<1x64x128xf32>
    tpu.vector_store %arg20[%c0_154, %c0_155, %c0_156], %333 {strides = array<i32>} : memref<1x64x128xf32, #tpu.memory_space<vmem>>, vector<1x64x128xf32>,
    return
  }
  func.func @transform_0(%arg0: i32) -> (i32, i32, i32) {
    %c0_i32 = arith.constant 0 : i32
    %c0_i32_0 = arith.constant 0 : i32
    %c0_i32_1 = arith.constant 0 : i32
    return %arg0, %c0_i32, %c0_i32_0 : i32, i32, i32
  }
  func.func @transform_1(%arg0: i32) -> (i32, i32, i32) {
    %c0_i32 = arith.constant 0 : i32
    %c0_i32_0 = arith.constant 0 : i32
    %c0_i32_1 = arith.constant 0 : i32
    return %arg0, %c0_i32, %c0_i32_0 : i32, i32, i32
  }
  func.func @transform_2(%arg0: i32) -> (i32, i32) {
    %c0_i32 = arith.constant 0 : i32
    %c0_i32_0 = arith.constant 0 : i32
    %c0_i32_1 = arith.constant 0 : i32
    return %c0_i32, %c0_i32_0 : i32, i32
  }
  func.func @transform_3(%arg0: i32) -> (i32, i32) {
    %c0_i32 = arith.constant 0 : i32
    %c0_i32_0 = arith.constant 0 : i32
    %c0_i32_1 = arith.constant 0 : i32
    return %c0_i32, %c0_i32_0 : i32, i32
  }
  func.func @transform_4(%arg0: i32) -> (i32, i32, i32) {
    %c0_i32 = arith.constant 0 : i32
    %c0_i32_0 = arith.constant 0 : i32
    %c0_i32_1 = arith.constant 0 : i32
    %c0_i32_2 = arith.constant 0 : i32
    return %c0_i32, %c0_i32_0, %c0_i32_1 : i32, i32, i32
  }
  func.func @transform_5(%arg0: i32) -> (i32, i32, i32) {
    %c0_i32 = arith.constant 0 : i32
    %c0_i32_0 = arith.constant 0 : i32
    %c0_i32_1 = arith.constant 0 : i32
    %c0_i32_2 = arith.constant 0 : i32
    return %c0_i32, %c0_i32_0, %c0_i32_1 : i32, i32, i32
  }
  func.func @transform_6(%arg0: i32) -> (i32, i32, i32) {
    %c0_i32 = arith.constant 0 : i32
    %c0_i32_0 = arith.constant 0 : i32
    %c0_i32_1 = arith.constant 0 : i32
    %c0_i32_2 = arith.constant 0 : i32
    return %c0_i32, %c0_i32_0, %c0_i32_1 : i32, i32, i32
  }
  func.func @transform_7(%arg0: i32) -> (i32, i32, i32) {
    %c0_i32 = arith.constant 0 : i32
    %c0_i32_0 = arith.constant 0 : i32
    %c0_i32_1 = arith.constant 0 : i32
    %c0_i32_2 = arith.constant 0 : i32
    return %c0_i32, %c0_i32_0, %c0_i32_1 : i32, i32, i32
  }
  func.func @transform_8(%arg0: i32) -> (i32, i32, i32) {
    %c0_i32 = arith.constant 0 : i32
    %c0_i32_0 = arith.constant 0 : i32
    %c0_i32_1 = arith.constant 0 : i32
    %c0_i32_2 = arith.constant 0 : i32
    return %c0_i32, %c0_i32_0, %c0_i32_1 : i32, i32, i32
  }
  func.func @transform_9(%arg0: i32) -> (i32, i32, i32) {
    %c0_i32 = arith.constant 0 : i32
    %c0_i32_0 = arith.constant 0 : i32
    %c0_i32_1 = arith.constant 0 : i32
    %c0_i32_2 = arith.constant 0 : i32
    return %c0_i32, %c0_i32_0, %c0_i32_1 : i32, i32, i32
  }
  func.func @transform_10(%arg0: i32) -> (i32, i32, i32) {
    %c0_i32 = arith.constant 0 : i32
    %c0_i32_0 = arith.constant 0 : i32
    %c0_i32_1 = arith.constant 0 : i32
    %c0_i32_2 = arith.constant 0 : i32
    return %c0_i32, %c0_i32_0, %c0_i32_1 : i32, i32, i32
  }
  func.func @transform_11(%arg0: i32) -> (i32, i32, i32) {
    %c0_i32 = arith.constant 0 : i32
    %c0_i32_0 = arith.constant 0 : i32
    %c0_i32_1 = arith.constant 0 : i32
    %c0_i32_2 = arith.constant 0 : i32
    return %c0_i32, %c0_i32_0, %c0_i32_1 : i32, i32, i32
  }
  func.func @transform_12(%arg0: i32) -> (i32, i32, i32) {
    %c0_i32 = arith.constant 0 : i32
    %c0_i32_0 = arith.constant 0 : i32
    %c0_i32_1 = arith.constant 0 : i32
    %c0_i32_2 = arith.constant 0 : i32
    return %c0_i32, %c0_i32_0, %c0_i32_1 : i32, i32, i32
  }
  func.func @transform_13(%arg0: i32) -> (i32, i32, i32) {
    %c0_i32 = arith.constant 0 : i32
    %c0_i32_0 = arith.constant 0 : i32
    %c0_i32_1 = arith.constant 0 : i32
    %c0_i32_2 = arith.constant 0 : i32
    return %c0_i32, %c0_i32_0, %c0_i32_1 : i32, i32, i32
  }
  func.func @transform_14(%arg0: i32) -> (i32, i32, i32) {
    %c0_i32 = arith.constant 0 : i32
    %c0_i32_0 = arith.constant 0 : i32
    %c0_i32_1 = arith.constant 0 : i32
    %c0_i32_2 = arith.constant 0 : i32
    return %c0_i32, %c0_i32_0, %c0_i32_1 : i32, i32, i32
  }
  func.func @transform_15(%arg0: i32) -> (i32, i32, i32) {
    %c0_i32 = arith.constant 0 : i32
    %c0_i32_0 = arith.constant 0 : i32
    %c0_i32_1 = arith.constant 0 : i32
    %c0_i32_2 = arith.constant 0 : i32
    return %c0_i32, %c0_i32_0, %c0_i32_1 : i32, i32, i32
  }
  func.func @transform_16(%arg0: i32) -> (i32, i32, i32) {
    %c0_i32 = arith.constant 0 : i32
    %c0_i32_0 = arith.constant 0 : i32
    %c0_i32_1 = arith.constant 0 : i32
    %c0_i32_2 = arith.constant 0 : i32
    return %c0_i32, %c0_i32_0, %c0_i32_1 : i32, i32, i32
  }
  func.func @transform_17(%arg0: i32) -> (i32, i32) {
    %c0_i32 = arith.constant 0 : i32
    %c0_i32_0 = arith.constant 0 : i32
    %c0_i32_1 = arith.constant 0 : i32
    return %c0_i32, %c0_i32_0 : i32, i32
  }
  func.func @transform_18(%arg0: i32) -> (i32, i32) {
    %c0_i32 = arith.constant 0 : i32
    %c0_i32_0 = arith.constant 0 : i32
    %c0_i32_1 = arith.constant 0 : i32
    return %c0_i32, %c0_i32_0 : i32, i32
  }
  func.func @transform_19(%arg0: i32) -> (i32, i32, i32) {
    %c0_i32 = arith.constant 0 : i32
    %c0_i32_0 = arith.constant 0 : i32
    %c0_i32_1 = arith.constant 0 : i32
    return %arg0, %c0_i32, %c0_i32_0 : i32, i32, i32
  }
}

</mosaic_0001>

<bundles_post_ra>
// kernel: tpu_custom_call.1
= control target key start
LH: loop header
LB: loop body
LE: loop exit
PB: predicated region body
PF: predicated region fallthrough
CT: control target
= control target key end

     0   :  { %s9736_s0 = inlined_call_operand.vmem [shape: bf16[4,64,64], index: 0, kind: input, shape index: {}]   ;;  %s9737_s1 = inlined_call_operand.vmem [shape: bf16[4,64,16], index: 1, kind: input, shape index: {}]   ;;  %s9738_s2 = inlined_call_operand.vmem [shape: bf16[16,128], index: 2, kind: input, shape index: {}]   ;;  %s9739_s3 = inlined_call_operand.vmem [shape: f32[1,128], index: 3, kind: input, shape index: {}]   ;;  %s9740_s4 = inlined_call_operand.hbm [shape: bf16[2,128,128], index: 4, kind: input, shape index: {}]   ;;  %s9741_s5 = inlined_call_operand.vmem [shape: f32[2,1,128], index: 5, kind: input, shape index: {}]   ;;  %s9742_s6 = inlined_call_operand.vmem [shape: f32[2,1,128], index: 6, kind: input, shape index: {}]   ;;  %s9743_s7 = inlined_call_operand.hbm [shape: bf16[2,128,384], index: 7, kind: input, shape index: {}]   ;;  %s9744_s8 = inlined_call_operand.vmem [shape: f32[2,1,384], index: 8, kind: input, shape index: {}]   ;;  %s9745_s9 = inlined_call_operand.hbm [shape: bf16[2,128,128], index: 9, kind: input, shape index: {}]   ;;  %s9746_s10 = inlined_call_operand.vmem [shape: f32[2,1,128], index: 10, kind: input, shape index: {}]   ;;  %s9747_s11 = inlined_call_operand.vmem [shape: f32[2,1,128], index: 11, kind: input, shape index: {}]   ;;  %s9748_s12 = inlined_call_operand.hbm [shape: bf16[2,128,256], index: 12, kind: input, shape index: {}]   ;;  %s9749_s13 = inlined_call_operand.vmem [shape: f32[2,1,256], index: 13, kind: input, shape index: {}]   ;;  %s9750_s14 = inlined_call_operand.hbm [shape: bf16[2,256,128], index: 14, kind: input, shape index: {}]   ;;  %s9751_s15 = inlined_call_operand.vmem [shape: f32[2,1,128], index: 15, kind: input, shape index: {}]   ;;  %s9752_s16 = inlined_call_operand.vmem [shape: f32[2,1,128], index: 16, kind: input, shape index: {}]   ;;  %s9753_s17 = inlined_call_operand.hbm [shape: bf16[128,128], index: 17, kind: input, shape index: {}]   ;;  %s9754_s18 = inlined_call_operand.vmem [shape: f32[1,128], index: 18, kind: input, shape index: {}]   ;;  %s9755_s19 = inlined_call_operand.hbm [shape: f32[4,64,128], index: 19, kind: output, shape index: {}]  }
   0x1   :  { %9781 = sst [smem:[#allocation44_spill]] %s9736_s0 }
   0x2   :  { %9782 = sst [smem:[#allocation45_spill]] %s9737_s1 }
   0x3   :  { %9783 = sst [smem:[#allocation46_spill]] %s9738_s2 }
   0x4   :  { %9784 = sst [smem:[#allocation47_spill]] %s9739_s3 }
   0x5   :  { %9785 = sst [smem:[#allocation48_spill]] %s9743_s7 }
   0x6   :  { %9786 = sst [smem:[#allocation49_spill]] %s9748_s12 }
   0x7   :  { %9787 = sst [smem:[#allocation50_spill]] %s9754_s18 }
   0x8   :  { %9788 = sst [smem:[#allocation51_spill]] %s9755_s19 }
   0x9   :  { %24 = vsyncpa [#allocation3], 0 }
   0xa   :  { %25 = vsyncpa [#allocation6], 0 }
   0xb   :  { %26 = vsyncpa [#allocation9], 0 }
   0xc   :  { %27 = vsyncpa [#allocation12], 0 }
   0xd   :  { %28 = vsyncpa [#allocation4], 0 }
   0xe   :  { %30 = vsyncpa [#allocation4 + $0x1], 0  ;;  %s7640_s0 = smov 0   ;;  %s7642_s30 = smov 0  }
   0xf   :  { %s7644_s20 = smov 0   ;;  %s7646_s21 = smov 0  }
  0x10 LB: > { %9789 = sst [smem:[#allocation19_spill]] %s7509_s0  ;;  %s7661_s1 = sadd.s32 4294967295, %s7521_s21   ;;  %s7521_s21 = sphi %s7646_s21, %s9912_s21   ;;  %s7517_s20 = sphi %s7644_s20, %s9915_s20   ;;  %s7513_s30 = sphi %s7642_s30, %s9914_s30   ;;  %s7509_s0 = sphi %s7640_s0, %s9913_s0  }
  0x11   : > { %9790 = sst [smem:[#allocation20_spill]] %s7513_s30  ;;  %s5924_s22 = sadd.s32 4294967294, %s7521_s21  }
  0x12   : > { %9791 = sst [smem:[#allocation21_spill]] %s7517_s20  ;;  %s7665_s2 = sadd.s32 1, %s7521_s21  }
  0x13   : > { %9792 = sst [smem:[#allocation22_spill]] %s7521_s21  ;;  %s452_s23 = sadd.s32 1, %s7517_s20 }
  0x14   : > { %9793 = sst [smem:[#allocation23_spill]] %s7665_s2  ;;  %s449_s24 = ssub.s32 %s7521_s21, %s7665_s2 }
  0x15   : > { %p462_p0 = scmp.ne.s32.totalorder %s7517_s20, %s7513_s30  ;;  %p450_p1 = scmp.eq.s32.totalorder %s449_s24, 0 }
  0x16   : > { %p463_p2 = scmp.eq.s32.totalorder %s7661_s1, 3  ;;  %p468_p3 = scmp.ne.s32.totalorder %s7513_s30, %s7509_s0 }
  0x17   : > { %p469_p4 = scmp.eq.s32.totalorder %s5924_s22, 3  ;;  %p5925_p7 = scmp.ge.s32.totalorder %s7521_s21, 1 }
  0x18   : > { %s7676_s25 = scalar_select %p450_p1, %s7517_s20, %s452_s23  }
  0x19   : > { %p7678_p5 = por %p463_p2, %p462_p0  ;;  %p7682_p6 = por %p469_p4, %p468_p3 }
  0x1a   : > { %9794 = sst [smem:[#allocation24_spill]] %s7676_s25  ;;  %p476_p8 = scmp.lt.s32.totalorder %s7521_s21, 5 }
  0x1b   : > { %s9795_s3 = scalar_select %p7678_p5, 1, 0 }
  0x1c   : > { %s9797_s26 = scalar_select %p7682_p6, 1, 0 }
  0x1d   : > { %9796 = sst [smem:[#allocation25_spill]] %s9795_s3  ;;  %p6923_p9 = scmp.eq.s32.totalorder %s7661_s1, 0 }
  0x1e   : > { %9798 = sst [smem:[#allocation26_spill]] %s9797_s26  ;;  %p7689_p10 = pnand %p5925_p7, %p476_p8 }
  0x1f   : > { %s9800_s7 = sld [smem:[#allocation48_spill]]  ;;  %s7523_s23 = smov [#allocation5]  }
  0x20   : > { %p6900_p11 = pneg %p7689_p10  ;;  %s515_s24 = sshll.u32 %s7523_s23, 4  ;;  %s516_s24 = int_to_ptr.vmem [resolvable:$true] %s515_s24 }
  0x21   : > { %s9802_s12 = sld [smem:[#allocation49_spill]]  ;;  %s7524_s28 = smov 192  }
  0x22   : > { %p7700_p12 = pnand %p6923_p9, %p6900_p11  ;;  %s7525_s29 = smov 12  }
  0x23   : > { %s7527_s0 = smov 128   ;;  %s7528_s21 = smov 8  }
  0x24   : > { %s493_s20 = sshll.u32 %s9740_s4, 4  ;;  %s7529_s2 = smov [#allocation2]   ;;  %s494_s20 = int_to_ptr.hbm [resolvable:$true] %s493_s20 }
  0x25   : > { %s513_s22 = sshll.u32 %s9800_s7, 4  ;;  %s7526_s7 = smov [#allocation8]   ;;  %s514_s22 = int_to_ptr.hbm [resolvable:$true] %s513_s22 }
  0x26   : > { %6906 = dma.hbm_to_vmem [thread:$0]  (!%p7700_p12), %s514_s22, 6144, %s516_s24, [#allocation6], %s7524_s28, %s7524_s28, %s7525_s29  }
  0x27   : > { %s550_s26 = sshll.u32 %s9802_s12, 4  ;;  %s552_s23 = sshll.u32 %s7526_s7, 4  ;;  %s551_s26 = int_to_ptr.hbm [resolvable:$true] %s550_s26  ;;  %s553_s23 = int_to_ptr.vmem [resolvable:$true] %s552_s23 }
  0x28   : > { %6912 = dma.hbm_to_vmem [thread:$0]  (!%p7700_p12), %s551_s26, 4096, %s553_s23, [#allocation9], %s7527_s0, %s7527_s0, %s7528_s21  }
  0x29   : > { %s495_s12 = sshll.u32 %s7529_s2, 4  ;;  %s530_s22 = sshll.u32 %s9745_s9, 4  ;;  %s496_s12 = int_to_ptr.vmem [resolvable:$true] %s495_s12  ;;  %s531_s22 = int_to_ptr.hbm [resolvable:$true] %s530_s22 }
  0x2a   : > { %s7530_s7 = smov 64   ;;  %s7531_s24 = smov 4  }
  0x2b   : > { %6903 = dma.hbm_to_vmem [thread:$0]  (!%p7700_p12), %s494_s20, 2048, %s496_s12, [#allocation3], %s7530_s7, %s7530_s7, %s7531_s24  }
  0x2c   : > { %s7532_s0 = smov [#allocation7]   ;;  %s567_s26 = sshll.u32 %s9750_s14, 4  ;;  %s568_s26 = int_to_ptr.hbm [resolvable:$true] %s567_s26 }
  0x2d   : > { %s532_s21 = sshll.u32 %s7532_s0, 4  ;;  %s587_s30 = sshll.u32 %s9753_s17, 4  ;;  %s533_s21 = int_to_ptr.vmem [resolvable:$true] %s532_s21  ;;  %s588_s30 = int_to_ptr.hbm [resolvable:$true] %s587_s30 }
  0x2e   : > { %6909 = dma.hbm_to_vmem [thread:$0]  (!%p7700_p12), %s531_s22, 2048, %s533_s21, [#allocation6], %s7530_s7, %s7530_s7, %s7531_s24  }
  0x2f   : > { %s7533_s29 = smov [#allocation10]   ;;  %s7534_s12 = smov [#allocation11]  }
  0x30   : > { %s569_s23 = sshll.u32 %s7533_s29, 4  ;;  %s589_s20 = sshll.u32 %s7534_s12, 4  ;;  %s570_s23 = int_to_ptr.vmem [resolvable:$true] %s569_s23  ;;  %s590_s20 = int_to_ptr.vmem [resolvable:$true] %s589_s20 }
  0x31   : > { %6915 = dma.hbm_to_vmem [thread:$0]  (!%p7700_p12), %s568_s26, 4096, %s570_s23, [#allocation9], %s7530_s7, %s7530_s7, %s7531_s24  }
  0x32   : > { %6918 = dma.hbm_to_vmem [thread:$0]  (!%p7700_p12), %s588_s30, 1024, %s590_s20, [#allocation12], %s7530_s7, %s7530_s7, %s7531_s24  }
  0x33   : > { %624 = sbr.rel (%p7689_p10) target bundleno = 4473 (0x1179), region = 96 }
  0x38   : > { %7488 = dma.done.wait (%p6923_p9), [#allocation3], 2048  }
  0x39   : > { %7490 = vsyncadd (%p6923_p9), [#allocation3], 4294965248 }
  0x3a   : > { %7492 = dma.done.wait (%p6923_p9), [#allocation6], 8192  }
  0x3b   : > { %7494 = vsyncadd (%p6923_p9), [#allocation6], 4294959104 }
  0x3c   : > { %7496 = dma.done.wait (%p6923_p9), [#allocation9], 8192  }
  0x3d   : > { %7498 = vsyncadd (%p6923_p9), [#allocation9], 4294959104 }
  0x3e   : > { %7500 = dma.done.wait (%p6923_p9), [#allocation12], 1024  }
  0x3f   : > { %7502 = vsyncadd (%p6923_p9), [#allocation12], 4294966272  ;;  %p711_p13 = scmp.lt.s32.totalorder %s7661_s1, 3  ;;  %s9803_s7 = sld [smem:[#allocation45_spill]]  ;;  %vm770_vm0 = vcmask 130048   ;;  %v6728_v3 = vld [vmem:[#allocation2 + $0x38] sm:$0xff] }
  0x40   : > { %s9804_s19 = sld [smem:[#allocation46_spill]]  ;;  %v6107_v4 = vld [vmem:[#allocation5 + $0xa8] sm:$0xf]  ;;  %v6751_v5 = vld [vmem:[#allocation5 + $0xb0] sm:$0xf0]  ;;  %888 = vmatpush.bf16.msra.mxu1 %v6728_v3  ;;  %v6725_v26 = vld [vmem:[#allocation2 + $0x20] sm:$0xff] }
  0x41   : > { %s7751_s25 = scalar_select %p711_p13, %s7661_s1, 3  ;;  %v6108_v6 = vor.u32 %v6751_v5, %v6107_v4  ;;  %v6750_v7 = vld [vmem:[#allocation5 + $0xac] sm:$0xf]  ;;  %v6109_v8 = vld [vmem:[#allocation5 + $0xb4] sm:$0xf0]  ;;  %v6727_v9 = vld [vmem:[#allocation2 + $0x30] sm:$0xff] }
  0x42   : > { %v6112_v10 = vor.u32 %v6750_v7, %v6109_v8  ;;  %v6095_v11 = vld [vmem:[#allocation5 + $0x90] sm:$0xf]  ;;  %v6748_v12 = vld [vmem:[#allocation5 + $0x98] sm:$0xf0]  ;;  %v6747_v13 = vld [vmem:[#allocation5 + $0x94] sm:$0xf] }
  0x43   : > { %s6710_s27 = sshll.u32 %s7751_s25, 5  ;;  %1183 = vmatpush.bf16.msra.mxu3 %v6108_v6  ;;  %v6096_v14 = vor.u32 %v6748_v12, %v6095_v11  ;;  %v6097_v15 = vld [vmem:[#allocation5 + $0x9c] sm:$0xf0]  ;;  %v6083_v17 = vld [vmem:[#allocation5 + $0x78] sm:$0xf]  ;;  %v6726_v21 = vld [vmem:[#allocation2 + $0x28] sm:$0xff] }
  0x44   : > { %v6100_v16 = vor.u32 %v6747_v13, %v6097_v15  ;;  %v6745_v18 = vld [vmem:[#allocation5 + $0x80] sm:$0xf0]  ;;  %v6744_v19 = vld [vmem:[#allocation5 + $0x7c] sm:$0xf]  ;;  %v6085_v20 = vld [vmem:[#allocation5 + $0x84] sm:$0xf0]  ;;  %889 = vmatpush.bf16.msra.mxu1 %v6727_v9 }
  0x45   : > { %s7759_s24 = scalar_lea.vmem %s9803_s7, %s6710_s27  ;;  %v6084_v22 = vor.u32 %v6745_v18, %v6083_v17  ;;  %v6088_v23 = vor.u32 %v6744_v19, %v6085_v20  ;;  %v6071_v24 = vld [vmem:[#allocation5 + $0x60] sm:$0xf]  ;;  %v6742_v25 = vld [vmem:[#allocation5 + $0x68] sm:$0xf0]  ;;  %v6741_v27 = vld [vmem:[#allocation5 + $0x64] sm:$0xf] }
  0x46   : > { %v6720_v0 = vld [vmem:[%s9804_s19] sm:$0xff]  ;;  %v6717_v2 = vld [vmem:[%s7759_s24 + $0x8] sm:$0xff]  ;;  %v6073_v28 = vld [vmem:[#allocation5 + $0x6c] sm:$0xf0]  ;;  %v6072_v29 = vor.u32 %v6742_v25, %v6071_v24  ;;  %s9805_s28 = sld [smem:[#allocation47_spill]]  ;;  %vm1306_vm1 = vcmask 261120  }
  0x47   : > { %v6716_v1 = vld [vmem:[%s7759_s24] sm:$0xff]  ;;  %790 = vmatpush.bf16.msra.mxu0 %v6720_v0  ;;  %1184 = vmatpush.bf16.msra.mxu3 %v6096_v14  ;;  %v6718_v30 = vld [vmem:[%s7759_s24 + $0x10] sm:$0xff]  ;;  %v6076_v31 = vor.u32 %v6741_v27, %v6073_v28  ;;  %v6719_v32 = vld [vmem:[%s7759_s24 + $0x18] sm:$0xff]  ;;  %s9810_s12 = sld [smem:[#allocation44_spill]]  ;;  %vm941_vm2 = vcmask 523264   ;;  %s7535_s7 = smov 96  }
  0x48   : > { %890 = vmatpush.bf16.msra.mxu1 %v6726_v21  ;;  %v6059_v33 = vld [vmem:[#allocation5 + $0x48] sm:$0xf]  ;;  %v6739_v34 = vld [vmem:[#allocation5 + $0x50] sm:$0xf0]  ;;  %v6738_v35 = vld [vmem:[#allocation5 + $0x4c] sm:$0xf] }
  0x49   : > { %v6724_v36 = vld [vmem:[#allocation2 + $0x18] sm:$0xff]  ;;  %v6060_v37 = vor.u32 %v6739_v34, %v6059_v33  ;;  %v6047_v40 = vld [vmem:[#allocation5 + $0x30] sm:$0xf]  ;;  %v6735_v42 = vld [vmem:[#allocation5 + $0x34] sm:$0xf]  ;;  %s7536_s24 = smov 32  }
  0x4a   : > { %5965 = vmatmul.msk.bf16.vlgmr.msra.gmra.mxu0 %vm770_vm0, %v6716_v1  ;;  %v6061_v38 = vld [vmem:[#allocation5 + $0x54] sm:$0xf0]  ;;  %v6736_v41 = vld [vmem:[#allocation5 + $0x38] sm:$0xf0]  ;;  %v6723_v43 = vld [vmem:[#allocation2 + $0x10] sm:$0xff]  ;;  %s7537_s0 = smov 64  }
  0x4b   : > { %1212 = vmatpush.bf16.msrb.mxu0 %v6112_v10  ;;  %1185 = vmatpush.bf16.msra.mxu3 %v6084_v22  ;;  %v6064_v39 = vor.u32 %v6738_v35, %v6061_v38  ;;  %v6048_v44 = vor.u32 %v6736_v41, %v6047_v40  ;;  %v6049_v45 = vld [vmem:[#allocation5 + $0x3c] sm:$0xf0]  ;;  %v6035_v47 = vld [vmem:[#allocation5 + $0x18] sm:$0xf]  ;;  %v6733_v48 = vld [vmem:[#allocation5 + $0x20] sm:$0xf0] }
  0x4c   : > { %891 = vmatpush.bf16.msra.mxu1 %v6725_v26  ;;  %v6052_v46 = vor.u32 %v6735_v42, %v6049_v45  ;;  %v6732_v49 = vld [vmem:[#allocation5 + $0x1c] sm:$0xf]  ;;  %v6722_v50 = vld [vmem:[#allocation2 + $0x8] sm:$0xff]  ;;  %v6036_v51 = vor.u32 %v6733_v48, %v6035_v47  ;;  %v6023_v54 = vld [vmem:[#allocation5] sm:$0xf]  ;;  %s6873_s18 = sshll.u32 %s7661_s1, 6 }
  0x4d   : > { %v6037_v52 = vld [vmem:[#allocation5 + $0x24] sm:$0xf0]  ;;  %v6730_v55 = vld [vmem:[#allocation5 + $0x8] sm:$0xf0]  ;;  %v6729_v56 = vld [vmem:[#allocation5 + $0x4] sm:$0xf]  ;;  %s7836_s20 = scalar_lea.vmem %s9810_s12, %s6710_s27 }
  0x4e   : > { %v6040_v53 = vor.u32 %v6732_v49, %v6037_v52  ;;  %v6721_v57 = vld [vmem:[#allocation2] sm:$0xff]  ;;  %v6024_v58 = vor.u32 %v6730_v55, %v6023_v54  ;;  %v6025_v59 = vld [vmem:[#allocation5 + $0xc] sm:$0xf0]  ;;  %s9908_s12 = sld [smem:[#allocation51_spill]] }
  0x4f   : > { %1213 = vmatpush.bf16.msrb.mxu0 %v6100_v16  ;;  %1186 = vmatpush.bf16.msra.mxu3 %v6072_v29  ;;  %v6028_v60 = vor.u32 %v6729_v56, %v6025_v59  ;;  %v6985_v62 = vld [vmem:[%s9805_s28] ss:$0 sm:$0xff] }
  0x50   : > { %892 = vmatpush.bf16.msra.mxu1 %v6724_v36  ;;  %v7822_v40 = vld [vmem:[%s9744_s8] sm:$0x7] }
  0x51   : > { %v1050_v41 = vperm.slane %v7822_v40, 1  ;;  %v6712_v59 = vld [vmem:[%s7836_s20] sm:$0xff] }
  0x53   : > { %1214 = vmatpush.bf16.msrb.mxu0 %v6088_v23  ;;  %1187 = vmatpush.bf16.msra.mxu3 %v6060_v37 }
  0x54   : > { %893 = vmatpush.bf16.msra.mxu1 %v6723_v43  ;;  %s5786_s25 = scalar_lea.hbm %s9908_s12, %s6873_s18  ;;  %s7463_s28 = scalar_lea.hbm %s9908_s12, 256 }
  0x55   : > { %s5789_s2 = sshll.u32 %s5786_s25, 4  ;;  %s5790_s2 = int_to_ptr.hbm [resolvable:$true] %s5789_s2 }
  0x56   : > { %s7457_s21 = sshra.s32 %s5790_s2, 4  ;;  %s7458_s21 = int_to_ptr.hbm [resolvable:$true] %s7457_s21 }
  0x57   : > { %1215 = vmatpush.bf16.msrb.mxu0 %v6076_v31  ;;  %1188 = vmatpush.bf16.msra.mxu3 %v6048_v44  ;;  %s7459_s19 = scalar_lea.hbm %s7458_s21, 64  ;;  %p7464_p3 = scmp.lt.s32.totalorder %s7458_s21, %s9908_s12 }
  0x58   : > { %894 = vmatpush.bf16.msra.mxu1 %v6722_v50  ;;  %p7460_p0 = scmp.ne.s32.totalorder %s7458_s21, %s7459_s19  ;;  %p7465_p4 = scmp.lt.s32.totalorder %s7463_s28, %s7459_s19 }
  0x5a   : > { %5966 = vmatmul.msk.bf16.gmra.mxu0 %vm770_vm0, %v6717_v2  ;;  %p7461_p1 = pnand %p7460_p0, %p7678_p5  ;;  %p7466_p7 = por %p7465_p4, %p7464_p3 }
  0x5b   : > { %1216 = vmatpush.bf16.msrb.mxu0 %v6064_v39  ;;  %1189 = vmatpush.bf16.msra.mxu3 %v6036_v51 }
  0x5c   : > { %895 = vmatpush.bf16.msra.mxu1 %v6721_v57  ;;  %p7462_p2 = pneg %p7461_p1 }
  0x5e   : > { %p7467_p8 = pnand %p7466_p7, %p7462_p2 }
  0x5f   : > { %1217 = vmatpush.bf16.msrb.mxu0 %v6052_v46  ;;  %1190 = vmatpush.bf16.msra.mxu3 %v6024_v58 }
  0x63   : > { %1218 = vmatpush.bf16.msrb.mxu0 %v6040_v53 }
  0x67   : > { %1219 = vmatpush.bf16.msrb.mxu0 %v6028_v60 }
  0x6a   : > { %5967 = vmatmul.msk.bf16.gmra.mxu0 %vm770_vm0, %v6718_v30 }
  0x7a   : > { %5968 = vmatmul.msk.bf16.gmra.mxu0 %vm770_vm0, %v6719_v32 }
  0xc7   : > { %v792_v61 = vpop.f32.mrf.mxu0 }
  0xc8   : > { %v793_v63 = vadd.f32 %v6985_v62, %v792_v61  ;;  %v6115_v61 = vld [vmem:[#allocation5 + $0xb0] sm:$0xf] }
  0xca   : > { %v7775_v2 = vmax.f32 %v793_v63, 0.0 }
  0xcf   : > { %v794_v0 = vpop.f32.mrf.mxu0 }
  0xd0   : > { %v795_v1 = vadd.f32 %v6985_v62, %v794_v0 }
  0xd2   : > { %v7777_v3 = vmax.f32 %v795_v1, 0.0  ;;  %v6103_v1 = vld [vmem:[#allocation5 + $0x98] sm:$0xf] }
  0xd4   : > { %v7781_v4 = vpack.c.bf16 %v7777_v3, %v7775_v2 }
  0xd6   : > { %896 = vmatmul.bf16.vlgmr.msra.gmra.mxu1 %v7781_v4  ;;  %1191 = vmatmul.bf16.vlgmr.msra.gmra.mxu3 %v7781_v4 }
  0xd7   : > { %1220 = vmatmul.bf16.vlgmr.msrb.gmra.mxu0 %v7781_v4  ;;  %v797_v5 = vpop.f32.mrf.mxu0 }
  0xd8   : > { %v798_v6 = vadd.f32 %v6985_v62, %v797_v5  ;;  %v6749_v5 = vld [vmem:[#allocation5 + $0xa0] sm:$0xf0] }
  0xda   : > { %v7786_v9 = vmax.f32 %v798_v6, 0.0 }
  0xdf   : > { %v799_v7 = vpop.f32.mrf.mxu0 }
  0xe0   : > { %v800_v8 = vadd.f32 %v6985_v62, %v799_v7 }
  0xe2   : > { %v7788_v10 = vmax.f32 %v800_v8, 0.0  ;;  %v6104_v8 = vor.u32 %v6749_v5, %v6103_v1 }
  0xe4   : > { %v7792_v11 = vpack.c.bf16 %v7788_v10, %v7786_v9 }
  0xe6   : > { %901 = vmatmul.bf16.gmra.mxu1 %v7792_v11  ;;  %1196 = vmatmul.bf16.gmra.mxu3 %v7792_v11 }
  0xe7   : > { %1225 = vmatmul.bf16.gmra.mxu0 %v7792_v11  ;;  %v802_v12 = vpop.f32.mrf.mxu0 }
  0xe8   : > { %v803_v13 = vadd.f32 %v6985_v62, %v802_v12  ;;  %v6091_v12 = vld [vmem:[#allocation5 + $0x80] sm:$0xf] }
  0xea   : > { %v7797_v16 = vmax.f32 %v803_v13, 0.0  ;;  %v6746_v13 = vld [vmem:[#allocation5 + $0x88] sm:$0xf0] }
  0xec   : > { %9806 = vst [vmem:[#allocation27_spill] sm:$0xff] %v7797_v16 }
  0xef   : > { %v804_v14 = vpop.f32.mrf.mxu0 }
  0xf0   : > { %v805_v15 = vadd.f32 %v6985_v62, %v804_v14 }
  0xf2   : > { %v7799_v17 = vmax.f32 %v805_v15, 0.0 }
  0xf4   : > { %9807 = vst [vmem:[#allocation28_spill] sm:$0xff] %v7799_v17  ;;  %v7803_v18 = vpack.c.bf16 %v7799_v17, %v7797_v16 }
  0xf6   : > { %906 = vmatmul.bf16.gmra.mxu1 %v7803_v18  ;;  %1201 = vmatmul.bf16.gmra.mxu3 %v7803_v18 }
  0xf7   : > { %1230 = vmatmul.bf16.gmra.mxu0 %v7803_v18  ;;  %v807_v19 = vpop.f32.mrf.mxu0 }
  0xf8   : > { %v808_v20 = vadd.f32 %v6985_v62, %v807_v19  ;;  %v6092_v19 = vor.u32 %v6746_v13, %v6091_v12 }
  0xfa   : > { %v7808_v23 = vmax.f32 %v808_v20, 0.0  ;;  %v6079_v20 = vld [vmem:[#allocation5 + $0x68] sm:$0xf] }
  0xfc   : > { %9808 = vst [vmem:[#allocation29_spill] sm:$0xff] %v7808_v23 }
  0xff   : > { %v809_v21 = vpop.f32.mrf.mxu0 }
 0x100   : > { %v810_v22 = vadd.f32 %v6985_v62, %v809_v21  ;;  %v6752_v62 = vld [vmem:[#allocation5 + $0xb8] sm:$0xf0]  ;;  %v6743_v21 = vld [vmem:[#allocation5 + $0x70] sm:$0xf0] }
 0x101   : > { %v6116_v0 = vor.u32 %v6752_v62, %v6115_v61  ;;  %v6715_v61 = vld [vmem:[%s7836_s20 + $0x18] sm:$0xff] }
 0x102   : > { %v7810_v24 = vmax.f32 %v810_v22, 0.0  ;;  %v1049_v22 = vperm.slane %v7822_v40, 0 }
 0x104   : > { %9809 = vst [vmem:[#allocation30_spill] sm:$0xff] %v7810_v24  ;;  %v7814_v25 = vpack.c.bf16 %v7810_v24, %v7808_v23 }
 0x106   : > { %911 = vmatmul.bf16.gmra.mxu1 %v7814_v25  ;;  %1206 = vmatmul.bf16.gmra.mxu3 %v7814_v25 }
 0x107   : > { %1235 = vmatmul.bf16.gmra.mxu0 %v7814_v25 }
 0x153   : > { %v897_v26 = vpop.f32.mrf.mxu1 }
 0x154   : > { %v1221_v27 = vpop.f32.mrf.mxu0 }
 0x155   : > { %v1222_v15 = vadd.f32 %v1221_v27, %v1050_v41 }
 0x159   : > { %v1192_v47 = vpop.f32.mrf.mxu3 }
 0x15b   : > { %v899_v28 = vpop.f32.mrf.mxu1 }
 0x15c   : > { %v1223_v29 = vpop.f32.mrf.mxu0  ;;  %v917_v56 = vpack.c.bf16 %v899_v28, %v897_v26 }
 0x15d   : > { %v1224_v6 = vadd.f32 %v1223_v29, %v1050_v41  ;;  %v6080_v29 = vor.u32 %v6743_v21, %v6079_v20 }
 0x15f   : > { %v7847_v26 = vpack.c.bf16 %v1224_v6, %v1222_v15 }
 0x161   : > { %v1194_v55 = vpop.f32.mrf.mxu3 }
 0x162   : > { %v1195_v28 = vadd.f32 %v1194_v55, %v1049_v22 }
 0x163   : > { %v902_v30 = vpop.f32.mrf.mxu1 }
 0x164   : > { %v1226_v31 = vpop.f32.mrf.mxu0 }
 0x165   : > { %v1227_v60 = vadd.f32 %v1226_v31, %v1050_v41  ;;  %v1320_v31 = vsel %vm1306_vm1, %v7847_v26, 0 }
 0x169   : > { %v1197_v14 = vpop.f32.mrf.mxu3 }
 0x16b   : > { %v904_v32 = vpop.f32.mrf.mxu1 }
 0x16c   : > { %v1228_v33 = vpop.f32.mrf.mxu0  ;;  %v918_v53 = vpack.c.bf16 %v904_v32, %v902_v30  ;;  %v1193_v30 = vadd.f32 %v1192_v47, %v1049_v22  ;;  %v6713_v32 = vld [vmem:[%s7836_s20 + $0x8] sm:$0xff]  ;;  %v6731_v47 = vld [vmem:[#allocation5 + $0x10] sm:$0xf0] }
 0x16d   : > { %v1229_v57 = vadd.f32 %v1228_v33, %v1050_v41  ;;  %v1287_v33 = vmul.f32 0.17677669, %v1195_v28 }
 0x16f   : > { %v7841_v63 = vpack.c.bf16 %v1229_v57, %v1227_v60 }
 0x171   : > { %v1323_v7 = vsel %vm1306_vm1, %v7841_v63, 0  ;;  %v1199_v27 = vpop.f32.mrf.mxu3 }
 0x173   : > { %v907_v34 = vpop.f32.mrf.mxu1 }
 0x174   : > { %v1231_v35 = vpop.f32.mrf.mxu0 }
 0x175   : > { %v1232_v52 = vadd.f32 %v1231_v35, %v1050_v41  ;;  %v6740_v35 = vld [vmem:[#allocation5 + $0x58] sm:$0xf0] }
 0x17b   : > { %v909_v36 = vpop.f32.mrf.mxu1 }
 0x17c   : > { %v1233_v37 = vpop.f32.mrf.mxu0  ;;  %v919_v49 = vpack.c.bf16 %v909_v36, %v907_v34  ;;  %v6067_v34 = vld [vmem:[#allocation5 + $0x50] sm:$0xf]  ;;  %v1286_v36 = vmul.f32 0.17677669, %v1193_v30  ;;  %v6986_v30 = vld [vmem:[%s9741_s5] ss:$0 sm:$0xff] }
 0x17d   : > { %v1234_v50 = vadd.f32 %v1233_v37, %v1050_v41  ;;  %v6068_v37 = vor.u32 %v6740_v35, %v6067_v34 }
 0x17f   : > { %v7829_v54 = vpack.c.bf16 %v1234_v50, %v1232_v52  ;;  %v1200_v50 = vadd.f32 %v1199_v27, %v1049_v22  ;;  %v1198_v52 = vadd.f32 %v1197_v14, %v1049_v22 }
 0x181   : > { %v1326_v58 = vsel %vm1306_vm1, %v7829_v54, 0  ;;  %v1289_v55 = vmul.f32 0.17677669, %v1200_v50 }
 0x183   : > { %v912_v38 = vpop.f32.mrf.mxu1 }
 0x184   : > { %v1236_v39 = vpop.f32.mrf.mxu0 }
 0x185   : > { %v1237_v45 = vadd.f32 %v1236_v39, %v1050_v41  ;;  %v6055_v39 = vld [vmem:[#allocation5 + $0x38] sm:$0xf] }
 0x18b   : > { %v914_v42 = vpop.f32.mrf.mxu1 }
 0x18c   : > { %v1238_v43 = vpop.f32.mrf.mxu0  ;;  %v920_v44 = vpack.c.bf16 %v914_v42, %v912_v38  ;;  %v7853_v38 = vpack.c.bf16 %v1287_v33, %v1286_v36 }
 0x18d   : > { %v1239_v46 = vadd.f32 %v1238_v43, %v1050_v41  ;;  %v6737_v41 = vld [vmem:[#allocation5 + $0x40] sm:$0xf0]  ;;  %v6043_v43 = vld [vmem:[#allocation5 + $0x20] sm:$0xf] }
 0x18e   : > { %958 = vmatpush.bf16.msra.mxu2 %v920_v44  ;;  %v6056_v42 = vor.u32 %v6737_v41, %v6055_v39  ;;  %v6734_v44 = vld [vmem:[#allocation5 + $0x28] sm:$0xf0] }
 0x18f   : > { %v7825_v48 = vpack.c.bf16 %v1239_v46, %v1237_v45  ;;  %v6044_v45 = vor.u32 %v6734_v44, %v6043_v43  ;;  %v6031_v46 = vld [vmem:[#allocation5 + $0x8] sm:$0xf] }
 0x191   : > { %v1329_v51 = vsel %vm1306_vm1, %v7825_v48, 0 }
 0x192   : > { %1335 = vmatpush.bf16.xpose.msrb.mxu1 %v1329_v51  ;;  %959 = vmatpush.bf16.msra.mxu2 %v919_v49  ;;  %v1202_v49 = vpop.f32.mrf.mxu3  ;;  %v6032_v51 = vor.u32 %v6731_v47, %v6031_v46 }
 0x193   : > { %v1203_v60 = vadd.f32 %v1202_v49, %v1049_v22 }
 0x195   : > { %v1290_v1 = vmul.f32 0.17677669, %v1203_v60 }
 0x196   : > { %960 = vmatpush.bf16.msra.mxu2 %v918_v53  ;;  %v6714_v53 = vld [vmem:[%s7836_s20 + $0x10] sm:$0xff] }
 0x19a   : > { %1336 = vmatpush.bf16.xpose.msrb.mxu1 %v1326_v58  ;;  %961 = vmatpush.bf16.msra.mxu2 %v917_v56  ;;  %v1288_v56 = vmul.f32 0.17677669, %v1198_v52  ;;  %v1204_v58 = vpop.f32.mrf.mxu3 }
 0x19c   : > { %v7859_v57 = vpack.c.bf16 %v1289_v55, %v1288_v56 }
 0x19d   : > { %6017 = vmatmul.msk.bf16.vlgmr.msra.gmra.mxu2 %vm941_vm2, %v6712_v59  ;;  %v1205_v59 = vadd.f32 %v1204_v58, %v1049_v22 }
 0x19e   : > { %1241 = vmatpush.bf16.msrb.mxu2 %v6116_v0 }
 0x19f   : > { %v1291_v0 = vmul.f32 0.17677669, %v1205_v59 }
 0x1a1   : > { %v7865_v5 = vpack.c.bf16 %v1291_v0, %v1290_v1 }
 0x1a2   : > { %1337 = vmatpush.bf16.xpose.msrb.mxu1 %v1323_v7  ;;  %1242 = vmatpush.bf16.msrb.mxu2 %v6104_v8  ;;  %v1207_v62 = vpop.f32.mrf.mxu3 }
 0x1a3   : > { %v1208_v8 = vadd.f32 %v1207_v62, %v1049_v22 }
 0x1a5   : > { %v1292_v13 = vmul.f32 0.17677669, %v1208_v8 }
 0x1a6   : > { %1243 = vmatpush.bf16.msrb.mxu2 %v6092_v19 }
 0x1aa   : > { %1338 = vmatpush.bf16.xpose.msrb.mxu1 %v1320_v31  ;;  %1244 = vmatpush.bf16.msrb.mxu2 %v6080_v29  ;;  %v1209_v6 = vpop.f32.mrf.mxu3 }
 0x1ab   : > { %v1210_v7 = vadd.f32 %v1209_v6, %v1049_v22 }
 0x1ad   : > { %6018 = vmatmul.msk.bf16.gmra.mxu2 %vm941_vm2, %v6713_v32  ;;  %v1293_v12 = vmul.f32 0.17677669, %v1210_v7  ;;  %v6987_v32 = vld [vmem:[%s9742_s6] ss:$0 sm:$0xff] }
 0x1ae   : > { %1245 = vmatpush.bf16.msrb.mxu2 %v6068_v37 }
 0x1af   : > { %v7870_v14 = vpack.c.bf16 %v1293_v12, %v1292_v13  ;;  %v1051_v12 = vperm.slane %v7822_v40, 2 }
 0x1b1   : > { %6117 = vmatmul.msk.bf16.vlgmr.msrb.gmra.mxu1 %vm1306_vm1, %v7853_v38 }
 0x1b2   : > { %1246 = vmatpush.bf16.msrb.mxu2 %v6056_v42 }
 0x1b6   : > { %1247 = vmatpush.bf16.msrb.mxu2 %v6044_v45 }
 0x1ba   : > { %1248 = vmatpush.bf16.msrb.mxu2 %v6032_v51 }
 0x1bd   : > { %6019 = vmatmul.msk.bf16.gmra.mxu2 %vm941_vm2, %v6714_v53 }
 0x1c1   : > { %6118 = vmatmul.msk.bf16.gmra.mxu1 %vm1306_vm1, %v7859_v57 }
 0x1cd   : > { %6020 = vmatmul.msk.bf16.gmra.mxu2 %vm941_vm2, %v6715_v61 }
 0x1d1   : > { %6119 = vmatmul.msk.bf16.gmra.mxu1 %vm1306_vm1, %v7865_v5 }
 0x1dd   : > { %1249 = vmatmul.bf16.vlgmr.msrb.gmra.mxu2 %v7781_v4 }
 0x1e1   : > { %6120 = vmatmul.msk.bf16.gmra.mxu1 %vm1306_vm1, %v7870_v14 }
 0x1ed   : > { %1254 = vmatmul.bf16.gmra.mxu2 %v7792_v11 }
 0x1fd   : > { %1259 = vmatmul.bf16.gmra.mxu2 %v7803_v18 }
 0x20d   : > { %1264 = vmatmul.bf16.gmra.mxu2 %v7814_v25 }
 0x220   : > { %v7877_v15 = vpop.f32.mrf.mxu2 }
 0x228   : > { %v7879_v19 = vpop.f32.mrf.mxu2 }
 0x22e   : > { %v7881_v20 = vpop.f32.mrf.mxu1 }
 0x22f   : > { %v1360_v4 = vsel %vm941_vm2, %v7881_v20, -inf }
 0x230   : > { %1361 = vmax.xlane.f32.xlu0 %v1360_v4  ;;  %v7885_v21 = vpop.f32.mrf.mxu2 }
 0x236   : > { %v7887_v22 = vpop.f32.mrf.mxu1 }
 0x237   : > { %v1363_v11 = vsel %vm941_vm2, %v7887_v22, -inf }
 0x238   : > { %1364 = vmax.xlane.f32.xlu0 %v1363_v11  ;;  %v7891_v18 = vpop.f32.mrf.mxu2 }
 0x23e   : > { %v7893_v25 = vpop.f32.mrf.mxu1 }
 0x23f   : > { %v1366_v28 = vsel %vm941_vm2, %v7893_v25, -inf }
 0x240   : > { %1367 = vmax.xlane.f32.xlu1 %v1366_v28  ;;  %v973_v29 = vpop.f32.mrf.mxu2 }
 0x241   : > { %v987_v31 = vadd.f32 %v973_v29, %v7797_v16 }
 0x243   : > { %v999_v33 = vmul.f32 %v6986_v30, %v987_v31 }
 0x245   : > { %v7904_v27 = vadd.f32 %v6987_v32, %v999_v33 }
 0x246   : > { %v7906_v34 = vpop.f32.mrf.mxu1 }
 0x247   : > { %9811 = vst [vmem:[#allocation31_spill] sm:$0xff] %v7904_v27  ;;  %v1369_v35 = vsel %vm941_vm2, %v7906_v34, -inf }
 0x248   : > { %1370 = vmax.xlane.f32.xlu1 %v1369_v35  ;;  %v975_v36 = vpop.f32.mrf.mxu2 }
 0x249   : > { %v988_v37 = vadd.f32 %v975_v36, %v7799_v17 }
 0x24b   : > { %v1000_v39 = vmul.f32 %v6986_v30, %v988_v37 }
 0x24d   : > { %v7911_v41 = vadd.f32 %v6987_v32, %v1000_v39 }
 0x24e   : > { %v7913_v42 = vpop.f32.mrf.mxu1 }
 0x24f   : > { %9812 = vst [vmem:[#allocation32_spill] sm:$0xff] %v7911_v41  ;;  %v1372_v43 = vsel %vm941_vm2, %v7913_v42, -inf }
 0x250   : > { %1373 = vmax.xlane.f32.xlu2 %v1372_v43  ;;  %v978_v44 = vpop.f32.mrf.mxu2 }
 0x251   : > { %v989_v45 = vadd.f32 %v978_v44, %v7808_v23 }
 0x253   : > { %v1001_v46 = vmul.f32 %v6986_v30, %v989_v45 }
 0x255   : > { %v7918_v47 = vadd.f32 %v6987_v32, %v1001_v46 }
 0x256   : > { %v7920_v49 = vpop.f32.mrf.mxu1 }
 0x257   : > { %9813 = vst [vmem:[#allocation33_spill] sm:$0xff] %v7918_v47  ;;  %v1375_v50 = vsel %vm941_vm2, %v7920_v49, -inf }
 0x258   : > { %1376 = vmax.xlane.f32.xlu2 %v1375_v50  ;;  %v980_v51 = vpop.f32.mrf.mxu2 }
 0x259   : > { %v990_v52 = vadd.f32 %v980_v51, %v7810_v24 }
 0x25b   : > { %v1002_v53 = vmul.f32 %v6986_v30, %v990_v52 }
 0x25d   : > { %v7925_v55 = vadd.f32 %v6987_v32, %v1002_v53 }
 0x25e   : > { %v7927_v56 = vpop.f32.mrf.mxu1 }
 0x25f   : > { %9814 = vst [vmem:[#allocation34_spill] sm:$0xff] %v7925_v55  ;;  %v1378_v58 = vsel %vm941_vm2, %v7927_v56, -inf }
 0x260   : > { %1379 = vmax.xlane.f32.xlu0 %v1378_v58  ;;  %v1250_v59 = vpop.f32.mrf.mxu2 }
 0x261   : > { %v1251_v39 = vadd.f32 %v1250_v59, %v1051_v12 }
 0x266   : > { %v7931_v60 = vpop.f32.mrf.mxu1 }
 0x267   : > { %v1381_v61 = vsel %vm941_vm2, %v7931_v60, -inf }
 0x268   : > { %1382 = vmax.xlane.f32.xlu1 %v1381_v61  ;;  %v1252_v62 = vpop.f32.mrf.mxu2 }
 0x269   : > { %v1253_v35 = vadd.f32 %v1252_v62, %v1051_v12 }
 0x26b   : > { %v7946_v44 = vpack.c.bf16 %v1253_v35, %v1251_v39 }
 0x270   : > { %v1255_v0 = vpop.f32.mrf.mxu2 }
 0x271   : > { %v1256_v33 = vadd.f32 %v1255_v0, %v1051_v12 }
 0x278   : > { %v1257_v1 = vpop.f32.mrf.mxu2 }
 0x279   : > { %v1258_v31 = vadd.f32 %v1257_v1, %v1051_v12 }
 0x27b   : > { %v7942_v36 = vpack.c.bf16 %v1258_v31, %v1256_v33 }
 0x280   : > { %v1260_v6 = vpop.f32.mrf.mxu2 }
 0x281   : > { %v1261_v30 = vadd.f32 %v1260_v6, %v1051_v12 }
 0x288   : > { %v1262_v7 = vpop.f32.mrf.mxu2 }
 0x289   : > { %v1263_v28 = vadd.f32 %v1262_v7, %v1051_v12 }
 0x28b   : > { %v7939_v32 = vpack.c.bf16 %v1263_v28, %v1261_v30 }
 0x290   : > { %v1265_v8 = vpop.f32.mrf.mxu2 }
 0x291   : > { %v1266_v4 = vadd.f32 %v1265_v8, %v1051_v12 }
 0x298   : > { %v1267_v13 = vpop.f32.mrf.mxu2 }
 0x299   : > { %v1268_v11 = vadd.f32 %v1267_v13, %v1051_v12 }
 0x29b   : > { %v7936_v29 = vpack.c.bf16 %v1268_v11, %v1266_v4 }
 0x29d   : > { %1572 = vmatpush.bf16.msrb.mxu3 %v7936_v29 }
 0x2a1   : > { %1573 = vmatpush.bf16.msrb.mxu3 %v7939_v32 }
 0x2a3   : > { %v1362_v37 = vpop.xlane.xlu0 %1361 }
 0x2a4   : > { %v1384_v40 = vsub.f32 %v7881_v20, %v1362_v37 }
 0x2a5   : > { %1574 = vmatpush.bf16.msrb.mxu3 %v7942_v36 }
 0x2a6   : > { %v1392_v43 = vmul.f32 1.442695, %v1384_v40 }
 0x2a8   : > { %6999 = vpow2.f32 %v1392_v43 }
 0x2a9   : > { %1575 = vmatpush.bf16.msrb.mxu3 %v7946_v44 }
 0x2ab   : > { %v1365_v45 = vpop.xlane.xlu0 %1364 }
 0x2ac   : > { %v1385_v46 = vsub.f32 %v7887_v22, %v1365_v45 }
 0x2ae   : > { %v7950_v50 = vpop.eup %6999  ;;  %v1394_v51 = vmul.f32 1.442695, %v1385_v46 }
 0x2af   : > { %v1408_v52 = vsel %vm941_vm2, %v7950_v50, 0.0 }
 0x2b0   : > { %7001 = vpow2.f32 %v1394_v51  ;;  %1409 = vadd.xlane.f32.xlu2 %v1408_v52 }
 0x2b3   : > { %v1368_v20 = vpop.xlane.xlu1 %1367 }
 0x2b4   : > { %v1386_v53 = vsub.f32 %v7893_v25, %v1368_v20 }
 0x2b6   : > { %v7955_v58 = vpop.eup %7001  ;;  %v1396_v59 = vmul.f32 1.442695, %v1386_v53 }
 0x2b7   : > { %v1411_v61 = vsel %vm941_vm2, %v7955_v58, 0.0 }
 0x2b8   : > { %7003 = vpow2.f32 %v1396_v59  ;;  %1412 = vadd.xlane.f32.xlu0 %v1411_v61 }
 0x2bb   : > { %v1371_v22 = vpop.xlane.xlu1 %1370 }
 0x2bc   : > { %v1387_v62 = vsub.f32 %v7906_v34, %v1371_v22 }
 0x2be   : > { %v7960_v0 = vpop.eup %7003  ;;  %v1398_v1 = vmul.f32 1.442695, %v1387_v62 }
 0x2bf   : > { %v1414_v6 = vsel %vm941_vm2, %v7960_v0, 0.0 }
 0x2c0   : > { %7005 = vpow2.f32 %v1398_v1  ;;  %1415 = vadd.xlane.f32.xlu1 %v1414_v6 }
 0x2c3   : > { %v1374_v25 = vpop.xlane.xlu2 %1373 }
 0x2c4   : > { %v1388_v7 = vsub.f32 %v7913_v42, %v1374_v25 }
 0x2c6   : > { %v7965_v8 = vpop.eup %7005  ;;  %v1400_v12 = vmul.f32 1.442695, %v1388_v7 }
 0x2c7   : > { %v1417_v13 = vsel %vm941_vm2, %v7965_v8, 0.0 }
 0x2c8   : > { %7007 = vpow2.f32 %v1400_v12  ;;  %1418 = vadd.xlane.f32.xlu2 %v1417_v13 }
 0x2cb   : > { %v1377_v34 = vpop.xlane.xlu2 %1376 }
 0x2cc   : > { %v1389_v4 = vsub.f32 %v7920_v49, %v1377_v34 }
 0x2ce   : > { %v7970_v11 = vpop.eup %7007  ;;  %v1402_v28 = vmul.f32 1.442695, %v1389_v4 }
 0x2cf   : > { %v1420_v30 = vsel %vm941_vm2, %v7970_v11, 0.0 }
 0x2d0   : > { %7009 = vpow2.f32 %v1402_v28  ;;  %1421 = vadd.xlane.f32.xlu0 %v1420_v30 }
 0x2d3   : > { %v1380_v42 = vpop.xlane.xlu0 %1379 }
 0x2d4   : > { %v1390_v31 = vsub.f32 %v7927_v56, %v1380_v42 }
 0x2d6   : > { %v7975_v33 = vpop.eup %7009  ;;  %v1404_v35 = vmul.f32 1.442695, %v1390_v31 }
 0x2d7   : > { %v1423_v37 = vsel %vm941_vm2, %v7975_v33, 0.0 }
 0x2d8   : > { %7011 = vpow2.f32 %v1404_v35  ;;  %1424 = vadd.xlane.f32.xlu1 %v1423_v37 }
 0x2db   : > { %v1383_v49 = vpop.xlane.xlu1 %1382 }
 0x2dc   : > { %v1391_v40 = vsub.f32 %v7931_v60, %v1383_v49 }
 0x2de   : > { %v7980_v39 = vpop.eup %7011  ;;  %v1406_v43 = vmul.f32 1.442695, %v1391_v40 }
 0x2df   : > { %v1426_v45 = vsel %vm941_vm2, %v7980_v39, 0.0 }
 0x2e0   : > { %7013 = vpow2.f32 %v1406_v43  ;;  %1427 = vadd.xlane.f32.xlu2 %v1426_v45 }
 0x2e6   : > { %v7984_v56 = vpop.eup %7013 }
 0x2e7   : > { %v1429_v46 = vsel %vm941_vm2, %v7984_v56, 0.0 }
 0x2e8   : > { %1430 = vadd.xlane.f32.xlu0 %v1429_v46 }
 0x2f1   : > { %1623 = vrot.lane.b32.xlu1 %v7825_v48, %s7535_s7 }
 0x2f8   : > { %1621 = vrot.lane.b32.xlu2 %v7829_v54, %s7535_s7 }
 0x2f9   : > { %1605 = vrot.lane.b32.xlu1 %v7853_v38, %s7535_s7 }
 0x2fc   : > { %1619 = vrot.lane.b32.xlu0 %v7841_v63, %s7535_s7 }
 0x300   : > { %1617 = vrot.lane.b32.xlu2 %v7847_v26, %s7535_s7 }
 0x301   : > { %1609 = vrot.lane.b32.xlu1 %v7865_v5, %s7535_s7 }
 0x304   : > { %1607 = vrot.lane.b32.xlu0 %v7859_v57, %s7535_s7 }
 0x308   : > { %2438 = vrot.lane.b32.xlu2 %v7825_v48, %s7536_s24 }
 0x309   : > { %2053 = vrot.lane.b32.xlu1 %v7829_v54, %s7537_s0 }
 0x30c   : > { %2055 = vrot.lane.b32.xlu0 %v7825_v48, %s7537_s0 }
 0x310   : > { %2436 = vrot.lane.b32.xlu2 %v7829_v54, %s7536_s24 }
 0x311   : > { %2051 = vrot.lane.b32.xlu1 %v7841_v63, %s7537_s0 }
 0x314   : > { %2434 = vrot.lane.b32.xlu0 %v7841_v63, %s7536_s24 }
 0x318   : > { %1611 = vrot.lane.b32.xlu2 %v7870_v14, %s7535_s7 }
 0x319   : > { %2424 = vrot.lane.b32.xlu1 %v7853_v38, %s7536_s24 }
 0x31c   : > { %2432 = vrot.lane.b32.xlu0 %v7847_v26, %s7536_s24 }
 0x320   : > { %2049 = vrot.lane.b32.xlu2 %v7847_v26, %s7537_s0 }
 0x321   : > { %2043 = vrot.lane.b32.xlu1 %v7859_v57, %s7537_s0 }
 0x323   : > { %v1410_v48 = vpop.xlane.xlu2 %1409 }
 0x324   : > { %7015 = vrcp.f32 %v1410_v48  ;;  %2041 = vrot.lane.b32.xlu0 %v7853_v38, %s7537_s0  ;;  %v1443_v53 = vand.u32 2147483648, %v1410_v48  ;;  %vm1437_vm4 = vweird.f32 %v1410_v48  ;;  %v1441_v59 = vand.u32 2147483647, %v1410_v48 }
 0x326   : > { %vm1442_vm7 = vcmp.eq.f32.partialorder %v1441_v59, 8.507059e+37 }
 0x328   : > { %2426 = vrot.lane.b32.xlu2 %v7859_v57, %s7536_s24 }
 0x329   : > { %2430 = vrot.lane.b32.xlu1 %v7870_v14, %s7536_s24 }
 0x32a   : > { %v7016_v54 = vpop.eup %7015 }
 0x32b   : > { %v1433_v63 = vmul.f32 %v7016_v54, %v1410_v48  ;;  %v1413_v60 = vpop.xlane.xlu0 %1412  ;;  %vm1438_vm3 = vweird.f32 %v7016_v54 }
 0x32c   : > { %7017 = vrcp.f32 %v1413_v60  ;;  %2428 = vrot.lane.b32.xlu0 %v7865_v5, %s7536_s24  ;;  %vm1439_vm5 = vmor %vm1437_vm4, %vm1438_vm3  ;;  %v1458_v22 = vand.u32 2147483648, %v1413_v60  ;;  %v1456_v1 = vand.u32 2147483647, %v1413_v60  ;;  %vm1452_vm8 = vweird.f32 %v1413_v60 }
 0x32d   : > { %v1434_v26 = vsub.f32 1.0, %v1433_v63 }
 0x32e   : > { %v1459_v12 = vor.u32 1.1754944e-38, %v1458_v22  ;;  %vm1457_vm10 = vcmp.eq.f32.partialorder %v1456_v1, 8.507059e+37 }
 0x32f   : > { %v1435_v51 = vmul.f32 %v7016_v54, %v1434_v26  ;;  %v6754_v26 = vld [vmem:[#allocation7 + $0x8] sm:$0xff] }
 0x330   : > { %2045 = vrot.lane.b32.xlu2 %v7865_v5, %s7537_s0  ;;  %v1444_v5 = vor.u32 1.1754944e-38, %v1443_v53  ;;  %2018 = vmatpush.bf16.msra.mxu3 %v6754_v26 }
 0x331   : > { %v1436_v38 = vadd.f32 %v7016_v54, %v1435_v51 }
 0x332   : > { %v7018_v52 = vpop.eup %7017 }
 0x333   : > { %v1448_v20 = vmul.f32 %v7018_v52, %v1413_v60  ;;  %v1416_v57 = vpop.xlane.xlu1 %1415  ;;  %vm1453_vm6 = vweird.f32 %v7018_v52  ;;  %v1440_v6 = vsel %vm1439_vm5, %v7016_v54, %v1436_v38 }
 0x334   : > { %7019 = vrcp.f32 %v1416_v57  ;;  %2047 = vrot.lane.b32.xlu0 %v7870_v14, %s7537_s0  ;;  %vm1454_vm9 = vmor %vm1452_vm8, %vm1453_vm6  ;;  %v1445_v13 = vsel %vm1442_vm7, %v1444_v5, %v1440_v6  ;;  %v1473_v46 = vand.u32 2147483648, %v1416_v57  ;;  %vm1467_vm12 = vweird.f32 %v1416_v57 }
 0x335   : > { %v1449_v61 = vsub.f32 1.0, %v1448_v20  ;;  %v1446_v42 = vmul.f32 %v7950_v50, %v1445_v13  ;;  %v1471_v54 = vand.u32 2147483647, %v1416_v57 }
 0x336   : > { %v1474_v51 = vor.u32 1.1754944e-38, %v1473_v46 }
 0x337   : > { %v1450_v62 = vmul.f32 %v7018_v52, %v1449_v61  ;;  %vm1472_vm0 = vcmp.eq.f32.partialorder %v1471_v54, 8.507059e+37 }
 0x339   : > { %v1451_v25 = vadd.f32 %v7018_v52, %v1450_v62 }
 0x33a   : > { %v7020_v7 = vpop.eup %7019 }
 0x33b   : > { %v1463_v34 = vmul.f32 %v7020_v7, %v1416_v57  ;;  %v1419_v14 = vpop.xlane.xlu2 %1418  ;;  %v1455_v4 = vsel %vm1454_vm9, %v7018_v52, %v1451_v25  ;;  %vm1468_vm11 = vweird.f32 %v7020_v7  ;;  %v6753_v57 = vld [vmem:[#allocation7] sm:$0xff] }
 0x33c   : > { %7021 = vrcp.f32 %v1419_v14  ;;  %v1460_v28 = vsel %vm1457_vm10, %v1459_v12, %v1455_v4  ;;  %v1488_v63 = vand.u32 2147483648, %v1419_v14  ;;  %vm1469_vm13 = vmor %vm1467_vm12, %vm1468_vm11  ;;  %vm1482_vm15 = vweird.f32 %v1419_v14  ;;  %2019 = vmatpush.bf16.msra.mxu3 %v6753_v57 }
 0x33d   : > { %v1464_v30 = vsub.f32 1.0, %v1463_v34  ;;  %v1461_v31 = vmul.f32 %v7955_v58, %v1460_v28  ;;  %v1486_v58 = vand.u32 2147483647, %v1419_v14 }
 0x33e   : > { %v1489_v53 = vor.u32 1.1754944e-38, %v1488_v63 }
 0x33f   : > { %v1465_v35 = vmul.f32 %v7020_v7, %v1464_v30  ;;  %v1552_v37 = vpack.c.bf16 %v1461_v31, %v1446_v42  ;;  %vm1487_vm4 = vcmp.eq.f32.partialorder %v1486_v58, 8.507059e+37 }
 0x341   : > { %6121 = vmatmul.msk.bf16.vlgmr.msrb.gmra.mxu3 %vm941_vm2, %v1552_v37  ;;  %v1466_v45 = vadd.f32 %v7020_v7, %v1465_v35 }
 0x342   : > { %v7022_v49 = vpop.eup %7021 }
 0x343   : > { %v1478_v40 = vmul.f32 %v7022_v49, %v1419_v14  ;;  %v1422_v43 = vpop.xlane.xlu0 %1421  ;;  %v1470_v50 = vsel %vm1469_vm13, %v7020_v7, %v1466_v45  ;;  %vm1483_vm14 = vweird.f32 %v7022_v49 }
 0x344   : > { %7023 = vrcp.f32 %v1422_v43  ;;  %v1475_v20 = vsel %vm1472_vm0, %v1474_v51, %v1470_v50  ;;  %vm1484_vm3 = vmor %vm1482_vm15, %vm1483_vm14  ;;  %v1503_v4 = vand.u32 2147483648, %v1422_v43  ;;  %vm1497_vm6 = vweird.f32 %v1422_v43 }
 0x345   : > { %v1479_v48 = vsub.f32 1.0, %v1478_v40  ;;  %v1476_v6 = vmul.f32 %v7960_v0, %v1475_v20  ;;  %v1501_v30 = vand.u32 2147483647, %v1422_v43 }
 0x346   : > { %v1504_v35 = vor.u32 1.1754944e-38, %v1503_v4 }
 0x347   : > { %v1480_v60 = vmul.f32 %v7022_v49, %v1479_v48  ;;  %vm1502_vm10 = vcmp.eq.f32.partialorder %v1501_v30, 8.507059e+37 }
 0x349   : > { %v1481_v52 = vadd.f32 %v7022_v49, %v1480_v60 }
 0x34a   : > { %v7024_v38 = vpop.eup %7023 }
 0x34b   : > { %v1493_v59 = vmul.f32 %v7024_v38, %v1422_v43  ;;  %v1425_v61 = vpop.xlane.xlu1 %1424  ;;  %v1485_v22 = vsel %vm1484_vm3, %v7022_v49, %v1481_v52  ;;  %vm1498_vm5 = vweird.f32 %v7024_v38 }
 0x34c   : > { %7025 = vrcp.f32 %v1425_v61  ;;  %v1490_v62 = vsel %vm1487_vm4, %v1489_v53, %v1485_v22  ;;  %v1518_v42 = vand.u32 2147483648, %v1425_v61  ;;  %vm1499_vm7 = vmor %vm1497_vm6, %vm1498_vm5  ;;  %vm1512_vm9 = vweird.f32 %v1425_v61 }
 0x34d   : > { %v1494_v1 = vsub.f32 1.0, %v1493_v59  ;;  %v1491_v5 = vmul.f32 %v7965_v8, %v1490_v62  ;;  %v1516_v8 = vand.u32 2147483647, %v1425_v61 }
 0x34e   : > { %v1519_v45 = vor.u32 1.1754944e-38, %v1518_v42 }
 0x34f   : > { %v1495_v25 = vmul.f32 %v7024_v38, %v1494_v1  ;;  %v1553_v7 = vpack.c.bf16 %v1491_v5, %v1476_v6  ;;  %vm1517_vm12 = vcmp.eq.f32.partialorder %v1516_v8, 8.507059e+37 }
 0x351   : > { %6122 = vmatmul.msk.bf16.gmra.mxu3 %vm941_vm2, %v1553_v7  ;;  %v1496_v14 = vadd.f32 %v7024_v38, %v1495_v25 }
 0x352   : > { %v7026_v12 = vpop.eup %7025 }
 0x353   : > { %v1508_v13 = vmul.f32 %v7026_v12, %v1425_v61  ;;  %v1428_v34 = vpop.xlane.xlu2 %1427  ;;  %v1500_v31 = vsel %vm1499_vm7, %v7024_v38, %v1496_v14  ;;  %vm1513_vm8 = vweird.f32 %v7026_v12 }
 0x354   : > { %7027 = vrcp.f32 %v1428_v34  ;;  %v1505_v40 = vsel %vm1502_vm10, %v1504_v35, %v1500_v31  ;;  %vm1514_vm11 = vmor %vm1512_vm9, %vm1513_vm8  ;;  %v1533_v61 = vand.u32 2147483648, %v1428_v34  ;;  %vm1527_vm14 = vweird.f32 %v1428_v34 }
 0x355   : > { %v1509_v28 = vsub.f32 1.0, %v1508_v13  ;;  %v1506_v50 = vmul.f32 %v7970_v11, %v1505_v40  ;;  %v1531_v62 = vand.u32 2147483647, %v1428_v34 }
 0x356   : > { %v1534_v5 = vor.u32 1.1754944e-38, %v1533_v61 }
 0x357   : > { %v1510_v0 = vmul.f32 %v7026_v12, %v1509_v28  ;;  %vm1532_vm4 = vcmp.eq.f32.partialorder %v1531_v62, 8.507059e+37 }
 0x359   : > { %v1511_v37 = vadd.f32 %v7026_v12, %v1510_v0 }
 0x35a   : > { %v7028_v49 = vpop.eup %7027 }
 0x35b   : > { %v1523_v46 = vmul.f32 %v7028_v49, %v1428_v34  ;;  %v1622_v48 = vpop.permute.xlu2 %1621  ;;  %v1431_v54 = vpop.xlane.xlu0 %1430  ;;  %v1515_v63 = vsel %vm1514_vm11, %v7026_v12, %v1511_v37  ;;  %vm1528_vm13 = vweird.f32 %v7028_v49 }
 0x35c   : > { %7029 = vrcp.f32 %v1431_v54  ;;  %v1520_v43 = vsel %vm1517_vm12, %v1519_v45, %v1515_v63  ;;  %v1548_v11 = vand.u32 2147483648, %v1431_v54  ;;  %vm1529_vm15 = vmor %vm1527_vm14, %vm1528_vm13  ;;  %v1546_v6 = vand.u32 2147483647, %v1431_v54 }
 0x35d   : > { %v1524_v60 = vsub.f32 1.0, %v1523_v46  ;;  %v1521_v58 = vmul.f32 %v7975_v33, %v1520_v43  ;;  %vm1542_vm3 = vweird.f32 %v1431_v54  ;;  %v1644_v34 = vsel %vm1306_vm1, %v1622_v48, 0 }
 0x35e   : > { %v1549_v12 = vor.u32 1.1754944e-38, %v1548_v11  ;;  %vm1547_vm6 = vcmp.eq.f32.partialorder %v1546_v6, 8.507059e+37 }
 0x35f   : > { %v1525_v26 = vmul.f32 %v7028_v49, %v1524_v60  ;;  %v1554_v51 = vpack.c.bf16 %v1521_v58, %v1506_v50 }
 0x361   : > { %6123 = vmatmul.msk.bf16.gmra.mxu3 %vm941_vm2, %v1554_v51  ;;  %v1526_v59 = vadd.f32 %v7028_v49, %v1525_v26 }
 0x362   : > { %v7030_v52 = vpop.eup %7029 }
 0x363   : > { %v1538_v38 = vmul.f32 %v7030_v52, %v1431_v54  ;;  %v1618_v20 = vpop.permute.xlu2 %1617  ;;  %v1624_v53 = vpop.permute.xlu1 %1623  ;;  %v1530_v1 = vsel %vm1529_vm15, %v7028_v49, %v1526_v59  ;;  %vm1543_vm0 = vweird.f32 %v7030_v52 }
 0x364   : > { %v1647_v22 = vsel %vm1306_vm1, %v1624_v53, 0  ;;  %v1535_v7 = vsel %vm1532_vm4, %v1534_v5, %v1530_v1  ;;  %vm1544_vm5 = vmor %vm1542_vm3, %vm1543_vm0  ;;  %v1638_v46 = vsel %vm1306_vm1, %v1618_v20, 0 }
 0x365   : > { %v1539_v57 = vsub.f32 1.0, %v1538_v38  ;;  %1653 = vmatpush.bf16.xpose.msra.mxu0 %v1647_v22  ;;  %v1536_v30 = vmul.f32 %v7980_v39, %v1535_v7 }
 0x367   : > { %v1540_v33 = vmul.f32 %v7030_v52, %v1539_v57 }
 0x369   : > { %v1541_v25 = vadd.f32 %v7030_v52, %v1540_v33 }
 0x36b   : > { %v2439_v13 = vpop.permute.xlu2 %2438  ;;  %v1545_v14 = vsel %vm1544_vm5, %v7030_v52, %v1541_v25  ;;  %v1606_v0 = vpop.permute.xlu1 %1605 }
 0x36c   : > { %v2462_v4 = vsel %vm1306_vm1, %v2439_v13, 0  ;;  %v1550_v28 = vsel %vm1547_vm6, %v1549_v12, %v1545_v14 }
 0x36d   : > { %1654 = vmatpush.bf16.xpose.msra.mxu0 %v1644_v34  ;;  %2468 = vmatpush.bf16.xpose.msrb.mxu3 %v2462_v4  ;;  %v1551_v42 = vmul.f32 %v7984_v56, %v1550_v28 }
 0x36e   : > { %v1620_v31 = vpop.permute.xlu0 %1619 }
 0x36f   : > { %v1555_v8 = vpack.c.bf16 %v1551_v42, %v1536_v30  ;;  %v1641_v37 = vsel %vm1306_vm1, %v1620_v31, 0 }
 0x371   : > { %6124 = vmatmul.msk.bf16.gmra.mxu3 %vm941_vm2, %v1555_v8 }
 0x373   : > { %v2437_v35 = vpop.permute.xlu2 %2436  ;;  %v1610_v45 = vpop.permute.xlu1 %1609 }
 0x374   : > { %v2459_v49 = vsel %vm1306_vm1, %v2437_v35, 0 }
 0x375   : > { %1655 = vmatpush.bf16.xpose.msra.mxu0 %v1641_v37  ;;  %2469 = vmatpush.bf16.xpose.msrb.mxu3 %v2459_v49 }
 0x376   : > { %v1608_v40 = vpop.permute.xlu0 %1607 }
 0x37b   : > { %v2054_v48 = vpop.permute.xlu1 %2053  ;;  %v1612_v60 = vpop.permute.xlu2 %1611 }
 0x37c   : > { %v2076_v63 = vsel %vm1306_vm1, %v2054_v48, 0 }
 0x37d   : > { %1656 = vmatpush.bf16.xpose.msra.mxu0 %v1638_v46 }
 0x37e   : > { %v2056_v39 = vpop.permute.xlu0 %2055 }
 0x37f   : > { %v2079_v56 = vsel %vm1306_vm1, %v2056_v39, 0 }
 0x383   : > { %v2052_v50 = vpop.permute.xlu1 %2051  ;;  %v2050_v52 = vpop.permute.xlu2 %2049 }
 0x384   : > { %6125 = vmatmul.msk.bf16.vlgmr.msra.gmra.mxu0 %vm1306_vm1, %v1606_v0  ;;  %v2073_v26 = vsel %vm1306_vm1, %v2052_v50, 0  ;;  %v2070_v38 = vsel %vm1306_vm1, %v2050_v52, 0 }
 0x385   : > { %2085 = vmatpush.bf16.xpose.msrb.mxu0 %v2079_v56 }
 0x386   : > { %v2435_v54 = vpop.permute.xlu0 %2434 }
 0x387   : > { %v2456_v43 = vsel %vm1306_vm1, %v2435_v54, 0 }
 0x388   : > { %2470 = vmatpush.bf16.xpose.msrb.mxu3 %v2456_v43 }
 0x38b   : > { %v2425_v59 = vpop.permute.xlu1 %2424  ;;  %v2427_v11 = vpop.permute.xlu2 %2426 }
 0x38d   : > { %2086 = vmatpush.bf16.xpose.msrb.mxu0 %v2076_v63 }
 0x38e   : > { %v2433_v58 = vpop.permute.xlu0 %2432 }
 0x38f   : > { %v2453_v51 = vsel %vm1306_vm1, %v2433_v58, 0 }
 0x390   : > { %2471 = vmatpush.bf16.xpose.msrb.mxu3 %v2453_v51 }
 0x393   : > { %v2044_v57 = vpop.permute.xlu1 %2043  ;;  %v2046_v6 = vpop.permute.xlu2 %2045 }
 0x394   : > { %6126 = vmatmul.msk.bf16.gmra.mxu0 %vm1306_vm1, %v1608_v40 }
 0x395   : > { %2087 = vmatpush.bf16.xpose.msrb.mxu0 %v2073_v26 }
 0x396   : > { %v2042_v20 = vpop.permute.xlu0 %2041 }
 0x39b   : > { %v2431_v63 = vpop.permute.xlu1 %2430 }
 0x39d   : > { %2088 = vmatpush.bf16.xpose.msrb.mxu0 %v2070_v38 }
 0x39e   : > { %v2429_v25 = vpop.permute.xlu0 %2428 }
 0x3a4   : > { %6127 = vmatmul.msk.bf16.gmra.mxu0 %vm1306_vm1, %v1610_v45 }
 0x3a6   : > { %v2048_v13 = vpop.permute.xlu0 %2047 }
 0x3b4   : > { %6128 = vmatmul.msk.bf16.gmra.mxu0 %vm1306_vm1, %v1612_v60 }
 0x3c4   : > { %v1577_v53 = vpop.f32.mrf.mxu3  ;;  %6157 = vmatmul.msk.bf16.vlgmr.msrb.gmra.mxu0 %vm1306_vm1, %v2042_v20 }
 0x3cc   : > { %v1579_v61 = vpop.f32.mrf.mxu3 }
 0x3cd   : > { %v1597_v22 = vpack.c.bf16 %v1579_v61, %v1577_v53 }
 0x3cf   : > { %6153 = vmatmul.msk.bf16.vlgmr.msra.gmra.mxu3 %vm1306_vm1, %v1597_v22 }
 0x3d4   : > { %v1582_v62 = vpop.f32.mrf.mxu3  ;;  %6158 = vmatmul.msk.bf16.gmra.mxu0 %vm1306_vm1, %v2044_v57 }
 0x3dc   : > { %v1584_v33 = vpop.f32.mrf.mxu3 }
 0x3dd   : > { %v1598_v1 = vpack.c.bf16 %v1584_v33, %v1582_v62 }
 0x3df   : > { %6154 = vmatmul.msk.bf16.gmra.mxu3 %vm1306_vm1, %v1598_v1 }
 0x3e4   : > { %v1587_v5 = vpop.f32.mrf.mxu3  ;;  %6159 = vmatmul.msk.bf16.gmra.mxu0 %vm1306_vm1, %v2046_v6 }
 0x3ec   : > { %v1589_v7 = vpop.f32.mrf.mxu3 }
 0x3ed   : > { %v1599_v12 = vpack.c.bf16 %v1589_v7, %v1587_v5 }
 0x3ef   : > { %6155 = vmatmul.msk.bf16.gmra.mxu3 %vm1306_vm1, %v1599_v12 }
 0x3f4   : > { %v1592_v14 = vpop.f32.mrf.mxu3  ;;  %6160 = vmatmul.msk.bf16.gmra.mxu0 %vm1306_vm1, %v2048_v13 }
 0x3fc   : > { %v1594_v4 = vpop.f32.mrf.mxu3 }
 0x3fd   : > { %v1600_v34 = vpack.c.bf16 %v1594_v4, %v1592_v14 }
 0x3ff   : > { %6156 = vmatmul.msk.bf16.gmra.mxu3 %vm1306_vm1, %v1600_v34 }
 0x401   : > { %v1658_v28 = vpop.f32.mrf.mxu0 }
 0x402   : > { %v1678_v30 = vsel %vm941_vm2, %v1658_v28, -inf }
 0x403   : > { %1679 = vmax.xlane.f32.xlu2 %v1678_v30 }
 0x409   : > { %v1660_v42 = vpop.f32.mrf.mxu0 }
 0x40a   : > { %v1681_v0 = vsel %vm941_vm2, %v1660_v42, -inf }
 0x40b   : > { %1682 = vmax.xlane.f32.xlu1 %v1681_v0 }
 0x40f   : > { %6177 = vmatmul.msk.bf16.vlgmr.msrb.gmra.mxu3 %vm1306_vm1, %v2425_v59 }
 0x411   : > { %v8075_v31 = vpop.f32.mrf.mxu0 }
 0x412   : > { %v1684_v8 = vsel %vm941_vm2, %v8075_v31, -inf }
 0x413   : > { %1685 = vmax.xlane.f32.xlu0 %v1684_v8 }
 0x419   : > { %v1665_v35 = vpop.f32.mrf.mxu0 }
 0x41a   : > { %v1687_v37 = vsel %vm941_vm2, %v1665_v35, -inf }
 0x41b   : > { %1688 = vmax.xlane.f32.xlu2 %v1687_v37 }
 0x41f   : > { %6178 = vmatmul.msk.bf16.gmra.mxu3 %vm1306_vm1, %v2427_v11 }
 0x421   : > { %v8081_v49 = vpop.f32.mrf.mxu0 }
 0x422   : > { %v1690_v40 = vsel %vm941_vm2, %v8081_v49, -inf }
 0x423   : > { %1691 = vmax.xlane.f32.xlu1 %v1690_v40 }
 0x429   : > { %v8085_v45 = vpop.f32.mrf.mxu0 }
 0x42a   : > { %v1693_v46 = vsel %vm941_vm2, %v8085_v45, -inf }
 0x42b   : > { %1694 = vmax.xlane.f32.xlu0 %v1693_v46 }
 0x42f   : > { %6179 = vmatmul.msk.bf16.gmra.mxu3 %vm1306_vm1, %v2429_v25 }
 0x431   : > { %v8090_v39 = vpop.f32.mrf.mxu0 }
 0x432   : > { %v1696_v56 = vsel %vm941_vm2, %v8090_v39, -inf }
 0x433   : > { %1697 = vmax.xlane.f32.xlu2 %v1696_v56 }
 0x439   : > { %v8094_v48 = vpop.f32.mrf.mxu0 }
 0x43a   : > { %v1699_v54 = vsel %vm941_vm2, %v8094_v48, -inf }
 0x43b   : > { %1700 = vmax.xlane.f32.xlu1 %v1699_v54 }
 0x43f   : > { %1882 = vrot.lane.b32.xlu0 %v7939_v32, %s7535_s7  ;;  %6180 = vmatmul.msk.bf16.gmra.mxu3 %vm1306_vm1, %v2431_v63 }
 0x441   : > { %v8101_v43 = vpop.f32.mrf.mxu0 }
 0x442   : > { %v2110_v60 = vsel %vm941_vm2, %v8101_v43, -inf }
 0x443   : > { %2111 = vmax.xlane.f32.xlu2 %v2110_v60 }
 0x447   : > { %2312 = vrot.lane.b32.xlu0 %v7936_v29, %s7537_s0 }
 0x449   : > { %v8107_v50 = vpop.f32.mrf.mxu0 }
 0x44a   : > { %v2113_v11 = vsel %vm941_vm2, %v8107_v50, -inf }
 0x451   : > { %v8115_v58 = vpop.f32.mrf.mxu0 }
 0x452   : > { %v8125_v20 = vpop.f32.mrf.mxu3  ;;  %v2116_v25 = vsel %vm941_vm2, %v8115_v58, -inf }
 0x454   : > { %1884 = vrot.lane.b32.xlu1 %v7936_v29, %s7535_s7 }
 0x459   : > { %v8119_v26 = vpop.f32.mrf.mxu0 }
 0x45a   : > { %v2119_v51 = vsel %vm941_vm2, %v8119_v26, -inf  ;;  %v8133_v57 = vpop.f32.mrf.mxu3 }
 0x45b   : > { %1878 = vrot.lane.b32.xlu2 %v7946_v44, %s7535_s7 }
 0x45c   : > { %1880 = vrot.lane.b32.xlu1 %v7942_v36, %s7535_s7 }
 0x461   : > { %v8123_v52 = vpop.f32.mrf.mxu0 }
 0x462   : > { %v2122_v59 = vsel %vm941_vm2, %v8123_v52, -inf  ;;  %v8141_v5 = vpop.f32.mrf.mxu3 }
 0x464   : > { %2695 = vrot.lane.b32.xlu1 %v7936_v29, %s7536_s24 }
 0x469   : > { %v8129_v22 = vpop.f32.mrf.mxu0 }
 0x46a   : > { %v2125_v7 = vsel %vm941_vm2, %v8129_v22, -inf  ;;  %v8152_v0 = vpop.f32.mrf.mxu3 }
 0x471   : > { %2120 = vmax.xlane.f32.xlu0 %v2119_v51  ;;  %v8139_v33 = vpop.f32.mrf.mxu0 }
 0x472   : > { %v2128_v8 = vsel %vm941_vm2, %v8139_v33, -inf  ;;  %v8165_v51 = vpop.f32.mrf.mxu3 }
 0x476   : > { %v1680_v38 = vpop.xlane.xlu2 %1679 }
 0x477   : > { %v1702_v53 = vsub.f32 %v1658_v28, %v1680_v38 }
 0x479   : > { %v1710_v61 = vmul.f32 1.442695, %v1702_v53  ;;  %2123 = vmax.xlane.f32.xlu0 %v2122_v59  ;;  %v8147_v34 = vpop.f32.mrf.mxu0 }
 0x47b   : > { %7031 = vpow2.f32 %v1710_v61 }
 0x47e   : > { %v1683_v1 = vpop.xlane.xlu1 %1682 }
 0x47f   : > { %v1703_v6 = vsub.f32 %v1660_v42, %v1683_v1  ;;  %v2131_v42 = vsel %vm941_vm2, %v8147_v34, -inf }
 0x481   : > { %v8131_v29 = vpop.eup %7031  ;;  %v1712_v12 = vmul.f32 1.442695, %v1703_v6 }
 0x482   : > { %v1726_v62 = vsel %vm941_vm2, %v8131_v29, 0.0 }
 0x483   : > { %1727 = vadd.xlane.f32.xlu0 %v1726_v62  ;;  %7033 = vpow2.f32 %v1712_v12 }
 0x484   : > { %2114 = vmax.xlane.f32.xlu2 %v2113_v11 }
 0x486   : > { %v1686_v14 = vpop.xlane.xlu0 %1685 }
 0x487   : > { %v1704_v30 = vsub.f32 %v8075_v31, %v1686_v14 }
 0x489   : > { %v1714_v37 = vmul.f32 1.442695, %v1704_v30  ;;  %v8157_v46 = vpop.eup %7033 }
 0x48a   : > { %v1729_v31 = vsel %vm941_vm2, %v8157_v46, 0.0 }
 0x48c   : > { %2117 = vmax.xlane.f32.xlu2 %v2116_v25 }
 0x48e   : > { %v1689_v13 = vpop.xlane.xlu2 %1688  ;;  %2126 = vmax.xlane.f32.xlu1 %v2125_v7 }
 0x48f   : > { %v1705_v4 = vsub.f32 %v1665_v35, %v1689_v13 }
 0x491   : > { %v1716_v28 = vmul.f32 1.442695, %v1705_v4 }
 0x493   : > { %7035 = vpow2.f32 %v1716_v28 }
 0x494   : > { %2132 = vmax.xlane.f32.xlu2 %v2131_v42  ;;  %7037 = vpow2.f32 %v1714_v37 }
 0x496   : > { %v1692_v40 = vpop.xlane.xlu1 %1691  ;;  %2129 = vmax.xlane.f32.xlu1 %v2128_v8 }
 0x497   : > { %v1706_v35 = vsub.f32 %v8081_v49, %v1692_v40 }
 0x499   : > { %v1718_v56 = vmul.f32 1.442695, %v1706_v35  ;;  %v8159_v54 = vpop.eup %7035 }
 0x49a   : > { %v1735_v63 = vsel %vm941_vm2, %v8159_v54, 0.0  ;;  %v8168_v38 = vpop.eup %7037 }
 0x49b   : > { %7039 = vpow2.f32 %v1718_v56  ;;  %v1732_v62 = vsel %vm941_vm2, %v8168_v38, 0.0 }
 0x49c   : > { %1730 = vadd.xlane.f32.xlu2 %v1729_v31 }
 0x49e   : > { %v1695_v60 = vpop.xlane.xlu0 %1694  ;;  %1736 = vadd.xlane.f32.xlu1 %v1735_v63 }
 0x49f   : > { %v1707_v49 = vsub.f32 %v8085_v45, %v1695_v60  ;;  %v8179_v45 = vpop.f32.mrf.mxu3 }
 0x4a0   : > { %9815 = vst [vmem:[#allocation35_spill] sm:$0xff] %v8179_v45 }
 0x4a1   : > { %v8170_v53 = vpop.eup %7039  ;;  %v1720_v59 = vmul.f32 1.442695, %v1707_v49 }
 0x4a2   : > { %v1738_v61 = vsel %vm941_vm2, %v8170_v53, 0.0 }
 0x4a3   : > { %7041 = vpow2.f32 %v1720_v59  ;;  %1739 = vadd.xlane.f32.xlu0 %v1738_v61 }
 0x4a4   : > { %1733 = vadd.xlane.f32.xlu2 %v1732_v62 }
 0x4a6   : > { %v1698_v11 = vpop.xlane.xlu2 %1697 }
 0x4a7   : > { %v1708_v1 = vsub.f32 %v8090_v39, %v1698_v11  ;;  %v8188_v39 = vpop.f32.mrf.mxu3 }
 0x4a8   : > { %9816 = vst [vmem:[#allocation36_spill] sm:$0xff] %v8188_v39 }
 0x4a9   : > { %v8177_v6 = vpop.eup %7041  ;;  %v1722_v25 = vmul.f32 1.442695, %v1708_v1 }
 0x4aa   : > { %v1741_v7 = vsel %vm941_vm2, %v8177_v6, 0.0 }
 0x4ab   : > { %7043 = vpow2.f32 %v1722_v25  ;;  %1742 = vadd.xlane.f32.xlu1 %v1741_v7 }
 0x4ae   : > { %v1701_v12 = vpop.xlane.xlu1 %1700 }
 0x4af   : > { %v1709_v13 = vsub.f32 %v8094_v48, %v1701_v12  ;;  %v8195_v48 = vpop.f32.mrf.mxu3 }
 0x4b0   : > { %9817 = vst [vmem:[#allocation37_spill] sm:$0xff] %v8195_v48 }
 0x4b1   : > { %v8184_v14 = vpop.eup %7043  ;;  %v1724_v4 = vmul.f32 1.442695, %v1709_v13  ;;  %v1883_v63 = vpop.permute.xlu0 %1882 }
 0x4b2   : > { %v1744_v28 = vsel %vm941_vm2, %v8184_v14, 0.0 }
 0x4b3   : > { %7045 = vpow2.f32 %v1724_v4  ;;  %1745 = vadd.xlane.f32.xlu2 %v1744_v28 }
 0x4b6   : > { %v2112_v30 = vpop.xlane.xlu2 %2111 }
 0x4b7   : > { %v2134_v42 = vsub.f32 %v8101_v43, %v2112_v30  ;;  %v8203_v31 = vpop.f32.mrf.mxu3 }
 0x4b8   : > { %v2493_v60 = vsel %vm941_vm2, %v8203_v31, -inf }
 0x4b9   : > { %v8191_v8 = vpop.eup %7045  ;;  %v2142_v37 = vmul.f32 1.442695, %v2134_v42  ;;  %v2313_v61 = vpop.permute.xlu0 %2312 }
 0x4ba   : > { %v1747_v40 = vsel %vm941_vm2, %v8191_v8, 0.0 }
 0x4bb   : > { %7047 = vpow2.f32 %v2142_v37  ;;  %1748 = vadd.xlane.f32.xlu0 %v1747_v40 }
 0x4be   : > { %v1879_v59 = vpop.permute.xlu2 %1878 }
 0x4bf   : > { %v8207_v62 = vpop.f32.mrf.mxu3 }
 0x4c1   : > { %v8197_v35 = vpop.eup %7047 }
 0x4c2   : > { %v2158_v56 = vsel %vm941_vm2, %v8197_v35, 0.0 }
 0x4c3   : > { %2159 = vadd.xlane.f32.xlu2 %v2158_v56 }
 0x4c4   : > { %2308 = vrot.lane.b32.xlu1 %v7942_v36, %s7537_s0 }
 0x4c6   : > { %v1885_v43 = vpop.permute.xlu1 %1884 }
 0x4c7   : > { %1906 = vmatpush.bf16.msra.mxu2 %v1885_v43  ;;  %v8209_v1 = vpop.f32.mrf.mxu3 }
 0x4cb   : > { %1907 = vmatpush.bf16.msra.mxu2 %v1883_v63  ;;  %2494 = vmax.xlane.f32.xlu2 %v2493_v60 }
 0x4ce   : > { %v1881_v49 = vpop.permute.xlu1 %1880 }
 0x4cf   : > { %1908 = vmatpush.bf16.msra.mxu2 %v1881_v49  ;;  %v8213_v25 = vpop.f32.mrf.mxu3 }
 0x4d0   : > { %v2502_v12 = vsel %vm941_vm2, %v8213_v25, -inf }
 0x4d3   : > { %1909 = vmatpush.bf16.msra.mxu2 %v1879_v59 }
 0x4d6   : > { %v2696_v11 = vpop.permute.xlu1 %2695 }
 0x4d7   : > { %2334 = vmatpush.bf16.msrb.mxu2 %v2313_v61  ;;  %2717 = vmatpush.bf16.msra.mxu0 %v2696_v11 }
 0x4e3   : > { %2310 = vrot.lane.b32.xlu2 %v7939_v32, %s7537_s0 }
 0x4e4   : > { %v2121_v7 = vpop.xlane.xlu0 %2120 }
 0x4e5   : > { %v2137_v30 = vsub.f32 %v8119_v26, %v2121_v7 }
 0x4e7   : > { %v2148_v37 = vmul.f32 1.442695, %v2137_v30 }
 0x4ec   : > { %v8217_v13 = vpop.xlane.xlu0 %2123 }
 0x4ee   : > { %2503 = vmax.xlane.f32.xlu1 %v2502_v12 }
 0x4f6   : > { %v1728_v40 = vpop.xlane.xlu0 %1727 }
 0x4f7   : > { %v2115_v4 = vpop.xlane.xlu2 %2114  ;;  %vm1755_vm8 = vweird.f32 %v1728_v40  ;;  %v1761_v24 = vand.u32 2147483648, %v1728_v40 }
 0x4f8   : > { %v2135_v28 = vsub.f32 %v8107_v50, %v2115_v4 }
 0x4f9   : > { %v1762_v41 = vor.u32 1.1754944e-38, %v1761_v24 }
 0x4fa   : > { %v2144_v42 = vmul.f32 1.442695, %v2135_v28 }
 0x4fc   : > { %7049 = vpow2.f32 %v2144_v42 }
 0x4fd   : > { %7051 = vrcp.f32 %v1728_v40 }
 0x4fe   : > { %7053 = vpow2.f32 %v2148_v37 }
 0x4ff   : > { %v8221_v56 = vpop.xlane.xlu2 %2117 }
 0x501   : > { %v8223_v43 = vpop.xlane.xlu1 %2126 }
 0x502   : > { %v8225_v63 = vpop.eup %7049 }
 0x503   : > { %v2161_v60 = vsel %vm941_vm2, %v8225_v63, 0.0  ;;  %v7052_v49 = vpop.eup %7051 }
 0x504   : > { %2162 = vadd.xlane.f32.xlu0 %v2161_v60  ;;  %v8233_v26 = vpop.eup %7053  ;;  %v1751_v61 = vmul.f32 %v7052_v49, %v1728_v40  ;;  %vm1756_vm7 = vweird.f32 %v7052_v49 }
 0x505   : > { %v2167_v11 = vsel %vm941_vm2, %v8233_v26, 0.0  ;;  %vm1757_vm9 = vmor %vm1755_vm8, %vm1756_vm7 }
 0x506   : > { %v1752_v7 = vsub.f32 1.0, %v1751_v61  ;;  %v1759_v61 = vand.u32 2147483647, %v1728_v40 }
 0x507   : > { %v8229_v50 = vpop.xlane.xlu2 %2132  ;;  %2691 = vrot.lane.b32.xlu1 %v7942_v36, %s7536_s24  ;;  %v8242_v36 = vpop.f32.mrf.mxu3 }
 0x508   : > { %v1753_v28 = vmul.f32 %v7052_v49, %v1752_v7  ;;  %vm1760_vm11 = vcmp.eq.f32.partialorder %v1759_v61, 8.507059e+37 }
 0x509   : > { %v8235_v59 = vpop.xlane.xlu1 %2129 }
 0x50a   : > { %v1754_v42 = vadd.f32 %v7052_v49, %v1753_v28 }
 0x50c   : > { %2168 = vadd.xlane.f32.xlu2 %v2167_v11  ;;  %v1758_v7 = vsel %vm1757_vm9, %v7052_v49, %v1754_v42 }
 0x50d   : > { %v1763_v27 = vsel %vm1760_vm11, %v1762_v41, %v1758_v7 }
 0x50e   : > { %v1764_v24 = vmul.f32 %v8131_v29, %v1763_v27 }
 0x50f   : > { %v1731_v12 = vpop.xlane.xlu2 %1730  ;;  %v8255_v16 = vpop.f32.mrf.mxu3 }
 0x510   : > { %7055 = vrcp.f32 %v1731_v12  ;;  %v1776_v47 = vand.u32 2147483648, %v1731_v12  ;;  %v1774_v28 = vand.u32 2147483647, %v1731_v12  ;;  %vm1770_vm12 = vweird.f32 %v1731_v12 }
 0x511   : > { %v8239_v4 = vpop.xlane.xlu1 %1736 }
 0x512   : > { %7057 = vrcp.f32 %v8239_v4  ;;  %v1777_v45 = vor.u32 1.1754944e-38, %v1776_v47  ;;  %vm1775_vm14 = vcmp.eq.f32.partialorder %v1774_v28, 8.507059e+37  ;;  %vm1800_vm5 = vweird.f32 %v8239_v4 }
 0x516   : > { %v7056_v30 = vpop.eup %7055  ;;  %v8252_v42 = vpop.xlane.xlu0 %1739 }
 0x517   : > { %v1766_v37 = vmul.f32 %v7056_v30, %v1731_v12  ;;  %v1734_v60 = vpop.xlane.xlu2 %1733  ;;  %vm1771_vm10 = vweird.f32 %v7056_v30 }
 0x518   : > { %v8244_v55 = vpop.eup %7057  ;;  %7059 = vrcp.f32 %v1734_v60  ;;  %2693 = vrot.lane.b32.xlu0 %v7939_v32, %s7536_s24  ;;  %vm1772_vm13 = vmor %vm1770_vm12, %vm1771_vm10  ;;  %vm1785_vm0 = vweird.f32 %v1734_v60  ;;  %v1789_v61 = vand.u32 2147483647, %v1734_v60 }
 0x519   : > { %v1767_v11 = vsub.f32 1.0, %v1766_v37  ;;  %v1796_v23 = vmul.f32 %v8244_v55, %v8239_v4  ;;  %vm1801_vm3 = vweird.f32 %v8244_v55 }
 0x51a   : > { %vm1802_vm6 = vmor %vm1800_vm5, %vm1801_vm3  ;;  %vm1790_vm7 = vcmp.eq.f32.partialorder %v1789_v61, 8.507059e+37 }
 0x51b   : > { %v1768_v48 = vmul.f32 %v7056_v30, %v1767_v11  ;;  %v1797_v49 = vsub.f32 1.0, %v1796_v23 }
 0x51d   : > { %v1769_v39 = vadd.f32 %v7056_v30, %v1768_v48  ;;  %v1798_v47 = vmul.f32 %v8244_v55, %v1797_v49 }
 0x51e   : > { %v7060_v17 = vpop.eup %7059  ;;  %v8250_v32 = vpop.xlane.xlu1 %1742 }
 0x51f   : > { %v1773_v40 = vsel %vm1772_vm13, %v7056_v30, %v1769_v39  ;;  %v1781_v37 = vmul.f32 %v7060_v17, %v1734_v60  ;;  %7061 = vrcp.f32 %v8250_v32  ;;  %vm1786_vm15 = vweird.f32 %v7060_v17 }
 0x520   : > { %v1778_v11 = vsel %vm1775_vm14, %v1777_v45, %v1773_v40  ;;  %7063 = vrcp.f32 %v8252_v42  ;;  %v1791_v30 = vand.u32 2147483648, %v1734_v60  ;;  %v1799_v27 = vadd.f32 %v8244_v55, %v1798_v47  ;;  %vm1787_vm4 = vmor %vm1785_vm0, %vm1786_vm15  ;;  %v8273_v60 = vpop.f32.mrf.mxu3 }
 0x521   : > { %v1779_v48 = vmul.f32 %v8157_v46, %v1778_v11  ;;  %v1782_v41 = vsub.f32 1.0, %v1781_v37  ;;  %v1806_v46 = vand.u32 2147483648, %v8239_v4  ;;  %v1804_v40 = vand.u32 2147483647, %v8239_v4 }
 0x522   : > { %v1792_v49 = vor.u32 1.1754944e-38, %v1791_v30  ;;  %v1803_v11 = vsel %vm1802_vm6, %v8244_v55, %v1799_v27  ;;  %v2508_v55 = vsel %vm941_vm2, %v8255_v16, -inf  ;;  %vm1830_vm11 = vweird.f32 %v8250_v32 }
 0x523   : > { %v1783_v39 = vmul.f32 %v7060_v17, %v1782_v41  ;;  %v1870_v12 = vpack.c.bf16 %v1779_v48, %v1764_v24  ;;  %v1807_v48 = vor.u32 1.1754944e-38, %v1806_v46  ;;  %vm1805_vm8 = vcmp.eq.f32.partialorder %v1804_v40, 8.507059e+37 }
 0x524   : > { %vm1815_vm13 = vweird.f32 %v8252_v42 }
 0x525   : > { %v1784_v23 = vadd.f32 %v7060_v17, %v1783_v39  ;;  %6129 = vmatmul.msk.bf16.vlgmr.msra.gmra.mxu2 %vm941_vm2, %v1870_v12  ;;  %v8262_v45 = vpop.eup %7061 }
 0x526   : > { %v8266_v29 = vpop.eup %7063  ;;  %v1826_v7 = vmul.f32 %v8262_v45, %v8250_v32  ;;  %v8278_v47 = vpop.xlane.xlu2 %1745  ;;  %vm1831_vm9 = vweird.f32 %v8262_v45 }
 0x527   : > { %v1788_v28 = vsel %vm1787_vm4, %v7060_v17, %v1784_v23  ;;  %v1811_v37 = vmul.f32 %v8266_v29, %v8252_v42  ;;  %v1808_v17 = vsel %vm1805_vm8, %v1807_v48, %v1803_v11  ;;  %v2136_v23 = vsub.f32 %v8115_v58, %v8221_v56  ;;  %vm1832_vm12 = vmor %vm1830_vm11, %vm1831_vm9 }
 0x528   : > { %v1793_v24 = vsel %vm1790_vm7, %v1792_v49, %v1788_v28  ;;  %v1827_v41 = vsub.f32 1.0, %v1826_v7  ;;  %v1809_v61 = vmul.f32 %v8159_v54, %v1808_v17  ;;  %v1836_v28 = vand.u32 2147483648, %v8250_v32 }
 0x529   : > { %v1812_v4 = vsub.f32 1.0, %v1811_v37  ;;  %v1794_v12 = vmul.f32 %v8168_v38, %v1793_v24  ;;  %v2146_v7 = vmul.f32 1.442695, %v2136_v23  ;;  %v8292_v38 = vpop.f32.mrf.mxu3  ;;  %vm1816_vm10 = vweird.f32 %v8266_v29 }
 0x52a   : > { %v1828_v30 = vmul.f32 %v8262_v45, %v1827_v41  ;;  %v1834_v49 = vand.u32 2147483647, %v8250_v32  ;;  %v1821_v11 = vand.u32 2147483648, %v8252_v42  ;;  %v2514_v24 = vsel %vm941_vm2, %v8292_v38, -inf  ;;  %vm1817_vm14 = vmor %vm1815_vm13, %vm1816_vm10 }
 0x52b   : > { %v1813_v27 = vmul.f32 %v8266_v29, %v1812_v4  ;;  %v1871_v46 = vpack.c.bf16 %v1809_v61, %v1794_v12  ;;  %v1819_v48 = vand.u32 2147483647, %v8252_v42  ;;  %v1837_v32 = vor.u32 1.1754944e-38, %v1836_v28 }
 0x52c   : > { %v1829_v58 = vadd.f32 %v8262_v45, %v1828_v30  ;;  %vm1835_vm15 = vcmp.eq.f32.partialorder %v1834_v49, 8.507059e+37  ;;  %v1822_v23 = vor.u32 1.1754944e-38, %v1821_v11  ;;  %vm1845_vm7 = vweird.f32 %v8278_v47 }
 0x52d   : > { %v1814_v54 = vadd.f32 %v8266_v29, %v1813_v27  ;;  %vm1820_vm0 = vcmp.eq.f32.partialorder %v1819_v48, 8.507059e+37 }
 0x52e   : > { %v8280_v39 = vpop.xlane.xlu0 %1748  ;;  %v1833_v17 = vsel %vm1832_vm12, %v8262_v45, %v1829_v58 }
 0x52f   : > { %7065 = vrcp.f32 %v8280_v39  ;;  %v1818_v12 = vsel %vm1817_vm14, %v8266_v29, %v1814_v54  ;;  %vm1860_vm5 = vweird.f32 %v8280_v39 }
 0x530   : > { %7067 = vrcp.f32 %v8278_v47  ;;  %v1823_v27 = vsel %vm1820_vm0, %v1822_v23, %v1818_v12  ;;  %v2496_v12 = vsel %vm941_vm2, %v8207_v62, -inf }
 0x531   : > { %2509 = vmax.xlane.f32.xlu1 %v2508_v55  ;;  %7069 = vpow2.f32 %v2146_v7  ;;  %v1838_v55 = vsel %vm1835_vm15, %v1837_v32, %v1833_v17  ;;  %v1824_v54 = vmul.f32 %v8170_v53, %v1823_v27  ;;  %v1864_v53 = vand.u32 2147483647, %v8280_v39 }
 0x532   : > { %v1839_v45 = vmul.f32 %v8177_v6, %v1838_v55  ;;  %v1866_v6 = vand.u32 2147483648, %v8280_v39 }
 0x533   : > { %vm1865_vm9 = vcmp.eq.f32.partialorder %v1864_v53, 8.507059e+37 }
 0x534   : > { %v1872_v11 = vpack.c.bf16 %v1839_v45, %v1824_v54  ;;  %v1867_v23 = vor.u32 1.1754944e-38, %v1866_v6 }
 0x535   : > { %6130 = vmatmul.msk.bf16.gmra.mxu2 %vm941_vm2, %v1871_v46  ;;  %v8297_v56 = vpop.eup %7065 }
 0x536   : > { %v8300_v40 = vpop.xlane.xlu2 %2159  ;;  %v8306_v37 = vpop.eup %7067  ;;  %v1856_v41 = vmul.f32 %v8297_v56, %v8280_v39  ;;  %vm1861_vm3 = vweird.f32 %v8297_v56 }
 0x537   : > { %v1841_v4 = vmul.f32 %v8306_v37, %v8278_v47  ;;  %v8319_v61 = vpop.eup %7069  ;;  %vm1846_vm4 = vweird.f32 %v8306_v37  ;;  %vm8337_vm6 = vmor %vm1860_vm5, %vm1861_vm3  ;;  %v2309_v55 = vpop.permute.xlu1 %2308  ;;  %v2193_v17 = vand.u32 2147483648, %v8300_v40  ;;  %vm2187_vm12 = vweird.f32 %v8300_v40 }
 0x538   : > { %v1857_v30 = vsub.f32 1.0, %v1856_v41  ;;  %v2164_v29 = vsel %vm941_vm2, %v8319_v61, 0.0  ;;  %v1851_v41 = vand.u32 2147483648, %v8278_v47  ;;  %vm1847_vm8 = vmor %vm1845_vm7, %vm1846_vm4 }
 0x539   : > { %2515 = vmax.xlane.f32.xlu1 %v2514_v24  ;;  %v1842_v46 = vsub.f32 1.0, %v1841_v4  ;;  %v1849_v4 = vand.u32 2147483647, %v8278_v47 }
 0x53a   : > { %v1858_v58 = vmul.f32 %v8297_v56, %v1857_v30  ;;  %v1852_v47 = vor.u32 1.1754944e-38, %v1851_v41 }
 0x53b   : > { %v1843_v49 = vmul.f32 %v8306_v37, %v1842_v46  ;;  %vm1850_vm10 = vcmp.eq.f32.partialorder %v1849_v4, 8.507059e+37  ;;  %v2191_v4 = vand.u32 2147483647, %v8300_v40 }
 0x53c   : > { %v1859_v24 = vadd.f32 %v8297_v56, %v1858_v58 }
 0x53d   : > { %v1844_v48 = vadd.f32 %v8306_v37, %v1843_v49  ;;  %vm2192_vm15 = vcmp.eq.f32.partialorder %v2191_v4, 8.507059e+37 }
 0x53e   : > { %v2495_v42 = vpop.xlane.xlu2 %2494  ;;  %v1863_v39 = vsel %vm8337_vm6, %v8297_v56, %v1859_v24  ;;  %v2499_v56 = vsel %vm941_vm2, %v8209_v1, -inf }
 0x53f   : > { %v2517_v7 = vsub.f32 %v8203_v31, %v2495_v42  ;;  %v1848_v42 = vsel %vm1847_vm8, %v8306_v37, %v1844_v48  ;;  %v1868_v27 = vsel %vm1865_vm9, %v1867_v23, %v1863_v39 }
 0x540   : > { %v1853_v46 = vsel %vm1850_vm10, %v1852_v47, %v1848_v42  ;;  %v2194_v42 = vor.u32 1.1754944e-38, %v2193_v17 }
 0x541   : > { %v2525_v28 = vmul.f32 1.442695, %v2517_v7  ;;  %v1869_v7 = vmul.f32 %v8191_v8, %v1868_v27  ;;  %v1854_v45 = vmul.f32 %v8184_v14, %v1853_v46 }
 0x542   : > { %2165 = vadd.xlane.f32.xlu0 %v2164_v29  ;;  %v2511_v29 = vsel %vm941_vm2, %v8273_v60, -inf }
 0x543   : > { %7071 = vpow2.f32 %v2525_v28  ;;  %v1873_v58 = vpack.c.bf16 %v1869_v7, %v1854_v45  ;;  %v2505_v28 = vsel %vm941_vm2, %v8242_v36, -inf }
 0x545   : > { %6131 = vmatmul.msk.bf16.gmra.mxu2 %vm941_vm2, %v1872_v11 }
 0x546   : > { %v2311_v31 = vpop.permute.xlu2 %2310 }
 0x547   : > { %2335 = vmatpush.bf16.msrb.mxu2 %v2311_v31 }
 0x549   : > { %v8341_v32 = vpop.eup %7071 }
 0x54a   : > { %2497 = vmax.xlane.f32.xlu0 %v2496_v12  ;;  %v2541_v30 = vsel %vm941_vm2, %v8341_v32, 0.0 }
 0x54b   : > { %2336 = vmatpush.bf16.msrb.mxu2 %v2309_v55  ;;  %2542 = vadd.xlane.f32.xlu1 %v2541_v30 }
 0x552   : > { %2500 = vmax.xlane.f32.xlu0 %v2499_v56 }
 0x555   : > { %6132 = vmatmul.msk.bf16.gmra.mxu2 %vm941_vm2, %v1873_v58  ;;  %v6756_v58 = vld [vmem:[#allocation7 + $0x18] sm:$0xff] }
 0x556   : > { %1965 = vmatpush.bf16.msra.mxu1 %v6756_v58  ;;  %v2140_v58 = vsub.f32 %v8139_v33, %v8235_v59 }
 0x55a   : > { %2506 = vmax.xlane.f32.xlu0 %v2505_v28 }
 0x561   : > { %v2504_v37 = vpop.xlane.xlu1 %2503 }
 0x562   : > { %v2520_v54 = vsub.f32 %v8213_v25, %v2504_v37  ;;  %2512 = vmax.xlane.f32.xlu0 %v2511_v29 }
 0x564   : > { %v2531_v8 = vmul.f32 1.442695, %v2520_v54  ;;  %v6755_v54 = vld [vmem:[#allocation7 + $0x10] sm:$0xff] }
 0x565   : > { %1966 = vmatpush.bf16.msra.mxu1 %v6755_v54 }
 0x566   : > { %7073 = vpow2.f32 %v2531_v8 }
 0x567   : > { %7075 = vrcp.f32 %v8300_v40 }
 0x56c   : > { %v8364_v14 = vpop.eup %7073 }
 0x56d   : > { %v2550_v49 = vsel %vm941_vm2, %v8364_v14, 0.0  ;;  %v7076_v11 = vpop.eup %7075 }
 0x56e   : > { %2551 = vadd.xlane.f32.xlu0 %v2550_v49  ;;  %v2183_v24 = vmul.f32 %v7076_v11, %v8300_v40  ;;  %vm2188_vm11 = vweird.f32 %v7076_v11 }
 0x56f   : > { %vm2189_vm13 = vmor %vm2187_vm12, %vm2188_vm11 }
 0x570   : > { %v2184_v6 = vsub.f32 1.0, %v2183_v24 }
 0x572   : > { %v2185_v48 = vmul.f32 %v7076_v11, %v2184_v6 }
 0x574   : > { %v2186_v25 = vadd.f32 %v7076_v11, %v2185_v48 }
 0x576   : > { %v2190_v23 = vsel %vm2189_vm13, %v7076_v11, %v2186_v25 }
 0x577   : > { %v2163_v31 = vpop.xlane.xlu0 %2162  ;;  %v2195_v27 = vsel %vm2192_vm15, %v2194_v42, %v2190_v23 }
 0x578   : > { %7077 = vrcp.f32 %v2163_v31  ;;  %v2208_v39 = vand.u32 2147483648, %v2163_v31  ;;  %v2206_v30 = vand.u32 2147483647, %v2163_v31  ;;  %vm2202_vm0 = vweird.f32 %v2163_v31 }
 0x579   : > { %v8375_v56 = vmul.f32 %v8197_v35, %v2195_v27  ;;  %v2692_v29 = vpop.permute.xlu1 %2691 }
 0x57a   : > { %v2209_v46 = vor.u32 1.1754944e-38, %v2208_v39  ;;  %vm2207_vm4 = vcmp.eq.f32.partialorder %v2206_v30, 8.507059e+37 }
 0x57e   : > { %v7078_v53 = vpop.eup %7077 }
 0x57f   : > { %v2198_v41 = vmul.f32 %v7078_v53, %v2163_v31  ;;  %vm2203_vm14 = vweird.f32 %v7078_v53 }
 0x580   : > { %vm2204_vm3 = vmor %vm2202_vm0, %vm2203_vm14 }
 0x581   : > { %v2199_v12 = vsub.f32 1.0, %v2198_v41 }
 0x582   : > { %2689 = vrot.lane.b32.xlu0 %v7946_v44, %s7536_s24 }
 0x583   : > { %v2200_v55 = vmul.f32 %v7078_v53, %v2199_v12 }
 0x585   : > { %v2201_v47 = vadd.f32 %v7078_v53, %v2200_v55  ;;  %v2138_v55 = vsub.f32 %v8123_v52, %v8217_v13 }
 0x587   : > { %v2205_v7 = vsel %vm2204_vm3, %v7078_v53, %v2201_v47 }
 0x588   : > { %v2210_v40 = vsel %vm2207_vm4, %v2209_v46, %v2205_v7  ;;  %v2139_v46 = vsub.f32 %v8129_v22, %v8223_v43  ;;  %v2154_v43 = vmul.f32 1.442695, %v2140_v58 }
 0x589   : > { %v8378_v45 = vmul.f32 %v8225_v63, %v2210_v40 }
 0x58a   : > { %v2694_v28 = vpop.permute.xlu0 %2693  ;;  %v2152_v52 = vmul.f32 1.442695, %v2139_v46 }
 0x58b   : > { %v2302_v37 = vpack.c.bf16 %v8378_v45, %v8375_v56  ;;  %2718 = vmatpush.bf16.msra.mxu0 %v2694_v28 }
 0x58f   : > { %2719 = vmatpush.bf16.msra.mxu0 %v2692_v29 }
 0x5a4   : > { %v2510_v8 = vpop.xlane.xlu1 %2509 }
 0x5a5   : > { %v2522_v49 = vsub.f32 %v8255_v16, %v2510_v8  ;;  %v2141_v8 = vsub.f32 %v8147_v34, %v8229_v50 }
 0x5a7   : > { %v2535_v11 = vmul.f32 1.442695, %v2522_v49  ;;  %v2156_v33 = vmul.f32 1.442695, %v2141_v8 }
 0x5a8   : > { %v1911_v35 = vpop.f32.mrf.mxu2 }
 0x5a9   : > { %7079 = vpow2.f32 %v2535_v11 }
 0x5af   : > { %v8383_v24 = vpop.eup %7079 }
 0x5b0   : > { %v1913_v63 = vpop.f32.mrf.mxu2  ;;  %v2556_v6 = vsel %vm941_vm2, %v8383_v24, 0.0 }
 0x5b1   : > { %v1931_v31 = vpack.c.bf16 %v1913_v63, %v1911_v35  ;;  %2557 = vadd.xlane.f32.xlu0 %v2556_v6 }
 0x5b3   : > { %6141 = vmatmul.msk.bf16.vlgmr.msra.gmra.mxu1 %vm1306_vm1, %v1931_v31 }
 0x5b5   : > { %v8388_v48 = vpop.xlane.xlu0 %2165 }
 0x5b6   : > { %vm2217_vm12 = vweird.f32 %v8388_v48 }
 0x5b8   : > { %v1916_v53 = vpop.f32.mrf.mxu2 }
 0x5bd   : > { %v2498_v25 = vpop.xlane.xlu0 %2497 }
 0x5be   : > { %v2518_v41 = vsub.f32 %v8207_v62, %v2498_v25  ;;  %v2150_v62 = vmul.f32 1.442695, %v2138_v55 }
 0x5c0   : > { %v2527_v16 = vmul.f32 1.442695, %v2518_v41  ;;  %v1918_v17 = vpop.f32.mrf.mxu2 }
 0x5c1   : > { %v1932_v4 = vpack.c.bf16 %v1918_v17, %v1916_v53  ;;  %v2516_v53 = vpop.xlane.xlu1 %2515 }
 0x5c2   : > { %7081 = vpow2.f32 %v2527_v16 }
 0x5c3   : > { %6142 = vmatmul.msk.bf16.gmra.mxu1 %vm1306_vm1, %v1932_v4 }
 0x5c5   : > { %v2501_v12 = vpop.xlane.xlu0 %2500 }
 0x5c6   : > { %v2519_v39 = vsub.f32 %v8209_v1, %v2501_v12 }
 0x5c8   : > { %v8393_v23 = vpop.eup %7081  ;;  %v2529_v30 = vmul.f32 1.442695, %v2519_v39  ;;  %v1921_v42 = vpop.f32.mrf.mxu2 }
 0x5c9   : > { %v2544_v47 = vsel %vm941_vm2, %v8393_v23, 0.0 }
 0x5ca   : > { %7083 = vpow2.f32 %v2529_v30  ;;  %2545 = vadd.xlane.f32.xlu2 %v2544_v47  ;;  %v2543_v47 = vpop.xlane.xlu1 %2542 }
 0x5cb   : > { %7085 = vpow2.f32 %v2150_v62  ;;  %vm2570_vm7 = vweird.f32 %v2543_v47 }
 0x5cc   : > { %7087 = vpow2.f32 %v2152_v52 }
 0x5cd   : > { %v2507_v22 = vpop.xlane.xlu0 %2506  ;;  %7089 = vpow2.f32 %v2154_v43 }
 0x5ce   : > { %7091 = vpow2.f32 %v2156_v33  ;;  %v2521_v4 = vsub.f32 %v8242_v36, %v2507_v22  ;;  %v8446_v36 = vpop.xlane.xlu2 %2168 }
 0x5cf   : > { %vm2232_vm6 = vweird.f32 %v8446_v36  ;;  %v2238_v33 = vand.u32 2147483648, %v8446_v36 }
 0x5d0   : > { %v8399_v27 = vpop.eup %7083  ;;  %v1923_v1 = vpop.f32.mrf.mxu2  ;;  %v2533_v39 = vmul.f32 1.442695, %v2521_v4 }
 0x5d1   : > { %v1933_v7 = vpack.c.bf16 %v1923_v1, %v1921_v42  ;;  %v2547_v40 = vsel %vm941_vm2, %v8399_v27, 0.0  ;;  %v8406_v13 = vpop.eup %7085 }
 0x5d2   : > { %2548 = vadd.xlane.f32.xlu1 %v2547_v40  ;;  %v2170_v29 = vsel %vm941_vm2, %v8406_v13, 0.0  ;;  %v8412_v54 = vpop.eup %7087 }
 0x5d3   : > { %6143 = vmatmul.msk.bf16.gmra.mxu1 %vm1306_vm1, %v1933_v7  ;;  %v2173_v35 = vsel %vm941_vm2, %v8412_v54, 0.0  ;;  %v8421_v63 = vpop.eup %7089 }
 0x5d4   : > { %v2176_v34 = vsel %vm941_vm2, %v8421_v63, 0.0  ;;  %v8428_v25 = vpop.eup %7091 }
 0x5d5   : > { %v2513_v59 = vpop.xlane.xlu0 %2512  ;;  %v2179_v41 = vsel %vm941_vm2, %v8428_v25, 0.0 }
 0x5d6   : > { %v2523_v6 = vsub.f32 %v8273_v60, %v2513_v59 }
 0x5d8   : > { %v1926_v28 = vpop.f32.mrf.mxu2  ;;  %v2537_v50 = vmul.f32 1.442695, %v2523_v6 }
 0x5da   : > { %2171 = vadd.xlane.f32.xlu1 %v2170_v29  ;;  %7093 = vpow2.f32 %v2537_v50 }
 0x5e0   : > { %v1928_v49 = vpop.f32.mrf.mxu2  ;;  %v8433_v60 = vpop.eup %7093 }
 0x5e1   : > { %v1934_v11 = vpack.c.bf16 %v1928_v49, %v1926_v28  ;;  %v8426_v31 = vpop.xlane.xlu0 %2551  ;;  %v2559_v12 = vsel %vm941_vm2, %v8433_v60, 0.0 }
 0x5e2   : > { %2306 = vrot.lane.b32.xlu2 %v7946_v44, %s7537_s0  ;;  %2174 = vadd.xlane.f32.xlu1 %v2173_v35  ;;  %v2524_v44 = vsub.f32 %v8292_v38, %v2516_v53  ;;  %v2236_v35 = vand.u32 2147483647, %v8446_v36 }
 0x5e3   : > { %6144 = vmatmul.msk.bf16.gmra.mxu1 %vm1306_vm1, %v1934_v11 }
 0x5e4   : > { %v2539_v16 = vmul.f32 1.442695, %v2524_v44  ;;  %v2576_v44 = vand.u32 2147483648, %v2543_v47 }
 0x5e6   : > { %7095 = vpow2.f32 %v2539_v16 }
 0x5e7   : > { %7097 = vpow2.f32 %v2533_v39 }
 0x5e8   : > { %7099 = vrcp.f32 %v2543_v47 }
 0x5e9   : > { %7101 = vrcp.f32 %v8388_v48 }
 0x5ea   : > { %2177 = vadd.xlane.f32.xlu1 %v2176_v34  ;;  %7103 = vrcp.f32 %v8446_v36 }
 0x5ec   : > { %v8438_v55 = vpop.eup %7095 }
 0x5ed   : > { %v2562_v38 = vsel %vm941_vm2, %v8438_v55, 0.0  ;;  %v8442_v30 = vpop.eup %7097 }
 0x5ee   : > { %v2553_v42 = vsel %vm941_vm2, %v8442_v30, 0.0  ;;  %v7100_v62 = vpop.eup %7099 }
 0x5ef   : > { %v2566_v46 = vmul.f32 %v7100_v62, %v2543_v47  ;;  %v8450_v1 = vpop.eup %7101  ;;  %vm2571_vm5 = vweird.f32 %v7100_v62 }
 0x5f0   : > { %v8452_v7 = vpop.eup %7103  ;;  %v2213_v40 = vmul.f32 %v8450_v1, %v8388_v48  ;;  %vm8472_vm9 = vmor %vm2570_vm7, %vm2571_vm5  ;;  %vm2218_vm10 = vweird.f32 %v8450_v1 }
 0x5f1   : > { %v2567_v52 = vsub.f32 1.0, %v2566_v46  ;;  %v2228_v28 = vmul.f32 %v8452_v7, %v8446_v36  ;;  %vm2233_vm8 = vweird.f32 %v8452_v7  ;;  %vm8489_vm13 = vmor %vm2217_vm12, %vm2218_vm10 }
 0x5f2   : > { %2180 = vadd.xlane.f32.xlu1 %v2179_v41  ;;  %v2214_v29 = vsub.f32 1.0, %v2213_v40  ;;  %v2223_v41 = vand.u32 2147483648, %v8388_v48  ;;  %vm8501_vm3 = vmor %vm2232_vm6, %vm2233_vm8  ;;  %vm2237_vm6 = vcmp.eq.f32.partialorder %v2236_v35, 8.507059e+37 }
 0x5f3   : > { %v2568_v22 = vmul.f32 %v7100_v62, %v2567_v52  ;;  %v2229_v43 = vsub.f32 1.0, %v2228_v28  ;;  %v2221_v52 = vand.u32 2147483647, %v8388_v48  ;;  %v2577_v28 = vor.u32 1.1754944e-38, %v2576_v44 }
 0x5f4   : > { %v2690_v17 = vpop.permute.xlu0 %2689  ;;  %v2215_v49 = vmul.f32 %v8450_v1, %v2214_v29  ;;  %v2224_v45 = vor.u32 1.1754944e-38, %v2223_v41 }
 0x5f5   : > { %2720 = vmatpush.bf16.msra.mxu0 %v2690_v17  ;;  %v2569_v11 = vadd.f32 %v7100_v62, %v2568_v22  ;;  %v2230_v53 = vmul.f32 %v8452_v7, %v2229_v43  ;;  %v2574_v17 = vand.u32 2147483647, %v2543_v47  ;;  %vm2222_vm5 = vcmp.eq.f32.partialorder %v2221_v52, 8.507059e+37 }
 0x5f7   : > { %v2573_v39 = vsel %vm8472_vm9, %v7100_v62, %v2569_v11  ;;  %v2231_v47 = vadd.f32 %v8452_v7, %v2230_v53  ;;  %v2239_v62 = vor.u32 1.1754944e-38, %v2238_v33  ;;  %vm2575_vm14 = vcmp.eq.f32.partialorder %v2574_v17, 8.507059e+37 }
 0x5fa   : > { %2560 = vadd.xlane.f32.xlu1 %v2559_v12  ;;  %v2216_v12 = vadd.f32 %v8450_v1, %v2215_v49 }
 0x5fc   : > { %v2220_v56 = vsel %vm8489_vm13, %v8450_v1, %v2216_v12  ;;  %v2235_v1 = vsel %vm8501_vm3, %v8452_v7, %v2231_v47  ;;  %v2619_v47 = vand.u32 2147483647, %v8426_v31 }
 0x5fd   : > { %v2225_v41 = vsel %vm2222_vm5, %v2224_v45, %v2220_v56 }
 0x5fe   : > { %v2226_v12 = vmul.f32 %v8319_v61, %v2225_v41 }
 0x602   : > { %2563 = vadd.xlane.f32.xlu1 %v2562_v38 }
 0x60b   : > { %2554 = vadd.xlane.f32.xlu2 %v2553_v42 }
 0x63d   : > { %v2546_v58 = vpop.xlane.xlu2 %2545 }
 0x63e   : > { %7105 = vrcp.f32 %v2546_v58  ;;  %v2591_v38 = vand.u32 2147483648, %v2546_v58  ;;  %v2589_v40 = vand.u32 2147483647, %v2546_v58  ;;  %vm2585_vm15 = vweird.f32 %v2546_v58 }
 0x63f   : > { %7107 = vrcp.f32 %v8426_v31 }
 0x640   : > { %v2592_v49 = vor.u32 1.1754944e-38, %v2591_v38  ;;  %vm2590_vm4 = vcmp.eq.f32.partialorder %v2589_v40, 8.507059e+37 }
 0x644   : > { %v7106_v8 = vpop.eup %7105 }
 0x645   : > { %v2581_v59 = vmul.f32 %v7106_v8, %v2546_v58  ;;  %v2307_v6 = vpop.permute.xlu2 %2306  ;;  %v8463_v34 = vpop.xlane.xlu1 %2548  ;;  %vm2586_vm11 = vweird.f32 %v7106_v8 }
 0x646   : > { %v8465_v50 = vpop.eup %7107  ;;  %7109 = vrcp.f32 %v8463_v34  ;;  %2337 = vmatpush.bf16.msrb.mxu2 %v2307_v6  ;;  %vm2587_vm0 = vmor %vm2585_vm15, %vm2586_vm11  ;;  %vm2600_vm9 = vweird.f32 %v8463_v34  ;;  %v2604_v38 = vand.u32 2147483647, %v8463_v34  ;;  %vm2615_vm11 = vweird.f32 %v8426_v31 }
 0x647   : > { %v2582_v4 = vsub.f32 1.0, %v2581_v59  ;;  %v2611_v42 = vmul.f32 %v8465_v50, %v8426_v31  ;;  %vm2616_vm8 = vweird.f32 %v8465_v50 }
 0x648   : > { %vm2617_vm12 = vmor %vm2615_vm11, %vm2616_vm8  ;;  %vm2605_vm13 = vcmp.eq.f32.partialorder %v2604_v38, 8.507059e+37 }
 0x649   : > { %v2583_v46 = vmul.f32 %v7106_v8, %v2582_v4  ;;  %6161 = vmatmul.msk.bf16.vlgmr.msrb.gmra.mxu2 %vm941_vm2, %v2302_v37  ;;  %v2578_v37 = vsel %vm2575_vm14, %v2577_v28, %v2573_v39  ;;  %v2612_v11 = vsub.f32 1.0, %v2611_v42  ;;  %v2240_v4 = vsel %vm2237_vm6, %v2239_v62, %v2235_v1 }
 0x64a   : > { %v2579_v36 = vmul.f32 %v8341_v32, %v2578_v37  ;;  %v2606_v32 = vand.u32 2147483648, %v8463_v34  ;;  %vm2620_vm14 = vcmp.eq.f32.partialorder %v2619_v47, 8.507059e+37 }
 0x64b   : > { %v2584_v22 = vadd.f32 %v7106_v8, %v2583_v46  ;;  %v2621_v46 = vand.u32 2147483648, %v8426_v31 }
 0x64c   : > { %v7110_v43 = vpop.eup %7109  ;;  %v2607_v28 = vor.u32 1.1754944e-38, %v2606_v32 }
 0x64d   : > { %v2588_v58 = vsel %vm2587_vm0, %v7106_v8, %v2584_v22  ;;  %v2596_v33 = vmul.f32 %v7110_v43, %v8463_v34  ;;  %v8506_v59 = vpop.xlane.xlu1 %2171  ;;  %v2613_v8 = vmul.f32 %v8465_v50, %v2612_v11  ;;  %vm2601_vm7 = vweird.f32 %v7110_v43 }
 0x64e   : > { %v2593_v6 = vsel %vm2590_vm4, %v2592_v49, %v2588_v58  ;;  %7111 = vrcp.f32 %v8506_v59  ;;  %vm2602_vm10 = vmor %vm2600_vm9, %vm2601_vm7  ;;  %v2622_v62 = vor.u32 1.1754944e-38, %v2621_v46  ;;  %v2253_v48 = vand.u32 2147483648, %v8506_v59 }
 0x64f   : > { %v2594_v53 = vmul.f32 %v8393_v23, %v2593_v6  ;;  %v2597_v44 = vsub.f32 1.0, %v2596_v33  ;;  %v2241_v23 = vmul.f32 %v8233_v26, %v2240_v4  ;;  %v2614_v35 = vadd.f32 %v8465_v50, %v2613_v8 }
 0x650   : > { %vm2247_vm0 = vweird.f32 %v8506_v59  ;;  %v2251_v58 = vand.u32 2147483647, %v8506_v59 }
 0x651   : > { %v2685_v16 = vpack.c.bf16 %v2594_v53, %v2579_v36  ;;  %v2598_v17 = vmul.f32 %v7110_v43, %v2597_v44  ;;  %v2303_v40 = vpack.c.bf16 %v2241_v23, %v2226_v12  ;;  %v2618_v34 = vsel %vm2617_vm12, %v8465_v50, %v2614_v35 }
 0x652   : > { %v2623_v45 = vsel %vm2620_vm14, %v2622_v62, %v2618_v34  ;;  %v2254_v44 = vor.u32 1.1754944e-38, %v2253_v48  ;;  %vm2252_vm6 = vcmp.eq.f32.partialorder %v2251_v58, 8.507059e+37 }
 0x653   : > { %v2599_v39 = vadd.f32 %v7110_v43, %v2598_v17  ;;  %6181 = vmatmul.msk.bf16.vlgmr.msra.gmra.mxu0 %vm941_vm2, %v2685_v16  ;;  %v2624_v50 = vmul.f32 %v8364_v14, %v2623_v45 }
 0x654   : > { %v7112_v7 = vpop.eup %7111 }
 0x655   : > { %v2243_v42 = vmul.f32 %v7112_v7, %v8506_v59  ;;  %v2175_v61 = vpop.xlane.xlu1 %2174  ;;  %v2603_v52 = vsel %vm2602_vm10, %v7110_v43, %v2599_v39  ;;  %vm2248_vm15 = vweird.f32 %v7112_v7 }
 0x656   : > { %7113 = vrcp.f32 %v2175_v61  ;;  %v2608_v22 = vsel %vm2605_vm13, %v2607_v28, %v2603_v52  ;;  %vm8536_vm3 = vmor %vm2247_vm0, %vm2248_vm15  ;;  %v2268_v6 = vand.u32 2147483648, %v2175_v61  ;;  %v2266_v53 = vand.u32 2147483647, %v2175_v61 }
 0x657   : > { %v2244_v26 = vsub.f32 1.0, %v2243_v42  ;;  %v2609_v31 = vmul.f32 %v8399_v27, %v2608_v22  ;;  %vm2262_vm5 = vweird.f32 %v2175_v61  ;;  %v2558_v42 = vpop.xlane.xlu0 %2557 }
 0x658   : > { %v2269_v8 = vor.u32 1.1754944e-38, %v2268_v6  ;;  %vm2267_vm8 = vcmp.eq.f32.partialorder %v2266_v53, 8.507059e+37 }
 0x659   : > { %6162 = vmatmul.msk.bf16.gmra.mxu2 %vm941_vm2, %v2303_v40  ;;  %v2245_v29 = vmul.f32 %v7112_v7, %v2244_v26  ;;  %v2686_v27 = vpack.c.bf16 %v2624_v50, %v2609_v31 }
 0x65b   : > { %v2246_v43 = vadd.f32 %v7112_v7, %v2245_v29 }
 0x65c   : > { %v7114_v56 = vpop.eup %7113 }
 0x65d   : > { %v2258_v37 = vmul.f32 %v7114_v56, %v2175_v61  ;;  %v2178_v49 = vpop.xlane.xlu1 %2177  ;;  %vm2263_vm4 = vweird.f32 %v7114_v56  ;;  %v2250_v36 = vsel %vm8536_vm3, %v7112_v7, %v2246_v43 }
 0x65e   : > { %7115 = vrcp.f32 %v2178_v49  ;;  %vm2264_vm7 = vmor %vm2262_vm5, %vm2263_vm4  ;;  %v2255_v4 = vsel %vm2252_vm6, %v2254_v44, %v2250_v36  ;;  %v2283_v40 = vand.u32 2147483648, %v2178_v49  ;;  %vm2277_vm10 = vweird.f32 %v2178_v49 }
 0x65f   : > { %v2259_v11 = vsub.f32 1.0, %v2258_v37  ;;  %v2256_v7 = vmul.f32 %v8406_v13, %v2255_v4  ;;  %v2281_v52 = vand.u32 2147483647, %v2178_v49  ;;  %vm2645_vm4 = vweird.f32 %v2558_v42 }
 0x660   : > { %v2284_v62 = vor.u32 1.1754944e-38, %v2283_v40 }
 0x661   : > { %v2260_v1 = vmul.f32 %v7114_v56, %v2259_v11  ;;  %vm2282_vm14 = vcmp.eq.f32.partialorder %v2281_v52, 8.507059e+37 }
 0x663   : > { %v2261_v41 = vadd.f32 %v7114_v56, %v2260_v1  ;;  %6182 = vmatmul.msk.bf16.gmra.mxu0 %vm941_vm2, %v2686_v27 }
 0x664   : > { %v7116_v14 = vpop.eup %7115 }
 0x665   : > { %v2265_v59 = vsel %vm2264_vm7, %v7114_v56, %v2261_v41  ;;  %v2273_v16 = vmul.f32 %v7116_v14, %v2178_v49  ;;  %v2181_v17 = vpop.xlane.xlu1 %2180  ;;  %vm2278_vm9 = vweird.f32 %v7116_v14  ;;  %v2649_v41 = vand.u32 2147483647, %v2558_v42 }
 0x666   : > { %7117 = vrcp.f32 %v2181_v17  ;;  %v2270_v39 = vsel %vm2267_vm8, %v2269_v8, %v2265_v59  ;;  %vm2279_vm11 = vmor %vm2277_vm10, %vm2278_vm9  ;;  %v2298_v13 = vand.u32 2147483648, %v2181_v17  ;;  %v2296_v34 = vand.u32 2147483647, %v2181_v17 }
 0x667   : > { %v2274_v12 = vsub.f32 1.0, %v2273_v16  ;;  %v2271_v32 = vmul.f32 %v8412_v54, %v2270_v39  ;;  %7119 = vrcp.f32 %v2558_v42  ;;  %vm2292_vm13 = vweird.f32 %v2181_v17 }
 0x668   : > { %v2299_v56 = vor.u32 1.1754944e-38, %v2298_v13  ;;  %vm2297_vm0 = vcmp.eq.f32.partialorder %v2296_v34, 8.507059e+37  ;;  %vm2650_vm7 = vcmp.eq.f32.partialorder %v2649_v41, 8.507059e+37 }
 0x669   : > { %v2275_v23 = vmul.f32 %v7116_v14, %v2274_v12  ;;  %v2304_v35 = vpack.c.bf16 %v2271_v32, %v2256_v7 }
 0x66b   : > { %6163 = vmatmul.msk.bf16.gmra.mxu2 %vm941_vm2, %v2304_v35  ;;  %v2276_v46 = vadd.f32 %v7116_v14, %v2275_v23 }
 0x66c   : > { %v7118_v38 = vpop.eup %7117 }
 0x66d   : > { %v2288_v61 = vmul.f32 %v7118_v38, %v2181_v17  ;;  %vm2293_vm12 = vweird.f32 %v7118_v38  ;;  %v8546_v28 = vpop.xlane.xlu1 %2560  ;;  %v2280_v54 = vsel %vm2279_vm11, %v7116_v14, %v2276_v46  ;;  %v7120_v37 = vpop.eup %7119 }
 0x66e   : > { %vm2294_vm15 = vmor %vm2292_vm13, %vm2293_vm12  ;;  %v2285_v45 = vsel %vm2282_vm14, %v2284_v62, %v2280_v54  ;;  %v2641_v48 = vmul.f32 %v7120_v37, %v2558_v42  ;;  %vm2646_vm3 = vweird.f32 %v7120_v37 }
 0x66f   : > { %v2289_v47 = vsub.f32 1.0, %v2288_v61  ;;  %v2286_v49 = vmul.f32 %v8421_v63, %v2285_v45  ;;  %vm8552_vm5 = vmor %vm2645_vm4, %vm2646_vm3 }
 0x670   : > { %v2642_v58 = vsub.f32 1.0, %v2641_v48 }
 0x671   : > { %v2290_v26 = vmul.f32 %v7118_v38, %v2289_v47 }
 0x672   : > { %v2643_v1 = vmul.f32 %v7120_v37, %v2642_v58  ;;  %v6759_v58 = vld [vmem:[#allocation7 + $0x30] sm:$0xff] }
 0x673   : > { %v2291_v29 = vadd.f32 %v7118_v38, %v2290_v26 }
 0x674   : > { %v2644_v36 = vadd.f32 %v7120_v37, %v2643_v1 }
 0x675   : > { %v2295_v22 = vsel %vm2294_vm15, %v7118_v38, %v2291_v29  ;;  %v2564_v50 = vpop.xlane.xlu1 %2563  ;;  %v2666_v29 = vand.u32 2147483648, %v8546_v28  ;;  %vm2660_vm15 = vweird.f32 %v8546_v28 }
 0x676   : > { %v2300_v31 = vsel %vm2297_vm0, %v2299_v56, %v2295_v22  ;;  %7121 = vrcp.f32 %v2564_v50  ;;  %v2648_v8 = vsel %vm8552_vm5, %v7120_v37, %v2644_v36  ;;  %v2681_v54 = vand.u32 2147483648, %v2564_v50 }
 0x677   : > { %v2301_v43 = vmul.f32 %v8428_v25, %v2300_v31  ;;  %v2651_v25 = vand.u32 2147483648, %v2558_v42  ;;  %vm2675_vm13 = vweird.f32 %v2564_v50  ;;  %v2679_v62 = vand.u32 2147483647, %v2564_v50 }
 0x678   : > { %v2667_v45 = vor.u32 1.1754944e-38, %v2666_v29  ;;  %v6774_v29 = vld [vmem:[#allocation8 + $0x64] sm:$0xf0] }
 0x679   : > { %v2305_v11 = vpack.c.bf16 %v2301_v43, %v2286_v49  ;;  %v2652_v39 = vor.u32 1.1754944e-38, %v2651_v25  ;;  %vm2680_vm3 = vcmp.eq.f32.partialorder %v2679_v62, 8.507059e+37  ;;  %v6247_v62 = vld [vmem:[#allocation8 + $0x60] sm:$0xf] }
 0x67b   : > { %6164 = vmatmul.msk.bf16.gmra.mxu2 %vm941_vm2, %v2305_v11  ;;  %v2653_v35 = vsel %vm2650_vm7, %v2652_v39, %v2648_v8  ;;  %v6758_v11 = vld [vmem:[#allocation7 + $0x28] sm:$0xff] }
 0x67c   : > { %v7122_v6 = vpop.eup %7121  ;;  %v2654_v47 = vmul.f32 %v8383_v24, %v2653_v35  ;;  %v2682_v24 = vor.u32 1.1754944e-38, %v2681_v54  ;;  %2393 = vmatpush.bf16.msrb.mxu1 %v6758_v11  ;;  %v6257_v54 = vld [vmem:[#allocation8 + $0x78] sm:$0xf0] }
 0x67d   : > { %v2671_v14 = vmul.f32 %v7122_v6, %v2564_v50  ;;  %vm2676_vm11 = vweird.f32 %v7122_v6  ;;  %v6757_v50 = vld [vmem:[#allocation7 + $0x20] sm:$0xff] }
 0x67e   : > { %v2555_v33 = vpop.xlane.xlu2 %2554  ;;  %vm2677_vm14 = vmor %vm2675_vm13, %vm2676_vm11 }
 0x67f   : > { %7123 = vrcp.f32 %v2555_v33  ;;  %v2636_v16 = vand.u32 2147483648, %v2555_v33  ;;  %v2634_v12 = vand.u32 2147483647, %v2555_v33  ;;  %v2672_v7 = vsub.f32 1.0, %v2671_v14 }
 0x680   : > { %7125 = vrcp.f32 %v8546_v28  ;;  %vm2630_vm8 = vweird.f32 %v2555_v33  ;;  %2394 = vmatpush.bf16.msrb.mxu1 %v6757_v50  ;;  %v6231_v50 = vld [vmem:[#allocation8 + $0x40] sm:$0xf] }
 0x681   : > { %v2637_v23 = vor.u32 1.1754944e-38, %v2636_v16  ;;  %vm2635_vm10 = vcmp.eq.f32.partialorder %v2634_v12, 8.507059e+37  ;;  %v2673_v46 = vmul.f32 %v7122_v6, %v2672_v7 }
 0x683   : > { %v2674_v13 = vadd.f32 %v7122_v6, %v2673_v46 }
 0x685   : > { %v7124_v27 = vpop.eup %7123  ;;  %v2678_v22 = vsel %vm2677_vm14, %v7122_v6, %v2674_v13 }
 0x686   : > { %v2626_v53 = vmul.f32 %v7124_v27, %v2555_v33  ;;  %v7126_v63 = vpop.eup %7125  ;;  %vm2631_vm6 = vweird.f32 %v7124_v27  ;;  %v2683_v37 = vsel %vm2680_vm3, %v2682_v24, %v2678_v22  ;;  %v6248_v22 = vor.u32 %v6774_v29, %v6247_v62  ;;  %v6249_v24 = vld [vmem:[#allocation8 + $0x68] sm:$0xf0] }
 0x687   : > { %v2656_v17 = vmul.f32 %v7126_v63, %v8546_v28  ;;  %vm2632_vm9 = vmor %vm2630_vm8, %vm2631_vm6  ;;  %vm2661_vm12 = vweird.f32 %v7126_v63  ;;  %v2684_v49 = vmul.f32 %v8438_v55, %v2683_v37  ;;  %v6239_v37 = vld [vmem:[#allocation8 + $0x50] sm:$0xf]  ;;  %v983_v29 = vadd.f32 %v7877_v15, %v7775_v2  ;;  %v8608_v15 = vld [vmem:[%s9747_s11] ss:$0 sm:$0xff] }
 0x688   : > { %v2627_v59 = vsub.f32 1.0, %v2626_v53  ;;  %vm2662_vm0 = vmor %vm2660_vm15, %vm2661_vm12 }
 0x689   : > { %v2657_v38 = vsub.f32 1.0, %v2656_v17  ;;  %v8573_v17 = vpop.f32.mrf.mxu1 }
 0x68a   : > { %v2628_v4 = vmul.f32 %v7124_v27, %v2627_v59  ;;  %v2022_v62 = vadd.f32 %v8125_v20, %v8573_v17 }
 0x68b   : > { %v2658_v52 = vmul.f32 %v7126_v63, %v2657_v38 }
 0x68c   : > { %v2629_v32 = vadd.f32 %v7124_v27, %v2628_v4 }
 0x68d   : > { %v2659_v34 = vadd.f32 %v7126_v63, %v2658_v52  ;;  %v6776_v52 = vld [vmem:[#allocation8 + $0x74] sm:$0xf0] }
 0x68e   : > { %v2633_v42 = vsel %vm2632_vm9, %v7124_v27, %v2629_v32 }
 0x68f   : > { %v2638_v61 = vsel %vm2635_vm10, %v2637_v23, %v2633_v42  ;;  %v2663_v56 = vsel %vm2662_vm0, %v7126_v63, %v2659_v34 }
 0x690   : > { %v2639_v40 = vmul.f32 %v8442_v30, %v2638_v61  ;;  %v2664_v30 = vand.u32 2147483647, %v8546_v28  ;;  %v6760_v28 = vld [vmem:[#allocation7 + $0x38] sm:$0xff] }
 0x691   : > { %2776 = vmatpush.bf16.msra.mxu2 %v6760_v28  ;;  %v8576_v39 = vpop.f32.mrf.mxu1  ;;  %v6770_v28 = vld [vmem:[#allocation8 + $0x44] sm:$0xf0] }
 0x692   : > { %v2687_v26 = vpack.c.bf16 %v2654_v47, %v2639_v40  ;;  %vm2665_vm4 = vcmp.eq.f32.partialorder %v2664_v30, 8.507059e+37  ;;  %v6255_v47 = vld [vmem:[#allocation8 + $0x70] sm:$0xf]  ;;  %v6773_v30 = vld [vmem:[#allocation8 + $0x64] sm:$0xf]  ;;  %v2024_v20 = vadd.f32 %v8133_v57, %v8576_v39 }
 0x693   : > { %v2668_v31 = vsel %vm2665_vm4, %v2667_v45, %v2663_v56  ;;  %v6256_v13 = vor.u32 %v6776_v52, %v6255_v47  ;;  %v6252_v56 = vor.u32 %v6773_v30, %v6249_v24  ;;  %v6762_v47 = vld [vmem:[#allocation8 + $0x4] sm:$0xf0]  ;;  %v6761_v52 = vld [vmem:[#allocation8 + $0x4] sm:$0xf] }
 0x694   : > { %6183 = vmatmul.msk.bf16.gmra.mxu0 %vm941_vm2, %v2687_v26  ;;  %v2669_v43 = vmul.f32 %v8433_v60, %v2668_v31  ;;  %v6775_v26 = vld [vmem:[#allocation8 + $0x74] sm:$0xf]  ;;  %v6772_v31 = vld [vmem:[#allocation8 + $0x54] sm:$0xf0] }
 0x695   : > { %2777 = vmatpush.bf16.msra.mxu2 %v6759_v58  ;;  %v6260_v34 = vor.u32 %v6775_v26, %v6257_v54  ;;  %2953 = vmatpush.bf16.msra.mxu1 %v6256_v13  ;;  %v6769_v58 = vld [vmem:[#allocation8 + $0x44] sm:$0xf]  ;;  %v6201_v13 = vld [vmem:[#allocation8 + $0x8] sm:$0xf0] }
 0x696   : > { %v2688_v48 = vpack.c.bf16 %v2684_v49, %v2669_v43  ;;  %v6771_v49 = vld [vmem:[#allocation8 + $0x54] sm:$0xf]  ;;  %v6240_v43 = vor.u32 %v6772_v31, %v6239_v37  ;;  %v6204_v54 = vor.u32 %v6761_v52, %v6201_v13  ;;  %v8599_v37 = vld [vmem:[%s9746_s10] ss:$0 sm:$0xff] }
 0x697   : > { %2982 = vmatpush.bf16.msra.mxu3 %v6260_v34  ;;  %v7255_v31 = vld [vmem:[%s9741_s5] ss:$0 sm:$0xff] }
 0x699   : > { %v8578_v23 = vpop.f32.mrf.mxu1  ;;  %2954 = vmatpush.bf16.msra.mxu1 %v6248_v22 }
 0x69a   : > { %v2027_v39 = vadd.f32 %v8141_v5, %v8578_v23 }
 0x69b   : > { %2983 = vmatpush.bf16.msra.mxu3 %v6252_v56 }
 0x69d   : > { %2955 = vmatpush.bf16.msra.mxu1 %v6240_v43 }
 0x6a1   : > { %v8581_v42 = vpop.f32.mrf.mxu1 }
 0x6a2   : > { %v2029_v23 = vadd.f32 %v8152_v0, %v8581_v42 }
 0x6a4   : > { %6184 = vmatmul.msk.bf16.gmra.mxu0 %vm941_vm2, %v2688_v48  ;;  %v6241_v48 = vld [vmem:[#allocation8 + $0x58] sm:$0xf0] }
 0x6a5   : > { %v6244_v11 = vor.u32 %v6771_v49, %v6241_v48  ;;  %v995_v49 = vmul.f32 %v7255_v31, %v983_v29  ;;  %v7256_v48 = vld [vmem:[%s9742_s6] ss:$0 sm:$0xff] }
 0x6a7   : > { %2984 = vmatpush.bf16.msra.mxu3 %v6244_v11  ;;  %v1007_v11 = vadd.f32 %v7256_v48, %v995_v49 }
 0x6a9   : > { %v8584_v40 = vpop.f32.mrf.mxu1 }
 0x6b1   : > { %v8586_v45 = vpop.f32.mrf.mxu1 }
 0x6cc   : > { %v2339_v33 = vpop.f32.mrf.mxu2 }
 0x6d0   : > { %v2722_v1 = vpop.f32.mrf.mxu0 }
 0x6d4   : > { %v2341_v6 = vpop.f32.mrf.mxu2 }
 0x6d5   : > { %v2359_v27 = vpack.c.bf16 %v2341_v6, %v2339_v33  ;;  %v6232_v33 = vor.u32 %v6770_v28, %v6231_v50  ;;  %v984_v50 = vadd.f32 %v7879_v19, %v7777_v3  ;;  %v985_v19 = vadd.f32 %v7885_v21, %v7786_v9 }
 0x6d7   : > { %6173 = vmatmul.msk.bf16.vlgmr.msrb.gmra.mxu1 %vm1306_vm1, %v2359_v27  ;;  %v8588_v27 = vpop.f32.mrf.mxu1 }
 0x6d8   : > { %v2724_v55 = vpop.f32.mrf.mxu0  ;;  %2956 = vmatpush.bf16.msra.mxu1 %v6232_v33 }
 0x6d9   : > { %v2742_v36 = vpack.c.bf16 %v2724_v55, %v2722_v1  ;;  %v6233_v1 = vld [vmem:[#allocation8 + $0x48] sm:$0xf0]  ;;  %v6223_v55 = vld [vmem:[#allocation8 + $0x30] sm:$0xf] }
 0x6da   : > { %v6236_v6 = vor.u32 %v6769_v58, %v6233_v1 }
 0x6db   : > { %6193 = vmatmul.msk.bf16.vlgmr.msra.gmra.mxu2 %vm1306_vm1, %v2742_v36  ;;  %v6768_v36 = vld [vmem:[#allocation8 + $0x34] sm:$0xf0] }
 0x6dc   : > { %v2344_v60 = vpop.f32.mrf.mxu2  ;;  %2985 = vmatpush.bf16.msra.mxu3 %v6236_v6 }
 0x6e0   : > { %v2727_v53 = vpop.f32.mrf.mxu0 }
 0x6e4   : > { %v2346_v63 = vpop.f32.mrf.mxu2 }
 0x6e5   : > { %v2360_v25 = vpack.c.bf16 %v2346_v63, %v2344_v60  ;;  %v6224_v60 = vor.u32 %v6768_v36, %v6223_v55  ;;  %v6225_v63 = vld [vmem:[#allocation8 + $0x38] sm:$0xf0]  ;;  %v996_v55 = vmul.f32 %v7255_v31, %v984_v50 }
 0x6e7   : > { %6174 = vmatmul.msk.bf16.gmra.mxu1 %vm1306_vm1, %v2360_v25 }
 0x6e8   : > { %v2729_v44 = vpop.f32.mrf.mxu0  ;;  %2957 = vmatpush.bf16.msra.mxu1 %v6224_v60  ;;  %v1008_v60 = vadd.f32 %v7256_v48, %v996_v55 }
 0x6e9   : > { %v2743_v41 = vpack.c.bf16 %v2729_v44, %v2727_v53  ;;  %v6767_v53 = vld [vmem:[#allocation8 + $0x34] sm:$0xf]  ;;  %v6215_v44 = vld [vmem:[#allocation8 + $0x20] sm:$0xf] }
 0x6ea   : > { %v6228_v25 = vor.u32 %v6767_v53, %v6225_v63 }
 0x6eb   : > { %6194 = vmatmul.msk.bf16.gmra.mxu2 %vm1306_vm1, %v2743_v41  ;;  %v6766_v41 = vld [vmem:[#allocation8 + $0x24] sm:$0xf0] }
 0x6ec   : > { %2986 = vmatpush.bf16.msra.mxu3 %v6228_v25 }
 0x6ee   : > { %v2349_v14 = vpop.f32.mrf.mxu2 }
 0x6f6   : > { %v2351_v59 = vpop.f32.mrf.mxu2 }
 0x6f7   : > { %v2361_v8 = vpack.c.bf16 %v2351_v59, %v2349_v14  ;;  %v6765_v14 = vld [vmem:[#allocation8 + $0x24] sm:$0xf]  ;;  %v6216_v59 = vor.u32 %v6766_v41, %v6215_v44 }
 0x6f9   : > { %6175 = vmatmul.msk.bf16.gmra.mxu1 %vm1306_vm1, %v2361_v8  ;;  %v6217_v8 = vld [vmem:[#allocation8 + $0x28] sm:$0xf0] }
 0x6fa   : > { %2958 = vmatpush.bf16.msra.mxu1 %v6216_v59 }
 0x6fe   : > { %v2354_v16 = vpop.f32.mrf.mxu2 }
 0x706   : > { %v2356_v4 = vpop.f32.mrf.mxu2 }
 0x707   : > { %v2362_v12 = vpack.c.bf16 %v2356_v4, %v2354_v16  ;;  %v6220_v16 = vor.u32 %v6765_v14, %v6217_v8  ;;  %v6207_v4 = vld [vmem:[#allocation8 + $0x10] sm:$0xf]  ;;  %v997_v14 = vmul.f32 %v7255_v31, %v985_v19 }
 0x709   : > { %6176 = vmatmul.msk.bf16.gmra.mxu1 %vm1306_vm1, %v2362_v12  ;;  %2987 = vmatpush.bf16.msra.mxu3 %v6220_v16  ;;  %v6764_v12 = vld [vmem:[#allocation8 + $0x14] sm:$0xf0]  ;;  %v1009_v21 = vadd.f32 %v7256_v48, %v997_v14  ;;  %v986_v16 = vadd.f32 %v7891_v18, %v7788_v10 }
 0x711   : > { %v2732_v7 = vpop.f32.mrf.mxu0 }
 0x719   : > { %v2734_v32 = vpop.f32.mrf.mxu0 }
 0x71a   : > { %v2744_v35 = vpack.c.bf16 %v2734_v32, %v2732_v7  ;;  %v6763_v7 = vld [vmem:[#allocation8 + $0x14] sm:$0xf]  ;;  %v8590_v32 = vpop.f32.mrf.mxu1 }
 0x71c   : > { %6195 = vmatmul.msk.bf16.gmra.mxu2 %vm1306_vm1, %v2744_v35  ;;  %v6208_v35 = vor.u32 %v6764_v12, %v6207_v4 }
 0x71e   : > { %2959 = vmatpush.bf16.msra.mxu1 %v6208_v35 }
 0x721   : > { %v2737_v38 = vpop.f32.mrf.mxu0 }
 0x729   : > { %v2739_v61 = vpop.f32.mrf.mxu0 }
 0x72a   : > { %v2745_v46 = vpack.c.bf16 %v2739_v61, %v2737_v38  ;;  %v6209_v38 = vld [vmem:[#allocation8 + $0x18] sm:$0xf0] }
 0x72b   : > { %v6212_v61 = vor.u32 %v6763_v7, %v6209_v38 }
 0x72c   : > { %6196 = vmatmul.msk.bf16.gmra.mxu2 %vm1306_vm1, %v2745_v46  ;;  %v6199_v46 = vld [vmem:[#allocation8] sm:$0xf] }
 0x72d   : > { %2988 = vmatpush.bf16.msra.mxu3 %v6212_v61  ;;  %v6200_v26 = vor.u32 %v6762_v47, %v6199_v46 }
 0x72f   : > { %2960 = vmatpush.bf16.msra.mxu1 %v6200_v26  ;;  %v2032_v26 = vadd.f32 %v8165_v51, %v8584_v40  ;;  %v6791_v51 = vld [vmem:[#allocation10 + $0x70] sm:$0xff] }
 0x731   : > { %2989 = vmatpush.bf16.msra.mxu3 %v6204_v54 }
 0x754   : > { %v2396_v34 = vpop.f32.mrf.mxu1 }
 0x755   : > { %v2416_v30 = vadd.f32 %v2396_v34, %v2022_v62  ;;  %v9830_v62 = vld [vmem:[#allocation27_spill] sm:$0xff] }
 0x75c   : > { %v2398_v22 = vpop.f32.mrf.mxu1 }
 0x75d   : > { %v2417_v28 = vadd.f32 %v2398_v22, %v2024_v20  ;;  %v6783_v20 = vld [vmem:[#allocation10 + $0x30] sm:$0xff] }
 0x75e   : > { %v2779_v24 = vpop.f32.mrf.mxu2 }
 0x75f   : > { %v2799_v56 = vadd.f32 %v2779_v24, %v2416_v30  ;;  %v9831_v30 = vld [vmem:[#allocation35_spill] sm:$0xff] }
 0x760   : > { %v2034_v22 = vadd.f32 %v9831_v30, %v8586_v45  ;;  %v6782_v45 = vld [vmem:[#allocation10 + $0x28] sm:$0xff] }
 0x761   : > { %v2807_v43 = vadd.f32 %v2799_v56, %v7775_v2  ;;  %v6784_v56 = vld [vmem:[#allocation10 + $0x38] sm:$0xff] }
 0x762   : > { %3163 = vmatpush.bf16.msrb.mxu0 %v6784_v56 }
 0x763   : > { %v2819_v17 = vmul.f32 %v8599_v37, %v2807_v43 }
 0x764   : > { %v2401_v6 = vpop.f32.mrf.mxu1 }
 0x765   : > { %v2831_v2 = vadd.f32 %v8608_v15, %v2819_v17  ;;  %v2418_v53 = vadd.f32 %v2401_v6, %v2027_v39 }
 0x766   : > { %v2781_v58 = vpop.f32.mrf.mxu2  ;;  %3164 = vmatpush.bf16.msrb.mxu0 %v6783_v20 }
 0x767   : > { %v8619_v33 = vadd.f32 %v2831_v2, %v1007_v11  ;;  %v2800_v1 = vadd.f32 %v2781_v58, %v2417_v28  ;;  %v9833_v28 = vld [vmem:[#allocation28_spill] sm:$0xff] }
 0x768   : > { %v6790_v58 = vld [vmem:[#allocation10 + $0x68] sm:$0xff] }
 0x769   : > { %v2808_v57 = vadd.f32 %v2800_v1, %v7777_v3  ;;  %v9834_v1 = vld [vmem:[#allocation36_spill] sm:$0xff] }
 0x76a   : > { %v2037_v6 = vadd.f32 %v9834_v1, %v8588_v27  ;;  %3165 = vmatpush.bf16.msrb.mxu0 %v6782_v45 }
 0x76b   : > { %v2820_v36 = vmul.f32 %v8599_v37, %v2808_v57 }
 0x76c   : > { %v2403_v5 = vpop.f32.mrf.mxu1 }
 0x76d   : > { %v2832_v63 = vadd.f32 %v8608_v15, %v2820_v36  ;;  %v2419_v4 = vadd.f32 %v2403_v5, %v2029_v23  ;;  %v6781_v36 = vld [vmem:[#allocation10 + $0x20] sm:$0xff] }
 0x76e   : > { %v2784_v25 = vpop.f32.mrf.mxu2  ;;  %3166 = vmatpush.bf16.msrb.mxu0 %v6781_v36 }
 0x76f   : > { %v8628_v44 = vadd.f32 %v2832_v63, %v1008_v60  ;;  %v2801_v41 = vadd.f32 %v2784_v25, %v2418_v53  ;;  %v9835_v53 = vld [vmem:[#allocation32_spill] sm:$0xff]  ;;  %v9836_v25 = vld [vmem:[#allocation29_spill] sm:$0xff] }
 0x771   : > { %v2847_v3 = vpack.c.bf16 %v8628_v44, %v8619_v33  ;;  %v2809_v59 = vadd.f32 %v2801_v41, %v7786_v9  ;;  %v998_v9 = vmul.f32 %v7255_v31, %v986_v16  ;;  %v6792_v31 = vld [vmem:[#allocation10 + $0x78] sm:$0xff] }
 0x772   : > { %3192 = vmatpush.bf16.msrb.mxu2 %v6792_v31 }
 0x773   : > { %v2821_v8 = vmul.f32 %v8599_v37, %v2809_v59  ;;  %2961 = vmatmul.bf16.vlgmr.msra.gmra.mxu1 %v2847_v3  ;;  %2990 = vmatmul.bf16.vlgmr.msra.gmra.mxu3 %v2847_v3  ;;  %v1010_v42 = vadd.f32 %v7256_v48, %v998_v9  ;;  %v9832_v48 = vld [vmem:[#allocation31_spill] sm:$0xff]  ;;  %v9837_v3 = vld [vmem:[#allocation37_spill] sm:$0xff] }
 0x774   : > { %v2039_v59 = vadd.f32 %v9837_v3, %v8590_v32 }
 0x775   : > { %v2833_v12 = vadd.f32 %v8608_v15, %v2821_v8 }
 0x776   : > { %v2786_v7 = vpop.f32.mrf.mxu2  ;;  %v2406_v52 = vpop.f32.mrf.mxu1  ;;  %3193 = vmatpush.bf16.msrb.mxu2 %v6791_v51 }
 0x777   : > { %v2802_v35 = vadd.f32 %v2786_v7, %v2419_v4  ;;  %v8639_v38 = vadd.f32 %v2833_v12, %v1009_v21  ;;  %v2420_v13 = vadd.f32 %v2406_v52, %v2032_v26  ;;  %v9838_v4 = vld [vmem:[#allocation33_spill] sm:$0xff]  ;;  %v9839_v7 = vld [vmem:[#allocation30_spill] sm:$0xff] }
 0x778   : > { %v6779_v52 = vld [vmem:[#allocation10 + $0x10] sm:$0xff]  ;;  %v6788_v26 = vld [vmem:[#allocation10 + $0x58] sm:$0xff] }
 0x779   : > { %v2810_v61 = vadd.f32 %v2802_v35, %v7788_v10 }
 0x77a   : > { %3194 = vmatpush.bf16.msrb.mxu2 %v6790_v58 }
 0x77b   : > { %v2822_v0 = vmul.f32 %v8599_v37, %v2810_v61 }
 0x77d   : > { %v2834_v46 = vadd.f32 %v8608_v15, %v2822_v0  ;;  %v9840_v0 = vld [vmem:[#allocation34_spill] sm:$0xff] }
 0x77e   : > { %v2408_v54 = vpop.f32.mrf.mxu1 }
 0x77f   : > { %v8644_v47 = vadd.f32 %v2834_v46, %v1010_v42  ;;  %v2421_v49 = vadd.f32 %v2408_v54, %v2034_v22  ;;  %v6780_v46 = vld [vmem:[#allocation10 + $0x18] sm:$0xff]  ;;  %v6786_v54 = vld [vmem:[#allocation10 + $0x48] sm:$0xff] }
 0x780   : > { %3167 = vmatpush.bf16.msrb.mxu0 %v6780_v46 }
 0x781   : > { %v2848_v18 = vpack.c.bf16 %v8644_v47, %v8639_v38 }
 0x783   : > { %2966 = vmatmul.bf16.gmra.mxu1 %v2848_v18  ;;  %2995 = vmatmul.bf16.gmra.mxu3 %v2848_v18  ;;  %v6789_v18 = vld [vmem:[#allocation10 + $0x60] sm:$0xff] }
 0x784   : > { %3195 = vmatpush.bf16.msrb.mxu2 %v6789_v18  ;;  %3168 = vmatpush.bf16.msrb.mxu0 %v6779_v52 }
 0x786   : > { %v2411_v50 = vpop.f32.mrf.mxu1 }
 0x787   : > { %v2422_v57 = vadd.f32 %v2411_v50, %v2037_v6 }
 0x788   : > { %3196 = vmatpush.bf16.msrb.mxu2 %v6788_v26 }
 0x78e   : > { %v2413_v27 = vpop.f32.mrf.mxu1 }
 0x78f   : > { %v2423_v23 = vadd.f32 %v2413_v27, %v2039_v59 }
 0x79f   : > { %v2789_v34 = vpop.f32.mrf.mxu2 }
 0x7a0   : > { %v2803_v10 = vadd.f32 %v2789_v34, %v2420_v13  ;;  %v6778_v13 = vld [vmem:[#allocation10 + $0x8] sm:$0xff]  ;;  %v6785_v34 = vld [vmem:[#allocation10 + $0x40] sm:$0xff] }
 0x7a1   : > { %3169 = vmatpush.bf16.msrb.mxu0 %v6778_v13 }
 0x7a2   : > { %v2811_v29 = vadd.f32 %v2803_v10, %v9830_v62  ;;  %v2867_v10 = vld [vmem:[%s9749_s13] sm:$0x3] }
 0x7a3   : > { %v2870_v56 = vperm.slane %v2867_v10, 1 }
 0x7a4   : > { %v2823_v24 = vmul.f32 %v8599_v37, %v2811_v29  ;;  %v2869_v29 = vperm.slane %v2867_v10, 0 }
 0x7a6   : > { %v2835_v43 = vadd.f32 %v8608_v15, %v2823_v24 }
 0x7a7   : > { %v2791_v40 = vpop.f32.mrf.mxu2 }
 0x7a8   : > { %v2804_v17 = vadd.f32 %v2791_v40, %v2421_v49  ;;  %v8656_v11 = vadd.f32 %v2835_v43, %v9832_v48 }
 0x7aa   : > { %v2812_v2 = vadd.f32 %v2804_v17, %v9833_v28 }
 0x7ac   : > { %v2824_v55 = vmul.f32 %v8599_v37, %v2812_v2 }
 0x7ae   : > { %v2836_v39 = vadd.f32 %v8608_v15, %v2824_v55 }
 0x7af   : > { %v2794_v60 = vpop.f32.mrf.mxu2 }
 0x7b0   : > { %v2805_v19 = vadd.f32 %v2794_v60, %v2422_v57  ;;  %v8664_v63 = vadd.f32 %v2836_v39, %v9835_v53 }
 0x7b2   : > { %v2813_v41 = vadd.f32 %v2805_v19, %v9836_v25  ;;  %v2849_v14 = vpack.c.bf16 %v8664_v63, %v8656_v11 }
 0x7b4   : > { %v2825_v5 = vmul.f32 %v8599_v37, %v2813_v41  ;;  %2971 = vmatmul.bf16.gmra.mxu1 %v2849_v14  ;;  %3000 = vmatmul.bf16.gmra.mxu3 %v2849_v14 }
 0x7b6   : > { %v2837_v8 = vadd.f32 %v8608_v15, %v2825_v5 }
 0x7b7   : > { %v2796_v21 = vpop.f32.mrf.mxu2 }
 0x7b8   : > { %v2806_v16 = vadd.f32 %v2796_v21, %v2423_v23  ;;  %v8674_v12 = vadd.f32 %v2837_v8, %v9838_v4 }
 0x7ba   : > { %v2814_v35 = vadd.f32 %v2806_v16, %v9839_v7 }
 0x7bc   : > { %v2826_v9 = vmul.f32 %v8599_v37, %v2814_v35  ;;  %v6787_v37 = vld [vmem:[#allocation10 + $0x50] sm:$0xff] }
 0x7bd   : > { %3197 = vmatpush.bf16.msrb.mxu2 %v6787_v37 }
 0x7be   : > { %v2838_v61 = vadd.f32 %v8608_v15, %v2826_v9  ;;  %v6777_v15 = vld [vmem:[#allocation10] sm:$0xff] }
 0x7bf   : > { %3170 = vmatpush.bf16.msrb.mxu0 %v6777_v15 }
 0x7c0   : > { %v8680_v32 = vadd.f32 %v2838_v61, %v9840_v0 }
 0x7c1   : > { %3198 = vmatpush.bf16.msrb.mxu2 %v6786_v54 }
 0x7c2   : > { %v2850_v42 = vpack.c.bf16 %v8680_v32, %v8674_v12 }
 0x7c4   : > { %2976 = vmatmul.bf16.gmra.mxu1 %v2850_v42  ;;  %3005 = vmatmul.bf16.gmra.mxu3 %v2850_v42 }
 0x7c5   : > { %3199 = vmatpush.bf16.msrb.mxu2 %v6785_v34 }
 0x7f0   : > { %v2962_v62 = vpop.f32.mrf.mxu1 }
 0x7f1   : > { %v2963_v22 = vadd.f32 %v2962_v62, %v2869_v29 }
 0x7f3   : > { %v3011_v49 = vmax.f32 %v2963_v22, 0.0  ;;  %v6450_v22 = vld [vmem:[#allocation5 + $0x168] sm:$0xf] }
 0x7f6   : > { %v2991_v30 = vpop.f32.mrf.mxu3 }
 0x7f7   : > { %v2992_v20 = vadd.f32 %v2991_v30, %v2870_v56 }
 0x7f8   : > { %v2964_v24 = vpop.f32.mrf.mxu1 }
 0x7f9   : > { %v2965_v31 = vadd.f32 %v2964_v24, %v2869_v29  ;;  %v3012_v50 = vmax.f32 %v2992_v20, 0.0  ;;  %v6823_v24 = vld [vmem:[#allocation5 + $0x170] sm:$0xf0]  ;;  %v6452_v20 = vld [vmem:[#allocation5 + $0x174] sm:$0xf0] }
 0x7fb   : > { %v3013_v43 = vmax.f32 %v2965_v31, 0.0  ;;  %v6822_v31 = vld [vmem:[#allocation5 + $0x16c] sm:$0xf] }
 0x7fd   : > { %v3027_v51 = vpack.c.bf16 %v3013_v43, %v3011_v49  ;;  %v6800_v49 = vld [vmem:[#allocation2 + $0x78] sm:$0xff]  ;;  %v6451_v43 = vor.u32 %v6823_v24, %v6450_v22 }
 0x7fe   : > { %v2993_v40 = vpop.f32.mrf.mxu3  ;;  %3322 = vmatpush.bf16.msrb.mxu1 %v6800_v49 }
 0x7ff   : > { %v2994_v17 = vadd.f32 %v2993_v40, %v2870_v56  ;;  %3171 = vmatmul.bf16.vlgmr.msrb.gmra.mxu0 %v3027_v51  ;;  %v6455_v51 = vor.u32 %v6822_v31, %v6452_v20  ;;  %v6438_v40 = vld [vmem:[#allocation5 + $0x150] sm:$0xf]  ;;  %v8691_v20 = vld [vmem:[%s9751_s15] ss:$0 sm:$0xff] }
 0x800   : > { %v2967_v48 = vpop.f32.mrf.mxu1  ;;  %3588 = vmatpush.bf16.msra.mxu0 %v6451_v43 }
 0x801   : > { %v3014_v28 = vmax.f32 %v2994_v17, 0.0  ;;  %v2968_v58 = vadd.f32 %v2967_v48, %v2869_v29  ;;  %v6819_v17 = vld [vmem:[#allocation5 + $0x154] sm:$0xf]  ;;  %3617 = vmatpush.bf16.msra.mxu2 %v6455_v51 }
 0x802   : > { %v6799_v48 = vld [vmem:[#allocation2 + $0x70] sm:$0xff] }
 0x803   : > { %v3028_v2 = vpack.c.bf16 %v3014_v28, %v3012_v50  ;;  %v3015_v55 = vmax.f32 %v2968_v58, 0.0  ;;  %3323 = vmatpush.bf16.msrb.mxu1 %v6799_v48  ;;  %v6816_v58 = vld [vmem:[#allocation5 + $0x13c] sm:$0xf] }
 0x805   : > { %3200 = vmatmul.bf16.vlgmr.msrb.gmra.mxu2 %v3028_v2  ;;  %v6426_v2 = vld [vmem:[#allocation5 + $0x138] sm:$0xf] }
 0x806   : > { %v2996_v45 = vpop.f32.mrf.mxu3 }
 0x807   : > { %v2997_v39 = vadd.f32 %v2996_v45, %v2870_v56  ;;  %v6817_v45 = vld [vmem:[#allocation5 + $0x140] sm:$0xf0] }
 0x808   : > { %v2969_v1 = vpop.f32.mrf.mxu1 }
 0x809   : > { %v2970_v6 = vadd.f32 %v2969_v1, %v2869_v29  ;;  %v3016_v53 = vmax.f32 %v2997_v39, 0.0  ;;  %v6798_v1 = vld [vmem:[#allocation2 + $0x68] sm:$0xff]  ;;  %v6414_v39 = vld [vmem:[#allocation5 + $0x120] sm:$0xf] }
 0x80a   : > { %3324 = vmatpush.bf16.msrb.mxu1 %v6798_v1 }
 0x80b   : > { %v3017_v57 = vmax.f32 %v2970_v6, 0.0  ;;  %v6427_v6 = vor.u32 %v6817_v45, %v6426_v2 }
 0x80d   : > { %v3029_v36 = vpack.c.bf16 %v3017_v57, %v3015_v55  ;;  %v6428_v55 = vld [vmem:[#allocation5 + $0x144] sm:$0xf0] }
 0x80e   : > { %v2998_v60 = vpop.f32.mrf.mxu3  ;;  %v6431_v57 = vor.u32 %v6816_v58, %v6428_v55 }
 0x80f   : > { %v2999_v19 = vadd.f32 %v2998_v60, %v2870_v56  ;;  %3176 = vmatmul.bf16.gmra.mxu0 %v3029_v36  ;;  %v6814_v36 = vld [vmem:[#allocation5 + $0x128] sm:$0xf0]  ;;  %v6813_v60 = vld [vmem:[#allocation5 + $0x124] sm:$0xf] }
 0x811   : > { %v3018_v25 = vmax.f32 %v2999_v19, 0.0  ;;  %v6797_v19 = vld [vmem:[#allocation2 + $0x60] sm:$0xff] }
 0x812   : > { %3325 = vmatpush.bf16.msrb.mxu1 %v6797_v19 }
 0x813   : > { %v3030_v41 = vpack.c.bf16 %v3018_v25, %v3016_v53  ;;  %v6415_v53 = vor.u32 %v6814_v36, %v6414_v39  ;;  %v6416_v25 = vld [vmem:[#allocation5 + $0x12c] sm:$0xf0] }
 0x815   : > { %3205 = vmatmul.bf16.gmra.mxu2 %v3030_v41  ;;  %v6419_v41 = vor.u32 %v6813_v60, %v6416_v25 }
 0x831   : > { %v2972_v14 = vpop.f32.mrf.mxu1 }
 0x832   : > { %v2973_v3 = vadd.f32 %v2972_v14, %v2869_v29  ;;  %v6402_v14 = vld [vmem:[#allocation5 + $0x108] sm:$0xf] }
 0x834   : > { %v3019_v23 = vmax.f32 %v2973_v3, 0.0  ;;  %v6796_v3 = vld [vmem:[#allocation2 + $0x58] sm:$0xff] }
 0x835   : > { %3326 = vmatpush.bf16.msrb.mxu1 %v6796_v3 }
 0x837   : > { %v3001_v27 = vpop.f32.mrf.mxu3 }
 0x838   : > { %v3002_v21 = vadd.f32 %v3001_v27, %v2870_v56  ;;  %v6811_v27 = vld [vmem:[#allocation5 + $0x110] sm:$0xf0] }
 0x839   : > { %v2974_v59 = vpop.f32.mrf.mxu1 }
 0x83a   : > { %v2975_v5 = vadd.f32 %v2974_v59, %v2869_v29  ;;  %v3020_v9 = vmax.f32 %v3002_v21, 0.0  ;;  %v6403_v59 = vor.u32 %v6811_v27, %v6402_v14  ;;  %v6390_v21 = vld [vmem:[#allocation5 + $0xf0] sm:$0xf]  ;;  %v6821_v14 = vld [vmem:[#allocation5 + $0x160] sm:$0xf0] }
 0x83c   : > { %v3021_v8 = vmax.f32 %v2975_v5, 0.0  ;;  %v6810_v5 = vld [vmem:[#allocation5 + $0x10c] sm:$0xf] }
 0x83e   : > { %v3031_v16 = vpack.c.bf16 %v3021_v8, %v3019_v23  ;;  %v6404_v23 = vld [vmem:[#allocation5 + $0x114] sm:$0xf0] }
 0x83f   : > { %v3003_v4 = vpop.f32.mrf.mxu3  ;;  %v6407_v8 = vor.u32 %v6810_v5, %v6404_v23  ;;  %v6818_v5 = vld [vmem:[#allocation5 + $0x148] sm:$0xf0] }
 0x840   : > { %v3004_v7 = vadd.f32 %v3003_v4, %v2870_v56  ;;  %3181 = vmatmul.bf16.gmra.mxu0 %v3031_v16  ;;  %v6808_v16 = vld [vmem:[#allocation5 + $0xf8] sm:$0xf0]  ;;  %v6807_v4 = vld [vmem:[#allocation5 + $0xf4] sm:$0xf] }
 0x841   : > { %v2977_v35 = vpop.f32.mrf.mxu1 }
 0x842   : > { %v3022_v61 = vmax.f32 %v3004_v7, 0.0  ;;  %v2978_v46 = vadd.f32 %v2977_v35, %v2869_v29  ;;  %v6795_v7 = vld [vmem:[#allocation2 + $0x50] sm:$0xff]  ;;  %v6391_v35 = vor.u32 %v6808_v16, %v6390_v21 }
 0x843   : > { %3327 = vmatpush.bf16.msrb.mxu1 %v6795_v7  ;;  %v6815_v21 = vld [vmem:[#allocation5 + $0x130] sm:$0xf0] }
 0x844   : > { %v3032_v0 = vpack.c.bf16 %v3022_v61, %v3020_v9  ;;  %v3023_v26 = vmax.f32 %v2978_v46, 0.0  ;;  %v6392_v9 = vld [vmem:[#allocation5 + $0xfc] sm:$0xf0]  ;;  %v6804_v46 = vld [vmem:[#allocation5 + $0xdc] sm:$0xf] }
 0x845   : > { %v6395_v61 = vor.u32 %v6807_v4, %v6392_v9  ;;  %v6812_v9 = vld [vmem:[#allocation5 + $0x118] sm:$0xf0] }
 0x846   : > { %3210 = vmatmul.bf16.gmra.mxu2 %v3032_v0  ;;  %v6378_v0 = vld [vmem:[#allocation5 + $0xd8] sm:$0xf] }
 0x847   : > { %v3006_v42 = vpop.f32.mrf.mxu3 }
 0x848   : > { %v3007_v37 = vadd.f32 %v3006_v42, %v2870_v56  ;;  %v6805_v42 = vld [vmem:[#allocation5 + $0xe0] sm:$0xf0] }
 0x849   : > { %v2979_v18 = vpop.f32.mrf.mxu1 }
 0x84a   : > { %v2980_v52 = vadd.f32 %v2979_v18, %v2869_v29  ;;  %v3024_v10 = vmax.f32 %v3007_v37, 0.0  ;;  %v6820_v29 = vld [vmem:[#allocation5 + $0x158] sm:$0xf0]  ;;  %v6794_v18 = vld [vmem:[#allocation2 + $0x48] sm:$0xff]  ;;  %v6366_v37 = vld [vmem:[#allocation5 + $0xc0] sm:$0xf] }
 0x84b   : > { %v6439_v50 = vor.u32 %v6820_v29, %v6438_v40  ;;  %3328 = vmatpush.bf16.msrb.mxu1 %v6794_v18 }
 0x84c   : > { %v3025_v13 = vmax.f32 %v2980_v52, 0.0  ;;  %v6379_v52 = vor.u32 %v6805_v42, %v6378_v0  ;;  %v6398_v42 = vld [vmem:[#allocation5 + $0xf8] sm:$0xf] }
 0x84d   : > { %3589 = vmatpush.bf16.msra.mxu0 %v6439_v50 }
 0x84e   : > { %v3033_v15 = vpack.c.bf16 %v3025_v13, %v3023_v26  ;;  %v6380_v26 = vld [vmem:[#allocation5 + $0xe4] sm:$0xf0] }
 0x84f   : > { %v3008_v54 = vpop.f32.mrf.mxu3  ;;  %v6383_v13 = vor.u32 %v6804_v46, %v6380_v26  ;;  %v6809_v46 = vld [vmem:[#allocation5 + $0x100] sm:$0xf0]  ;;  %v6386_v26 = vld [vmem:[#allocation5 + $0xe0] sm:$0xf] }
 0x850   : > { %v3009_v34 = vadd.f32 %v3008_v54, %v2870_v56  ;;  %3186 = vmatmul.bf16.gmra.mxu0 %v3033_v15  ;;  %v6440_v56 = vld [vmem:[#allocation5 + $0x15c] sm:$0xf0]  ;;  %v6802_v15 = vld [vmem:[#allocation5 + $0xc8] sm:$0xf0]  ;;  %v6801_v54 = vld [vmem:[#allocation5 + $0xc4] sm:$0xf]  ;;  %v6399_v18 = vor.u32 %v6809_v46, %v6398_v42 }
 0x851   : > { %v6443_v28 = vor.u32 %v6819_v17, %v6440_v56  ;;  %3590 = vmatpush.bf16.msra.mxu0 %v6427_v6  ;;  %v8697_v17 = vld [vmem:[%s9752_s16] ss:$0 sm:$0xff] }
 0x852   : > { %v3026_v62 = vmax.f32 %v3009_v34, 0.0  ;;  %v6793_v34 = vld [vmem:[#allocation2 + $0x40] sm:$0xff] }
 0x853   : > { %3618 = vmatpush.bf16.msra.mxu2 %v6443_v28  ;;  %3329 = vmatpush.bf16.msrb.mxu1 %v6793_v34  ;;  %v7257_v46 = vld [vmem:[%s7836_s20] sm:$0xff] }
 0x854   : > { %v3034_v30 = vpack.c.bf16 %v3026_v62, %v3024_v10  ;;  %v6367_v10 = vor.u32 %v6802_v15, %v6366_v37  ;;  %v6368_v62 = vld [vmem:[#allocation5 + $0xcc] sm:$0xf0] }
 0x855   : > { %3591 = vmatpush.bf16.msra.mxu0 %v6415_v53 }
 0x856   : > { %3215 = vmatmul.bf16.gmra.mxu2 %v3034_v30  ;;  %v6371_v30 = vor.u32 %v6801_v54, %v6368_v62  ;;  %v6374_v62 = vld [vmem:[#allocation5 + $0xc8] sm:$0xf] }
 0x857   : > { %3619 = vmatpush.bf16.msra.mxu2 %v6431_v57 }
 0x859   : > { %3592 = vmatpush.bf16.msra.mxu0 %v6403_v59  ;;  %v6434_v59 = vld [vmem:[#allocation5 + $0x140] sm:$0xf] }
 0x85a   : > { %v6435_v23 = vor.u32 %v6818_v5, %v6434_v59 }
 0x85b   : > { %3620 = vmatpush.bf16.msra.mxu2 %v6419_v41  ;;  %v6446_v41 = vld [vmem:[#allocation5 + $0x158] sm:$0xf] }
 0x85c   : > { %v6447_v27 = vor.u32 %v6821_v14, %v6446_v41 }
 0x85d   : > { %3593 = vmatpush.bf16.msra.mxu0 %v6391_v35  ;;  %v6410_v35 = vld [vmem:[#allocation5 + $0x110] sm:$0xf] }
 0x85e   : > { %v6411_v0 = vor.u32 %v6812_v9, %v6410_v35 }
 0x85f   : > { %3621 = vmatpush.bf16.msra.mxu2 %v6407_v8  ;;  %v6422_v8 = vld [vmem:[#allocation5 + $0x128] sm:$0xf] }
 0x860   : > { %v6423_v4 = vor.u32 %v6815_v21, %v6422_v8 }
 0x861   : > { %3594 = vmatpush.bf16.msra.mxu0 %v6379_v52 }
 0x863   : > { %3622 = vmatpush.bf16.msra.mxu2 %v6395_v61 }
 0x865   : > { %3595 = vmatpush.bf16.msra.mxu0 %v6367_v10 }
 0x867   : > { %3623 = vmatpush.bf16.msra.mxu2 %v6383_v13  ;;  %v6806_v13 = vld [vmem:[#allocation5 + $0xe8] sm:$0xf0] }
 0x868   : > { %v6387_v54 = vor.u32 %v6806_v13, %v6386_v26 }
 0x86b   : > { %3624 = vmatpush.bf16.msra.mxu2 %v6371_v30  ;;  %v6803_v30 = vld [vmem:[#allocation5 + $0xd0] sm:$0xf0] }
 0x87c   : > { %v3172_v22 = vpop.f32.mrf.mxu0 }
 0x884   : > { %v3174_v49 = vpop.f32.mrf.mxu0 }
 0x888   : > { %v3201_v24 = vpop.f32.mrf.mxu2 }
 0x889   : > { %v3202_v31 = vadd.f32 %v3201_v24, %v3172_v22 }
 0x88b   : > { %v3221_v43 = vadd.f32 %v3202_v31, %v8619_v33  ;;  %v6375_v31 = vor.u32 %v6803_v30, %v6374_v62  ;;  %v7258_v30 = vld [vmem:[%s7836_s20 + $0x8] sm:$0xff] }
 0x88c   : > { %v3177_v56 = vpop.f32.mrf.mxu0 }
 0x88d   : > { %v3233_v29 = vmul.f32 %v8691_v20, %v3221_v43 }
 0x88f   : > { %v8702_v33 = vadd.f32 %v8697_v17, %v3233_v29 }
 0x890   : > { %v3203_v51 = vpop.f32.mrf.mxu2 }
 0x891   : > { %v3204_v40 = vadd.f32 %v3203_v51, %v3174_v49 }
 0x893   : > { %v3222_v48 = vadd.f32 %v3204_v40, %v8628_v44 }
 0x894   : > { %v3179_v1 = vpop.f32.mrf.mxu0 }
 0x895   : > { %v3234_v50 = vmul.f32 %v8691_v20, %v3222_v48 }
 0x897   : > { %v8705_v28 = vadd.f32 %v8697_v17, %v3234_v50 }
 0x898   : > { %v3206_v2 = vpop.f32.mrf.mxu2 }
 0x899   : > { %v8709_v45 = vpack.c.bf16 %v8705_v28, %v8702_v33  ;;  %v3207_v58 = vadd.f32 %v3206_v2, %v3177_v56 }
 0x89b   : > { %3330 = vmatmul.bf16.vlgmr.msrb.gmra.mxu1 %v8709_v45  ;;  %3596 = vmatmul.bf16.vlgmr.msra.gmra.mxu0 %v8709_v45  ;;  %v3223_v44 = vadd.f32 %v3207_v58, %v8639_v38  ;;  %v6458_v38 = vld [vmem:[#allocation5 + $0x170] sm:$0xf] }
 0x89c   : > { %3625 = vmatmul.bf16.vlgmr.msra.gmra.mxu2 %v8709_v45 }
 0x89d   : > { %v3235_v57 = vmul.f32 %v8691_v20, %v3223_v44 }
 0x89f   : > { %v8719_v60 = vadd.f32 %v8697_v17, %v3235_v57 }
 0x8a0   : > { %v3208_v6 = vpop.f32.mrf.mxu2 }
 0x8a1   : > { %v3209_v55 = vadd.f32 %v3208_v6, %v3179_v1  ;;  %9841 = vst [vmem:[#allocation27_spill] sm:$0xff] %v8719_v60 }
 0x8a3   : > { %v3224_v39 = vadd.f32 %v3209_v55, %v8644_v47  ;;  %v6824_v47 = vld [vmem:[#allocation5 + $0x178] sm:$0xf0] }
 0x8a4   : > { %v6459_v25 = vor.u32 %v6824_v47, %v6458_v38 }
 0x8a5   : > { %v3236_v36 = vmul.f32 %v8691_v20, %v3224_v39 }
 0x8a6   : > { %3646 = vmatpush.bf16.msra.mxu1 %v6459_v25 }
 0x8a7   : > { %v8722_v19 = vadd.f32 %v8697_v17, %v3236_v36 }
 0x8a9   : > { %9842 = vst [vmem:[#allocation35_spill] sm:$0xff] %v8722_v19  ;;  %v8726_v53 = vpack.c.bf16 %v8722_v19, %v8719_v60 }
 0x8aa   : > { %3647 = vmatpush.bf16.msra.mxu1 %v6447_v27 }
 0x8ab   : > { %3335 = vmatmul.bf16.gmra.mxu1 %v8726_v53  ;;  %3601 = vmatmul.bf16.gmra.mxu0 %v8726_v53 }
 0x8ac   : > { %3630 = vmatmul.bf16.gmra.mxu2 %v8726_v53 }
 0x8ae   : > { %3648 = vmatpush.bf16.msra.mxu1 %v6435_v23 }
 0x8b2   : > { %3649 = vmatpush.bf16.msra.mxu1 %v6423_v4 }
 0x8b6   : > { %3650 = vmatpush.bf16.msra.mxu1 %v6411_v0 }
 0x8ba   : > { %3651 = vmatpush.bf16.msra.mxu1 %v6399_v18 }
 0x8bd   : > { %v3182_v3 = vpop.f32.mrf.mxu0 }
 0x8be   : > { %3652 = vmatpush.bf16.msra.mxu1 %v6387_v54 }
 0x8c2   : > { %3653 = vmatpush.bf16.msra.mxu1 %v6375_v31 }
 0x8c5   : > { %v3184_v61 = vpop.f32.mrf.mxu0 }
 0x8c9   : > { %v3211_v16 = vpop.f32.mrf.mxu2 }
 0x8ca   : > { %v3212_v7 = vadd.f32 %v3211_v16, %v3182_v3 }
 0x8cc   : > { %v3225_v52 = vadd.f32 %v3212_v7, %v8656_v11 }
 0x8cd   : > { %v3187_v24 = vpop.f32.mrf.mxu0 }
 0x8ce   : > { %v3237_v34 = vmul.f32 %v8691_v20, %v3225_v52 }
 0x8d0   : > { %v8736_v49 = vadd.f32 %v8697_v17, %v3237_v34 }
 0x8d1   : > { %v3213_v37 = vpop.f32.mrf.mxu2 }
 0x8d2   : > { %v3214_v15 = vadd.f32 %v3213_v37, %v3184_v61  ;;  %9843 = vst [vmem:[#allocation31_spill] sm:$0xff] %v8736_v49 }
 0x8d4   : > { %v3226_v10 = vadd.f32 %v3214_v15, %v8664_v63 }
 0x8d5   : > { %v3189_v29 = vpop.f32.mrf.mxu0 }
 0x8d6   : > { %v3238_v22 = vmul.f32 %v8691_v20, %v3226_v10 }
 0x8d8   : > { %v8739_v11 = vadd.f32 %v8697_v17, %v3238_v22 }
 0x8d9   : > { %v3216_v43 = vpop.f32.mrf.mxu2 }
 0x8da   : > { %9844 = vst [vmem:[#allocation28_spill] sm:$0xff] %v8739_v11  ;;  %v3255_v51 = vpack.c.bf16 %v8739_v11, %v8736_v49  ;;  %v3217_v40 = vadd.f32 %v3216_v43, %v3187_v24 }
 0x8dc   : > { %3340 = vmatmul.bf16.gmra.mxu1 %v3255_v51  ;;  %3606 = vmatmul.bf16.gmra.mxu0 %v3255_v51  ;;  %v3227_v63 = vadd.f32 %v3217_v40, %v8674_v12  ;;  %v7259_v40 = vld [vmem:[%s7836_s20 + $0x10] sm:$0xff] }
 0x8dd   : > { %3635 = vmatmul.bf16.gmra.mxu2 %v3255_v51 }
 0x8de   : > { %v3239_v56 = vmul.f32 %v8691_v20, %v3227_v63 }
 0x8e0   : > { %v8748_v44 = vadd.f32 %v8697_v17, %v3239_v56 }
 0x8e1   : > { %v3218_v48 = vpop.f32.mrf.mxu2 }
 0x8e2   : > { %v3219_v50 = vadd.f32 %v3218_v48, %v3189_v29  ;;  %9845 = vst [vmem:[#allocation36_spill] sm:$0xff] %v8748_v44 }
 0x8e4   : > { %v3228_v2 = vadd.f32 %v3219_v50, %v8680_v32 }
 0x8e6   : > { %v3240_v58 = vmul.f32 %v8691_v20, %v3228_v2 }
 0x8e8   : > { %v8751_v1 = vadd.f32 %v8697_v17, %v3240_v58  ;;  %v7260_v58 = vld [vmem:[%s7836_s20 + $0x18] sm:$0xff]  ;;  %s9905_s20 = sld [smem:[#allocation20_spill]] }
 0x8ea   : > { %9846 = vst [vmem:[#allocation32_spill] sm:$0xff] %v8751_v1  ;;  %v3256_v6 = vpack.c.bf16 %v8751_v1, %v8748_v44 }
 0x8ec   : > { %3345 = vmatmul.bf16.gmra.mxu1 %v3256_v6  ;;  %3611 = vmatmul.bf16.gmra.mxu0 %v3256_v6 }
 0x8ed   : > { %3640 = vmatmul.bf16.gmra.mxu2 %v3256_v6 }
 0x8ee   : > { %s708_s3 = sand.u32 1, %s9905_s20  }
 0x8ef   : > { %s5940_s26 = sshll.u32 %s708_s3, 6  ;;  %s5775_s22 = scalar_lea.sflag [#allocation4], %s708_s3 }
 0x8fc   : > { %3654 = vmatmul.bf16.vlgmr.msra.gmra.mxu1 %v8709_v45 }
 0x90c   : > { %3659 = vmatmul.bf16.gmra.mxu1 %v8726_v53  ;;  %v6363_v53 = vld [vmem:[%s9744_s8 + $0x3] sm:$0x7] }
 0x90d   : > { %v3455_v5 = vperm.slane %v6363_v53, 1  ;;  %v3456_v48 = vperm.slane %v6363_v53, 2 }
 0x918   : > { %v3331_v12 = vpop.f32.mrf.mxu1 }
 0x91c   : > { %3664 = vmatmul.bf16.gmra.mxu1 %v3255_v51  ;;  %v3597_v51 = vpop.f32.mrf.mxu0 }
 0x91f   : > { %v3626_v32 = vpop.f32.mrf.mxu2 }
 0x920   : > { %v3333_v20 = vpop.f32.mrf.mxu1  ;;  %v3627_v62 = vadd.f32 %v3626_v32, %v3455_v5 }
 0x921   : > { %v3351_v35 = vpack.c.bf16 %v3333_v20, %v3331_v12 }
 0x924   : > { %v3599_v29 = vpop.f32.mrf.mxu0 }
 0x927   : > { %v3628_v55 = vpop.f32.mrf.mxu2 }
 0x928   : > { %v3336_v57 = vpop.f32.mrf.mxu1  ;;  %v3629_v54 = vadd.f32 %v3628_v55, %v3455_v5  ;;  %v3454_v55 = vperm.slane %v6363_v53, 0 }
 0x92a   : > { %v8776_v22 = vpack.c.bf16 %v3629_v54, %v3627_v62 }
 0x92c   : > { %3669 = vmatmul.bf16.gmra.mxu1 %v3256_v6  ;;  %v3725_v24 = vsel %vm1306_vm1, %v8776_v22, 0  ;;  %v3602_v32 = vpop.f32.mrf.mxu0 }
 0x92f   : > { %v3631_v39 = vpop.f32.mrf.mxu2 }
 0x930   : > { %v3338_v17 = vpop.f32.mrf.mxu1  ;;  %v3632_v37 = vadd.f32 %v3631_v39, %v3455_v5 }
 0x931   : > { %v3352_v16 = vpack.c.bf16 %v3338_v17, %v3336_v57  ;;  %v3600_v17 = vadd.f32 %v3599_v29, %v3454_v55  ;;  %v6993_v29 = vld [vmem:[%s9742_s6 + $0x1] ss:$0 sm:$0xff] }
 0x937   : > { %v3633_v36 = vpop.f32.mrf.mxu2 }
 0x938   : > { %v3634_v52 = vadd.f32 %v3633_v36, %v3455_v5 }
 0x93a   : > { %v8770_v15 = vpack.c.bf16 %v3634_v52, %v3632_v37 }
 0x93c   : > { %v3728_v34 = vsel %vm1306_vm1, %v8770_v15, 0 }
 0x959   : > { %v3341_v38 = vpop.f32.mrf.mxu1 }
 0x960   : > { %v3636_v47 = vpop.f32.mrf.mxu2 }
 0x961   : > { %v3343_v25 = vpop.f32.mrf.mxu1  ;;  %v3637_v42 = vadd.f32 %v3636_v47, %v3455_v5 }
 0x962   : > { %v3353_v59 = vpack.c.bf16 %v3343_v25, %v3341_v38  ;;  %v3598_v38 = vadd.f32 %v3597_v51, %v3454_v55 }
 0x968   : > { %v3638_v41 = vpop.f32.mrf.mxu2 }
 0x969   : > { %v3346_v14 = vpop.f32.mrf.mxu1  ;;  %v3639_v9 = vadd.f32 %v3638_v41, %v3455_v5  ;;  %v3693_v41 = vmul.f32 0.17677669, %v3600_v17 }
 0x96b   : > { %v8766_v18 = vpack.c.bf16 %v3639_v9, %v3637_v42 }
 0x96d   : > { %v3731_v26 = vsel %vm1306_vm1, %v8766_v18, 0 }
 0x970   : > { %v3641_v27 = vpop.f32.mrf.mxu2 }
 0x971   : > { %v3348_v3 = vpop.f32.mrf.mxu1  ;;  %v3642_v4 = vadd.f32 %v3641_v27, %v3455_v5  ;;  %v3692_v27 = vmul.f32 0.17677669, %v3598_v38 }
 0x972   : > { %v3354_v45 = vpack.c.bf16 %v3348_v3, %v3346_v14  ;;  %v3604_v3 = vpop.f32.mrf.mxu0 }
 0x973   : > { %v8795_v53 = vpack.c.bf16 %v3693_v41, %v3692_v27 }
 0x974   : > { %3359 = vmatpush.bf16.msrb.mxu3 %v3354_v45 }
 0x978   : > { %v3643_v23 = vpop.f32.mrf.mxu2  ;;  %3360 = vmatpush.bf16.msrb.mxu3 %v3353_v59 }
 0x979   : > { %v3644_v8 = vadd.f32 %v3643_v23, %v3455_v5  ;;  %v3655_v21 = vpop.f32.mrf.mxu1  ;;  %v3605_v5 = vadd.f32 %v3604_v3, %v3454_v55  ;;  %v3603_v23 = vadd.f32 %v3602_v32, %v3454_v55 }
 0x97a   : > { %v3656_v14 = vadd.f32 %v3655_v21, %v3456_v48  ;;  %v3607_v59 = vpop.f32.mrf.mxu0 }
 0x97b   : > { %v8760_v7 = vpack.c.bf16 %v3644_v8, %v3642_v4  ;;  %v3695_v8 = vmul.f32 0.17677669, %v3605_v5  ;;  %v3608_v9 = vadd.f32 %v3607_v59, %v3454_v55 }
 0x97c   : > { %3361 = vmatpush.bf16.msrb.mxu3 %v3352_v16  ;;  %v3694_v16 = vmul.f32 0.17677669, %v3603_v23 }
 0x97d   : > { %v3734_v61 = vsel %vm1306_vm1, %v8760_v7, 0  ;;  %v3696_v42 = vmul.f32 0.17677669, %v3608_v9 }
 0x97e   : > { %v8800_v4 = vpack.c.bf16 %v3695_v8, %v3694_v16 }
 0x980   : > { %3362 = vmatpush.bf16.msrb.mxu3 %v3351_v35 }
 0x981   : > { %v3657_v0 = vpop.f32.mrf.mxu1 }
 0x982   : > { %v3658_v47 = vadd.f32 %v3657_v0, %v3456_v48  ;;  %v3609_v21 = vpop.f32.mrf.mxu0 }
 0x983   : > { %6357 = vmatmul.msk.bf16.vlgmr.msrb.gmra.mxu3 %vm941_vm2, %v7257_v46  ;;  %v3610_v35 = vadd.f32 %v3609_v21, %v3454_v55 }
 0x984   : > { %3740 = vmatpush.bf16.xpose.msra.mxu3 %v3734_v61  ;;  %v8793_v45 = vpack.c.bf16 %v3658_v47, %v3656_v14 }
 0x985   : > { %v3697_v0 = vmul.f32 0.17677669, %v3610_v35 }
 0x987   : > { %v8804_v46 = vpack.c.bf16 %v3697_v0, %v3696_v42 }
 0x989   : > { %v3660_v13 = vpop.f32.mrf.mxu1 }
 0x98a   : > { %v3661_v36 = vadd.f32 %v3660_v13, %v3456_v48  ;;  %v3612_v61 = vpop.f32.mrf.mxu0 }
 0x98b   : > { %v3613_v13 = vadd.f32 %v3612_v61, %v3454_v55 }
 0x98c   : > { %3741 = vmatpush.bf16.xpose.msra.mxu3 %v3731_v26 }
 0x98d   : > { %v3698_v54 = vmul.f32 0.17677669, %v3613_v13 }
 0x991   : > { %v3662_v10 = vpop.f32.mrf.mxu1 }
 0x992   : > { %v3663_v57 = vadd.f32 %v3662_v10, %v3456_v48  ;;  %v3614_v52 = vpop.f32.mrf.mxu0 }
 0x993   : > { %6358 = vmatmul.msk.bf16.gmra.mxu3 %vm941_vm2, %v7258_v30  ;;  %v3615_v26 = vadd.f32 %v3614_v52, %v3454_v55 }
 0x994   : > { %3742 = vmatpush.bf16.xpose.msra.mxu3 %v3728_v34  ;;  %v8790_v25 = vpack.c.bf16 %v3663_v57, %v3661_v36 }
 0x995   : > { %v3699_v37 = vmul.f32 0.17677669, %v3615_v26 }
 0x997   : > { %v8808_v34 = vpack.c.bf16 %v3699_v37, %v3698_v54 }
 0x999   : > { %v3665_v31 = vpop.f32.mrf.mxu1 }
 0x99a   : > { %v3666_v20 = vadd.f32 %v3665_v31, %v3456_v48 }
 0x99c   : > { %3743 = vmatpush.bf16.xpose.msra.mxu3 %v3725_v24 }
 0x9a1   : > { %v3667_v43 = vpop.f32.mrf.mxu1 }
 0x9a2   : > { %v3668_v6 = vadd.f32 %v3667_v43, %v3456_v48 }
 0x9a3   : > { %6359 = vmatmul.msk.bf16.gmra.mxu3 %vm941_vm2, %v7259_v40  ;;  %v6992_v40 = vld [vmem:[%s9741_s5 + $0x1] ss:$0 sm:$0xff] }
 0x9a4   : > { %v8787_v39 = vpack.c.bf16 %v3668_v6, %v3666_v20 }
 0x9a9   : > { %v3670_v63 = vpop.f32.mrf.mxu1 }
 0x9aa   : > { %v3671_v56 = vadd.f32 %v3670_v63, %v3456_v48 }
 0x9b1   : > { %v3672_v50 = vpop.f32.mrf.mxu1 }
 0x9b2   : > { %v3673_v2 = vadd.f32 %v3672_v50, %v3456_v48 }
 0x9b3   : > { %6360 = vmatmul.msk.bf16.gmra.mxu3 %vm941_vm2, %v7260_v58 }
 0x9b4   : > { %v8784_v12 = vpack.c.bf16 %v3673_v2, %v3671_v56 }
 0x9b6   : > { %3977 = vmatpush.bf16.msrb.mxu0 %v8784_v12 }
 0x9ba   : > { %3978 = vmatpush.bf16.msrb.mxu0 %v8787_v39 }
 0x9be   : > { %3979 = vmatpush.bf16.msrb.mxu0 %v8790_v25 }
 0x9c2   : > { %3980 = vmatpush.bf16.msrb.mxu0 %v8793_v45 }
 0x9c3   : > { %6460 = vmatmul.msk.bf16.vlgmr.msra.gmra.mxu3 %vm1306_vm1, %v8795_v53 }
 0x9d3   : > { %6461 = vmatmul.msk.bf16.gmra.mxu3 %vm1306_vm1, %v8800_v4 }
 0x9e3   : > { %6462 = vmatmul.msk.bf16.gmra.mxu3 %vm1306_vm1, %v8804_v46 }
 0x9f3   : > { %6463 = vmatmul.msk.bf16.gmra.mxu3 %vm1306_vm1, %v8808_v34 }
 0xa06   : > { %v8812_v10 = vpop.f32.mrf.mxu3 }
 0xa0e   : > { %v8814_v62 = vpop.f32.mrf.mxu3 }
 0xa16   : > { %v8816_v30 = vpop.f32.mrf.mxu3 }
 0xa17   : > { %9847 = vst [vmem:[#allocation29_spill] sm:$0xff] %v8816_v30 }
 0xa1e   : > { %v8818_v24 = vpop.f32.mrf.mxu3 }
 0xa1f   : > { %9848 = vst [vmem:[#allocation37_spill] sm:$0xff] %v8818_v24 }
 0xa26   : > { %v8820_v31 = vpop.f32.mrf.mxu3 }
 0xa27   : > { %9849 = vst [vmem:[#allocation33_spill] sm:$0xff] %v8820_v31 }
 0xa2e   : > { %v8822_v43 = vpop.f32.mrf.mxu3 }
 0xa2f   : > { %9850 = vst [vmem:[#allocation30_spill] sm:$0xff] %v8822_v43 }
 0xa36   : > { %v3379_v51 = vpop.f32.mrf.mxu3 }
 0xa37   : > { %v3390_v63 = vadd.f32 %v3379_v51, %v8748_v44 }
 0xa39   : > { %v3403_v48 = vmul.f32 %v6992_v40, %v3390_v63 }
 0xa3b   : > { %v8831_v50 = vadd.f32 %v6993_v29, %v3403_v48 }
 0xa3d   : > { %9851 = vst [vmem:[#allocation34_spill] sm:$0xff] %v8831_v50 }
 0xa3e   : > { %v3381_v56 = vpop.f32.mrf.mxu3 }
 0xa3f   : > { %v3391_v2 = vadd.f32 %v3381_v56, %v8751_v1 }
 0xa41   : > { %v3404_v58 = vmul.f32 %v6992_v40, %v3391_v2 }
 0xa43   : > { %v8834_v6 = vadd.f32 %v6993_v29, %v3404_v58 }
 0xa45   : > { %9852 = vst [vmem:[#allocation38_spill] sm:$0xff] %v8834_v6 }
 0xa46   : > { %v3745_v32 = vpop.f32.mrf.mxu3 }
 0xa47   : > { %v3765_v20 = vsel %vm941_vm2, %v3745_v32, -inf }
 0xa48   : > { %3766 = vmax.xlane.f32.xlu1 %v3765_v20 }
 0xa4e   : > { %v3747_v55 = vpop.f32.mrf.mxu3 }
 0xa4f   : > { %v3768_v57 = vsel %vm941_vm2, %v3747_v55, -inf }
 0xa50   : > { %3769 = vmax.xlane.f32.xlu2 %v3768_v57 }
 0xa56   : > { %v3750_v17 = vpop.f32.mrf.mxu3 }
 0xa57   : > { %v3771_v36 = vsel %vm941_vm2, %v3750_v17, -inf }
 0xa58   : > { %3772 = vmax.xlane.f32.xlu0 %v3771_v36 }
 0xa5e   : > { %v3752_v38 = vpop.f32.mrf.mxu3 }
 0xa5f   : > { %v3774_v47 = vsel %vm941_vm2, %v3752_v38, -inf }
 0xa60   : > { %3775 = vmax.xlane.f32.xlu1 %v3774_v47 }
 0xa66   : > { %v3755_v41 = vpop.f32.mrf.mxu3 }
 0xa67   : > { %v3777_v14 = vsel %vm941_vm2, %v3755_v41, -inf }
 0xa68   : > { %3778 = vmax.xlane.f32.xlu2 %v3777_v14 }
 0xa6e   : > { %v3757_v27 = vpop.f32.mrf.mxu3 }
 0xa6f   : > { %v3780_v3 = vsel %vm941_vm2, %v3757_v27, -inf }
 0xa70   : > { %3781 = vmax.xlane.f32.xlu0 %v3780_v3 }
 0xa76   : > { %v3760_v59 = vpop.f32.mrf.mxu3 }
 0xa77   : > { %v3783_v5 = vsel %vm941_vm2, %v3760_v59, -inf }
 0xa78   : > { %3784 = vmax.xlane.f32.xlu1 %v3783_v5 }
 0xa7e   : > { %v8843_v23 = vpop.f32.mrf.mxu3 }
 0xa7f   : > { %v3786_v8 = vsel %vm941_vm2, %v8843_v23, -inf }
 0xa80   : > { %3787 = vmax.xlane.f32.xlu2 %v3786_v8 }
 0xabb   : > { %v3767_v16 = vpop.xlane.xlu1 %3766 }
 0xabc   : > { %v3789_v21 = vsub.f32 %v3745_v32, %v3767_v16 }
 0xabe   : > { %v3797_v35 = vmul.f32 1.442695, %v3789_v21 }
 0xac0   : > { %7127 = vpow2.f32 %v3797_v35 }
 0xac3   : > { %v3770_v9 = vpop.xlane.xlu2 %3769 }
 0xac4   : > { %v3790_v61 = vsub.f32 %v3747_v55, %v3770_v9 }
 0xac6   : > { %v8847_v0 = vpop.eup %7127  ;;  %v3799_v42 = vmul.f32 1.442695, %v3790_v61 }
 0xac7   : > { %v3813_v52 = vsel %vm941_vm2, %v8847_v0, 0.0 }
 0xac8   : > { %7129 = vpow2.f32 %v3799_v42  ;;  %3814 = vadd.xlane.f32.xlu0 %v3813_v52 }
 0xacb   : > { %v3773_v26 = vpop.xlane.xlu0 %3772 }
 0xacc   : > { %v3791_v13 = vsub.f32 %v3750_v17, %v3773_v26 }
 0xace   : > { %v8851_v37 = vpop.eup %7129  ;;  %v3801_v54 = vmul.f32 1.442695, %v3791_v13 }
 0xacf   : > { %v3816_v51 = vsel %vm941_vm2, %v8851_v37, 0.0 }
 0xad0   : > { %7131 = vpow2.f32 %v3801_v54  ;;  %3817 = vadd.xlane.f32.xlu1 %v3816_v51 }
 0xad3   : > { %v3776_v40 = vpop.xlane.xlu1 %3775 }
 0xad4   : > { %v3792_v63 = vsub.f32 %v3752_v38, %v3776_v40 }
 0xad6   : > { %v8855_v29 = vpop.eup %7131  ;;  %v3803_v48 = vmul.f32 1.442695, %v3792_v63 }
 0xad7   : > { %v3819_v56 = vsel %vm941_vm2, %v8855_v29, 0.0 }
 0xad8   : > { %7133 = vpow2.f32 %v3803_v48  ;;  %3820 = vadd.xlane.f32.xlu2 %v3819_v56 }
 0xadb   : > { %v3779_v2 = vpop.xlane.xlu2 %3778 }
 0xadc   : > { %v3793_v58 = vsub.f32 %v3755_v41, %v3779_v2 }
 0xade   : > { %v8859_v32 = vpop.eup %7133  ;;  %v3805_v20 = vmul.f32 1.442695, %v3793_v58 }
 0xadf   : > { %v3822_v55 = vsel %vm941_vm2, %v8859_v32, 0.0 }
 0xae0   : > { %7135 = vpow2.f32 %v3805_v20  ;;  %3823 = vadd.xlane.f32.xlu0 %v3822_v55 }
 0xae3   : > { %v3782_v57 = vpop.xlane.xlu0 %3781 }
 0xae4   : > { %v3794_v17 = vsub.f32 %v3757_v27, %v3782_v57 }
 0xae6   : > { %v8863_v36 = vpop.eup %7135  ;;  %v3807_v38 = vmul.f32 1.442695, %v3794_v17 }
 0xae7   : > { %v3825_v47 = vsel %vm941_vm2, %v8863_v36, 0.0 }
 0xae8   : > { %7137 = vpow2.f32 %v3807_v38  ;;  %3826 = vadd.xlane.f32.xlu1 %v3825_v47 }
 0xaeb   : > { %v3785_v27 = vpop.xlane.xlu1 %3784 }
 0xaec   : > { %v3795_v3 = vsub.f32 %v3760_v59, %v3785_v27 }
 0xaee   : > { %v8867_v14 = vpop.eup %7137  ;;  %v3809_v5 = vmul.f32 1.442695, %v3795_v3 }
 0xaef   : > { %v3828_v41 = vsel %vm941_vm2, %v8867_v14, 0.0 }
 0xaf0   : > { %3829 = vadd.xlane.f32.xlu2 %v3828_v41  ;;  %7139 = vpow2.f32 %v3809_v5 }
 0xaf3   : > { %v3788_v59 = vpop.xlane.xlu2 %3787 }
 0xaf4   : > { %4026 = vrot.lane.b32.xlu0 %v8766_v18, %s7535_s7  ;;  %v3796_v21 = vsub.f32 %v8843_v23, %v3788_v59 }
 0xaf6   : > { %v8887_v8 = vpop.eup %7139 }
 0xaf7   : > { %v3831_v16 = vsel %vm941_vm2, %v8887_v8, 0.0 }
 0xb01   : > { %4024 = vrot.lane.b32.xlu1 %v8770_v15, %s7535_s7 }
 0xb08   : > { %4028 = vrot.lane.b32.xlu2 %v8760_v7, %s7535_s7 }
 0xb09   : > { %4012 = vrot.lane.b32.xlu1 %v8800_v4, %s7535_s7 }
 0xb10   : > { %4010 = vrot.lane.b32.xlu2 %v8795_v53, %s7535_s7 }
 0xb11   : > { %4458 = vrot.lane.b32.xlu1 %v8766_v18, %s7537_s0 }
 0xb18   : > { %4460 = vrot.lane.b32.xlu2 %v8760_v7, %s7537_s0 }
 0xb19   : > { %4456 = vrot.lane.b32.xlu1 %v8770_v15, %s7537_s0 }
 0xb1e   : > { %3832 = vadd.xlane.f32.xlu0 %v3831_v16 }
 0xb20   : > { %4016 = vrot.lane.b32.xlu2 %v8808_v34, %s7535_s7 }
 0xb21   : > { %4839 = vrot.lane.b32.xlu1 %v8770_v15, %s7536_s24  ;;  %v3811_v15 = vmul.f32 1.442695, %v3796_v21 }
 0xb28   : > { %4454 = vrot.lane.b32.xlu2 %v8776_v22, %s7537_s0 }
 0xb30   : > { %4837 = vrot.lane.b32.xlu2 %v8776_v22, %s7536_s24 }
 0xb32   : > { %4022 = vrot.lane.b32.xlu0 %v8776_v22, %s7535_s7 }
 0xb38   : > { %4831 = vrot.lane.b32.xlu2 %v8800_v4, %s7536_s24 }
 0xb3a   : > { %4014 = vrot.lane.b32.xlu0 %v8804_v46, %s7535_s7 }
 0xb3b   : > { %v3815_v35 = vpop.xlane.xlu0 %3814 }
 0xb3c   : > { %7141 = vrcp.f32 %v3815_v35  ;;  %vm3842_vm6 = vweird.f32 %v3815_v35  ;;  %v3846_v63 = vand.u32 2147483647, %v3815_v35 }
 0xb3d   : > { %7143 = vpow2.f32 %v3811_v15 }
 0xb3e   : > { %vm3847_vm9 = vcmp.eq.f32.partialorder %v3846_v63, 8.507059e+37 }
 0xb40   : > { %4452 = vrot.lane.b32.xlu2 %v8808_v34, %s7537_s0 }
 0xb42   : > { %v7142_v9 = vpop.eup %7141  ;;  %4843 = vrot.lane.b32.xlu0 %v8760_v7, %s7536_s24  ;;  %v3848_v7 = vand.u32 2147483648, %v3815_v35 }
 0xb43   : > { %v3838_v22 = vmul.f32 %v7142_v9, %v3815_v35  ;;  %v3818_v61 = vpop.xlane.xlu1 %3817  ;;  %v8910_v52 = vpop.eup %7143  ;;  %vm3843_vm5 = vweird.f32 %v7142_v9 }
 0xb44   : > { %7145 = vrcp.f32 %v3818_v61  ;;  %v3834_v13 = vsel %vm941_vm2, %v8910_v52, 0.0  ;;  %vm3844_vm7 = vmor %vm3842_vm6, %vm3843_vm5  ;;  %v3863_v56 = vand.u32 2147483648, %v3818_v61  ;;  %v3861_v20 = vand.u32 2147483647, %v3818_v61 }
 0xb45   : > { %v3839_v42 = vsub.f32 1.0, %v3838_v22  ;;  %vm3857_vm10 = vweird.f32 %v3818_v61 }
 0xb46   : > { %v3864_v38 = vor.u32 1.1754944e-38, %v3863_v56  ;;  %vm3862_vm12 = vcmp.eq.f32.partialorder %v3861_v20, 8.507059e+37 }
 0xb47   : > { %v3840_v23 = vmul.f32 %v7142_v9, %v3839_v42 }
 0xb49   : > { %v3841_v54 = vadd.f32 %v7142_v9, %v3840_v23 }
 0xb4a   : > { %v7146_v26 = vpop.eup %7145  ;;  %4841 = vrot.lane.b32.xlu0 %v8766_v18, %s7536_s24  ;;  %v3849_v18 = vor.u32 1.1754944e-38, %v3848_v7 }
 0xb4b   : > { %v3853_v51 = vmul.f32 %v7146_v26, %v3818_v61  ;;  %3835 = vadd.xlane.f32.xlu1 %v3834_v13  ;;  %v3821_v40 = vpop.xlane.xlu2 %3820  ;;  %v3845_v2 = vsel %vm3844_vm7, %v7142_v9, %v3841_v54  ;;  %vm3858_vm8 = vweird.f32 %v7146_v26 }
 0xb4c   : > { %7147 = vrcp.f32 %v3821_v40  ;;  %v3850_v17 = vsel %vm3847_vm9, %v3849_v18, %v3845_v2  ;;  %vm3859_vm11 = vmor %vm3857_vm10, %vm3858_vm8  ;;  %v3878_v42 = vand.u32 2147483648, %v3821_v40  ;;  %vm3872_vm14 = vweird.f32 %v3821_v40 }
 0xb4d   : > { %v3854_v48 = vsub.f32 1.0, %v3853_v51  ;;  %v3851_v5 = vmul.f32 %v8847_v0, %v3850_v17  ;;  %v3876_v0 = vand.u32 2147483647, %v3821_v40 }
 0xb4e   : > { %v3879_v51 = vor.u32 1.1754944e-38, %v3878_v42 }
 0xb4f   : > { %v3855_v58 = vmul.f32 %v7146_v26, %v3854_v48  ;;  %vm3877_vm4 = vcmp.eq.f32.partialorder %v3876_v0, 8.507059e+37 }
 0xb51   : > { %v3856_v55 = vadd.f32 %v7146_v26, %v3855_v58 }
 0xb52   : > { %v7148_v57 = vpop.eup %7147  ;;  %4446 = vrot.lane.b32.xlu0 %v8795_v53, %s7537_s0 }
 0xb53   : > { %v3860_v47 = vsel %vm3859_vm11, %v7146_v26, %v3856_v55  ;;  %v3868_v41 = vmul.f32 %v7148_v57, %v3821_v40  ;;  %v3824_v27 = vpop.xlane.xlu0 %3823  ;;  %vm3873_vm13 = vweird.f32 %v7148_v57 }
 0xb54   : > { %v3865_v3 = vsel %vm3862_vm12, %v3864_v38, %v3860_v47  ;;  %7149 = vrcp.f32 %v3824_v27  ;;  %vm8923_vm15 = vmor %vm3872_vm14, %vm3873_vm13  ;;  %v3893_v13 = vand.u32 2147483648, %v3824_v27  ;;  %vm3887_vm3 = vweird.f32 %v3824_v27 }
 0xb55   : > { %v3866_v16 = vmul.f32 %v8851_v37, %v3865_v3  ;;  %v3869_v59 = vsub.f32 1.0, %v3868_v41 }
 0xb56   : > { %v3894_v48 = vor.u32 1.1754944e-38, %v3893_v13 }
 0xb57   : > { %v3957_v21 = vpack.c.bf16 %v3866_v16, %v3851_v5  ;;  %v3870_v35 = vmul.f32 %v7148_v57, %v3869_v59 }
 0xb59   : > { %6464 = vmatmul.msk.bf16.vlgmr.msrb.gmra.mxu0 %vm941_vm2, %v3957_v21  ;;  %v3871_v61 = vadd.f32 %v7148_v57, %v3870_v35 }
 0xb5a   : > { %v7150_v15 = vpop.eup %7149  ;;  %4448 = vrot.lane.b32.xlu0 %v8800_v4, %s7537_s0  ;;  %v3891_v4 = vand.u32 2147483647, %v3824_v27 }
 0xb5b   : > { %v3883_v9 = vmul.f32 %v7150_v15, %v3824_v27  ;;  %v3827_v22 = vpop.xlane.xlu1 %3826  ;;  %vm3888_vm0 = vweird.f32 %v7150_v15  ;;  %v3875_v54 = vsel %vm8923_vm15, %v7148_v57, %v3871_v61 }
 0xb5c   : > { %7151 = vrcp.f32 %v3827_v22  ;;  %vm3889_vm5 = vmor %vm3887_vm3, %vm3888_vm0  ;;  %v3880_v58 = vsel %vm3877_vm4, %v3879_v51, %v3875_v54  ;;  %vm3892_vm6 = vcmp.eq.f32.partialorder %v3891_v4, 8.507059e+37  ;;  %v3908_v5 = vand.u32 2147483648, %v3827_v22  ;;  %v6826_v51 = vld [vmem:[#allocation7 + $0x48] sm:$0xff] }
 0xb5d   : > { %v3884_v23 = vsub.f32 1.0, %v3883_v9  ;;  %v3881_v55 = vmul.f32 %v8855_v29, %v3880_v58  ;;  %vm3902_vm8 = vweird.f32 %v3827_v22  ;;  %4423 = vmatpush.bf16.msra.mxu0 %v6826_v51 }
 0xb5f   : > { %v3885_v26 = vmul.f32 %v7150_v15, %v3884_v23 }
 0xb61   : > { %v3886_v7 = vadd.f32 %v7150_v15, %v3885_v26 }
 0xb62   : > { %v7152_v63 = vpop.eup %7151  ;;  %4833 = vrot.lane.b32.xlu0 %v8804_v46, %s7536_s24 }
 0xb63   : > { %v3890_v40 = vsel %vm3889_vm5, %v7150_v15, %v3886_v7  ;;  %v3898_v56 = vmul.f32 %v7152_v63, %v3827_v22  ;;  %v3830_v2 = vpop.xlane.xlu2 %3829  ;;  %vm3903_vm7 = vweird.f32 %v7152_v63  ;;  %v3909_v15 = vor.u32 1.1754944e-38, %v3908_v5  ;;  %v6825_v7 = vld [vmem:[#allocation7 + $0x40] sm:$0xff] }
 0xb64   : > { %7153 = vrcp.f32 %v3830_v2  ;;  %4829 = vrot.lane.b32.xlu1 %v8795_v53, %s7536_s24  ;;  %v3895_v18 = vsel %vm3892_vm6, %v3894_v48, %v3890_v40  ;;  %v3906_v53 = vand.u32 2147483647, %v3827_v22  ;;  %vm3904_vm9 = vmor %vm3902_vm8, %vm3903_vm7  ;;  %v3921_v35 = vand.u32 2147483647, %v3830_v2  ;;  %4424 = vmatpush.bf16.msra.mxu0 %v6825_v7 }
 0xb65   : > { %v3899_v20 = vsub.f32 1.0, %v3898_v56  ;;  %v3896_v57 = vmul.f32 %v8859_v32, %v3895_v18  ;;  %v3923_v32 = vand.u32 2147483648, %v3830_v2  ;;  %vm3917_vm12 = vweird.f32 %v3830_v2 }
 0xb66   : > { %vm3907_vm11 = vcmp.eq.f32.partialorder %v3906_v53, 8.507059e+37  ;;  %v4027_v61 = vpop.permute.xlu0 %4026  ;;  %vm3922_vm14 = vcmp.eq.f32.partialorder %v3921_v35, 8.507059e+37 }
 0xb67   : > { %v3900_v17 = vmul.f32 %v7152_v63, %v3899_v20  ;;  %v3958_v38 = vpack.c.bf16 %v3896_v57, %v3881_v55  ;;  %v3924_v42 = vor.u32 1.1754944e-38, %v3923_v32 }
 0xb69   : > { %6465 = vmatmul.msk.bf16.gmra.mxu0 %vm941_vm2, %v3958_v38  ;;  %v3901_v41 = vadd.f32 %v7152_v63, %v3900_v17 }
 0xb6a   : > { %v7154_v47 = vpop.eup %7153 }
 0xb6b   : > { %v3913_v27 = vmul.f32 %v7154_v47, %v3830_v2  ;;  %v4029_v3 = vpop.permute.xlu2 %4028  ;;  %v3905_v59 = vsel %vm3904_vm9, %v7152_v63, %v3901_v41  ;;  %vm3918_vm10 = vweird.f32 %v7154_v47 }
 0xb6c   : > { %v4052_v16 = vsel %vm1306_vm1, %v4029_v3, 0  ;;  %4450 = vrot.lane.b32.xlu1 %v8804_v46, %s7537_s0  ;;  %vm3919_vm13 = vmor %vm3917_vm12, %vm3918_vm10  ;;  %v3910_v23 = vsel %vm3907_vm11, %v3909_v15, %v3905_v59  ;;  %v4049_v46 = vsel %vm1306_vm1, %v4027_v61, 0 }
 0xb6d   : > { %v3914_v29 = vsub.f32 1.0, %v3913_v27  ;;  %4058 = vmatpush.bf16.xpose.msrb.mxu2 %v4052_v16  ;;  %v3911_v37 = vmul.f32 %v8863_v36, %v3910_v23 }
 0xb6f   : > { %v3915_v21 = vmul.f32 %v7154_v47, %v3914_v29 }
 0xb71   : > { %v3916_v9 = vadd.f32 %v7154_v47, %v3915_v21 }
 0xb73   : > { %v3920_v0 = vsel %vm3919_vm13, %v7154_v47, %v3916_v9  ;;  %v4025_v54 = vpop.permute.xlu1 %4024  ;;  %v4011_v40 = vpop.permute.xlu2 %4010 }
 0xb74   : > { %4835 = vrot.lane.b32.xlu1 %v8808_v34, %s7536_s24  ;;  %v3925_v22 = vsel %vm3922_vm14, %v3924_v42, %v3920_v0  ;;  %v4046_v4 = vsel %vm1306_vm1, %v4025_v54, 0 }
 0xb75   : > { %4059 = vmatpush.bf16.xpose.msrb.mxu2 %v4049_v46  ;;  %v3926_v26 = vmul.f32 %v8867_v14, %v3925_v22 }
 0xb77   : > { %v3959_v13 = vpack.c.bf16 %v3926_v26, %v3911_v37 }
 0xb79   : > { %6466 = vmatmul.msk.bf16.gmra.mxu0 %vm941_vm2, %v3959_v13 }
 0xb7b   : > { %v4013_v63 = vpop.permute.xlu1 %4012  ;;  %v4461_v56 = vpop.permute.xlu2 %4460 }
 0xb7c   : > { %v4484_v14 = vsel %vm1306_vm1, %v4461_v56, 0 }
 0xb7d   : > { %4060 = vmatpush.bf16.xpose.msrb.mxu2 %v4046_v4 }
 0xb83   : > { %v4459_v48 = vpop.permute.xlu1 %4458  ;;  %v4017_v55 = vpop.permute.xlu2 %4016 }
 0xb84   : > { %v4481_v18 = vsel %vm1306_vm1, %v4459_v48, 0 }
 0xb8b   : > { %v4457_v58 = vpop.permute.xlu1 %4456  ;;  %v4455_v3 = vpop.permute.xlu2 %4454 }
 0xb8c   : > { %v4478_v38 = vsel %vm1306_vm1, %v4457_v58, 0  ;;  %v4475_v53 = vsel %vm1306_vm1, %v4455_v3, 0 }
 0xb91   : > { %v3833_v34 = vpop.xlane.xlu0 %3832 }
 0xb92   : > { %7155 = vrcp.f32 %v3833_v34  ;;  %v3938_v61 = vand.u32 2147483648, %v3833_v34  ;;  %vm3932_vm0 = vweird.f32 %v3833_v34  ;;  %v3936_v42 = vand.u32 2147483647, %v3833_v34 }
 0xb93   : > { %v4840_v47 = vpop.permute.xlu1 %4839  ;;  %v4838_v37 = vpop.permute.xlu2 %4837 }
 0xb94   : > { %v4861_v35 = vsel %vm1306_vm1, %v4840_v47, 0  ;;  %v3939_v54 = vor.u32 1.1754944e-38, %v3938_v61  ;;  %vm3937_vm5 = vcmp.eq.f32.partialorder %v3936_v42, 8.507059e+37  ;;  %v4858_v51 = vsel %vm1306_vm1, %v4838_v37, 0 }
 0xb98   : > { %v7156_v41 = vpop.eup %7155 }
 0xb99   : > { %v3928_v27 = vmul.f32 %v7156_v41, %v3833_v34  ;;  %vm3933_vm15 = vweird.f32 %v7156_v41 }
 0xb9a   : > { %vm8956_vm3 = vmor %vm3932_vm0, %vm3933_vm15 }
 0xb9b   : > { %v3929_v29 = vsub.f32 1.0, %v3928_v27  ;;  %v4832_v27 = vpop.permute.xlu2 %4831 }
 0xb9d   : > { %v3930_v59 = vmul.f32 %v7156_v41, %v3929_v29 }
 0xb9f   : > { %v3931_v15 = vadd.f32 %v7156_v41, %v3930_v59 }
 0xba1   : > { %v3935_v22 = vsel %vm8956_vm3, %v7156_v41, %v3931_v15 }
 0xba3   : > { %v4453_v3 = vpop.permute.xlu2 %4452 }
 0xba4   : > { %v4023_v2 = vpop.permute.xlu0 %4022 }
 0xba5   : > { %v4043_v36 = vsel %vm1306_vm1, %v4023_v2, 0 }
 0xba6   : > { %4061 = vmatpush.bf16.xpose.msrb.mxu2 %v4043_v36 }
 0xbac   : > { %v4015_v20 = vpop.permute.xlu0 %4014 }
 0xbad   : > { %6468 = vmatmul.msk.bf16.vlgmr.msrb.gmra.mxu2 %vm1306_vm1, %v4011_v40 }
 0xbae   : > { %4490 = vmatpush.bf16.xpose.msra.mxu2 %v4484_v14 }
 0xbb4   : > { %v4844_v57 = vpop.permute.xlu0 %4843 }
 0xbb5   : > { %v4867_v17 = vsel %vm1306_vm1, %v4844_v57, 0 }
 0xbb6   : > { %4491 = vmatpush.bf16.xpose.msra.mxu2 %v4481_v18  ;;  %4873 = vmatpush.bf16.xpose.msrb.mxu0 %v4867_v17 }
 0xbbc   : > { %v4842_v5 = vpop.permute.xlu0 %4841 }
 0xbbd   : > { %v4864_v16 = vsel %vm1306_vm1, %v4842_v5, 0  ;;  %6469 = vmatmul.msk.bf16.gmra.mxu2 %vm1306_vm1, %v4013_v63  ;;  %v3940_v63 = vsel %vm3937_vm5, %v3939_v54, %v3935_v22 }
 0xbbe   : > { %4492 = vmatpush.bf16.xpose.msra.mxu2 %v4478_v38  ;;  %4874 = vmatpush.bf16.xpose.msrb.mxu0 %v4864_v16  ;;  %v3836_v32 = vpop.xlane.xlu1 %3835  ;;  %v3941_v48 = vmul.f32 %v8887_v8, %v3940_v63 }
 0xbbf   : > { %7157 = vrcp.f32 %v3836_v32  ;;  %v3953_v46 = vand.u32 2147483648, %v3836_v32  ;;  %v3951_v13 = vand.u32 2147483647, %v3836_v32  ;;  %vm3947_vm6 = vweird.f32 %v3836_v32 }
 0xbc1   : > { %v3954_v7 = vor.u32 1.1754944e-38, %v3953_v46  ;;  %vm3952_vm8 = vcmp.eq.f32.partialorder %v3951_v13, 8.507059e+37 }
 0xbc4   : > { %v4447_v18 = vpop.permute.xlu0 %4446 }
 0xbc5   : > { %v7158_v21 = vpop.eup %7157 }
 0xbc6   : > { %4493 = vmatpush.bf16.xpose.msra.mxu2 %v4475_v53  ;;  %v3943_v9 = vmul.f32 %v7158_v21, %v3836_v32  ;;  %4875 = vmatpush.bf16.xpose.msrb.mxu0 %v4861_v35  ;;  %vm3948_vm4 = vweird.f32 %v7158_v21 }
 0xbc7   : > { %vm3949_vm7 = vmor %vm3947_vm6, %vm3948_vm4 }
 0xbc8   : > { %v3944_v23 = vsub.f32 1.0, %v3943_v9 }
 0xbca   : > { %v3945_v26 = vmul.f32 %v7158_v21, %v3944_v23 }
 0xbcc   : > { %v3946_v4 = vadd.f32 %v7158_v21, %v3945_v26 }
 0xbcd   : > { %6470 = vmatmul.msk.bf16.gmra.mxu2 %vm1306_vm1, %v4015_v20 }
 0xbce   : > { %v3950_v40 = vsel %vm3949_vm7, %v7158_v21, %v3946_v4  ;;  %4876 = vmatpush.bf16.xpose.msrb.mxu0 %v4858_v51 }
 0xbcf   : > { %v3955_v34 = vsel %vm3952_vm8, %v3954_v7, %v3950_v40 }
 0xbd0   : > { %v3956_v56 = vmul.f32 %v8910_v52, %v3955_v34  ;;  %v4449_v52 = vpop.permute.xlu0 %4448 }
 0xbd2   : > { %v3960_v2 = vpack.c.bf16 %v3956_v56, %v3941_v48 }
 0xbd4   : > { %6467 = vmatmul.msk.bf16.gmra.mxu0 %vm941_vm2, %v3960_v2 }
 0xbd6   : > { %v3982_v36 = vpop.f32.mrf.mxu0  ;;  %v4830_v47 = vpop.permute.xlu1 %4829 }
 0xbd8   : > { %v4834_v63 = vpop.permute.xlu0 %4833 }
 0xbdd   : > { %6471 = vmatmul.msk.bf16.gmra.mxu2 %vm1306_vm1, %v4017_v55 }
 0xbde   : > { %v3984_v14 = vpop.f32.mrf.mxu0  ;;  %v4451_v55 = vpop.permute.xlu1 %4450 }
 0xbdf   : > { %v4002_v58 = vpack.c.bf16 %v3984_v14, %v3982_v36 }
 0xbe4   : > { %6496 = vmatmul.msk.bf16.vlgmr.msra.gmra.mxu0 %vm1306_vm1, %v4002_v58 }
 0xbe6   : > { %v3987_v20 = vpop.f32.mrf.mxu0  ;;  %v4836_v48 = vpop.permute.xlu1 %4835 }
 0xbed   : > { %6500 = vmatmul.msk.bf16.vlgmr.msra.gmra.mxu2 %vm1306_vm1, %v4447_v18 }
 0xbee   : > { %v3989_v57 = vpop.f32.mrf.mxu0 }
 0xbef   : > { %v4003_v17 = vpack.c.bf16 %v3989_v57, %v3987_v20 }
 0xbf4   : > { %6497 = vmatmul.msk.bf16.gmra.mxu0 %vm1306_vm1, %v4003_v17 }
 0xbf6   : > { %v3992_v8 = vpop.f32.mrf.mxu0 }
 0xbfd   : > { %6501 = vmatmul.msk.bf16.gmra.mxu2 %vm1306_vm1, %v4449_v52 }
 0xbfe   : > { %v3994_v38 = vpop.f32.mrf.mxu0 }
 0xbff   : > { %v4004_v41 = vpack.c.bf16 %v3994_v38, %v3992_v8 }
 0xc04   : > { %6498 = vmatmul.msk.bf16.gmra.mxu0 %vm1306_vm1, %v4004_v41 }
 0xc0d   : > { %6502 = vmatmul.msk.bf16.gmra.mxu2 %vm1306_vm1, %v4451_v55 }
 0xc1d   : > { %6503 = vmatmul.msk.bf16.gmra.mxu2 %vm1306_vm1, %v4453_v3 }
 0xc30   : > { %v8975_v5 = vpop.f32.mrf.mxu2 }
 0xc31   : > { %v4083_v16 = vsel %vm941_vm2, %v8975_v5, -inf }
 0xc32   : > { %4084 = vmax.xlane.f32.xlu0 %v4083_v16 }
 0xc38   : > { %v4065_v53 = vpop.f32.mrf.mxu2 }
 0xc39   : > { %v4086_v29 = vsel %vm941_vm2, %v4065_v53, -inf }
 0xc3a   : > { %4087 = vmax.xlane.f32.xlu2 %v4086_v29 }
 0xc40   : > { %v8980_v32 = vpop.f32.mrf.mxu2 }
 0xc41   : > { %v4089_v59 = vsel %vm941_vm2, %v8980_v32, -inf }
 0xc42   : > { %4090 = vmax.xlane.f32.xlu1 %v4089_v59 }
 0xc48   : > { %v8984_v21 = vpop.f32.mrf.mxu2 }
 0xc49   : > { %v4092_v35 = vsel %vm941_vm2, %v8984_v21, -inf }
 0xc4a   : > { %4093 = vmax.xlane.f32.xlu2 %v4092_v35 }
 0xc50   : > { %v8988_v15 = vpop.f32.mrf.mxu2 }
 0xc51   : > { %v3997_v9 = vpop.f32.mrf.mxu0  ;;  %v4095_v61 = vsel %vm941_vm2, %v8988_v15, -inf }
 0xc52   : > { %4096 = vmax.xlane.f32.xlu0 %v4095_v61 }
 0xc58   : > { %v8992_v42 = vpop.f32.mrf.mxu2 }
 0xc59   : > { %v3999_v23 = vpop.f32.mrf.mxu0  ;;  %v4098_v0 = vsel %vm941_vm2, %v8992_v42, -inf }
 0xc5a   : > { %v4005_v46 = vpack.c.bf16 %v3999_v23, %v3997_v9  ;;  %4099 = vmax.xlane.f32.xlu1 %v4098_v0 }
 0xc5c   : > { %6499 = vmatmul.msk.bf16.gmra.mxu0 %vm1306_vm1, %v4005_v46 }
 0xc60   : > { %v8997_v22 = vpop.f32.mrf.mxu2 }
 0xc61   : > { %v4101_v37 = vsel %vm941_vm2, %v8997_v22, -inf  ;;  %v9029_v56 = vpop.f32.mrf.mxu0 }
 0xc62   : > { %4102 = vmax.xlane.f32.xlu2 %v4101_v37 }
 0xc68   : > { %v9001_v26 = vpop.f32.mrf.mxu2 }
 0xc69   : > { %v4104_v13 = vsel %vm941_vm2, %v9001_v26, -inf  ;;  %v9037_v58 = vpop.f32.mrf.mxu0 }
 0xc6a   : > { %4105 = vmax.xlane.f32.xlu0 %v4104_v13 }
 0xc6c   : > { %6520 = vmatmul.msk.bf16.vlgmr.msrb.gmra.mxu0 %vm1306_vm1, %v4830_v47 }
 0xc70   : > { %v9006_v54 = vpop.f32.mrf.mxu2 }
 0xc71   : > { %v4515_v4 = vsel %vm941_vm2, %v9006_v54, -inf  ;;  %v9043_v57 = vpop.f32.mrf.mxu0 }
 0xc72   : > { %4516 = vmax.xlane.f32.xlu2 %v4515_v4 }
 0xc73   : > { %4287 = vrot.lane.b32.xlu1 %v8787_v39, %s7535_s7 }
 0xc78   : > { %v9012_v51 = vpop.f32.mrf.mxu2 }
 0xc79   : > { %v4518_v7 = vsel %vm941_vm2, %v9012_v51, -inf  ;;  %v9049_v47 = vpop.f32.mrf.mxu0 }
 0xc7a   : > { %4519 = vmax.xlane.f32.xlu2 %v4518_v7  ;;  %9857 = vst [vmem:[#allocation39_spill] sm:$0xff] %v9049_v47 }
 0xc7b   : > { %4285 = vrot.lane.b32.xlu1 %v8790_v25, %s7535_s7 }
 0xc7c   : > { %6521 = vmatmul.msk.bf16.gmra.mxu0 %vm1306_vm1, %v4832_v27 }
 0xc7e   : > { %4289 = vrot.lane.b32.xlu0 %v8784_v12, %s7535_s7 }
 0xc80   : > { %v9022_v40 = vpop.f32.mrf.mxu2 }
 0xc81   : > { %v4521_v14 = vsel %vm941_vm2, %v9022_v40, -inf  ;;  %v9062_v59 = vpop.f32.mrf.mxu0 }
 0xc82   : > { %9858 = vst [vmem:[#allocation40_spill] sm:$0xff] %v9062_v59 }
 0xc88   : > { %v9026_v34 = vpop.f32.mrf.mxu2 }
 0xc89   : > { %v4524_v38 = vsel %vm941_vm2, %v9026_v34, -inf }
 0xc8c   : > { %6522 = vmatmul.msk.bf16.gmra.mxu0 %vm1306_vm1, %v4834_v63 }
 0xc90   : > { %v9031_v2 = vpop.f32.mrf.mxu2 }
 0xc91   : > { %v4527_v36 = vsel %vm941_vm2, %v9031_v2, -inf }
 0xc92   : > { %4283 = vrot.lane.b32.xlu2 %v8793_v45, %s7535_s7 }
 0xc98   : > { %v9039_v20 = vpop.f32.mrf.mxu2 }
 0xc99   : > { %v4530_v18 = vsel %vm941_vm2, %v9039_v20, -inf }
 0xc9c   : > { %6523 = vmatmul.msk.bf16.gmra.mxu0 %vm1306_vm1, %v4836_v48 }
 0xca0   : > { %v9045_v17 = vpop.f32.mrf.mxu2 }
 0xca5   : > { %4528 = vmax.xlane.f32.xlu1 %v4527_v36  ;;  %v4085_v0 = vpop.xlane.xlu0 %4084 }
 0xca6   : > { %v4107_v46 = vsub.f32 %v8975_v5, %v4085_v0 }
 0xca8   : > { %4522 = vmax.xlane.f32.xlu0 %v4521_v14  ;;  %v9053_v27 = vpop.f32.mrf.mxu2  ;;  %v4115_v7 = vmul.f32 1.442695, %v4107_v46 }
 0xca9   : > { %v4536_v16 = vsel %vm941_vm2, %v9053_v27, -inf }
 0xcad   : > { %v4088_v8 = vpop.xlane.xlu2 %4087 }
 0xcae   : > { %v4108_v52 = vsub.f32 %v4065_v53, %v4088_v8 }
 0xcb0   : > { %4531 = vmax.xlane.f32.xlu0 %v4530_v18  ;;  %v4117_v41 = vmul.f32 1.442695, %v4108_v52 }
 0xcb2   : > { %7159 = vpow2.f32 %v4117_v41 }
 0xcb5   : > { %v4091_v55 = vpop.xlane.xlu1 %4090 }
 0xcb6   : > { %v4109_v3 = vsub.f32 %v8980_v32, %v4091_v55  ;;  %v9068_v32 = vpop.f32.mrf.mxu0 }
 0xcb7   : > { %9859 = vst [vmem:[#allocation41_spill] sm:$0xff] %v9068_v32 }
 0xcb8   : > { %v4119_v53 = vmul.f32 1.442695, %v4109_v3  ;;  %v9060_v29 = vpop.eup %7159 }
 0xcb9   : > { %v4134_v35 = vsel %vm941_vm2, %v9060_v29, 0.0 }
 0xcba   : > { %7161 = vpow2.f32 %v4119_v53 }
 0xcbb   : > { %4525 = vmax.xlane.f32.xlu2 %v4524_v38 }
 0xcbd   : > { %v4094_v9 = vpop.xlane.xlu2 %4093 }
 0xcbe   : > { %4717 = vrot.lane.b32.xlu1 %v8784_v12, %s7537_s0  ;;  %v4110_v63 = vsub.f32 %v8984_v21, %v4094_v9 }
 0xcc0   : > { %v9066_v61 = vpop.eup %7161  ;;  %v4121_v8 = vmul.f32 1.442695, %v4110_v63 }
 0xcc1   : > { %v4137_v23 = vsel %vm941_vm2, %v9066_v61, 0.0 }
 0xcc3   : > { %4537 = vmax.xlane.f32.xlu2 %v4536_v16 }
 0xcc4   : > { %5100 = vrot.lane.b32.xlu0 %v8784_v12, %s7536_s24 }
 0xcc5   : > { %v4097_v36 = vpop.xlane.xlu0 %4096 }
 0xcc6   : > { %v4111_v41 = vsub.f32 %v8988_v15, %v4097_v36 }
 0xccb   : > { %4135 = vadd.xlane.f32.xlu2 %v4134_v35  ;;  %v4123_v35 = vmul.f32 1.442695, %v4111_v41 }
 0xccd   : > { %v4100_v14 = vpop.xlane.xlu1 %4099 }
 0xcd3   : > { %4138 = vadd.xlane.f32.xlu2 %v4137_v23 }
 0xcd5   : > { %v4103_v12 = vpop.xlane.xlu2 %4102 }
 0xcd6   : > { %v4113_v37 = vsub.f32 %v8997_v22, %v4103_v12  ;;  %v4112_v22 = vsub.f32 %v8992_v42, %v4100_v14  ;;  %v4533_v42 = vsel %vm941_vm2, %v9045_v17, -inf }
 0xcd8   : > { %v4127_v13 = vmul.f32 1.442695, %v4113_v37  ;;  %v4125_v3 = vmul.f32 1.442695, %v4112_v22 }
 0xcd9   : > { %v9074_v4 = vpop.f32.mrf.mxu0 }
 0xcda   : > { %9860 = vst [vmem:[#allocation42_spill] sm:$0xff] %v9074_v4  ;;  %7163 = vpow2.f32 %v4127_v13 }
 0xcdb   : > { %7165 = vpow2.f32 %v4115_v7 }
 0xcdc   : > { %7167 = vpow2.f32 %v4121_v8 }
 0xcdd   : > { %v4106_v16 = vpop.xlane.xlu0 %4105 }
 0xcde   : > { %v4114_v15 = vsub.f32 %v9001_v26, %v4106_v16 }
 0xce0   : > { %v9077_v48 = vpop.eup %7163  ;;  %v4129_v7 = vmul.f32 1.442695, %v4114_v15 }
 0xce1   : > { %v4149_v18 = vsel %vm941_vm2, %v9077_v48, 0.0  ;;  %v9081_v52 = vpop.f32.mrf.mxu0  ;;  %v9083_v5 = vpop.eup %7165 }
 0xce2   : > { %9861 = vst [vmem:[#allocation43_spill] sm:$0xff] %v9081_v52  ;;  %4150 = vadd.xlane.f32.xlu2 %v4149_v18  ;;  %v4131_v55 = vsel %vm941_vm2, %v9083_v5, 0.0  ;;  %v9090_v9 = vpop.eup %7167 }
 0xce3   : > { %v4140_v0 = vsel %vm941_vm2, %v9090_v9, 0.0 }
 0xce5   : > { %v4517_v38 = vpop.xlane.xlu2 %4516 }
 0xce6   : > { %v4539_v21 = vsub.f32 %v9006_v54, %v4517_v38  ;;  %v4288_v54 = vpop.permute.xlu1 %4287 }
 0xce8   : > { %v4547_v53 = vmul.f32 1.442695, %v4539_v21  ;;  %4132 = vadd.xlane.f32.xlu1 %v4131_v55 }
 0xce9   : > { %v9092_v23 = vpop.f32.mrf.mxu0 }
 0xcea   : > { %7169 = vpow2.f32 %v4547_v53 }
 0xceb   : > { %7171 = vpow2.f32 %v4125_v3 }
 0xcec   : > { %7173 = vpow2.f32 %v4123_v35 }
 0xced   : > { %v4520_v63 = vpop.xlane.xlu2 %4519  ;;  %7175 = vpow2.f32 %v4129_v7 }
 0xcee   : > { %4534 = vmax.xlane.f32.xlu0 %v4533_v42  ;;  %v4540_v14 = vsub.f32 %v9012_v51, %v4520_v63  ;;  %v4286_v22 = vpop.permute.xlu1 %4285  ;;  %v4898_v51 = vsel %vm941_vm2, %v9092_v23, -inf }
 0xcf0   : > { %v9099_v12 = vpop.eup %7169  ;;  %v4290_v46 = vpop.permute.xlu0 %4289  ;;  %4141 = vadd.xlane.f32.xlu1 %v4140_v0  ;;  %v4549_v41 = vmul.f32 1.442695, %v4540_v14 }
 0xcf1   : > { %4311 = vmatpush.bf16.msrb.mxu1 %v4290_v46  ;;  %v4563_v37 = vsel %vm941_vm2, %v9099_v12, 0.0  ;;  %v9103_v13 = vpop.eup %7171  ;;  %v9110_v18 = vpop.f32.mrf.mxu0 }
 0xcf2   : > { %4564 = vadd.xlane.f32.xlu2 %v4563_v37  ;;  %v9105_v36 = vpop.eup %7173  ;;  %v4146_v26 = vsel %vm941_vm2, %v9103_v13, 0.0  ;;  %v4901_v38 = vsel %vm941_vm2, %v9110_v18, -inf  ;;  %7177 = vpow2.f32 %v4549_v41 }
 0xcf3   : > { %v4143_v8 = vsel %vm941_vm2, %v9105_v36, 0.0  ;;  %v9116_v21 = vpop.eup %7175 }
 0xcf4   : > { %v4152_v3 = vsel %vm941_vm2, %v9116_v21, 0.0 }
 0xcf5   : > { %4312 = vmatpush.bf16.msrb.mxu1 %v4288_v54  ;;  %v4284_v55 = vpop.permute.xlu2 %4283 }
 0xcf6   : > { %4147 = vadd.xlane.f32.xlu0 %v4146_v26 }
 0xcf8   : > { %4144 = vadd.xlane.f32.xlu1 %v4143_v8  ;;  %v9122_v16 = vpop.eup %7177 }
 0xcf9   : > { %4313 = vmatpush.bf16.msrb.mxu1 %v4286_v22  ;;  %v4566_v53 = vsel %vm941_vm2, %v9122_v16, 0.0  ;;  %v9132_v42 = vpop.f32.mrf.mxu0 }
 0xcfa   : > { %4902 = vmax.xlane.f32.xlu2 %v4901_v38 }
 0xcfd   : > { %4314 = vmatpush.bf16.msrb.mxu1 %v4284_v55  ;;  %v4904_v55 = vsel %vm941_vm2, %v9132_v42, -inf }
 0xcfe   : > { %4899 = vmax.xlane.f32.xlu0 %v4898_v51 }
 0xd00   : > { %4153 = vadd.xlane.f32.xlu1 %v4152_v3 }
 0xd01   : > { %v9140_v63 = vpop.f32.mrf.mxu0 }
 0xd08   : > { %4567 = vadd.xlane.f32.xlu1 %v4566_v53 }
 0xd12   : > { %5098 = vrot.lane.b32.xlu0 %v8787_v39, %s7536_s24  ;;  %4715 = vrot.lane.b32.xlu2 %v8787_v39, %s7537_s0 }
 0xd18   : > { %v9134_v15 = vpop.xlane.xlu1 %4528 }
 0xd1b   : > { %v4523_v35 = vpop.xlane.xlu0 %4522 }
 0xd1c   : > { %v4541_v54 = vsub.f32 %v9022_v40, %v4523_v35  ;;  %v9146_v40 = vpop.f32.mrf.mxu0  ;;  %v4907_v35 = vsel %vm941_vm2, %v9140_v63, -inf }
 0xd1d   : > { %v4910_v53 = vsel %vm941_vm2, %v9146_v40, -inf }
 0xd1e   : > { %v4551_v0 = vmul.f32 1.442695, %v4541_v54 }
 0xd20   : > { %7179 = vpow2.f32 %v4551_v0 }
 0xd21   : > { %4713 = vrot.lane.b32.xlu1 %v8790_v25, %s7537_s0 }
 0xd23   : > { %v9137_v46 = vpop.xlane.xlu0 %4531 }
 0xd24   : > { %v9156_v51 = vpop.f32.mrf.mxu0 }
 0xd26   : > { %v9142_v8 = vpop.eup %7179 }
 0xd27   : > { %v4569_v38 = vsel %vm941_vm2, %v9142_v8, 0.0 }
 0xd2c   : > { %v9162_v54 = vpop.f32.mrf.mxu0 }
 0xd2e   : > { %v4526_v37 = vpop.xlane.xlu2 %4525 }
 0xd2f   : > { %v4542_v7 = vsub.f32 %v9026_v34, %v4526_v37  ;;  %v4913_v37 = vsel %vm941_vm2, %v9156_v51, -inf }
 0xd30   : > { %v4718_v26 = vpop.permute.xlu1 %4717 }
 0xd31   : > { %v4553_v39 = vmul.f32 1.442695, %v4542_v7  ;;  %4739 = vmatpush.bf16.msra.mxu1 %v4718_v26 }
 0xd33   : > { %7181 = vpow2.f32 %v4553_v39 }
 0xd34   : > { %v9168_v39 = vpop.f32.mrf.mxu0 }
 0xd36   : > { %v5101_v14 = vpop.permute.xlu0 %5100  ;;  %v9152_v41 = vpop.xlane.xlu2 %4537 }
 0xd37   : > { %5122 = vmatpush.bf16.msrb.mxu2 %v5101_v14 }
 0xd39   : > { %v9144_v22 = vpop.eup %7181 }
 0xd3a   : > { %v4572_v34 = vsel %vm941_vm2, %v9144_v22, 0.0 }
 0xd3b   : > { %4570 = vadd.xlane.f32.xlu2 %v4569_v38 }
 0xd3c   : > { %4573 = vadd.xlane.f32.xlu0 %v4572_v34  ;;  %v4919_v34 = vsel %vm941_vm2, %v9168_v39, -inf }
 0xd3e   : > { %v4136_v3 = vpop.xlane.xlu2 %4135 }
 0xd3f   : > { %7183 = vrcp.f32 %v4136_v3  ;;  %vm4175_vm10 = vweird.f32 %v4136_v3  ;;  %v4181_v52 = vand.u32 2147483648, %v4136_v3 }
 0xd41   : > { %v4182_v49 = vor.u32 1.1754944e-38, %v4181_v52 }
 0xd44   : > { %4905 = vmax.xlane.f32.xlu0 %v4904_v55 }
 0xd45   : > { %v7184_v0 = vpop.eup %7183 }
 0xd46   : > { %v9166_v7 = vpop.xlane.xlu2 %4138  ;;  %v4171_v26 = vmul.f32 %v7184_v0, %v4136_v3  ;;  %vm4176_vm9 = vweird.f32 %v7184_v0 }
 0xd47   : > { %vm9184_vm11 = vmor %vm4175_vm10, %vm4176_vm9  ;;  %vm4190_vm7 = vweird.f32 %v9166_v7 }
 0xd48   : > { %v4172_v14 = vsub.f32 1.0, %v4171_v26 }
 0xd4b   : > { %4911 = vmax.xlane.f32.xlu1 %v4910_v53  ;;  %v4173_v53 = vmul.f32 %v7184_v0, %v4172_v14 }
 0xd4c   : > { %4908 = vmax.xlane.f32.xlu0 %v4907_v35 }
 0xd4d   : > { %v4174_v6 = vadd.f32 %v7184_v0, %v4173_v53 }
 0xd4f   : > { %v4178_v4 = vsel %vm9184_vm11, %v7184_v0, %v4174_v6 }
 0xd54   : > { %4914 = vmax.xlane.f32.xlu0 %v4913_v37 }
 0xd55   : > { %v9172_v55 = vpop.xlane.xlu2 %4150 }
 0xd5b   : > { %v4133_v38 = vpop.xlane.xlu1 %4132 }
 0xd5c   : > { %7185 = vrcp.f32 %v4133_v38  ;;  %4920 = vmax.xlane.f32.xlu0 %v4919_v34  ;;  %v4179_v34 = vand.u32 2147483647, %v4136_v3  ;;  %v4166_v43 = vand.u32 2147483648, %v4133_v38  ;;  %v4164_v31 = vand.u32 2147483647, %v4133_v38 }
 0xd5d   : > { %7187 = vrcp.f32 %v9166_v7  ;;  %vm4160_vm14 = vweird.f32 %v4133_v38 }
 0xd5e   : > { %vm4180_vm13 = vcmp.eq.f32.partialorder %v4179_v34, 8.507059e+37  ;;  %v4167_v24 = vor.u32 1.1754944e-38, %v4166_v43  ;;  %vm4165_vm0 = vcmp.eq.f32.partialorder %v4164_v31, 8.507059e+37 }
 0xd61   : > { %v9175_v35 = vpop.xlane.xlu0 %4534 }
 0xd62   : > { %v7186_v37 = vpop.eup %7185 }
 0xd63   : > { %v4156_v1 = vmul.f32 %v7186_v37, %v4133_v38  ;;  %v9177_v50 = vpop.xlane.xlu1 %4141  ;;  %v9179_v26 = vpop.eup %7187  ;;  %vm4161_vm12 = vweird.f32 %v7186_v37 }
 0xd64   : > { %7189 = vrcp.f32 %v9177_v50  ;;  %5096 = vrot.lane.b32.xlu1 %v8790_v25, %s7536_s24  ;;  %v4186_v11 = vmul.f32 %v9179_v26, %v9166_v7  ;;  %vm4162_vm15 = vmor %vm4160_vm14, %vm4161_vm12  ;;  %vm4191_vm4 = vweird.f32 %v9179_v26  ;;  %vm4205_vm5 = vweird.f32 %v9177_v50 }
 0xd65   : > { %v4157_v44 = vsub.f32 1.0, %v4156_v1  ;;  %v9188_v53 = vpop.xlane.xlu2 %4564  ;;  %v4183_v1 = vsel %vm4180_vm13, %v4182_v49, %v4178_v4  ;;  %vm9233_vm8 = vmor %vm4190_vm7, %vm4191_vm4 }
 0xd66   : > { %v4187_v19 = vsub.f32 1.0, %v4186_v11  ;;  %v4184_v52 = vmul.f32 %v9060_v29, %v4183_v1  ;;  %vm4592_vm11 = vweird.f32 %v9188_v53 }
 0xd67   : > { %v4158_v32 = vmul.f32 %v7186_v37, %v4157_v44 }
 0xd68   : > { %v4188_v31 = vmul.f32 %v9179_v26, %v4187_v19  ;;  %v4209_v19 = vand.u32 2147483647, %v9177_v50 }
 0xd69   : > { %v4159_v25 = vadd.f32 %v7186_v37, %v4158_v32  ;;  %v9194_v59 = vpop.xlane.xlu0 %4147 }
 0xd6a   : > { %v7190_v3 = vpop.eup %7189  ;;  %vm4210_vm9 = vcmp.eq.f32.partialorder %v4209_v19, 8.507059e+37 }
 0xd6b   : > { %v4163_v14 = vsel %vm4162_vm15, %v7186_v37, %v4159_v25  ;;  %v4201_v6 = vmul.f32 %v7190_v3, %v9177_v50  ;;  %v9197_v0 = vpop.xlane.xlu1 %4144  ;;  %vm4206_vm3 = vweird.f32 %v7190_v3 }
 0xd6c   : > { %v4168_v44 = vsel %vm4165_vm0, %v4167_v24, %v4163_v14  ;;  %7191 = vrcp.f32 %v9197_v0  ;;  %vm9223_vm6 = vmor %vm4205_vm5, %vm4206_vm3  ;;  %vm4220_vm15 = vweird.f32 %v9197_v0  ;;  %vm4235_vm0 = vweird.f32 %v9194_v59 }
 0xd6d   : > { %v4169_v32 = vmul.f32 %v9083_v5, %v4168_v44  ;;  %v4202_v38 = vsub.f32 1.0, %v4201_v6  ;;  %7193 = vrcp.f32 %v9188_v53  ;;  %v4903_v49 = vpop.xlane.xlu2 %4902  ;;  %v4211_v5 = vand.u32 2147483648, %v9177_v50 }
 0xd6e   : > { %7195 = vrcp.f32 %v9194_v59  ;;  %v4923_v11 = vsub.f32 %v9110_v18, %v4903_v49  ;;  %v4189_v18 = vadd.f32 %v9179_v26, %v4188_v31  ;;  %v4196_v44 = vand.u32 2147483648, %v9166_v7 }
 0xd6f   : > { %v4275_v43 = vpack.c.bf16 %v4184_v52, %v4169_v32  ;;  %v4203_v4 = vmul.f32 %v7190_v3, %v4202_v38  ;;  %v4194_v32 = vand.u32 2147483647, %v9166_v7  ;;  %v4212_v31 = vor.u32 1.1754944e-38, %v4211_v5 }
 0xd70   : > { %v4932_v37 = vmul.f32 1.442695, %v4923_v11  ;;  %v4193_v7 = vsel %vm9233_vm8, %v9179_v26, %v4189_v18 }
 0xd71   : > { %v4204_v24 = vadd.f32 %v7190_v3, %v4203_v4  ;;  %v4900_v34 = vpop.xlane.xlu0 %4899  ;;  %6472 = vmatmul.msk.bf16.vlgmr.msrb.gmra.mxu1 %vm941_vm2, %v4275_v43  ;;  %vm4195_vm10 = vcmp.eq.f32.partialorder %v4194_v32, 8.507059e+37 }
 0xd72   : > { %v9207_v29 = vpop.eup %7191  ;;  %7197 = vpow2.f32 %v4932_v37  ;;  %v4922_v25 = vsub.f32 %v9092_v23, %v4900_v34  ;;  %v4197_v37 = vor.u32 1.1754944e-38, %v4196_v44 }
 0xd73   : > { %v9211_v1 = vpop.eup %7193  ;;  %v9217_v14 = vpop.xlane.xlu1 %4153  ;;  %v4208_v38 = vsel %vm9223_vm6, %v7190_v3, %v4204_v24  ;;  %v4216_v50 = vmul.f32 %v9207_v29, %v9197_v0  ;;  %vm4221_vm12 = vweird.f32 %v9207_v29 }
 0xd74   : > { %v9219_v6 = vpop.eup %7195  ;;  %v4930_v23 = vmul.f32 1.442695, %v4922_v25  ;;  %v4588_v43 = vmul.f32 %v9211_v1, %v9188_v53  ;;  %v4213_v24 = vsel %vm4210_vm9, %v4212_v31, %v4208_v38  ;;  %v4198_v52 = vsel %vm4195_vm10, %v4197_v37, %v4193_v7  ;;  %vm9286_vm3 = vmor %vm4220_vm15, %vm4221_vm12 }
 0xd75   : > { %v4716_v49 = vpop.permute.xlu2 %4715  ;;  %v4231_v3 = vmul.f32 %v9219_v6, %v9194_v59  ;;  %v4217_v34 = vsub.f32 1.0, %v4216_v50  ;;  %v4214_v18 = vmul.f32 %v9090_v9, %v4213_v24  ;;  %v4199_v38 = vmul.f32 %v9066_v61, %v4198_v52 }
 0xd76   : > { %7199 = vpow2.f32 %v4930_v23  ;;  %4740 = vmatpush.bf16.msra.mxu1 %v4716_v49  ;;  %v4589_v25 = vsub.f32 1.0, %v4588_v43  ;;  %vm4593_vm13 = vweird.f32 %v9211_v1  ;;  %v4224_v37 = vand.u32 2147483647, %v9197_v0 }
 0xd77   : > { %7201 = vrcp.f32 %v9172_v55  ;;  %v4232_v23 = vsub.f32 1.0, %v4231_v3  ;;  %v4218_v44 = vmul.f32 %v9207_v29, %v4217_v34  ;;  %v4276_v31 = vpack.c.bf16 %v4214_v18, %v4199_v38  ;;  %vm9292_vm4 = vmor %vm4592_vm11, %vm4593_vm13 }
 0xd78   : > { %v9244_v4 = vpop.eup %7197  ;;  %7203 = vrcp.f32 %v9217_v14  ;;  %v4590_v49 = vmul.f32 %v9211_v1, %v4589_v25  ;;  %v4226_v24 = vand.u32 2147483648, %v9197_v0  ;;  %vm4236_vm14 = vweird.f32 %v9219_v6 }
 0xd79   : > { %v4949_v5 = vsel %vm941_vm2, %v9244_v4, 0.0  ;;  %v4233_v11 = vmul.f32 %v9219_v6, %v4232_v23  ;;  %v4219_v7 = vadd.f32 %v9207_v29, %v4218_v44  ;;  %v4596_v25 = vand.u32 2147483647, %v9188_v53  ;;  %vm9307_vm5 = vmor %vm4235_vm0, %vm4236_vm14 }
 0xd7a   : > { %4950 = vadd.xlane.f32.xlu2 %v4949_v5  ;;  %v4591_v3 = vadd.f32 %v9211_v1, %v4590_v49  ;;  %v4598_v52 = vand.u32 2147483648, %v9188_v53  ;;  %v4241_v23 = vand.u32 2147483648, %v9194_v59  ;;  %vm4225_vm6 = vcmp.eq.f32.partialorder %v4224_v37, 8.507059e+37 }
 0xd7b   : > { %v9250_v26 = vpop.xlane.xlu1 %4567  ;;  %v4234_v34 = vadd.f32 %v9219_v6, %v4233_v11  ;;  %v4223_v38 = vsel %vm9286_vm3, %v9207_v29, %v4219_v7  ;;  %vm4597_vm8 = vcmp.eq.f32.partialorder %v4596_v25, 8.507059e+37  ;;  %v4916_v25 = vsel %vm941_vm2, %v9162_v54, -inf }
 0xd7c   : > { %v9253_v19 = vpop.eup %7199  ;;  %7205 = vrcp.f32 %v9250_v26  ;;  %v4613_v18 = vand.u32 2147483648, %v9250_v26  ;;  %vm4607_vm10 = vweird.f32 %v9250_v26  ;;  %vm4265_vm15 = vweird.f32 %v9217_v14 }
 0xd7d   : > { %v4946_v32 = vsel %vm941_vm2, %v9253_v19, 0.0  ;;  %v9260_v50 = vpop.eup %7201  ;;  %v4238_v29 = vsel %vm9307_vm5, %v9219_v6, %v4234_v34  ;;  %vm4250_vm3 = vweird.f32 %v9172_v55 }
 0xd7e   : > { %4947 = vadd.xlane.f32.xlu0 %v4946_v32  ;;  %v9264_v9 = vpop.eup %7203  ;;  %v4246_v43 = vmul.f32 %v9260_v50, %v9172_v55  ;;  %v4239_v32 = vand.u32 2147483647, %v9194_v59  ;;  %v4227_v59 = vor.u32 1.1754944e-38, %v4226_v24  ;;  %v4614_v24 = vor.u32 1.1754944e-38, %v4613_v18 }
 0xd7f   : > { %v4261_v49 = vmul.f32 %v9264_v9, %v9217_v14  ;;  %vm4266_vm13 = vweird.f32 %v9264_v9  ;;  %vm4251_vm14 = vweird.f32 %v9260_v50 }
 0xd80   : > { %vm4240_vm9 = vcmp.eq.f32.partialorder %v4239_v32, 8.507059e+37  ;;  %v4247_v60 = vsub.f32 1.0, %v4246_v43  ;;  %vm4267_vm0 = vmor %vm4265_vm15, %vm4266_vm13 }
 0xd81   : > { %6473 = vmatmul.msk.bf16.gmra.mxu1 %vm941_vm2, %v4276_v31  ;;  %v4595_v31 = vsel %vm9292_vm4, %v9211_v1, %v4591_v3  ;;  %v4599_v1 = vor.u32 1.1754944e-38, %v4598_v52  ;;  %v4242_v3 = vor.u32 1.1754944e-38, %v4241_v23  ;;  %v4262_v0 = vsub.f32 1.0, %v4261_v49  ;;  %vm4252_vm4 = vmor %vm4250_vm3, %vm4251_vm14 }
 0xd82   : > { %v7206_v61 = vpop.eup %7205 }
 0xd83   : > { %v4603_v5 = vmul.f32 %v7206_v61, %v9250_v26  ;;  %vm4608_vm7 = vweird.f32 %v7206_v61  ;;  %v4600_v37 = vsel %vm4597_vm8, %v4599_v1, %v4595_v31  ;;  %v4243_v30 = vsel %vm4240_vm9, %v4242_v3, %v4238_v29 }
 0xd84   : > { %v5099_v44 = vpop.permute.xlu0 %5098  ;;  %vm4609_vm11 = vmor %vm4607_vm10, %vm4608_vm7  ;;  %v9321_v52 = vmul.f32 %v9099_v12, %v4600_v37  ;;  %v4263_v23 = vmul.f32 %v9264_v9, %v4262_v0  ;;  %v4244_v32 = vmul.f32 %v9103_v13, %v4243_v30  ;;  %v4271_v12 = vand.u32 2147483648, %v9217_v14 }
 0xd85   : > { %v4604_v11 = vsub.f32 1.0, %v4603_v5  ;;  %5123 = vmatpush.bf16.msrb.mxu2 %v5099_v44  ;;  %v4611_v5 = vand.u32 2147483647, %v9250_v26  ;;  %v4228_v44 = vsel %vm4225_vm6, %v4227_v59, %v4223_v38  ;;  %v4254_v38 = vand.u32 2147483647, %v9172_v55 }
 0xd86   : > { %v4229_v6 = vmul.f32 %v9105_v36, %v4228_v44 }
 0xd87   : > { %v4605_v7 = vmul.f32 %v7206_v61, %v4604_v11  ;;  %vm4612_vm12 = vcmp.eq.f32.partialorder %v4611_v5, 8.507059e+37  ;;  %v4272_v11 = vor.u32 1.1754944e-38, %v4271_v12  ;;  %vm4255_vm6 = vcmp.eq.f32.partialorder %v4254_v38, 8.507059e+37 }
 0xd88   : > { %v4277_v43 = vpack.c.bf16 %v4244_v32, %v4229_v6  ;;  %v4544_v6 = vsub.f32 %v9039_v20, %v9137_v46 }
 0xd89   : > { %v4606_v47 = vadd.f32 %v7206_v61, %v4605_v7 }
 0xd8b   : > { %v4610_v53 = vsel %vm4609_vm11, %v7206_v61, %v4606_v47  ;;  %v4248_v47 = vmul.f32 %v9260_v50, %v4247_v60  ;;  %v4264_v61 = vadd.f32 %v9264_v9, %v4263_v23  ;;  %v4269_v60 = vand.u32 2147483647, %v9217_v14 }
 0xd8c   : > { %v4615_v34 = vsel %vm4612_vm12, %v4614_v24, %v4610_v53 }
 0xd8d   : > { %v9325_v26 = vmul.f32 %v9122_v16, %v4615_v34  ;;  %v4249_v30 = vadd.f32 %v9260_v50, %v4248_v47  ;;  %v4256_v16 = vand.u32 2147483648, %v9172_v55  ;;  %v4268_v49 = vsel %vm4267_vm0, %v9264_v9, %v4264_v61 }
 0xd8e   : > { %4917 = vmax.xlane.f32.xlu1 %v4916_v25  ;;  %vm4270_vm5 = vcmp.eq.f32.partialorder %v4269_v60, 8.507059e+37  ;;  %v4546_v25 = vsub.f32 %v9053_v27, %v9152_v41  ;;  %v6828_v41 = vld [vmem:[#allocation7 + $0x58] sm:$0xff]  ;;  %v6827_v60 = vld [vmem:[#allocation7 + $0x50] sm:$0xff] }
 0xd8f   : > { %v4707_v36 = vpack.c.bf16 %v9325_v26, %v9321_v52  ;;  %v4253_v31 = vsel %vm4252_vm4, %v9260_v50, %v4249_v30  ;;  %v4257_v59 = vor.u32 1.1754944e-38, %v4256_v16  ;;  %v4273_v18 = vsel %vm4270_vm5, %v4272_v11, %v4268_v49  ;;  %4370 = vmatpush.bf16.msrb.mxu3 %v6828_v41 }
 0xd90   : > { %v4274_v29 = vmul.f32 %v9116_v21, %v4273_v18  ;;  %v4543_v50 = vsub.f32 %v9031_v2, %v9134_v15  ;;  %v4557_v15 = vmul.f32 1.442695, %v4544_v6  ;;  %v4561_v32 = vmul.f32 1.442695, %v4546_v25 }
 0xd91   : > { %6474 = vmatmul.msk.bf16.gmra.mxu1 %vm941_vm2, %v4277_v43  ;;  %v4258_v14 = vsel %vm4255_vm6, %v4257_v59, %v4253_v31 }
 0xd92   : > { %4711 = vrot.lane.b32.xlu0 %v8793_v45, %s7537_s0  ;;  %v4259_v7 = vmul.f32 %v9077_v48, %v4258_v14  ;;  %v4555_v44 = vmul.f32 1.442695, %v4543_v50  ;;  %s710_s0 = scalar_lea.vmem [#allocation13], %s5940_s26 }
 0xd93   : > { %v4714_v13 = vpop.permute.xlu1 %4713  ;;  %4371 = vmatpush.bf16.msrb.mxu3 %v6827_v60  ;;  %s5787_s27 = sshll.u32 %s710_s0, 4  ;;  %s5788_s27 = int_to_ptr.vmem [resolvable:$true] %s5787_s27 }
 0xd94   : > { %4741 = vmatpush.bf16.msra.mxu1 %v4714_v13  ;;  %v4278_v5 = vpack.c.bf16 %v4274_v29, %v4259_v7  ;;  %v4545_v7 = vsub.f32 %v9045_v17, %v9175_v35 }
 0xd96   : > { %v4559_v50 = vmul.f32 1.442695, %v4545_v7 }
 0xda1   : > { %6475 = vmatmul.msk.bf16.gmra.mxu1 %vm941_vm2, %v4278_v5 }
 0xdae   : > { %v4571_v11 = vpop.xlane.xlu2 %4570 }
 0xdaf   : > { %v9349_v1 = vpop.xlane.xlu0 %4573  ;;  %vm4622_vm9 = vweird.f32 %v4571_v11 }
 0xdb0   : > { %vm4637_vm11 = vweird.f32 %v9349_v1 }
 0xdb7   : > { %v4906_v55 = vpop.xlane.xlu0 %4905 }
 0xdb8   : > { %v4924_v9 = vsub.f32 %v9132_v42, %v4906_v55 }
 0xdba   : > { %v4934_v3 = vmul.f32 1.442695, %v4924_v9 }
 0xdbc   : > { %7207 = vpow2.f32 %v4934_v3 }
 0xdbd   : > { %7209 = vpow2.f32 %v4555_v44 }
 0xdbe   : > { %v4912_v0 = vpop.xlane.xlu1 %4911 }
 0xdbf   : > { %v4926_v37 = vsub.f32 %v9146_v40, %v4912_v0  ;;  %v4909_v21 = vpop.xlane.xlu0 %4908 }
 0xdc0   : > { %v4925_v48 = vsub.f32 %v9140_v63, %v4909_v21 }
 0xdc1   : > { %v4938_v24 = vmul.f32 1.442695, %v4926_v37 }
 0xdc2   : > { %v9356_v53 = vpop.eup %7207  ;;  %v4936_v42 = vmul.f32 1.442695, %v4925_v48 }
 0xdc3   : > { %7211 = vpow2.f32 %v4938_v24  ;;  %v4952_v2 = vsel %vm941_vm2, %v9356_v53, 0.0  ;;  %v9362_v34 = vpop.eup %7209 }
 0xdc4   : > { %7213 = vpow2.f32 %v4936_v42  ;;  %4953 = vadd.xlane.f32.xlu1 %v4952_v2  ;;  %v4575_v46 = vsel %vm941_vm2, %v9362_v34, 0.0 }
 0xdc5   : > { %7215 = vpow2.f32 %v4557_v15 }
 0xdc6   : > { %7217 = vpow2.f32 %v4561_v32  ;;  %v4641_v32 = vand.u32 2147483647, %v9349_v1 }
 0xdc7   : > { %v4915_v47 = vpop.xlane.xlu0 %4914 }
 0xdc8   : > { %v4927_v61 = vsub.f32 %v9156_v51, %v4915_v47  ;;  %vm4642_vm14 = vcmp.eq.f32.partialorder %v4641_v32, 8.507059e+37 }
 0xdc9   : > { %v9364_v40 = vpop.eup %7211 }
 0xdca   : > { %v9366_v63 = vpop.eup %7213  ;;  %v4958_v20 = vsel %vm941_vm2, %v9364_v40, 0.0  ;;  %v4940_v12 = vmul.f32 1.442695, %v4927_v61 }
 0xdcb   : > { %4959 = vadd.xlane.f32.xlu0 %v4958_v20  ;;  %v4955_v23 = vsel %vm941_vm2, %v9366_v63, 0.0  ;;  %v9376_v43 = vpop.eup %7215  ;;  %v4643_v20 = vand.u32 2147483648, %v9349_v1 }
 0xdcc   : > { %4576 = vadd.xlane.f32.xlu1 %v4575_v46  ;;  %4956 = vadd.xlane.f32.xlu2 %v4955_v23  ;;  %v4578_v27 = vsel %vm941_vm2, %v9376_v43, 0.0  ;;  %v9381_v13 = vpop.eup %7217  ;;  %7219 = vpow2.f32 %v4940_v12  ;;  %v4626_v23 = vand.u32 2147483647, %v4571_v11 }
 0xdcd   : > { %v4584_v16 = vsel %vm941_vm2, %v9381_v13, 0.0  ;;  %7221 = vrcp.f32 %v4571_v11  ;;  %v4644_v41 = vor.u32 1.1754944e-38, %v4643_v20 }
 0xdce   : > { %7223 = vrcp.f32 %v9349_v1  ;;  %vm4627_vm13 = vcmp.eq.f32.partialorder %v4626_v23, 8.507059e+37 }
 0xdcf   : > { %v4921_v31 = vpop.xlane.xlu0 %4920  ;;  %7225 = vpow2.f32 %v4559_v50 }
 0xdd0   : > { %v4929_v24 = vsub.f32 %v9168_v39, %v4921_v31  ;;  %v4628_v39 = vand.u32 2147483648, %v4571_v11 }
 0xdd2   : > { %v9385_v38 = vpop.eup %7219  ;;  %v4944_v25 = vmul.f32 1.442695, %v4929_v24 }
 0xdd3   : > { %v4961_v51 = vsel %vm941_vm2, %v9385_v38, 0.0  ;;  %v7222_v14 = vpop.eup %7221 }
 0xdd4   : > { %4579 = vadd.xlane.f32.xlu1 %v4578_v27  ;;  %v7224_v29 = vpop.eup %7223  ;;  %v4618_v5 = vmul.f32 %v7222_v14, %v4571_v11  ;;  %vm4623_vm7 = vweird.f32 %v7222_v14  ;;  %v4629_v27 = vor.u32 1.1754944e-38, %v4628_v39 }
 0xdd5   : > { %v4633_v55 = vmul.f32 %v7224_v29, %v9349_v1  ;;  %vm4638_vm8 = vweird.f32 %v7224_v29  ;;  %vm9408_vm10 = vmor %vm4622_vm9, %vm4623_vm7 }
 0xdd6   : > { %v5097_v30 = vpop.permute.xlu1 %5096  ;;  %v4619_v3 = vsub.f32 1.0, %v4618_v5  ;;  %vm9414_vm12 = vmor %vm4637_vm11, %vm4638_vm8 }
 0xdd7   : > { %5124 = vmatpush.bf16.msrb.mxu2 %v5097_v30  ;;  %v4634_v44 = vsub.f32 1.0, %v4633_v55 }
 0xdd8   : > { %v4620_v21 = vmul.f32 %v7222_v14, %v4619_v3 }
 0xdd9   : > { %v4635_v48 = vmul.f32 %v7224_v29, %v4634_v44 }
 0xdda   : > { %v4621_v2 = vadd.f32 %v7222_v14, %v4620_v21 }
 0xddb   : > { %v4636_v15 = vadd.f32 %v7224_v29, %v4635_v48 }
 0xddc   : > { %4585 = vadd.xlane.f32.xlu1 %v4584_v16 }
 0xddd   : > { %v4640_v47 = vsel %vm9414_vm12, %v7224_v29, %v4636_v15 }
 0xdde   : > { %v4645_v60 = vsel %vm4642_vm14, %v4644_v41, %v4640_v47 }
 0xde4   : > { %4962 = vadd.xlane.f32.xlu1 %v4961_v51  ;;  %5094 = vrot.lane.b32.xlu2 %v8793_v45, %s7536_s24  ;;  %s9906_s24 = sld [smem:[#allocation50_spill]] }
 0xded   : > { %v4951_v29 = vpop.xlane.xlu2 %4950 }
 0xdee   : > { %v4316_v49 = vpop.f32.mrf.mxu1  ;;  %vm4990_vm5 = vweird.f32 %v4951_v29 }
 0xdf1   : > { %v9396_v9 = vpop.xlane.xlu0 %4947 }
 0xdf2   : > { %v4981_v48 = vand.u32 2147483648, %v9396_v9  ;;  %vm4975_vm3 = vweird.f32 %v9396_v9 }
 0xdf4   : > { %v4982_v39 = vor.u32 1.1754944e-38, %v4981_v48 }
 0xdf6   : > { %v4318_v59 = vpop.f32.mrf.mxu1 }
 0xdf7   : > { %v4336_v18 = vpack.c.bf16 %v4318_v59, %v4316_v49  ;;  %v4646_v49 = vmul.f32 %v9144_v22, %v4645_v60 }
 0xdf9   : > { %6484 = vmatmul.msk.bf16.vlgmr.msrb.gmra.mxu3 %vm1306_vm1, %v4336_v18 }
 0xdfe   : > { %v4321_v45 = vpop.f32.mrf.mxu1 }
 0xe01   : > { %v4918_v0 = vpop.xlane.xlu1 %4917 }
 0xe02   : > { %v4928_v37 = vsub.f32 %v9162_v54, %v4918_v0  ;;  %v9404_v54 = vpop.eup %7225 }
 0xe03   : > { %v4581_v61 = vsel %vm941_vm2, %v9404_v54, 0.0 }
 0xe04   : > { %v4942_v6 = vmul.f32 1.442695, %v4928_v37  ;;  %v4712_v42 = vpop.permute.xlu0 %4711 }
 0xe05   : > { %4742 = vmatpush.bf16.msra.mxu1 %v4712_v42 }
 0xe06   : > { %7227 = vpow2.f32 %v4942_v6  ;;  %v4323_v17 = vpop.f32.mrf.mxu1  ;;  %v4979_v6 = vand.u32 2147483647, %v9396_v9 }
 0xe07   : > { %v4337_v35 = vpack.c.bf16 %v4323_v17, %v4321_v45  ;;  %7229 = vpow2.f32 %v4944_v25  ;;  %v4996_v17 = vand.u32 2147483648, %v4951_v29 }
 0xe08   : > { %6504 = vmatmul.msk.bf16.vlgmr.msra.gmra.mxu1 %vm941_vm2, %v4707_v36  ;;  %v4625_v36 = vsel %vm9408_vm10, %v7222_v14, %v4621_v2  ;;  %7231 = vrcp.f32 %v9396_v9  ;;  %vm4980_vm7 = vcmp.eq.f32.partialorder %v4979_v6, 8.507059e+37 }
 0xe09   : > { %6485 = vmatmul.msk.bf16.gmra.mxu3 %vm1306_vm1, %v4337_v35  ;;  %v4630_v30 = vsel %vm4627_vm13, %v4629_v27, %v4625_v36  ;;  %7233 = vrcp.f32 %v4951_v29  ;;  %v4994_v35 = vand.u32 2147483647, %v4951_v29 }
 0xe0a   : > { %v4631_v51 = vmul.f32 %v9142_v8, %v4630_v30 }
 0xe0b   : > { %vm4995_vm8 = vcmp.eq.f32.partialorder %v4994_v35, 8.507059e+37 }
 0xe0c   : > { %v9418_v26 = vpop.eup %7227  ;;  %v4708_v59 = vpack.c.bf16 %v4646_v49, %v4631_v51 }
 0xe0d   : > { %4582 = vadd.xlane.f32.xlu2 %v4581_v61  ;;  %v4964_v1 = vsel %vm941_vm2, %v9418_v26, 0.0  ;;  %v9428_v16 = vpop.eup %7229 }
 0xe0e   : > { %4965 = vadd.xlane.f32.xlu1 %v4964_v1  ;;  %v4326_v12 = vpop.f32.mrf.mxu1  ;;  %v4967_v11 = vsel %vm941_vm2, %v9428_v16, 0.0  ;;  %v7232_v8 = vpop.eup %7231 }
 0xe0f   : > { %v7234_v22 = vpop.eup %7233  ;;  %v4971_v55 = vmul.f32 %v7232_v8, %v9396_v9  ;;  %vm4976_vm15 = vweird.f32 %v7232_v8  ;;  %v4997_v9 = vor.u32 1.1754944e-38, %v4996_v17 }
 0xe10   : > { %v4986_v45 = vmul.f32 %v7234_v22, %v4951_v29  ;;  %vm4991_vm0 = vweird.f32 %v7234_v22  ;;  %vm4977_vm4 = vmor %vm4975_vm3, %vm4976_vm15 }
 0xe11   : > { %v4972_v50 = vsub.f32 1.0, %v4971_v55  ;;  %vm4992_vm6 = vmor %vm4990_vm5, %vm4991_vm0 }
 0xe12   : > { %v4987_v3 = vsub.f32 1.0, %v4986_v45 }
 0xe13   : > { %v4973_v44 = vmul.f32 %v7232_v8, %v4972_v50 }
 0xe14   : > { %v4988_v37 = vmul.f32 %v7234_v22, %v4987_v3 }
 0xe15   : > { %v4974_v21 = vadd.f32 %v7232_v8, %v4973_v44  ;;  %v6830_v44 = vld [vmem:[#allocation7 + $0x68] sm:$0xff] }
 0xe16   : > { %4968 = vadd.xlane.f32.xlu1 %v4967_v11  ;;  %v4328_v31 = vpop.f32.mrf.mxu1  ;;  %v4989_v24 = vadd.f32 %v7234_v22, %v4988_v37  ;;  %4798 = vmatpush.bf16.msra.mxu3 %v6830_v44 }
 0xe17   : > { %v4338_v18 = vpack.c.bf16 %v4328_v31, %v4326_v12  ;;  %v4978_v2 = vsel %vm4977_vm4, %v7232_v8, %v4974_v21 }
 0xe18   : > { %6505 = vmatmul.msk.bf16.gmra.mxu1 %vm941_vm2, %v4708_v59  ;;  %v4993_v20 = vsel %vm4992_vm6, %v7234_v22, %v4989_v24  ;;  %v4983_v23 = vsel %vm4980_vm7, %v4982_v39, %v4978_v2 }
 0xe19   : > { %6486 = vmatmul.msk.bf16.gmra.mxu3 %vm1306_vm1, %v4338_v18  ;;  %v4998_v32 = vsel %vm4995_vm8, %v4997_v9, %v4993_v20  ;;  %v4984_v52 = vmul.f32 %v9253_v19, %v4983_v23 }
 0xe1a   : > { %v4999_v41 = vmul.f32 %v9244_v4, %v4998_v32 }
 0xe1c   : > { %v5090_v51 = vpack.c.bf16 %v4999_v41, %v4984_v52 }
 0xe1e   : > { %v4331_v14 = vpop.f32.mrf.mxu1 }
 0xe26   : > { %v4333_v7 = vpop.f32.mrf.mxu1 }
 0xe27   : > { %v4339_v5 = vpack.c.bf16 %v4333_v7, %v4331_v14 }
 0xe29   : > { %6487 = vmatmul.msk.bf16.gmra.mxu3 %vm1306_vm1, %v4339_v5 }
 0xe37   : > { %v9439_v0 = vpop.xlane.xlu1 %4953 }
 0xe38   : > { %7235 = vrcp.f32 %v9439_v0  ;;  %v5011_v31 = vand.u32 2147483648, %v9439_v0  ;;  %vm5005_vm12 = vweird.f32 %v9439_v0  ;;  %v5009_v22 = vand.u32 2147483647, %v9439_v0 }
 0xe3a   : > { %v5012_v55 = vor.u32 1.1754944e-38, %v5011_v31  ;;  %vm5010_vm4 = vcmp.eq.f32.partialorder %v5009_v22, 8.507059e+37 }
 0xe3e   : > { %v9445_v42 = vpop.eup %7235  ;;  %v9455_v61 = vpop.xlane.xlu0 %4959 }
 0xe3f   : > { %v9447_v15 = vpop.xlane.xlu1 %4576  ;;  %v4957_v25 = vpop.xlane.xlu2 %4956  ;;  %v5001_v46 = vmul.f32 %v9445_v42, %v9439_v0  ;;  %vm5006_vm10 = vweird.f32 %v9445_v42  ;;  %v5041_v31 = vand.u32 2147483648, %v9455_v61 }
 0xe40   : > { %7237 = vrcp.f32 %v9447_v15  ;;  %v5026_v18 = vand.u32 2147483648, %v4957_v25  ;;  %v5024_v29 = vand.u32 2147483647, %v4957_v25  ;;  %vm5020_vm11 = vweird.f32 %v4957_v25  ;;  %vm9481_vm14 = vmor %vm5005_vm12, %vm5006_vm10 }
 0xe41   : > { %7239 = vrcp.f32 %v4957_v25  ;;  %v5002_v36 = vsub.f32 1.0, %v5001_v46  ;;  %v4658_v24 = vand.u32 2147483648, %v9447_v15  ;;  %vm4652_vm3 = vweird.f32 %v9447_v15 }
 0xe42   : > { %v5027_v21 = vor.u32 1.1754944e-38, %v5026_v18  ;;  %vm5025_vm0 = vcmp.eq.f32.partialorder %v5024_v29, 8.507059e+37  ;;  %v4656_v35 = vand.u32 2147483647, %v9447_v15  ;;  %vm5035_vm12 = vweird.f32 %v9455_v61 }
 0xe43   : > { %v5003_v19 = vmul.f32 %v9445_v42, %v5002_v36  ;;  %v4659_v23 = vor.u32 1.1754944e-38, %v4658_v24  ;;  %v5042_v29 = vor.u32 1.1754944e-38, %v5041_v31 }
 0xe44   : > { %vm4657_vm8 = vcmp.eq.f32.partialorder %v4656_v35, 8.507059e+37 }
 0xe45   : > { %v5004_v14 = vadd.f32 %v9445_v42, %v5003_v19 }
 0xe46   : > { %v9453_v47 = vpop.eup %7237 }
 0xe47   : > { %v7240_v27 = vpop.eup %7239  ;;  %v4648_v1 = vmul.f32 %v9453_v47, %v9447_v15  ;;  %v9460_v12 = vpop.xlane.xlu1 %4579  ;;  %vm4653_vm15 = vweird.f32 %v9453_v47  ;;  %v5008_v48 = vsel %vm9481_vm14, %v9445_v42, %v5004_v14 }
 0xe48   : > { %v5095_v30 = vpop.permute.xlu2 %5094  ;;  %v5016_v60 = vmul.f32 %v7240_v27, %v4957_v25  ;;  %7241 = vrcp.f32 %v9460_v12  ;;  %vm5021_vm9 = vweird.f32 %v7240_v27  ;;  %vm9497_vm5 = vmor %vm4652_vm3, %vm4653_vm15  ;;  %v4673_v42 = vand.u32 2147483648, %v9460_v12 }
 0xe49   : > { %5125 = vmatpush.bf16.msrb.mxu2 %v5095_v30  ;;  %7243 = vrcp.f32 %v9455_v61  ;;  %v4649_v49 = vsub.f32 1.0, %v4648_v1  ;;  %vm9474_vm13 = vmor %vm5020_vm11, %vm5021_vm9  ;;  %v4671_v46 = vand.u32 2147483647, %v9460_v12  ;;  %v5013_v9 = vsel %vm5010_vm4, %v5012_v55, %v5008_v48 }
 0xe4a   : > { %v5017_v11 = vsub.f32 1.0, %v5016_v60  ;;  %vm4667_vm7 = vweird.f32 %v9460_v12  ;;  %v5014_v1 = vmul.f32 %v9356_v53, %v5013_v9 }
 0xe4b   : > { %v4650_v4 = vmul.f32 %v9453_v47, %v4649_v49  ;;  %vm4672_vm10 = vcmp.eq.f32.partialorder %v4671_v46, 8.507059e+37 }
 0xe4c   : > { %6524 = vmatmul.msk.bf16.vlgmr.msrb.gmra.mxu2 %vm941_vm2, %v5090_v51  ;;  %v5018_v59 = vmul.f32 %v7240_v27, %v5017_v11 }
 0xe4d   : > { %v4651_v37 = vadd.f32 %v9453_v47, %v4650_v4 }
 0xe4e   : > { %v7242_v7 = vpop.eup %7241  ;;  %v5019_v5 = vadd.f32 %v7240_v27, %v5018_v59 }
 0xe4f   : > { %v9470_v8 = vpop.eup %7243  ;;  %v4663_v50 = vmul.f32 %v7242_v7, %v9460_v12  ;;  %v9479_v3 = vpop.xlane.xlu1 %4585  ;;  %vm4668_vm6 = vweird.f32 %v7242_v7  ;;  %v4655_v20 = vsel %vm9497_vm5, %v9453_v47, %v4651_v37 }
 0xe50   : > { %v5023_v0 = vsel %vm9474_vm13, %v7240_v27, %v5019_v5  ;;  %v5031_v17 = vmul.f32 %v9470_v8, %v9455_v61  ;;  %vm4669_vm9 = vmor %vm4667_vm7, %vm4668_vm6  ;;  %v4674_v27 = vor.u32 1.1754944e-38, %v4673_v42  ;;  %v4660_v30 = vsel %vm4657_vm8, %v4659_v23, %v4655_v20  ;;  %v6601_v23 = vld [vmem:[#allocation8 + $0xf0] sm:$0xf] }
 0xe51   : > { %v4664_v6 = vsub.f32 1.0, %v4663_v50  ;;  %v5028_v2 = vsel %vm5025_vm0, %v5027_v21, %v5023_v0  ;;  %v4661_v51 = vmul.f32 %v9362_v34, %v4660_v30  ;;  %vm5036_vm11 = vweird.f32 %v9470_v8 }
 0xe52   : > { %v5029_v15 = vmul.f32 %v9366_v63, %v5028_v2  ;;  %v5032_v52 = vsub.f32 1.0, %v5031_v17  ;;  %v5039_v34 = vand.u32 2147483647, %v9455_v61  ;;  %vm5037_vm13 = vmor %vm5035_vm12, %vm5036_vm11  ;;  %vm4697_vm6 = vweird.f32 %v9479_v3 }
 0xe53   : > { %v4665_v39 = vmul.f32 %v7242_v7, %v4664_v6  ;;  %v4701_v46 = vand.u32 2147483647, %v9479_v3 }
 0xe54   : > { %v5091_v47 = vpack.c.bf16 %v5029_v15, %v5014_v1  ;;  %v5033_v12 = vmul.f32 %v9470_v8, %v5032_v52  ;;  %vm5040_vm15 = vcmp.eq.f32.partialorder %v5039_v34, 8.507059e+37 }
 0xe55   : > { %v4666_v32 = vadd.f32 %v7242_v7, %v4665_v39  ;;  %v4703_v39 = vand.u32 2147483648, %v9479_v3 }
 0xe56   : > { %v5034_v11 = vadd.f32 %v9470_v8, %v5033_v12 }
 0xe57   : > { %v4670_v36 = vsel %vm4669_vm9, %v7242_v7, %v4666_v32  ;;  %v4963_v41 = vpop.xlane.xlu1 %4962  ;;  %vm4702_vm9 = vcmp.eq.f32.partialorder %v4701_v46, 8.507059e+37 }
 0xe58   : > { %7245 = vrcp.f32 %v4963_v41  ;;  %v4675_v60 = vsel %vm4672_vm10, %v4674_v27, %v4670_v36  ;;  %v5056_v4 = vand.u32 2147483648, %v4963_v41  ;;  %v5038_v59 = vsel %vm5037_vm13, %v9470_v8, %v5034_v11  ;;  %v6829_v8 = vld [vmem:[#allocation7 + $0x60] sm:$0xff] }
 0xe59   : > { %v4676_v19 = vmul.f32 %v9376_v43, %v4675_v60  ;;  %v5054_v14 = vand.u32 2147483647, %v4963_v41  ;;  %vm5050_vm0 = vweird.f32 %v4963_v41  ;;  %v5043_v5 = vsel %vm5040_vm15, %v5042_v29, %v5038_v59  ;;  %4799 = vmatpush.bf16.msra.mxu3 %v6829_v8 }
 0xe5a   : > { %v5057_v22 = vor.u32 1.1754944e-38, %v5056_v4  ;;  %v5044_v61 = vmul.f32 %v9364_v40, %v5043_v5  ;;  %7247 = vrcp.f32 %v9479_v3 }
 0xe5b   : > { %v4709_v63 = vpack.c.bf16 %v4676_v19, %v4661_v51  ;;  %vm5055_vm4 = vcmp.eq.f32.partialorder %v5054_v14, 8.507059e+37 }
 0xe5c   : > { %6525 = vmatmul.msk.bf16.gmra.mxu2 %vm941_vm2, %v5091_v47 }
 0xe5d   : > { %6506 = vmatmul.msk.bf16.gmra.mxu1 %vm941_vm2, %v4709_v63 }
 0xe5e   : > { %v7246_v49 = vpop.eup %7245 }
 0xe5f   : > { %v5046_v53 = vmul.f32 %v7246_v49, %v4963_v41  ;;  %vm5051_vm14 = vweird.f32 %v7246_v49  ;;  %v4704_v41 = vor.u32 1.1754944e-38, %v4703_v39 }
 0xe60   : > { %vm5052_vm3 = vmor %vm5050_vm0, %vm5051_vm14  ;;  %v7248_v0 = vpop.eup %7247 }
 0xe61   : > { %v5047_v43 = vsub.f32 1.0, %v5046_v53  ;;  %v4693_v21 = vmul.f32 %v7248_v0, %v9479_v3  ;;  %vm4698_vm5 = vweird.f32 %v7248_v0 }
 0xe62   : > { %vm9528_vm7 = vmor %vm4697_vm6, %vm4698_vm5 }
 0xe63   : > { %v5048_v18 = vmul.f32 %v7246_v49, %v5047_v43  ;;  %v4694_v48 = vsub.f32 1.0, %v4693_v21 }
 0xe65   : > { %v5049_v7 = vadd.f32 %v7246_v49, %v5048_v18  ;;  %v4695_v40 = vmul.f32 %v7248_v0, %v4694_v48  ;;  %v6832_v48 = vld [vmem:[#allocation7 + $0x78] sm:$0xff] }
 0xe66   : > { %5181 = vmatpush.bf16.msrb.mxu1 %v6832_v48  ;;  %v6561_v48 = vld [vmem:[#allocation8 + $0xa0] sm:$0xf] }
 0xe67   : > { %v5053_v55 = vsel %vm5052_vm3, %v7246_v49, %v5049_v7  ;;  %v4696_v2 = vadd.f32 %v7248_v0, %v4695_v40 }
 0xe68   : > { %v5058_v45 = vsel %vm5055_vm4, %v5057_v22, %v5053_v55 }
 0xe69   : > { %v5059_v50 = vmul.f32 %v9385_v38, %v5058_v45  ;;  %v4700_v52 = vsel %vm9528_vm7, %v7248_v0, %v4696_v2 }
 0xe6a   : > { %v4705_v51 = vsel %vm4702_vm9, %v4704_v41, %v4700_v52  ;;  %v6846_v41 = vld [vmem:[#allocation8 + $0xe4] sm:$0xf0] }
 0xe6b   : > { %v5092_v37 = vpack.c.bf16 %v5059_v50, %v5044_v61  ;;  %v4706_v34 = vmul.f32 %v9381_v13, %v4705_v51  ;;  %v6585_v51 = vld [vmem:[#allocation8 + $0xd0] sm:$0xf] }
 0xe6d   : > { %6526 = vmatmul.msk.bf16.gmra.mxu2 %vm941_vm2, %v5092_v37 }
 0xe7c   : > { %v9552_v46 = vpop.f32.mrf.mxu3 }
 0xe80   : > { %v4583_v24 = vpop.xlane.xlu2 %4582 }
 0xe81   : > { %7249 = vrcp.f32 %v4583_v24  ;;  %v4966_v6 = vpop.xlane.xlu1 %4965  ;;  %v4688_v32 = vand.u32 2147483648, %v4583_v24  ;;  %v4686_v27 = vand.u32 2147483647, %v4583_v24  ;;  %vm4682_vm10 = vweird.f32 %v4583_v24 }
 0xe82   : > { %7251 = vrcp.f32 %v4966_v6  ;;  %v5071_v53 = vand.u32 2147483648, %v4966_v6  ;;  %vm5065_vm14 = vweird.f32 %v4966_v6  ;;  %v5069_v43 = vand.u32 2147483647, %v4966_v6 }
 0xe83   : > { %v4689_v60 = vor.u32 1.1754944e-38, %v4688_v32  ;;  %vm4687_vm12 = vcmp.eq.f32.partialorder %v4686_v27, 8.507059e+37  ;;  %v6848_v32 = vld [vmem:[#allocation8 + $0xf4] sm:$0xf0]  ;;  %v6593_v27 = vld [vmem:[#allocation8 + $0xe0] sm:$0xf] }
 0xe84   : > { %v5072_v55 = vor.u32 1.1754944e-38, %v5071_v53  ;;  %vm5070_vm3 = vcmp.eq.f32.partialorder %v5069_v43, 8.507059e+37  ;;  %v6602_v52 = vor.u32 %v6848_v32, %v6601_v23  ;;  %v6834_v23 = vld [vmem:[#allocation8 + $0x84] sm:$0xf0]  ;;  %v6833_v32 = vld [vmem:[#allocation8 + $0x84] sm:$0xf] }
 0xe85   : > { %v4744_v17 = vpop.f32.mrf.mxu1 }
 0xe86   : > { %5362 = vmatpush.bf16.msrb.mxu3 %v6602_v52  ;;  %v6547_v52 = vld [vmem:[#allocation8 + $0x88] sm:$0xf0] }
 0xe87   : > { %v7250_v38 = vpop.eup %7249 }
 0xe88   : > { %v7252_v35 = vpop.eup %7251  ;;  %v4678_v25 = vmul.f32 %v7250_v38, %v4583_v24  ;;  %vm4683_vm8 = vweird.f32 %v7250_v38  ;;  %v6831_v24 = vld [vmem:[#allocation7 + $0x70] sm:$0xff] }
 0xe89   : > { %v5061_v42 = vmul.f32 %v7252_v35, %v4966_v6  ;;  %v4969_v20 = vpop.xlane.xlu1 %4968  ;;  %vm4684_vm11 = vmor %vm4682_vm10, %vm4683_vm8  ;;  %vm5066_vm13 = vweird.f32 %v7252_v35  ;;  %5182 = vmatpush.bf16.msrb.mxu1 %v6831_v24  ;;  %v6838_v24 = vld [vmem:[#allocation8 + $0xa4] sm:$0xf0] }
 0xe8a   : > { %v4679_v9 = vsub.f32 1.0, %v4678_v25  ;;  %7253 = vrcp.f32 %v4969_v20  ;;  %vm9537_vm15 = vmor %vm5065_vm14, %vm5066_vm13  ;;  %v5086_v18 = vand.u32 2147483648, %v4969_v20  ;;  %v5084_v5 = vand.u32 2147483647, %v4969_v20 }
 0xe8b   : > { %v5062_v15 = vsub.f32 1.0, %v5061_v42  ;;  %vm5080_vm4 = vweird.f32 %v4969_v20 }
 0xe8c   : > { %v4680_v36 = vmul.f32 %v7250_v38, %v4679_v9  ;;  %vm5085_vm6 = vcmp.eq.f32.partialorder %v5084_v5, 8.507059e+37  ;;  %v9554_v9 = vpop.f32.mrf.mxu3  ;;  %v6577_v5 = vld [vmem:[#allocation8 + $0xc0] sm:$0xf] }
 0xe8d   : > { %v5063_v1 = vmul.f32 %v7252_v35, %v5062_v15  ;;  %v4746_v30 = vpop.f32.mrf.mxu1  ;;  %v6847_v15 = vld [vmem:[#allocation8 + $0xf4] sm:$0xf] }
 0xe8e   : > { %v4681_v47 = vadd.f32 %v7250_v38, %v4680_v36  ;;  %v4764_v3 = vpack.c.bf16 %v4746_v30, %v4744_v17  ;;  %v6603_v36 = vld [vmem:[#allocation8 + $0xf8] sm:$0xf0]  ;;  %v6845_v30 = vld [vmem:[#allocation8 + $0xe4] sm:$0xf] }
 0xe8f   : > { %v5064_v49 = vadd.f32 %v7252_v35, %v5063_v1  ;;  %v6606_v1 = vor.u32 %v6847_v15, %v6603_v36  ;;  %v6550_v36 = vor.u32 %v6833_v32, %v6547_v52 }
 0xe90   : > { %v7254_v19 = vpop.eup %7253  ;;  %v4685_v12 = vsel %vm4684_vm11, %v7250_v38, %v4681_v47  ;;  %6516 = vmatmul.msk.bf16.vlgmr.msra.gmra.mxu3 %vm1306_vm1, %v4764_v3  ;;  %v6595_v47 = vld [vmem:[#allocation8 + $0xe8] sm:$0xf0]  ;;  %v6594_v3 = vor.u32 %v6846_v41, %v6593_v27  ;;  %v4427_v41 = vadd.f32 %v9029_v56, %v9552_v46  ;;  %v4429_v46 = vadd.f32 %v9037_v58, %v9554_v9 }
 0xe91   : > { %v4690_v63 = vsel %vm4687_vm12, %v4689_v60, %v4685_v12  ;;  %v5076_v11 = vmul.f32 %v7254_v19, %v4969_v20  ;;  %v5068_v29 = vsel %vm9537_vm15, %v7252_v35, %v5064_v49  ;;  %vm5081_vm0 = vweird.f32 %v7254_v19  ;;  %5391 = vmatpush.bf16.msra.mxu0 %v6606_v1  ;;  %v6587_v49 = vld [vmem:[#allocation8 + $0xd8] sm:$0xf0] }
 0xe92   : > { %v4691_v31 = vmul.f32 %v9404_v54, %v4690_v63  ;;  %vm5082_vm5 = vmor %vm5080_vm4, %vm5081_vm0  ;;  %v5087_v54 = vor.u32 1.1754944e-38, %v5086_v18  ;;  %v5073_v45 = vsel %vm5070_vm3, %v5072_v55, %v5068_v29  ;;  %v6598_v60 = vor.u32 %v6845_v30, %v6595_v47  ;;  %v6843_v63 = vld [vmem:[#allocation8 + $0xd4] sm:$0xf]  ;;  %5363 = vmatpush.bf16.msrb.mxu3 %v6594_v3  ;;  %v6841_v55 = vld [vmem:[#allocation8 + $0xc4] sm:$0xf] }
 0xe93   : > { %v5077_v4 = vsub.f32 1.0, %v5076_v11  ;;  %v5074_v44 = vmul.f32 %v9418_v26, %v5073_v45  ;;  %v3384_v1 = vadd.f32 %v8812_v10, %v8702_v33  ;;  %v9589_v10 = vld [vmem:[%s9747_s11 + $0x1] ss:$0 sm:$0xff] }
 0xe94   : > { %v4710_v14 = vpack.c.bf16 %v4706_v34, %v4691_v31  ;;  %v9556_v12 = vpop.f32.mrf.mxu3  ;;  %v6590_v31 = vor.u32 %v6843_v63, %v6587_v49 }
 0xe95   : > { %v5078_v7 = vmul.f32 %v7254_v19, %v5077_v4  ;;  %v4749_v22 = vpop.f32.mrf.mxu1  ;;  %5392 = vmatpush.bf16.msra.mxu0 %v6598_v60 }
 0xe96   : > { %6507 = vmatmul.msk.bf16.gmra.mxu1 %vm941_vm2, %v4710_v14 }
 0xe97   : > { %v5079_v13 = vadd.f32 %v7254_v19, %v5078_v7 }
 0xe99   : > { %v5083_v61 = vsel %vm5082_vm5, %v7254_v19, %v5079_v13  ;;  %v6844_v19 = vld [vmem:[#allocation8 + $0xd4] sm:$0xf0]  ;;  %5393 = vmatpush.bf16.msra.mxu0 %v6590_v31 }
 0xe9a   : > { %v5088_v50 = vsel %vm5085_vm6, %v5087_v54, %v5083_v61  ;;  %v6586_v53 = vor.u32 %v6844_v19, %v6585_v51  ;;  %v6579_v54 = vld [vmem:[#allocation8 + $0xc8] sm:$0xf0]  ;;  %v9577_v51 = vld [vmem:[%s9746_s10 + $0x1] ss:$0 sm:$0xff] }
 0xe9b   : > { %v5089_v37 = vmul.f32 %v9428_v16, %v5088_v50  ;;  %v6582_v61 = vor.u32 %v6841_v55, %v6579_v54  ;;  %v6569_v50 = vld [vmem:[#allocation8 + $0xb0] sm:$0xf]  ;;  %v9582_v19 = vld [vmem:[%s9741_s5 + $0x1] ss:$0 sm:$0xff] }
 0xe9c   : > { %5364 = vmatpush.bf16.msrb.mxu3 %v6586_v53  ;;  %v9558_v43 = vpop.f32.mrf.mxu3  ;;  %v3397_v63 = vmul.f32 %v9582_v19, %v3384_v1 }
 0xe9d   : > { %v4751_v8 = vpop.f32.mrf.mxu1  ;;  %v5093_v0 = vpack.c.bf16 %v5089_v37, %v5074_v44  ;;  %5394 = vmatpush.bf16.msra.mxu0 %v6582_v61  ;;  %v6840_v44 = vld [vmem:[#allocation8 + $0xb4] sm:$0xf0]  ;;  %v6839_v37 = vld [vmem:[#allocation8 + $0xb4] sm:$0xf] }
 0xe9e   : > { %v4765_v21 = vpack.c.bf16 %v4751_v8, %v4749_v22  ;;  %v6842_v22 = vld [vmem:[#allocation8 + $0xc4] sm:$0xf0]  ;;  %v6570_v8 = vor.u32 %v6840_v44, %v6569_v50 }
 0xe9f   : > { %6527 = vmatmul.msk.bf16.gmra.mxu2 %vm941_vm2, %v5093_v0  ;;  %v6578_v13 = vor.u32 %v6842_v22, %v6577_v5  ;;  %v6571_v0 = vld [vmem:[#allocation8 + $0xb8] sm:$0xf0]  ;;  %v4432_v5 = vadd.f32 %v9043_v57, %v9556_v12 }
 0xea0   : > { %6517 = vmatmul.msk.bf16.gmra.mxu3 %vm1306_vm1, %v4765_v21  ;;  %v6574_v21 = vor.u32 %v6839_v37, %v6571_v0 }
 0xea1   : > { %5365 = vmatpush.bf16.msrb.mxu3 %v6578_v13  ;;  %v9889_v13 = vld [vmem:[#allocation29_spill] sm:$0xff] }
 0xea2   : > { %5395 = vmatpush.bf16.msra.mxu0 %v6574_v21  ;;  %v9890_v21 = vld [vmem:[#allocation39_spill] sm:$0xff] }
 0xea4   : > { %v9561_v18 = vpop.f32.mrf.mxu3 }
 0xea5   : > { %5366 = vmatpush.bf16.msrb.mxu3 %v6570_v8 }
 0xeac   : > { %v9564_v7 = vpop.f32.mrf.mxu3 }
 0xeb4   : > { %v9566_v45 = vpop.f32.mrf.mxu3 }
 0xecf   : > { %v5127_v6 = vpop.f32.mrf.mxu2 }
 0xed7   : > { %v5129_v40 = vpop.f32.mrf.mxu2 }
 0xed8   : > { %v5147_v17 = vpack.c.bf16 %v5129_v40, %v5127_v6  ;;  %v6837_v6 = vld [vmem:[#allocation8 + $0xa4] sm:$0xf]  ;;  %v6562_v40 = vor.u32 %v6838_v24, %v6561_v48  ;;  %v4434_v48 = vadd.f32 %v9890_v21, %v9558_v43 }
 0xeda   : > { %6536 = vmatmul.msk.bf16.vlgmr.msrb.gmra.mxu1 %vm1306_vm1, %v5147_v17  ;;  %v4754_v38 = vpop.f32.mrf.mxu1  ;;  %v6563_v17 = vld [vmem:[#allocation8 + $0xa8] sm:$0xf0]  ;;  %5367 = vmatpush.bf16.msrb.mxu3 %v6562_v40  ;;  %v9891_v40 = vld [vmem:[#allocation35_spill] sm:$0xff] }
 0xedf   : > { %v5132_v26 = vpop.f32.mrf.mxu2 }
 0xee2   : > { %v4756_v35 = vpop.f32.mrf.mxu1 }
 0xee3   : > { %v4766_v16 = vpack.c.bf16 %v4756_v35, %v4754_v38  ;;  %v6566_v38 = vor.u32 %v6837_v6, %v6563_v17  ;;  %v6553_v35 = vld [vmem:[#allocation8 + $0x90] sm:$0xf] }
 0xee4   : > { %v9892_v17 = vld [vmem:[#allocation37_spill] sm:$0xff] }
 0xee5   : > { %6518 = vmatmul.msk.bf16.gmra.mxu3 %vm1306_vm1, %v4766_v16  ;;  %5396 = vmatpush.bf16.msra.mxu0 %v6566_v38  ;;  %v6836_v16 = vld [vmem:[#allocation8 + $0x94] sm:$0xf0]  ;;  %v3387_v38 = vadd.f32 %v9892_v17, %v9891_v40  ;;  %v9900_v17 = vld [vmem:[#allocation36_spill] sm:$0xff] }
 0xee7   : > { %v5134_v2 = vpop.f32.mrf.mxu2 }
 0xee8   : > { %v5148_v25 = vpack.c.bf16 %v5134_v2, %v5132_v26  ;;  %v9568_v26 = vpop.f32.mrf.mxu3  ;;  %v6835_v2 = vld [vmem:[#allocation8 + $0x94] sm:$0xf] }
 0xeea   : > { %6537 = vmatmul.msk.bf16.gmra.mxu1 %vm1306_vm1, %v5148_v25  ;;  %v6554_v25 = vor.u32 %v6836_v16, %v6553_v35 }
 0xeec   : > { %5368 = vmatpush.bf16.msrb.mxu3 %v6554_v25 }
 0xef0   : > { %v5137_v39 = vpop.f32.mrf.mxu2 }
 0xef8   : > { %v5139_v42 = vpop.f32.mrf.mxu2 }
 0xef9   : > { %v5149_v20 = vpack.c.bf16 %v5139_v42, %v5137_v39  ;;  %v6555_v39 = vld [vmem:[#allocation8 + $0x98] sm:$0xf0] }
 0xefa   : > { %v6558_v42 = vor.u32 %v6835_v2, %v6555_v39 }
 0xefb   : > { %6538 = vmatmul.msk.bf16.gmra.mxu1 %vm1306_vm1, %v5149_v20  ;;  %v6545_v20 = vld [vmem:[#allocation8 + $0x80] sm:$0xf] }
 0xefc   : > { %5397 = vmatpush.bf16.msra.mxu0 %v6558_v42  ;;  %v6546_v15 = vor.u32 %v6834_v23, %v6545_v20  ;;  %v3400_v42 = vmul.f32 %v9582_v19, %v3387_v38 }
 0xefe   : > { %5369 = vmatpush.bf16.msrb.mxu3 %v6546_v15  ;;  %v9893_v15 = vld [vmem:[#allocation40_spill] sm:$0xff] }
 0xeff   : > { %v4437_v52 = vadd.f32 %v9893_v15, %v9561_v18  ;;  %v9903_v15 = vld [vmem:[#allocation32_spill] sm:$0xff] }
 0xf00   : > { %5398 = vmatpush.bf16.msra.mxu0 %v6550_v36 }
 0xf13   : > { %v4759_v11 = vpop.f32.mrf.mxu1  ;;  %v4801_v27 = vpop.f32.mrf.mxu3 }
 0xf14   : > { %v4821_v30 = vadd.f32 %v4801_v27, %v4427_v41  ;;  %v9894_v27 = vld [vmem:[#allocation31_spill] sm:$0xff]  ;;  %v9895_v41 = vld [vmem:[#allocation33_spill] sm:$0xff] }
 0xf15   : > { %v3388_v1 = vadd.f32 %v9895_v41, %v9894_v27  ;;  %v9904_v41 = vld [vmem:[#allocation38_spill] sm:$0xff] }
 0xf1b   : > { %v4761_v34 = vpop.f32.mrf.mxu1  ;;  %v4803_v47 = vpop.f32.mrf.mxu3 }
 0xf1c   : > { %v4767_v4 = vpack.c.bf16 %v4761_v34, %v4759_v11  ;;  %v9597_v11 = vld [vmem:[%s9742_s6 + $0x1] ss:$0 sm:$0xff]  ;;  %v4822_v31 = vadd.f32 %v4803_v47, %v4429_v46 }
 0xf1d   : > { %v3410_v53 = vadd.f32 %v9597_v11, %v3397_v63  ;;  %v3413_v32 = vadd.f32 %v9597_v11, %v3400_v42 }
 0xf1e   : > { %6519 = vmatmul.msk.bf16.gmra.mxu3 %vm1306_vm1, %v4767_v4 }
 0xf22   : > { %v5142_v59 = vpop.f32.mrf.mxu2 }
 0xf23   : > { %v4806_v58 = vpop.f32.mrf.mxu3 }
 0xf24   : > { %v4823_v61 = vadd.f32 %v4806_v58, %v4432_v5 }
 0xf2a   : > { %v5144_v14 = vpop.f32.mrf.mxu2 }
 0xf2b   : > { %v5150_v29 = vpack.c.bf16 %v5144_v14, %v5142_v59  ;;  %v4808_v12 = vpop.f32.mrf.mxu3 }
 0xf2c   : > { %v4824_v35 = vadd.f32 %v4808_v12, %v4434_v48  ;;  %v9899_v12 = vld [vmem:[#allocation42_spill] sm:$0xff] }
 0xf2d   : > { %6539 = vmatmul.msk.bf16.gmra.mxu1 %vm1306_vm1, %v5150_v29  ;;  %v4442_v21 = vadd.f32 %v9899_v12, %v9566_v45 }
 0xf57   : > { %v5184_v3 = vpop.f32.mrf.mxu1 }
 0xf58   : > { %v5204_v60 = vadd.f32 %v5184_v3, %v4821_v30 }
 0xf5a   : > { %v5212_v56 = vadd.f32 %v5204_v60, %v8702_v33  ;;  %v3385_v33 = vadd.f32 %v8814_v62, %v8705_v28  ;;  %v9888_v62 = vld [vmem:[#allocation27_spill] sm:$0xff] }
 0xf5b   : > { %v3386_v54 = vadd.f32 %v9889_v13, %v9888_v62 }
 0xf5c   : > { %v5225_v49 = vmul.f32 %v9577_v51, %v5212_v56  ;;  %v3398_v9 = vmul.f32 %v9582_v19, %v3385_v33  ;;  %v3401_v56 = vmul.f32 %v9582_v19, %v3388_v1 }
 0xf5d   : > { %v3399_v0 = vmul.f32 %v9582_v19, %v3386_v54 }
 0xf5e   : > { %v5238_v34 = vadd.f32 %v9589_v10, %v5225_v49  ;;  %v3411_v55 = vadd.f32 %v9597_v11, %v3398_v9  ;;  %v9896_v49 = vld [vmem:[#allocation41_spill] sm:$0xff] }
 0xf5f   : > { %v5186_v4 = vpop.f32.mrf.mxu1  ;;  %v3412_v6 = vadd.f32 %v9597_v11, %v3399_v0  ;;  %v6863_v0 = vld [vmem:[#allocation10 + $0xf0] sm:$0xff] }
 0xf60   : > { %v9603_v59 = vadd.f32 %v5238_v34, %v3410_v53  ;;  %v5205_v14 = vadd.f32 %v5186_v4, %v4822_v31  ;;  %v4439_v53 = vadd.f32 %v9896_v49, %v9564_v7  ;;  %v3414_v31 = vadd.f32 %v9597_v11, %v3401_v56  ;;  %v9897_v34 = vld [vmem:[#allocation28_spill] sm:$0xff]  ;;  %v9898_v4 = vld [vmem:[#allocation30_spill] sm:$0xff]  ;;  %v6542_v49 = vld [vmem:[%s9749_s13 + $0x2] sm:$0x3] }
 0xf61   : > { %v6858_v56 = vld [vmem:[#allocation10 + $0xc8] sm:$0xff] }
 0xf62   : > { %v5213_v29 = vadd.f32 %v5205_v14, %v8705_v28  ;;  %v3389_v14 = vadd.f32 %v9898_v4, %v9897_v34 }
 0xf64   : > { %v5226_v22 = vmul.f32 %v9577_v51, %v5213_v29 }
 0xf66   : > { %v5239_v50 = vadd.f32 %v9589_v10, %v5226_v22 }
 0xf67   : > { %v5189_v44 = vpop.f32.mrf.mxu1 }
 0xf68   : > { %v9614_v37 = vadd.f32 %v5239_v50, %v3411_v55  ;;  %v5206_v8 = vadd.f32 %v5189_v44, %v4823_v61  ;;  %v4811_v20 = vpop.f32.mrf.mxu3  ;;  %v3402_v55 = vmul.f32 %v9582_v19, %v3389_v14  ;;  %v6864_v44 = vld [vmem:[#allocation10 + $0xf8] sm:$0xff]  ;;  %v6855_v19 = vld [vmem:[#allocation10 + $0xb0] sm:$0xff]  ;;  %v5278_v14 = vperm.slane %v6542_v49, 0 }
 0xf69   : > { %v4825_v30 = vadd.f32 %v4811_v20, %v4437_v52  ;;  %5602 = vmatpush.bf16.msra.mxu1 %v6864_v44 }
 0xf6a   : > { %v5254_v28 = vpack.c.bf16 %v9614_v37, %v9603_v59  ;;  %v5214_v57 = vadd.f32 %v5206_v8, %v9888_v62  ;;  %v3415_v13 = vadd.f32 %v9597_v11, %v3402_v55  ;;  %v6856_v8 = vld [vmem:[#allocation10 + $0xb8] sm:$0xff]  ;;  %v6854_v11 = vld [vmem:[#allocation10 + $0xa8] sm:$0xff] }
 0xf6b   : > { %5573 = vmatpush.bf16.msra.mxu2 %v6856_v8 }
 0xf6c   : > { %v5227_v24 = vmul.f32 %v9577_v51, %v5214_v57  ;;  %5370 = vmatmul.bf16.vlgmr.msrb.gmra.mxu3 %v5254_v28  ;;  %5399 = vmatmul.bf16.vlgmr.msra.gmra.mxu0 %v5254_v28  ;;  %v6862_v57 = vld [vmem:[#allocation10 + $0xe8] sm:$0xff] }
 0xf6d   : > { %5603 = vmatpush.bf16.msra.mxu1 %v6863_v0 }
 0xf6e   : > { %v5240_v16 = vadd.f32 %v9589_v10, %v5227_v24  ;;  %v6861_v24 = vld [vmem:[#allocation10 + $0xe0] sm:$0xff] }
 0xf6f   : > { %v5191_v2 = vpop.f32.mrf.mxu1  ;;  %5574 = vmatpush.bf16.msra.mxu2 %v6855_v19 }
 0xf70   : > { %v5207_v25 = vadd.f32 %v5191_v2, %v4824_v35  ;;  %v9627_v39 = vadd.f32 %v5240_v16, %v3412_v6  ;;  %v4813_v18 = vpop.f32.mrf.mxu3  ;;  %v9901_v16 = vld [vmem:[#allocation43_spill] sm:$0xff] }
 0xf71   : > { %v4826_v58 = vadd.f32 %v4813_v18, %v4439_v53  ;;  %5604 = vmatpush.bf16.msra.mxu1 %v6862_v57  ;;  %v4444_v2 = vadd.f32 %v9901_v16, %v9568_v26  ;;  %v6849_v18 = vld [vmem:[#allocation10 + $0x80] sm:$0xff] }
 0xf72   : > { %v5215_v43 = vadd.f32 %v5207_v25, %v9891_v40 }
 0xf73   : > { %5575 = vmatpush.bf16.msra.mxu2 %v6854_v11 }
 0xf74   : > { %v5228_v23 = vmul.f32 %v9577_v51, %v5215_v43 }
 0xf75   : > { %5605 = vmatpush.bf16.msra.mxu1 %v6861_v24 }
 0xf76   : > { %v5241_v36 = vadd.f32 %v9589_v10, %v5228_v23  ;;  %v9902_v23 = vld [vmem:[#allocation34_spill] sm:$0xff] }
 0xf78   : > { %v9638_v47 = vadd.f32 %v5241_v36, %v3413_v32  ;;  %v5194_v3 = vpop.f32.mrf.mxu1 }
 0xf79   : > { %v5208_v60 = vadd.f32 %v5194_v3, %v4825_v30  ;;  %v6860_v30 = vld [vmem:[#allocation10 + $0xd8] sm:$0xff]  ;;  %v6853_v3 = vld [vmem:[#allocation10 + $0xa0] sm:$0xff] }
 0xf7a   : > { %v5255_v63 = vpack.c.bf16 %v9638_v47, %v9627_v39  ;;  %5606 = vmatpush.bf16.msra.mxu1 %v6860_v30  ;;  %5576 = vmatpush.bf16.msra.mxu2 %v6853_v3 }
 0xf7b   : > { %v5216_v46 = vadd.f32 %v5208_v60, %v9894_v27  ;;  %v6859_v60 = vld [vmem:[#allocation10 + $0xd0] sm:$0xff] }
 0xf7c   : > { %5375 = vmatmul.bf16.gmra.mxu3 %v5255_v63  ;;  %5404 = vmatmul.bf16.gmra.mxu0 %v5255_v63  ;;  %v6852_v63 = vld [vmem:[#allocation10 + $0x98] sm:$0xff] }
 0xf7d   : > { %v5229_v33 = vmul.f32 %v9577_v51, %v5216_v46  ;;  %v6850_v46 = vld [vmem:[#allocation10 + $0x88] sm:$0xff] }
 0xf7e   : > { %5607 = vmatpush.bf16.msra.mxu1 %v6859_v60  ;;  %5577 = vmatpush.bf16.msra.mxu2 %v6852_v63 }
 0xf7f   : > { %v5242_v9 = vadd.f32 %v9589_v10, %v5229_v33  ;;  %v5279_v33 = vperm.slane %v6542_v49, 1 }
 0xf80   : > { %v5196_v29 = vpop.f32.mrf.mxu1 }
 0xf81   : > { %v5209_v5 = vadd.f32 %v5196_v29, %v4826_v58  ;;  %v9651_v22 = vadd.f32 %v5242_v9, %v3414_v31 }
 0xf82   : > { %5608 = vmatpush.bf16.msra.mxu1 %v6858_v56 }
 0xf83   : > { %v5217_v62 = vadd.f32 %v5209_v5, %v9897_v34 }
 0xf85   : > { %v5230_v7 = vmul.f32 %v9577_v51, %v5217_v62 }
 0xf87   : > { %v5243_v54 = vadd.f32 %v9589_v10, %v5230_v7 }
 0xf89   : > { %v9658_v61 = vadd.f32 %v5243_v54, %v3415_v13 }
 0xf8b   : > { %v5256_v50 = vpack.c.bf16 %v9658_v61, %v9651_v22 }
 0xf8d   : > { %5380 = vmatmul.bf16.gmra.mxu3 %v5256_v50  ;;  %5409 = vmatmul.bf16.gmra.mxu0 %v5256_v50 }
 0xfa1   : > { %v4816_v28 = vpop.f32.mrf.mxu3 }
 0xfa2   : > { %v4827_v48 = vadd.f32 %v4816_v28, %v4442_v21 }
 0xfa9   : > { %v4818_v35 = vpop.f32.mrf.mxu3 }
 0xfaa   : > { %v5199_v6 = vpop.f32.mrf.mxu1  ;;  %v4828_v42 = vadd.f32 %v4818_v35, %v4444_v2 }
 0xfab   : > { %v5210_v40 = vadd.f32 %v5199_v6, %v4827_v48 }
 0xfad   : > { %v5218_v38 = vadd.f32 %v5210_v40, %v9900_v17 }
 0xfaf   : > { %v5231_v25 = vmul.f32 %v9577_v51, %v5218_v38 }
 0xfb1   : > { %v5244_v43 = vadd.f32 %v9589_v10, %v5231_v25 }
 0xfb2   : > { %v5201_v20 = vpop.f32.mrf.mxu1 }
 0xfb3   : > { %v5211_v45 = vadd.f32 %v5201_v20, %v4828_v42  ;;  %v9670_v32 = vadd.f32 %v5244_v43, %v9902_v23 }
 0xfb5   : > { %v5219_v52 = vadd.f32 %v5211_v45, %v9903_v15 }
 0xfb7   : > { %v5232_v36 = vmul.f32 %v9577_v51, %v5219_v52  ;;  %v6851_v51 = vld [vmem:[#allocation10 + $0x90] sm:$0xff] }
 0xfb8   : > { %5578 = vmatpush.bf16.msra.mxu2 %v6851_v51 }
 0xfb9   : > { %v5245_v27 = vadd.f32 %v9589_v10, %v5232_v36  ;;  %v6857_v10 = vld [vmem:[#allocation10 + $0xc0] sm:$0xff] }
 0xfba   : > { %5609 = vmatpush.bf16.msra.mxu1 %v6857_v10 }
 0xfbb   : > { %v9676_v1 = vadd.f32 %v5245_v27, %v9904_v41 }
 0xfbc   : > { %5579 = vmatpush.bf16.msra.mxu2 %v6850_v46 }
 0xfbd   : > { %v5257_v26 = vpack.c.bf16 %v9676_v1, %v9670_v32 }
 0xfbf   : > { %5385 = vmatmul.bf16.gmra.mxu3 %v5257_v26  ;;  %5414 = vmatmul.bf16.gmra.mxu0 %v5257_v26 }
 0xfc0   : > { %5580 = vmatpush.bf16.msra.mxu2 %v6849_v18 }
 0xfe9   : > { %v5400_v53 = vpop.f32.mrf.mxu0 }
 0xfea   : > { %v5401_v34 = vadd.f32 %v5400_v53, %v5279_v33 }
 0xfec   : > { %v5421_v9 = vmax.f32 %v5401_v34, 0.0  ;;  %v6872_v34 = vld [vmem:[#allocation11 + $0x38] sm:$0xff] }
 0xfed   : > { %5737 = vmatpush.bf16.msra.mxu3 %v6872_v34  ;;  %v6998_v34 = vld [vmem:[%s9906_s24] ss:$0 sm:$0xff] }
 0xfef   : > { %v5371_v31 = vpop.f32.mrf.mxu3 }
 0xff0   : > { %v5372_v5 = vadd.f32 %v5371_v31, %v5278_v14 }
 0xff1   : > { %v5402_v4 = vpop.f32.mrf.mxu0 }
 0xff2   : > { %v5403_v58 = vadd.f32 %v5402_v4, %v5279_v33  ;;  %v5420_v54 = vmax.f32 %v5372_v5, 0.0  ;;  %v6871_v4 = vld [vmem:[#allocation11 + $0x30] sm:$0xff]  ;;  %v6866_v5 = vld [vmem:[#allocation11 + $0x8] sm:$0xff] }
 0xff3   : > { %5738 = vmatpush.bf16.msra.mxu3 %v6871_v4 }
 0xff4   : > { %v5423_v29 = vmax.f32 %v5403_v58, 0.0  ;;  %v6870_v58 = vld [vmem:[#allocation11 + $0x28] sm:$0xff] }
 0xff6   : > { %v5437_v55 = vpack.c.bf16 %v5423_v29, %v5421_v9  ;;  %v6869_v9 = vld [vmem:[#allocation11 + $0x20] sm:$0xff]  ;;  %v6867_v29 = vld [vmem:[#allocation11 + $0x10] sm:$0xff] }
 0xff7   : > { %v5373_v62 = vpop.f32.mrf.mxu3  ;;  %5739 = vmatpush.bf16.msra.mxu3 %v6870_v58 }
 0xff8   : > { %v5374_v7 = vadd.f32 %v5373_v62, %v5278_v14  ;;  %5610 = vmatmul.bf16.vlgmr.msra.gmra.mxu1 %v5437_v55 }
 0xff9   : > { %v5405_v13 = vpop.f32.mrf.mxu0 }
 0xffa   : > { %v5422_v50 = vmax.f32 %v5374_v7, 0.0  ;;  %v5406_v0 = vadd.f32 %v5405_v13, %v5279_v33 }
 0xffb   : > { %5740 = vmatpush.bf16.msra.mxu3 %v6869_v9 }
 0xffc   : > { %v5436_v44 = vpack.c.bf16 %v5422_v50, %v5420_v54  ;;  %v5425_v57 = vmax.f32 %v5406_v0, 0.0  ;;  %v6996_v50 = vld [vmem:[%s9751_s15 + $0x1] ss:$0 sm:$0xff] }
 0xffe   : > { %5581 = vmatmul.bf16.vlgmr.msra.gmra.mxu2 %v5436_v44 }
 0xfff   : > { %v5376_v8 = vpop.f32.mrf.mxu3 }
0x1000   : > { %v5377_v12 = vadd.f32 %v5376_v8, %v5278_v14 }
0x1001   : > { %v5407_v19 = vpop.f32.mrf.mxu0 }
0x1002   : > { %v5408_v28 = vadd.f32 %v5407_v19, %v5279_v33  ;;  %v5424_v6 = vmax.f32 %v5377_v12, 0.0  ;;  %v6997_v19 = vld [vmem:[%s9752_s16 + $0x1] ss:$0 sm:$0xff] }
0x1004   : > { %v5427_v11 = vmax.f32 %v5408_v28, 0.0 }
0x1006   : > { %v5439_v21 = vpack.c.bf16 %v5427_v11, %v5425_v57 }
0x1007   : > { %v5378_v48 = vpop.f32.mrf.mxu3 }
0x1008   : > { %v5379_v24 = vadd.f32 %v5378_v48, %v5278_v14  ;;  %5615 = vmatmul.bf16.gmra.mxu1 %v5439_v21 }
0x100a   : > { %v5426_v40 = vmax.f32 %v5379_v24, 0.0  ;;  %v5410_v17 = vpop.f32.mrf.mxu0 }
0x100b   : > { %v5411_v16 = vadd.f32 %v5410_v17, %v5279_v33 }
0x100c   : > { %v5438_v38 = vpack.c.bf16 %v5426_v40, %v5424_v6 }
0x100d   : > { %v5429_v42 = vmax.f32 %v5411_v16, 0.0 }
0x100e   : > { %5586 = vmatmul.bf16.gmra.mxu2 %v5438_v38 }
0x1010   : > { %v5381_v35 = vpop.f32.mrf.mxu3 }
0x1011   : > { %v5382_v20 = vadd.f32 %v5381_v35, %v5278_v14 }
0x1012   : > { %v5412_v2 = vpop.f32.mrf.mxu0 }
0x1013   : > { %v5413_v25 = vadd.f32 %v5412_v2, %v5279_v33  ;;  %v5428_v52 = vmax.f32 %v5382_v20, 0.0 }
0x1015   : > { %v5431_v43 = vmax.f32 %v5413_v25, 0.0 }
0x1017   : > { %v5441_v45 = vpack.c.bf16 %v5431_v43, %v5429_v42 }
0x1018   : > { %v5383_v23 = vpop.f32.mrf.mxu3 }
0x1019   : > { %v5384_v15 = vadd.f32 %v5383_v23, %v5278_v14  ;;  %5620 = vmatmul.bf16.gmra.mxu1 %v5441_v45 }
0x101b   : > { %v5430_v36 = vmax.f32 %v5384_v15, 0.0 }
0x101d   : > { %v5440_v27 = vpack.c.bf16 %v5430_v36, %v5428_v52 }
0x101f   : > { %5591 = vmatmul.bf16.gmra.mxu2 %v5440_v27 }
0x103c   : > { %v5415_v41 = vpop.f32.mrf.mxu0 }
0x103d   : > { %v5416_v30 = vadd.f32 %v5415_v41, %v5279_v33 }
0x103f   : > { %v5433_v63 = vmax.f32 %v5416_v30, 0.0 }
0x1042   : > { %v5386_v26 = vpop.f32.mrf.mxu3 }
0x1043   : > { %v5387_v51 = vadd.f32 %v5386_v26, %v5278_v14 }
0x1044   : > { %v5417_v3 = vpop.f32.mrf.mxu0 }
0x1045   : > { %v5418_v60 = vadd.f32 %v5417_v3, %v5279_v33  ;;  %v5432_v49 = vmax.f32 %v5387_v51, 0.0  ;;  %v6868_v33 = vld [vmem:[#allocation11 + $0x18] sm:$0xff] }
0x1046   : > { %5741 = vmatpush.bf16.msra.mxu3 %v6868_v33 }
0x1047   : > { %v5435_v56 = vmax.f32 %v5418_v60, 0.0 }
0x1049   : > { %v5443_v10 = vpack.c.bf16 %v5435_v56, %v5433_v63 }
0x104a   : > { %v5388_v46 = vpop.f32.mrf.mxu3  ;;  %5742 = vmatpush.bf16.msra.mxu3 %v6867_v29 }
0x104b   : > { %v5389_v18 = vadd.f32 %v5388_v46, %v5278_v14  ;;  %5625 = vmatmul.bf16.gmra.mxu1 %v5443_v10  ;;  %v6865_v14 = vld [vmem:[#allocation11] sm:$0xff] }
0x104d   : > { %v5434_v53 = vmax.f32 %v5389_v18, 0.0 }
0x104e   : > { %5743 = vmatpush.bf16.msra.mxu3 %v6866_v5 }
0x104f   : > { %v5442_v31 = vpack.c.bf16 %v5434_v53, %v5432_v49 }
0x1051   : > { %5596 = vmatmul.bf16.gmra.mxu2 %v5442_v31 }
0x1052   : > { %5744 = vmatpush.bf16.msra.mxu3 %v6865_v14 }
0x1075   : > { %v5611_v55 = vpop.f32.mrf.mxu1 }
0x107d   : > { %v5613_v13 = vpop.f32.mrf.mxu1 }
0x1081   : > { %v5582_v62 = vpop.f32.mrf.mxu2 }
0x1082   : > { %v5612_v7 = vadd.f32 %v5611_v55, %v5582_v62 }
0x1084   : > { %v5631_v54 = vadd.f32 %v5612_v7, %v9603_v59 }
0x1085   : > { %v5616_v11 = vpop.f32.mrf.mxu1 }
0x1086   : > { %v5644_v0 = vmul.f32 %v6996_v50, %v5631_v54 }
0x1088   : > { %v5657_v12 = vadd.f32 %v6997_v19, %v5644_v0 }
0x1089   : > { %v5584_v44 = vpop.f32.mrf.mxu2 }
0x108a   : > { %v5614_v8 = vadd.f32 %v5613_v13, %v5584_v44 }
0x108c   : > { %v5632_v28 = vadd.f32 %v5614_v8, %v9614_v37 }
0x108d   : > { %v5618_v40 = vpop.f32.mrf.mxu1 }
0x108e   : > { %v5645_v57 = vmul.f32 %v6996_v50, %v5632_v28 }
0x1090   : > { %v5658_v21 = vadd.f32 %v6997_v19, %v5645_v57 }
0x1091   : > { %v5587_v48 = vpop.f32.mrf.mxu2 }
0x1092   : > { %v5665_v24 = vpack.c.bf16 %v5658_v21, %v5657_v12  ;;  %v5617_v59 = vadd.f32 %v5616_v11, %v5587_v48 }
0x1094   : > { %5745 = vmatmul.bf16.vlgmr.msra.gmra.mxu3 %v5665_v24  ;;  %v5633_v6 = vadd.f32 %v5617_v59, %v9627_v39 }
0x1096   : > { %v5646_v35 = vmul.f32 %v6996_v50, %v5633_v6  ;;  %v5621_v37 = vpop.f32.mrf.mxu1 }
0x1098   : > { %v5659_v25 = vadd.f32 %v6997_v19, %v5646_v35 }
0x1099   : > { %v5589_v17 = vpop.f32.mrf.mxu2 }
0x109a   : > { %v5619_v38 = vadd.f32 %v5618_v40, %v5589_v17 }
0x109c   : > { %v5634_v16 = vadd.f32 %v5619_v38, %v9638_v47 }
0x109e   : > { %v5647_v2 = vmul.f32 %v6996_v50, %v5634_v16  ;;  %v5623_v15 = vpop.f32.mrf.mxu1 }
0x10a0   : > { %v5660_v42 = vadd.f32 %v6997_v19, %v5647_v2 }
0x10a2   : > { %v5666_v43 = vpack.c.bf16 %v5660_v42, %v5659_v25  ;;  %v5592_v20 = vpop.f32.mrf.mxu2 }
0x10a3   : > { %v5622_v45 = vadd.f32 %v5621_v37, %v5592_v20 }
0x10a4   : > { %5750 = vmatmul.bf16.gmra.mxu3 %v5666_v43 }
0x10a5   : > { %v5635_v23 = vadd.f32 %v5622_v45, %v9651_v22 }
0x10a7   : > { %v5648_v39 = vmul.f32 %v6996_v50, %v5635_v23 }
0x10a9   : > { %v5661_v26 = vadd.f32 %v6997_v19, %v5648_v39 }
0x10aa   : > { %v5594_v52 = vpop.f32.mrf.mxu2 }
0x10ab   : > { %v5624_v36 = vadd.f32 %v5623_v15, %v5594_v52 }
0x10ad   : > { %v5636_v27 = vadd.f32 %v5624_v36, %v9658_v61 }
0x10af   : > { %v5649_v41 = vmul.f32 %v6996_v50, %v5636_v27 }
0x10b1   : > { %v5662_v30 = vadd.f32 %v6997_v19, %v5649_v41 }
0x10b3   : > { %v5667_v47 = vpack.c.bf16 %v5662_v30, %v5661_v26 }
0x10b5   : > { %5755 = vmatmul.bf16.gmra.mxu3 %v5667_v47 }
0x10c8   : > { %v5626_v3 = vpop.f32.mrf.mxu1 }
0x10d0   : > { %v5628_v51 = vpop.f32.mrf.mxu1 }
0x10d4   : > { %v5597_v60 = vpop.f32.mrf.mxu2 }
0x10d5   : > { %v5627_v63 = vadd.f32 %v5626_v3, %v5597_v60 }
0x10d7   : > { %v5637_v56 = vadd.f32 %v5627_v63, %v9670_v32 }
0x10d9   : > { %v5650_v46 = vmul.f32 %v6996_v50, %v5637_v56 }
0x10db   : > { %v5663_v61 = vadd.f32 %v6997_v19, %v5650_v46 }
0x10dc   : > { %v5599_v22 = vpop.f32.mrf.mxu2 }
0x10dd   : > { %v5629_v10 = vadd.f32 %v5628_v51, %v5599_v22 }
0x10df   : > { %v5638_v18 = vadd.f32 %v5629_v10, %v9676_v1 }
0x10e1   : > { %v5651_v49 = vmul.f32 %v6996_v50, %v5638_v18 }
0x10e3   : > { %v5664_v53 = vadd.f32 %v6997_v19, %v5651_v49 }
0x10e5   : > { %v5668_v31 = vpack.c.bf16 %v5664_v53, %v5663_v61 }
0x10e7   : > { %5760 = vmatmul.bf16.gmra.mxu3 %v5668_v31 }
0x1117   : > { %v5746_v4 = vpop.f32.mrf.mxu3 }
0x1118   : > { %v5747_v32 = vadd.f32 %v6998_v34, %v5746_v4 }
0x111a   : > { %5766 = vst [vmem:[%s710_s0] sm:$0xff] %v5747_v32 }
0x111f   : > { %v5748_v58 = vpop.f32.mrf.mxu3 }
0x1120   : > { %v5749_v9 = vadd.f32 %v6998_v34, %v5748_v58 }
0x1122   : > { %5767 = vst [vmem:[%s710_s0 + $0x8] sm:$0xff] %v5749_v9 }
0x1127   : > { %v5751_v1 = vpop.f32.mrf.mxu3 }
0x1128   : > { %v5752_v33 = vadd.f32 %v6998_v34, %v5751_v1 }
0x112a   : > { %5768 = vst [vmem:[%s710_s0 + $0x10] sm:$0xff] %v5752_v33 }
0x112f   : > { %v5753_v29 = vpop.f32.mrf.mxu3 }
0x1130   : > { %v5754_v5 = vadd.f32 %v6998_v34, %v5753_v29 }
0x1132   : > { %5769 = vst [vmem:[%s710_s0 + $0x18] sm:$0xff] %v5754_v5 }
0x1138   : > { %v5756_v14 = vpop.f32.mrf.mxu3 }
0x1139   : > { %v5757_v55 = vadd.f32 %v6998_v34, %v5756_v14 }
0x113b   : > { %5770 = vst [vmem:[%s710_s0 + $0x20] sm:$0xff] %v5757_v55 }
0x1140   : > { %v5758_v62 = vpop.f32.mrf.mxu3 }
0x1141   : > { %v5759_v7 = vadd.f32 %v6998_v34, %v5758_v62 }
0x1143   : > { %5771 = vst [vmem:[%s710_s0 + $0x28] sm:$0xff] %v5759_v7 }
0x116a   : > { %v5761_v13 = vpop.f32.mrf.mxu3 }
0x116b   : > { %v5762_v54 = vadd.f32 %v6998_v34, %v5761_v13 }
0x116d   : > { %5772 = vst [vmem:[%s710_s0 + $0x30] sm:$0xff] %v5762_v54 }
0x1172   : > { %v5763_v50 = vpop.f32.mrf.mxu3 }
0x1173   : > { %v5764_v44 = vadd.f32 %v6998_v34, %v5763_v50 }
0x1175   : > { %5773 = vst [vmem:[%s710_s0 + $0x38] sm:$0xff] %v5764_v44 }
0x1176   : > { %7470 = shalt.err (!%p7467_p8)
}
0x1177   : > { %s7538_s20 = smov 128   ;;  %s7539_s3 = smov 8  }
0x1178   : > { %6898 = dma.vmem_to_hbm [thread:$0]  (%p7678_p5), %s5788_s27, 1024, %s5790_s2, %s5775_s22, %s7538_s20, %s7538_s20, %s7539_s3  }
0x1179 PF: > { %s9909_s0 = sld [smem:[#allocation22_spill]] }
0x117a   : > { %s9910_s18 = sld [smem:[#allocation19_spill]] }
0x117f   : > { %p6935_p9 = scmp.ge.s32.totalorder %s9909_s0, 2 }
0x1180   : > { %s5804_s23 = sand.u32 1, %s9910_s18  }
0x1181   : > { %p6920_p10 = pnand %p6935_p9, %p7682_p6  ;;  %s5805_s25 = scalar_lea.sflag [#allocation4], %s5804_s23 }
0x1183   : > { %p6921_p11 = pneg %p6920_p10 }
0x1185   : > { %7504 = dma.done.wait (%p6921_p11), %s5805_s25, 1024  }
0x1186   : > { %7506 = vsyncadd (%p6921_p11), %s5805_s25, 4294966272  ;;  %s9912_s21 = sld [smem:[#allocation23_spill]] }
0x1187   : > { %s9913_s0 = sld [smem:[#allocation20_spill]] }
0x1188   : > { %s9914_s30 = sld [smem:[#allocation21_spill]] }
0x1189   : > { %s9915_s20 = sld [smem:[#allocation24_spill]] }
0x118c   : > { %p33_p12 = scmp.ge.s32.totalorder %s9912_s21, 6  }
0x118e   :  { %35 = sbr.rel (!%p33_p12) target bundleno = 16 (0x10), region = 172 }
0x1193   :  { %5811 = vsyncpa [#allocation3], 1 }
0x1194   :  { %5813 = vsyncpa [#allocation3 + $0x1], 1 }
0x1195   :  { %5814 = vsyncpa [#allocation6], 1 }
0x1196   :  { %5815 = vsyncpa [#allocation9], 1 }
0x1197   :  { %5816 = vsyncpa [#allocation12], 1 }
0x1198   :  { %5817 = vsyncpa [#allocation4], 1 }
0x1199   :  { %5819 = vsyncpa [#allocation4 + $0x1], 1 }

</bundles_post_ra>
